<compile_context>
chip_gen: v5e
topology: v5e:2x2
jax: 0.10.0
libtpu: 0.0.40
codegen_flags: <defaults>
</compile_context>

<pallas_src>
import functools

import jax
import jax.numpy as jnp
import numpy as np
from jax.experimental import pallas as pl
from jax.experimental.pallas import tpu as pltpu


def _round_up(x, m):
    return ((x + m - 1) // m) * m


def _to_nhwc(x):
    return jnp.transpose(x, (0, 2, 3, 1))


# ----------------------------------------------------------------------------
# Fused Pallas kernel: one grid step == one batch element.
# ----------------------------------------------------------------------------
def _fused_kernel(x_ref, dcw_ref, dcb_ref, w1_ref, b1_ref, w2_ref, b2_ref,
                  w3_ref, b3_ref, qkw_ref, qkb_ref, out_ref, scr_ref, *, H, W):
    HW = H * W

    # Column index of each flat pixel, (HW, 1).
    p = jax.lax.broadcasted_iota(jnp.int32, (HW, 1), 0)
    xc = jnp.bitwise_and(p, W - 1) if (W & (W - 1)) == 0 else p % W
    first_col = xc == 0          # source mask for taps with ox = +1
    last_col = xc == W - 1       # source mask for taps with ox = -1

    def shift_rows(a, s):
        """b[p] = a[p + s], zero-filled outside [0, HW). Static s."""
        if s == 0:
            return a
        z = jnp.zeros((abs(s), a.shape[1]), a.dtype)
        if s > 0:
            return jnp.concatenate([a[s:], z], axis=0)
        return jnp.concatenate([z, a[:s]], axis=0)

    def mish(y):
        # y * tanh(softplus(y)); with t = e^y:
        #   tanh(log(1+t)) = t*(t+2) / (t*(t+2) + 2)   (no cancellation)
        t = jnp.exp(jnp.minimum(y, 20.0))
        num = t * (t + 2.0)
        r = num * pl.reciprocal(num + 2.0, approx=True)
        return jnp.where(y > 20.0, y, y * r)

    def conv3x3(act_f32, w_ref, b_ref):
        """3x3 SAME conv on a flat (HW, C) activation.

        In-kernel im2col into the bf16 VMEM scratch (9 lane-aligned column
        blocks) followed by ONE MXU dot with the (9*C, N) weight.  Boundary
        handling: zero-fill for out-of-image rows (done by shift_rows) and
        source-side column masks for the left/right taps (2 selects total).
        """
        C = act_f32.shape[-1]
        act = act_f32.astype(jnp.bfloat16)              # single cast per conv
        src_m1 = jnp.where(last_col, 0.0, act)          # taps with ox = -1
        src_p1 = jnp.where(first_col, 0.0, act)         # taps with ox = +1
        srcs = {-1: src_m1, 0: act, 1: src_p1}
        t = 0
        for oy in (-1, 0, 1):
            for ox in (-1, 0, 1):
                scr_ref[:, t * C:(t + 1) * C] = shift_rows(srcs[ox], oy * W + ox)
                t += 1
        return jnp.dot(scr_ref[:, :9 * C], w_ref[...],
                       preferred_element_type=jnp.float32) + b_ref[...]

    # --- down_channel (1x1 conv): dis & ref rows batched in one matmul ------
    y = jnp.dot(x_ref[0], dcw_ref[...], preferred_element_type=jnp.float32)
    y = y + dcb_ref[...]
    f_dis = y[:HW]
    f_ref = y[HW:]
    # Each part is already a 128-lane multiple -> aligned block placement.
    f_cat = jnp.concatenate([f_dis - f_ref, f_dis, f_ref], axis=-1)

    # --- conv1a -> conv1b -> conv2 (3x3 + Mish), everything VMEM-resident ---
    h = mish(conv3x3(f_cat, w1_ref, b1_ref))
    h = mish(conv3x3(h, w2_ref, b2_ref))
    feat = mish(conv3x3(h, w3_ref, b3_ref))   # padded columns stay exactly 0
                                              # (zero-padded w3/b3, mish(0)=0)

    # --- q / k heads: one MXU dot (lane 0 = q, lane 1 = k) + pooling --------
    qk = jnp.dot(feat.astype(jnp.bfloat16), qkw_ref[...],
                 preferred_element_type=jnp.float32) + qkb_ref[...]
    q = qk[:, 0:1]
    kl = jnp.maximum(qk[:, 1:2], -60.0)                       # exp-overflow clamp
    ks = pl.reciprocal(1.0 + jnp.exp(-kl), approx=True)       # sigmoid
    num = jnp.sum(q * ks, axis=0, keepdims=True)              # (1, 1)
    den = jnp.sum(ks, axis=0, keepdims=True)
    pred = num * pl.reciprocal(den, approx=True)
    out_ref[0] = jnp.broadcast_to(pred, out_ref.shape[1:]).astype(out_ref.dtype)


# ----------------------------------------------------------------------------
# Wrapper: layout plumbing (NCHW->NHWC, weight reshape/pad/bf16) + pallas_call
# ----------------------------------------------------------------------------
def pixel_prediction_forward(params, first_dis_, first_ref_, first_dis, first_ref):
    """Inputs are NCHW (PyTorch convention). Returns pred of shape (B, 1)."""
    B, _, H, W = first_dis_.shape
    HW = H * W

    f_dis = jnp.concatenate([_to_nhwc(first_dis_), _to_nhwc(first_dis)], axis=-1)
    f_ref = jnp.concatenate([_to_nhwc(first_ref_), _to_nhwc(first_ref)], axis=-1)
    cin = f_dis.shape[-1]
    # rows 0:HW = dis pixels, rows HW:2HW = ref pixels, per batch element
    x = jnp.concatenate([f_dis.reshape(B, HW, cin),
                         f_ref.reshape(B, HW, cin)], axis=1).astype(jnp.bfloat16)

    co = params["dc_b"].shape[0]        # outchannels
    nh = params["c1a_b"].shape[0]       # d_hidn
    mid = params["c1b_b"].shape[0]      # 2*outchannels
    cop = _round_up(co, 128)            # padded down_channel / conv2 / head width
    nhp = _round_up(nh, 128)
    midp = _round_up(mid, 128)
    c1 = 3 * cop                        # f_cat width (three aligned blocks)

    dc_w = jnp.pad(params["dc_w"], ((0, 0), (0, cop - co))).astype(jnp.bfloat16)
    dc_b = jnp.pad(params["dc_b"], (0, cop - co)).reshape(1, cop).astype(jnp.float32)

    # conv1a: K = (tap, part, channel) -> flatten to (9 * 3*cop, nhp)
    w1 = params["c1a_w"].reshape(9, 3, co, nh)
    w1 = jnp.pad(w1, ((0, 0), (0, 0), (0, cop - co), (0, nhp - nh)))
    w1 = w1.reshape(9 * c1, nhp).astype(jnp.bfloat16)
    b1 = jnp.pad(params["c1a_b"], (0, nhp - nh)).reshape(1, nhp).astype(jnp.float32)

    w2 = params["c1b_w"].reshape(9, nh, mid)
    w2 = jnp.pad(w2, ((0, 0), (0, nhp - nh), (0, midp - mid)))
    w2 = w2.reshape(9 * nhp, midp).astype(jnp.bfloat16)
    b2 = jnp.pad(params["c1b_b"], (0, midp - mid)).reshape(1, midp).astype(jnp.float32)

    w3 = params["c2_w"].reshape(9, mid, co)
    w3 = jnp.pad(w3, ((0, 0), (0, midp - mid), (0, cop - co)))
    w3 = w3.reshape(9 * midp, cop).astype(jnp.bfloat16)
    b3 = jnp.pad(params["c2_b"], (0, cop - co)).reshape(1, cop).astype(jnp.float32)

    # q/k heads packed into one lane-dense (cop, 128) weight: lane0=q, lane1=k.
    qk_w = jnp.zeros((cop, 128), jnp.float32)
    qk_w = qk_w.at[:co, 0].set(params["q_w"][:, 0])
    qk_w = qk_w.at[:co, 1].set(params["k_w"][:, 0])
    qk_w = qk_w.astype(jnp.bfloat16)
    qk_b = jnp.zeros((1, 128), jnp.float32)
    qk_b = qk_b.at[0, 0].set(params["q_b"][0]).at[0, 1].set(params["k_b"][0])

    cmax = max(c1, nhp, midp)           # widest conv input -> im2col scratch size
    kernel = functools.partial(_fused_kernel, H=H, W=W)

    out = pl.pallas_call(
        kernel,
        out_shape=jax.ShapeDtypeStruct((B, 1, 128), jnp.float32),
        grid=(B,),
        in_specs=[
            pl.BlockSpec((1, 2 * HW, cin), lambda b: (b, 0, 0)),   # x
            pl.BlockSpec((cin, cop), lambda b: (0, 0)),            # dc_w
            pl.BlockSpec((1, cop), lambda b: (0, 0)),              # dc_b
            pl.BlockSpec((9 * c1, nhp), lambda b: (0, 0)),         # conv1a w (flat)
            pl.BlockSpec((1, nhp), lambda b: (0, 0)),              # conv1a b
            pl.BlockSpec((9 * nhp, midp), lambda b: (0, 0)),       # conv1b w (flat)
            pl.BlockSpec((1, midp), lambda b: (0, 0)),             # conv1b b
            pl.BlockSpec((9 * midp, cop), lambda b: (0, 0)),       # conv2 w (flat)
            pl.BlockSpec((1, cop), lambda b: (0, 0)),              # conv2 b
            pl.BlockSpec((cop, 128), lambda b: (0, 0)),            # q/k weights
            pl.BlockSpec((1, 128), lambda b: (0, 0)),              # q/k biases
        ],
        out_specs=pl.BlockSpec((1, 1, 128), lambda b: (b, 0, 0)),
        scratch_shapes=[pltpu.VMEM((HW, 9 * cmax), jnp.bfloat16)],  # im2col buffer
        compiler_params=pltpu.CompilerParams(
            dimension_semantics=("parallel",)),
    )(x, dc_w, dc_b, w1, b1, w2, b2, w3, b3, qk_w, qk_b)

    return out[:, 0, :1]                                           # (B, 1)


# ----------------------------------------------------------------------------
# Deterministic parameter init (matmul layout: (kh*kw*Cin, Cout))
# ----------------------------------------------------------------------------
def init_params(key, inchannels, outchannels, d_hidn):
    mid = 2 * outchannels

    def dense(k, fan_in, fan_out):
        kw, kb = jax.random.split(k)
        lim = 1.0 / np.sqrt(fan_in)
        w = jax.random.uniform(kw, (fan_in, fan_out), jnp.float32, -lim, lim)
        b = jax.random.uniform(kb, (fan_out,), jnp.float32, -lim, lim)
        return w, b

    ks = jax.random.split(key, 6)
    p = {}
    p["dc_w"], p["dc_b"] = dense(ks[0], inchannels, outchannels)          # 1x1
    p["c1a_w"], p["c1a_b"] = dense(ks[1], 9 * 3 * outchannels, d_hidn)    # 3x3
    p["c1b_w"], p["c1b_b"] = dense(ks[2], 9 * d_hidn, mid)                # 3x3
    p["c2_w"], p["c2_b"] = dense(ks[3], 9 * mid, outchannels)             # 3x3
    p["q_w"], p["q_b"] = dense(ks[4], outchannels, 1)                     # 1x1
    p["k_w"], p["k_b"] = dense(ks[5], outchannels, 1)                     # 1x1
    return p


# ----------------------------------------------------------------------------
# Pure-JAX reference (for correctness check)
# ----------------------------------------------------------------------------
def ref_forward(params, first_dis_, first_ref_, first_dis, first_ref):
    mish = lambda x: x * jnp.tanh(jax.nn.softplus(x))

    def c1x1(x, w, b):
        return jnp.einsum("bhwc,cd->bhwd", x, w,
                          precision=jax.lax.Precision.HIGHEST) + b

    def c3x3(x, w, b):
        C = x.shape[-1]
        w4 = w.reshape(3, 3, C, -1)
        y = jax.lax.conv_general_dilated(
            x, w4, (1, 1), "SAME",
            dimension_numbers=("NHWC", "HWIO", "NHWC"),
            precision=jax.lax.Precision.HIGHEST)
        return y + b

    f_dis = jnp.concatenate([_to_nhwc(first_dis_), _to_nhwc(first_dis)], -1)
    f_ref = jnp.concatenate([_to_nhwc(first_ref_), _to_nhwc(first_ref)], -1)
    f_dis = c1x1(f_dis, params["dc_w"], params["dc_b"])
    f_ref = c1x1(f_ref, params["dc_w"], params["dc_b"])
    f_cat = jnp.concatenate([f_dis - f_ref, f_dis, f_ref], -1)
    x = mish(c3x3(f_cat, params["c1a_w"], params["c1a_b"]))
    x = mish(c3x3(x, params["c1b_w"], params["c1b_b"]))
    feat = mish(c3x3(x, params["c2_w"], params["c2_b"]))
    q = c1x1(feat, params["q_w"], params["q_b"])[..., 0]
    k = jax.nn.sigmoid(c1x1(feat, params["k_w"], params["k_b"])[..., 0])
    num = jnp.sum(q * k, axis=(1, 2))
    den = jnp.sum(k, axis=(1, 2))
    return (num / den)[:, None]


# ----------------------------------------------------------------------------
if __name__ == "__main__":
    # Small config (structure identical to Pixel_Prediction(512, 256, 1024),
    # channels scaled down 4x).
    B, H, W = 2, 8, 8
    inchannels, outchannels, d_hidn = 128, 64, 256
    half = inchannels // 2

    key = jax.random.PRNGKey(0)
    kp, k0, k1, k2, k3 = jax.random.split(key, 5)
    params = init_params(kp, inchannels, outchannels, d_hidn)

    first_dis_ = jax.random.normal(k0, (B, half, H, W), jnp.float32)
    first_ref_ = jax.random.normal(k1, (B, half, H, W), jnp.float32)
    first_dis = jax.random.normal(k2, (B, half, H, W), jnp.float32)
    first_ref = jax.random.normal(k3, (B, half, H, W), jnp.float32)

    fwd = jax.jit(pixel_prediction_forward)
    pred = jax.block_until_ready(
        fwd(params, first_dis_, first_ref_, first_dis, first_ref))
    assert pred.shape == (B, 1), pred.shape

    pred_ref = jax.block_until_ready(
        ref_forward(params, first_dis_, first_ref_, first_dis, first_ref))
    np.testing.assert_allclose(np.asarray(pred), np.asarray(pred_ref),
                               rtol=2e-2, atol=2e-2)

    print("KERNEL_OK")
</pallas_src>

<mosaic_0001>
module attributes {stable_mosaic.version = 11 : i64} {
  func.func @_fused_kernel(%arg0: i32, %arg1: memref<1x128x128xbf16, #tpu.memory_space<vmem>>, %arg2: memref<128x128xbf16, #tpu.memory_space<vmem>>, %arg3: memref<1x128xf32, #tpu.memory_space<vmem>>, %arg4: memref<3456x256xbf16, #tpu.memory_space<vmem>>, %arg5: memref<1x256xf32, #tpu.memory_space<vmem>>, %arg6: memref<2304x128xbf16, #tpu.memory_space<vmem>>, %arg7: memref<1x128xf32, #tpu.memory_space<vmem>>, %arg8: memref<1152x128xbf16, #tpu.memory_space<vmem>>, %arg9: memref<1x128xf32, #tpu.memory_space<vmem>>, %arg10: memref<128x128xbf16, #tpu.memory_space<vmem>>, %arg11: memref<1x128xf32, #tpu.memory_space<vmem>>, %arg12: memref<1x1x128xf32, #tpu.memory_space<vmem>>, %arg13: memref<64x3456xbf16, #tpu.memory_space<vmem>>) attributes {dimension_semantics = [#tpu.dimension_semantics<parallel>], iteration_bounds = array<i64: 2>, scalar_prefetch = 0 : i64, scratch_operands = 1 : i64, tpu.core_type = #tpu.core_type<tc>, window_params = [{transform_indices = @transform_0, window_bounds = array<i64: 1, 128, 128>}, {pipeline_mode = #tpu.pipeline_mode<synchronous>, transform_indices = @transform_1, window_bounds = array<i64: 128, 128>}, {pipeline_mode = #tpu.pipeline_mode<synchronous>, transform_indices = @transform_2, window_bounds = array<i64: 1, 128>}, {pipeline_mode = #tpu.pipeline_mode<synchronous>, transform_indices = @transform_3, window_bounds = array<i64: 3456, 256>}, {pipeline_mode = #tpu.pipeline_mode<synchronous>, transform_indices = @transform_4, window_bounds = array<i64: 1, 256>}, {pipeline_mode = #tpu.pipeline_mode<synchronous>, transform_indices = @transform_5, window_bounds = array<i64: 2304, 128>}, {pipeline_mode = #tpu.pipeline_mode<synchronous>, transform_indices = @transform_6, window_bounds = array<i64: 1, 128>}, {pipeline_mode = #tpu.pipeline_mode<synchronous>, transform_indices = @transform_7, window_bounds = array<i64: 1152, 128>}, {pipeline_mode = #tpu.pipeline_mode<synchronous>, transform_indices = @transform_8, window_bounds = array<i64: 1, 128>}, {pipeline_mode = #tpu.pipeline_mode<synchronous>, transform_indices = @transform_9, window_bounds = array<i64: 128, 128>}, {pipeline_mode = #tpu.pipeline_mode<synchronous>, transform_indices = @transform_10, window_bounds = array<i64: 1, 128>}, {transform_indices = @transform_11, window_bounds = array<i64: 1, 1, 128>}]} {
    %0 = tpu.iota {dimensions = array<i32: 0>} : vector<64x1xi32>
    %c7_i32 = arith.constant 7 : i32
    %1 = vector.broadcast %c7_i32 : i32 to vector<64x1xi32>
    %2 = arith.andi %0, %1 : vector<64x1xi32>
    %c0_i32 = arith.constant 0 : i32
    %3 = vector.broadcast %c0_i32 : i32 to vector<64x1xi32>
    %4 = arith.cmpi eq, %2, %3 : vector<64x1xi32>
    %c7_i32_0 = arith.constant 7 : i32
    %5 = vector.broadcast %c7_i32_0 : i32 to vector<64x1xi32>
    %6 = arith.cmpi eq, %2, %5 : vector<64x1xi32>
    %c0 = arith.constant 0 : index
    %c0_1 = arith.constant 0 : index
    %c0_2 = arith.constant 0 : index
    %7 = vector.load %arg1[%c0, %c0_1, %c0_2] : memref<1x128x128xbf16, #tpu.memory_space<vmem>>, vector<1x128x128xbf16>
    %8 = vector.shape_cast %7 : vector<1x128x128xbf16> to vector<128x128xbf16>
    %c0_3 = arith.constant 0 : index
    %c0_4 = arith.constant 0 : index
    %9 = vector.load %arg2[%c0_3, %c0_4] : memref<128x128xbf16, #tpu.memory_space<vmem>>, vector<128x128xbf16>
    %cst = arith.constant dense<0.000000e+00> : vector<128x128xf32>
    %10 = tpu.matmul %8, %9, %cst {dimension_numbers = #tpu.dot_dimension_numbers<[1], [0], [0], [1], [0, 0, 1, 1], [], []>} : vector<128x128xbf16>, vector<128x128xbf16>, vector<128x128xf32> -> vector<128x128xf32>
    %c0_5 = arith.constant 0 : index
    %c0_6 = arith.constant 0 : index
    %11 = vector.load %arg3[%c0_5, %c0_6] : memref<1x128xf32, #tpu.memory_space<vmem>>, vector<1x128xf32>
    %12 = vector.broadcast %11 : vector<1x128xf32> to vector<128x128xf32>
    %13 = arith.addf %10, %12 : vector<128x128xf32>
    %14 = vector.extract_strided_slice %13 {offsets = [0, 0], sizes = [64, 128], strides = [1, 1]} : vector<128x128xf32> to vector<64x128xf32>
    %15 = vector.extract_strided_slice %13 {offsets = [64, 0], sizes = [64, 128], strides = [1, 1]} : vector<128x128xf32> to vector<64x128xf32>
    %16 = arith.subf %14, %15 : vector<64x128xf32>
    %17 = tpu.concatenate %16, %14, %15 in 1 : vector<64x128xf32>, vector<64x128xf32>, vector<64x128xf32> -> vector<64x384xf32>
    %18 = arith.truncf %17 : vector<64x384xf32> to vector<64x384xbf16>
    %cst_7 = arith.constant 0.000000e+00 : f32
    %19 = arith.truncf %cst_7 : f32 to bf16
    %20 = vector.shape_cast %6 : vector<64x1xi1> to vector<64x1xi1>
    %21 = vector.broadcast %20 : vector<64x1xi1> to vector<64x384xi1>
    %22 = vector.broadcast %19 : bf16 to vector<64x384xbf16>
    %23 = arith.select %21, %22, %18 : vector<64x384xi1>, vector<64x384xbf16>
    %cst_8 = arith.constant 0.000000e+00 : f32
    %24 = arith.truncf %cst_8 : f32 to bf16
    %25 = vector.shape_cast %4 : vector<64x1xi1> to vector<64x1xi1>
    %26 = vector.broadcast %25 : vector<64x1xi1> to vector<64x384xi1>
    %27 = vector.broadcast %24 : bf16 to vector<64x384xbf16>
    %28 = arith.select %26, %27, %18 : vector<64x384xi1>, vector<64x384xbf16>
    %cst_9 = arith.constant 0.000000e+00 : bf16
    %29 = vector.broadcast %cst_9 : bf16 to vector<9x384xbf16>
    %30 = vector.extract_strided_slice %23 {offsets = [0, 0], sizes = [55, 384], strides = [1, 1]} : vector<64x384xbf16> to vector<55x384xbf16>
    %31 = tpu.concatenate %29, %30 in 0 : vector<9x384xbf16>, vector<55x384xbf16> -> vector<64x384xbf16>
    %c0_10 = arith.constant 0 : index
    %c0_11 = arith.constant 0 : index
    %32 = vector.load %arg13[%c0_10, %c0_11] : memref<64x3456xbf16, #tpu.memory_space<vmem>>, vector<64x384xbf16>
    tpu.vector_store %arg13[%c0_10, %c0_11], %31 {strides = array<i32>} : memref<64x3456xbf16, #tpu.memory_space<vmem>>, vector<64x384xbf16>,
    %cst_12 = arith.constant 0.000000e+00 : bf16
    %33 = vector.broadcast %cst_12 : bf16 to vector<8x384xbf16>
    %34 = vector.extract_strided_slice %18 {offsets = [0, 0], sizes = [56, 384], strides = [1, 1]} : vector<64x384xbf16> to vector<56x384xbf16>
    %35 = tpu.concatenate %33, %34 in 0 : vector<8x384xbf16>, vector<56x384xbf16> -> vector<64x384xbf16>
    %c0_13 = arith.constant 0 : index
    %c384 = arith.constant 384 : index
    %36 = vector.load %arg13[%c0_13, %c384] : memref<64x3456xbf16, #tpu.memory_space<vmem>>, vector<64x384xbf16>
    tpu.vector_store %arg13[%c0_13, %c384], %35 {strides = array<i32>} : memref<64x3456xbf16, #tpu.memory_space<vmem>>, vector<64x384xbf16>,
    %cst_14 = arith.constant 0.000000e+00 : bf16
    %37 = vector.broadcast %cst_14 : bf16 to vector<7x384xbf16>
    %38 = vector.extract_strided_slice %28 {offsets = [0, 0], sizes = [57, 384], strides = [1, 1]} : vector<64x384xbf16> to vector<57x384xbf16>
    %39 = tpu.concatenate %37, %38 in 0 : vector<7x384xbf16>, vector<57x384xbf16> -> vector<64x384xbf16>
    %c0_15 = arith.constant 0 : index
    %c768 = arith.constant 768 : index
    %40 = vector.load %arg13[%c0_15, %c768] : memref<64x3456xbf16, #tpu.memory_space<vmem>>, vector<64x384xbf16>
    tpu.vector_store %arg13[%c0_15, %c768], %39 {strides = array<i32>} : memref<64x3456xbf16, #tpu.memory_space<vmem>>, vector<64x384xbf16>,
    %cst_16 = arith.constant 0.000000e+00 : bf16
    %41 = vector.broadcast %cst_16 : bf16 to vector<1x384xbf16>
    %42 = vector.extract_strided_slice %23 {offsets = [0, 0], sizes = [63, 384], strides = [1, 1]} : vector<64x384xbf16> to vector<63x384xbf16>
    %43 = tpu.concatenate %41, %42 in 0 : vector<1x384xbf16>, vector<63x384xbf16> -> vector<64x384xbf16>
    %c0_17 = arith.constant 0 : index
    %c1152 = arith.constant 1152 : index
    %44 = vector.load %arg13[%c0_17, %c1152] : memref<64x3456xbf16, #tpu.memory_space<vmem>>, vector<64x384xbf16>
    tpu.vector_store %arg13[%c0_17, %c1152], %43 {strides = array<i32>} : memref<64x3456xbf16, #tpu.memory_space<vmem>>, vector<64x384xbf16>,
    %c0_18 = arith.constant 0 : index
    %c1536 = arith.constant 1536 : index
    %45 = vector.load %arg13[%c0_18, %c1536] : memref<64x3456xbf16, #tpu.memory_space<vmem>>, vector<64x384xbf16>
    tpu.vector_store %arg13[%c0_18, %c1536], %18 {strides = array<i32>} : memref<64x3456xbf16, #tpu.memory_space<vmem>>, vector<64x384xbf16>,
    %cst_19 = arith.constant 0.000000e+00 : bf16
    %46 = vector.broadcast %cst_19 : bf16 to vector<1x384xbf16>
    %47 = vector.extract_strided_slice %28 {offsets = [1, 0], sizes = [63, 384], strides = [1, 1]} : vector<64x384xbf16> to vector<63x384xbf16>
    %48 = tpu.concatenate %47, %46 in 0 : vector<63x384xbf16>, vector<1x384xbf16> -> vector<64x384xbf16>
    %c0_20 = arith.constant 0 : index
    %c1920 = arith.constant 1920 : index
    %49 = vector.load %arg13[%c0_20, %c1920] : memref<64x3456xbf16, #tpu.memory_space<vmem>>, vector<64x384xbf16>
    tpu.vector_store %arg13[%c0_20, %c1920], %48 {strides = array<i32>} : memref<64x3456xbf16, #tpu.memory_space<vmem>>, vector<64x384xbf16>,
    %cst_21 = arith.constant 0.000000e+00 : bf16
    %50 = vector.broadcast %cst_21 : bf16 to vector<7x384xbf16>
    %51 = vector.extract_strided_slice %23 {offsets = [7, 0], sizes = [57, 384], strides = [1, 1]} : vector<64x384xbf16> to vector<57x384xbf16>
    %52 = tpu.concatenate %51, %50 in 0 : vector<57x384xbf16>, vector<7x384xbf16> -> vector<64x384xbf16>
    %c0_22 = arith.constant 0 : index
    %c2304 = arith.constant 2304 : index
    %53 = vector.load %arg13[%c0_22, %c2304] : memref<64x3456xbf16, #tpu.memory_space<vmem>>, vector<64x384xbf16>
    tpu.vector_store %arg13[%c0_22, %c2304], %52 {strides = array<i32>} : memref<64x3456xbf16, #tpu.memory_space<vmem>>, vector<64x384xbf16>,
    %cst_23 = arith.constant 0.000000e+00 : bf16
    %54 = vector.broadcast %cst_23 : bf16 to vector<8x384xbf16>
    %55 = vector.extract_strided_slice %18 {offsets = [8, 0], sizes = [56, 384], strides = [1, 1]} : vector<64x384xbf16> to vector<56x384xbf16>
    %56 = tpu.concatenate %55, %54 in 0 : vector<56x384xbf16>, vector<8x384xbf16> -> vector<64x384xbf16>
    %c0_24 = arith.constant 0 : index
    %c2688 = arith.constant 2688 : index
    %57 = vector.load %arg13[%c0_24, %c2688] : memref<64x3456xbf16, #tpu.memory_space<vmem>>, vector<64x384xbf16>
    tpu.vector_store %arg13[%c0_24, %c2688], %56 {strides = array<i32>} : memref<64x3456xbf16, #tpu.memory_space<vmem>>, vector<64x384xbf16>,
    %cst_25 = arith.constant 0.000000e+00 : bf16
    %58 = vector.broadcast %cst_25 : bf16 to vector<9x384xbf16>
    %59 = vector.extract_strided_slice %28 {offsets = [9, 0], sizes = [55, 384], strides = [1, 1]} : vector<64x384xbf16> to vector<55x384xbf16>
    %60 = tpu.concatenate %59, %58 in 0 : vector<55x384xbf16>, vector<9x384xbf16> -> vector<64x384xbf16>
    %c0_26 = arith.constant 0 : index
    %c3072 = arith.constant 3072 : index
    %61 = vector.load %arg13[%c0_26, %c3072] : memref<64x3456xbf16, #tpu.memory_space<vmem>>, vector<64x384xbf16>
    tpu.vector_store %arg13[%c0_26, %c3072], %60 {strides = array<i32>} : memref<64x3456xbf16, #tpu.memory_space<vmem>>, vector<64x384xbf16>,
    %c0_27 = arith.constant 0 : index
    %c0_28 = arith.constant 0 : index
    %62 = vector.load %arg13[%c0_27, %c0_28] : memref<64x3456xbf16, #tpu.memory_space<vmem>>, vector<64x3456xbf16>
    %c0_29 = arith.constant 0 : index
    %c0_30 = arith.constant 0 : index
    %63 = vector.load %arg4[%c0_29, %c0_30] : memref<3456x256xbf16, #tpu.memory_space<vmem>>, vector<3456x256xbf16>
    %cst_31 = arith.constant dense<0.000000e+00> : vector<64x256xf32>
    %64 = tpu.matmul %62, %63, %cst_31 {dimension_numbers = #tpu.dot_dimension_numbers<[1], [0], [0], [1], [0, 0, 1, 1], [], []>} : vector<64x3456xbf16>, vector<3456x256xbf16>, vector<64x256xf32> -> vector<64x256xf32>
    %c0_32 = arith.constant 0 : index
    %c0_33 = arith.constant 0 : index
    %65 = vector.load %arg5[%c0_32, %c0_33] : memref<1x256xf32, #tpu.memory_space<vmem>>, vector<1x256xf32>
    %66 = vector.broadcast %65 : vector<1x256xf32> to vector<64x256xf32>
    %67 = arith.addf %64, %66 : vector<64x256xf32>
    %cst_34 = arith.constant 2.000000e+01 : f32
    %68 = vector.broadcast %cst_34 : f32 to vector<64x256xf32>
    %69 = arith.minimumf %67, %68 : vector<64x256xf32>
    %70 = math.exp %69 : vector<64x256xf32>
    %cst_35 = arith.constant 2.000000e+00 : f32
    %71 = vector.broadcast %cst_35 : f32 to vector<64x256xf32>
    %72 = arith.addf %70, %71 : vector<64x256xf32>
    %73 = arith.mulf %70, %72 : vector<64x256xf32>
    %cst_36 = arith.constant 2.000000e+00 : f32
    %74 = vector.broadcast %cst_36 : f32 to vector<64x256xf32>
    %75 = arith.addf %73, %74 : vector<64x256xf32>
    %76 = tpu.reciprocal %75 {approx = true} : vector<64x256xf32> -> vector<64x256xf32>
    %77 = arith.mulf %73, %76 : vector<64x256xf32>
    %cst_37 = arith.constant 2.000000e+01 : f32
    %78 = vector.broadcast %cst_37 : f32 to vector<64x256xf32>
    %79 = arith.cmpf ogt, %67, %78 : vector<64x256xf32>
    %80 = arith.mulf %67, %77 : vector<64x256xf32>
    %81 = arith.select %79, %67, %80 : vector<64x256xi1>, vector<64x256xf32>
    %82 = arith.truncf %81 : vector<64x256xf32> to vector<64x256xbf16>
    %cst_38 = arith.constant 0.000000e+00 : f32
    %83 = arith.truncf %cst_38 : f32 to bf16
    %84 = vector.shape_cast %6 : vector<64x1xi1> to vector<64x1xi1>
    %85 = vector.broadcast %84 : vector<64x1xi1> to vector<64x256xi1>
    %86 = vector.broadcast %83 : bf16 to vector<64x256xbf16>
    %87 = arith.select %85, %86, %82 : vector<64x256xi1>, vector<64x256xbf16>
    %cst_39 = arith.constant 0.000000e+00 : f32
    %88 = arith.truncf %cst_39 : f32 to bf16
    %89 = vector.shape_cast %4 : vector<64x1xi1> to vector<64x1xi1>
    %90 = vector.broadcast %89 : vector<64x1xi1> to vector<64x256xi1>
    %91 = vector.broadcast %88 : bf16 to vector<64x256xbf16>
    %92 = arith.select %90, %91, %82 : vector<64x256xi1>, vector<64x256xbf16>
    %cst_40 = arith.constant 0.000000e+00 : bf16
    %93 = vector.broadcast %cst_40 : bf16 to vector<9x256xbf16>
    %94 = vector.extract_strided_slice %87 {offsets = [0, 0], sizes = [55, 256], strides = [1, 1]} : vector<64x256xbf16> to vector<55x256xbf16>
    %95 = tpu.concatenate %93, %94 in 0 : vector<9x256xbf16>, vector<55x256xbf16> -> vector<64x256xbf16>
    %c0_41 = arith.constant 0 : index
    %c0_42 = arith.constant 0 : index
    %96 = vector.load %arg13[%c0_41, %c0_42] : memref<64x3456xbf16, #tpu.memory_space<vmem>>, vector<64x256xbf16>
    tpu.vector_store %arg13[%c0_41, %c0_42], %95 {strides = array<i32>} : memref<64x3456xbf16, #tpu.memory_space<vmem>>, vector<64x256xbf16>,
    %cst_43 = arith.constant 0.000000e+00 : bf16
    %97 = vector.broadcast %cst_43 : bf16 to vector<8x256xbf16>
    %98 = vector.extract_strided_slice %82 {offsets = [0, 0], sizes = [56, 256], strides = [1, 1]} : vector<64x256xbf16> to vector<56x256xbf16>
    %99 = tpu.concatenate %97, %98 in 0 : vector<8x256xbf16>, vector<56x256xbf16> -> vector<64x256xbf16>
    %c0_44 = arith.constant 0 : index
    %c256 = arith.constant 256 : index
    %100 = vector.load %arg13[%c0_44, %c256] : memref<64x3456xbf16, #tpu.memory_space<vmem>>, vector<64x256xbf16>
    tpu.vector_store %arg13[%c0_44, %c256], %99 {strides = array<i32>} : memref<64x3456xbf16, #tpu.memory_space<vmem>>, vector<64x256xbf16>,
    %cst_45 = arith.constant 0.000000e+00 : bf16
    %101 = vector.broadcast %cst_45 : bf16 to vector<7x256xbf16>
    %102 = vector.extract_strided_slice %92 {offsets = [0, 0], sizes = [57, 256], strides = [1, 1]} : vector<64x256xbf16> to vector<57x256xbf16>
    %103 = tpu.concatenate %101, %102 in 0 : vector<7x256xbf16>, vector<57x256xbf16> -> vector<64x256xbf16>
    %c0_46 = arith.constant 0 : index
    %c512 = arith.constant 512 : index
    %104 = vector.load %arg13[%c0_46, %c512] : memref<64x3456xbf16, #tpu.memory_space<vmem>>, vector<64x256xbf16>
    tpu.vector_store %arg13[%c0_46, %c512], %103 {strides = array<i32>} : memref<64x3456xbf16, #tpu.memory_space<vmem>>, vector<64x256xbf16>,
    %cst_47 = arith.constant 0.000000e+00 : bf16
    %105 = vector.broadcast %cst_47 : bf16 to vector<1x256xbf16>
    %106 = vector.extract_strided_slice %87 {offsets = [0, 0], sizes = [63, 256], strides = [1, 1]} : vector<64x256xbf16> to vector<63x256xbf16>
    %107 = tpu.concatenate %105, %106 in 0 : vector<1x256xbf16>, vector<63x256xbf16> -> vector<64x256xbf16>
    %c0_48 = arith.constant 0 : index
    %c768_49 = arith.constant 768 : index
    %108 = vector.load %arg13[%c0_48, %c768_49] : memref<64x3456xbf16, #tpu.memory_space<vmem>>, vector<64x256xbf16>
    tpu.vector_store %arg13[%c0_48, %c768_49], %107 {strides = array<i32>} : memref<64x3456xbf16, #tpu.memory_space<vmem>>, vector<64x256xbf16>,
    %c0_50 = arith.constant 0 : index
    %c1024 = arith.constant 1024 : index
    %109 = vector.load %arg13[%c0_50, %c1024] : memref<64x3456xbf16, #tpu.memory_space<vmem>>, vector<64x256xbf16>
    tpu.vector_store %arg13[%c0_50, %c1024], %82 {strides = array<i32>} : memref<64x3456xbf16, #tpu.memory_space<vmem>>, vector<64x256xbf16>,
    %cst_51 = arith.constant 0.000000e+00 : bf16
    %110 = vector.broadcast %cst_51 : bf16 to vector<1x256xbf16>
    %111 = vector.extract_strided_slice %92 {offsets = [1, 0], sizes = [63, 256], strides = [1, 1]} : vector<64x256xbf16> to vector<63x256xbf16>
    %112 = tpu.concatenate %111, %110 in 0 : vector<63x256xbf16>, vector<1x256xbf16> -> vector<64x256xbf16>
    %c0_52 = arith.constant 0 : index
    %c1280 = arith.constant 1280 : index
    %113 = vector.load %arg13[%c0_52, %c1280] : memref<64x3456xbf16, #tpu.memory_space<vmem>>, vector<64x256xbf16>
    tpu.vector_store %arg13[%c0_52, %c1280], %112 {strides = array<i32>} : memref<64x3456xbf16, #tpu.memory_space<vmem>>, vector<64x256xbf16>,
    %cst_53 = arith.constant 0.000000e+00 : bf16
    %114 = vector.broadcast %cst_53 : bf16 to vector<7x256xbf16>
    %115 = vector.extract_strided_slice %87 {offsets = [7, 0], sizes = [57, 256], strides = [1, 1]} : vector<64x256xbf16> to vector<57x256xbf16>
    %116 = tpu.concatenate %115, %114 in 0 : vector<57x256xbf16>, vector<7x256xbf16> -> vector<64x256xbf16>
    %c0_54 = arith.constant 0 : index
    %c1536_55 = arith.constant 1536 : index
    %117 = vector.load %arg13[%c0_54, %c1536_55] : memref<64x3456xbf16, #tpu.memory_space<vmem>>, vector<64x256xbf16>
    tpu.vector_store %arg13[%c0_54, %c1536_55], %116 {strides = array<i32>} : memref<64x3456xbf16, #tpu.memory_space<vmem>>, vector<64x256xbf16>,
    %cst_56 = arith.constant 0.000000e+00 : bf16
    %118 = vector.broadcast %cst_56 : bf16 to vector<8x256xbf16>
    %119 = vector.extract_strided_slice %82 {offsets = [8, 0], sizes = [56, 256], strides = [1, 1]} : vector<64x256xbf16> to vector<56x256xbf16>
    %120 = tpu.concatenate %119, %118 in 0 : vector<56x256xbf16>, vector<8x256xbf16> -> vector<64x256xbf16>
    %c0_57 = arith.constant 0 : index
    %c1792 = arith.constant 1792 : index
    %121 = vector.load %arg13[%c0_57, %c1792] : memref<64x3456xbf16, #tpu.memory_space<vmem>>, vector<64x256xbf16>
    tpu.vector_store %arg13[%c0_57, %c1792], %120 {strides = array<i32>} : memref<64x3456xbf16, #tpu.memory_space<vmem>>, vector<64x256xbf16>,
    %cst_58 = arith.constant 0.000000e+00 : bf16
    %122 = vector.broadcast %cst_58 : bf16 to vector<9x256xbf16>
    %123 = vector.extract_strided_slice %92 {offsets = [9, 0], sizes = [55, 256], strides = [1, 1]} : vector<64x256xbf16> to vector<55x256xbf16>
    %124 = tpu.concatenate %123, %122 in 0 : vector<55x256xbf16>, vector<9x256xbf16> -> vector<64x256xbf16>
    %c0_59 = arith.constant 0 : index
    %c2048 = arith.constant 2048 : index
    %125 = vector.load %arg13[%c0_59, %c2048] : memref<64x3456xbf16, #tpu.memory_space<vmem>>, vector<64x256xbf16>
    tpu.vector_store %arg13[%c0_59, %c2048], %124 {strides = array<i32>} : memref<64x3456xbf16, #tpu.memory_space<vmem>>, vector<64x256xbf16>,
    %c0_60 = arith.constant 0 : index
    %c0_61 = arith.constant 0 : index
    %126 = vector.load %arg13[%c0_60, %c0_61] : memref<64x3456xbf16, #tpu.memory_space<vmem>>, vector<64x2304xbf16>
    %c0_62 = arith.constant 0 : index
    %c0_63 = arith.constant 0 : index
    %127 = vector.load %arg6[%c0_62, %c0_63] : memref<2304x128xbf16, #tpu.memory_space<vmem>>, vector<2304x128xbf16>
    %cst_64 = arith.constant dense<0.000000e+00> : vector<64x128xf32>
    %128 = tpu.matmul %126, %127, %cst_64 {dimension_numbers = #tpu.dot_dimension_numbers<[1], [0], [0], [1], [0, 0, 1, 1], [], []>} : vector<64x2304xbf16>, vector<2304x128xbf16>, vector<64x128xf32> -> vector<64x128xf32>
    %c0_65 = arith.constant 0 : index
    %c0_66 = arith.constant 0 : index
    %129 = vector.load %arg7[%c0_65, %c0_66] : memref<1x128xf32, #tpu.memory_space<vmem>>, vector<1x128xf32>
    %130 = vector.broadcast %129 : vector<1x128xf32> to vector<64x128xf32>
    %131 = arith.addf %128, %130 : vector<64x128xf32>
    %cst_67 = arith.constant 2.000000e+01 : f32
    %132 = vector.broadcast %cst_67 : f32 to vector<64x128xf32>
    %133 = arith.minimumf %131, %132 : vector<64x128xf32>
    %134 = math.exp %133 : vector<64x128xf32>
    %cst_68 = arith.constant 2.000000e+00 : f32
    %135 = vector.broadcast %cst_68 : f32 to vector<64x128xf32>
    %136 = arith.addf %134, %135 : vector<64x128xf32>
    %137 = arith.mulf %134, %136 : vector<64x128xf32>
    %cst_69 = arith.constant 2.000000e+00 : f32
    %138 = vector.broadcast %cst_69 : f32 to vector<64x128xf32>
    %139 = arith.addf %137, %138 : vector<64x128xf32>
    %140 = tpu.reciprocal %139 {approx = true} : vector<64x128xf32> -> vector<64x128xf32>
    %141 = arith.mulf %137, %140 : vector<64x128xf32>
    %cst_70 = arith.constant 2.000000e+01 : f32
    %142 = vector.broadcast %cst_70 : f32 to vector<64x128xf32>
    %143 = arith.cmpf ogt, %131, %142 : vector<64x128xf32>
    %144 = arith.mulf %131, %141 : vector<64x128xf32>
    %145 = arith.select %143, %131, %144 : vector<64x128xi1>, vector<64x128xf32>
    %146 = arith.truncf %145 : vector<64x128xf32> to vector<64x128xbf16>
    %cst_71 = arith.constant 0.000000e+00 : f32
    %147 = arith.truncf %cst_71 : f32 to bf16
    %148 = vector.shape_cast %6 : vector<64x1xi1> to vector<64x1xi1>
    %149 = vector.broadcast %148 : vector<64x1xi1> to vector<64x128xi1>
    %150 = vector.broadcast %147 : bf16 to vector<64x128xbf16>
    %151 = arith.select %149, %150, %146 : vector<64x128xi1>, vector<64x128xbf16>
    %cst_72 = arith.constant 0.000000e+00 : f32
    %152 = arith.truncf %cst_72 : f32 to bf16
    %153 = vector.shape_cast %4 : vector<64x1xi1> to vector<64x1xi1>
    %154 = vector.broadcast %153 : vector<64x1xi1> to vector<64x128xi1>
    %155 = vector.broadcast %152 : bf16 to vector<64x128xbf16>
    %156 = arith.select %154, %155, %146 : vector<64x128xi1>, vector<64x128xbf16>
    %cst_73 = arith.constant 0.000000e+00 : bf16
    %157 = vector.broadcast %cst_73 : bf16 to vector<9x128xbf16>
    %158 = vector.extract_strided_slice %151 {offsets = [0, 0], sizes = [55, 128], strides = [1, 1]} : vector<64x128xbf16> to vector<55x128xbf16>
    %159 = tpu.concatenate %157, %158 in 0 : vector<9x128xbf16>, vector<55x128xbf16> -> vector<64x128xbf16>
    %c0_74 = arith.constant 0 : index
    %c0_75 = arith.constant 0 : index
    %160 = vector.load %arg13[%c0_74, %c0_75] : memref<64x3456xbf16, #tpu.memory_space<vmem>>, vector<64x128xbf16>
    tpu.vector_store %arg13[%c0_74, %c0_75], %159 {strides = array<i32>} : memref<64x3456xbf16, #tpu.memory_space<vmem>>, vector<64x128xbf16>,
    %cst_76 = arith.constant 0.000000e+00 : bf16
    %161 = vector.broadcast %cst_76 : bf16 to vector<8x128xbf16>
    %162 = vector.extract_strided_slice %146 {offsets = [0, 0], sizes = [56, 128], strides = [1, 1]} : vector<64x128xbf16> to vector<56x128xbf16>
    %163 = tpu.concatenate %161, %162 in 0 : vector<8x128xbf16>, vector<56x128xbf16> -> vector<64x128xbf16>
    %c0_77 = arith.constant 0 : index
    %c128 = arith.constant 128 : index
    %164 = vector.load %arg13[%c0_77, %c128] : memref<64x3456xbf16, #tpu.memory_space<vmem>>, vector<64x128xbf16>
    tpu.vector_store %arg13[%c0_77, %c128], %163 {strides = array<i32>} : memref<64x3456xbf16, #tpu.memory_space<vmem>>, vector<64x128xbf16>,
    %cst_78 = arith.constant 0.000000e+00 : bf16
    %165 = vector.broadcast %cst_78 : bf16 to vector<7x128xbf16>
    %166 = vector.extract_strided_slice %156 {offsets = [0, 0], sizes = [57, 128], strides = [1, 1]} : vector<64x128xbf16> to vector<57x128xbf16>
    %167 = tpu.concatenate %165, %166 in 0 : vector<7x128xbf16>, vector<57x128xbf16> -> vector<64x128xbf16>
    %c0_79 = arith.constant 0 : index
    %c256_80 = arith.constant 256 : index
    %168 = vector.load %arg13[%c0_79, %c256_80] : memref<64x3456xbf16, #tpu.memory_space<vmem>>, vector<64x128xbf16>
    tpu.vector_store %arg13[%c0_79, %c256_80], %167 {strides = array<i32>} : memref<64x3456xbf16, #tpu.memory_space<vmem>>, vector<64x128xbf16>,
    %cst_81 = arith.constant 0.000000e+00 : bf16
    %169 = vector.broadcast %cst_81 : bf16 to vector<1x128xbf16>
    %170 = vector.extract_strided_slice %151 {offsets = [0, 0], sizes = [63, 128], strides = [1, 1]} : vector<64x128xbf16> to vector<63x128xbf16>
    %171 = tpu.concatenate %169, %170 in 0 : vector<1x128xbf16>, vector<63x128xbf16> -> vector<64x128xbf16>
    %c0_82 = arith.constant 0 : index
    %c384_83 = arith.constant 384 : index
    %172 = vector.load %arg13[%c0_82, %c384_83] : memref<64x3456xbf16, #tpu.memory_space<vmem>>, vector<64x128xbf16>
    tpu.vector_store %arg13[%c0_82, %c384_83], %171 {strides = array<i32>} : memref<64x3456xbf16, #tpu.memory_space<vmem>>, vector<64x128xbf16>,
    %c0_84 = arith.constant 0 : index
    %c512_85 = arith.constant 512 : index
    %173 = vector.load %arg13[%c0_84, %c512_85] : memref<64x3456xbf16, #tpu.memory_space<vmem>>, vector<64x128xbf16>
    tpu.vector_store %arg13[%c0_84, %c512_85], %146 {strides = array<i32>} : memref<64x3456xbf16, #tpu.memory_space<vmem>>, vector<64x128xbf16>,
    %cst_86 = arith.constant 0.000000e+00 : bf16
    %174 = vector.broadcast %cst_86 : bf16 to vector<1x128xbf16>
    %175 = vector.extract_strided_slice %156 {offsets = [1, 0], sizes = [63, 128], strides = [1, 1]} : vector<64x128xbf16> to vector<63x128xbf16>
    %176 = tpu.concatenate %175, %174 in 0 : vector<63x128xbf16>, vector<1x128xbf16> -> vector<64x128xbf16>
    %c0_87 = arith.constant 0 : index
    %c640 = arith.constant 640 : index
    %177 = vector.load %arg13[%c0_87, %c640] : memref<64x3456xbf16, #tpu.memory_space<vmem>>, vector<64x128xbf16>
    tpu.vector_store %arg13[%c0_87, %c640], %176 {strides = array<i32>} : memref<64x3456xbf16, #tpu.memory_space<vmem>>, vector<64x128xbf16>,
    %cst_88 = arith.constant 0.000000e+00 : bf16
    %178 = vector.broadcast %cst_88 : bf16 to vector<7x128xbf16>
    %179 = vector.extract_strided_slice %151 {offsets = [7, 0], sizes = [57, 128], strides = [1, 1]} : vector<64x128xbf16> to vector<57x128xbf16>
    %180 = tpu.concatenate %179, %178 in 0 : vector<57x128xbf16>, vector<7x128xbf16> -> vector<64x128xbf16>
    %c0_89 = arith.constant 0 : index
    %c768_90 = arith.constant 768 : index
    %181 = vector.load %arg13[%c0_89, %c768_90] : memref<64x3456xbf16, #tpu.memory_space<vmem>>, vector<64x128xbf16>
    tpu.vector_store %arg13[%c0_89, %c768_90], %180 {strides = array<i32>} : memref<64x3456xbf16, #tpu.memory_space<vmem>>, vector<64x128xbf16>,
    %cst_91 = arith.constant 0.000000e+00 : bf16
    %182 = vector.broadcast %cst_91 : bf16 to vector<8x128xbf16>
    %183 = vector.extract_strided_slice %146 {offsets = [8, 0], sizes = [56, 128], strides = [1, 1]} : vector<64x128xbf16> to vector<56x128xbf16>
    %184 = tpu.concatenate %183, %182 in 0 : vector<56x128xbf16>, vector<8x128xbf16> -> vector<64x128xbf16>
    %c0_92 = arith.constant 0 : index
    %c896 = arith.constant 896 : index
    %185 = vector.load %arg13[%c0_92, %c896] : memref<64x3456xbf16, #tpu.memory_space<vmem>>, vector<64x128xbf16>
    tpu.vector_store %arg13[%c0_92, %c896], %184 {strides = array<i32>} : memref<64x3456xbf16, #tpu.memory_space<vmem>>, vector<64x128xbf16>,
    %cst_93 = arith.constant 0.000000e+00 : bf16
    %186 = vector.broadcast %cst_93 : bf16 to vector<9x128xbf16>
    %187 = vector.extract_strided_slice %156 {offsets = [9, 0], sizes = [55, 128], strides = [1, 1]} : vector<64x128xbf16> to vector<55x128xbf16>
    %188 = tpu.concatenate %187, %186 in 0 : vector<55x128xbf16>, vector<9x128xbf16> -> vector<64x128xbf16>
    %c0_94 = arith.constant 0 : index
    %c1024_95 = arith.constant 1024 : index
    %189 = vector.load %arg13[%c0_94, %c1024_95] : memref<64x3456xbf16, #tpu.memory_space<vmem>>, vector<64x128xbf16>
    tpu.vector_store %arg13[%c0_94, %c1024_95], %188 {strides = array<i32>} : memref<64x3456xbf16, #tpu.memory_space<vmem>>, vector<64x128xbf16>,
    %c0_96 = arith.constant 0 : index
    %c0_97 = arith.constant 0 : index
    %190 = vector.load %arg13[%c0_96, %c0_97] : memref<64x3456xbf16, #tpu.memory_space<vmem>>, vector<64x1152xbf16>
    %c0_98 = arith.constant 0 : index
    %c0_99 = arith.constant 0 : index
    %191 = vector.load %arg8[%c0_98, %c0_99] : memref<1152x128xbf16, #tpu.memory_space<vmem>>, vector<1152x128xbf16>
    %cst_100 = arith.constant dense<0.000000e+00> : vector<64x128xf32>
    %192 = tpu.matmul %190, %191, %cst_100 {dimension_numbers = #tpu.dot_dimension_numbers<[1], [0], [0], [1], [0, 0, 1, 1], [], []>} : vector<64x1152xbf16>, vector<1152x128xbf16>, vector<64x128xf32> -> vector<64x128xf32>
    %c0_101 = arith.constant 0 : index
    %c0_102 = arith.constant 0 : index
    %193 = vector.load %arg9[%c0_101, %c0_102] : memref<1x128xf32, #tpu.memory_space<vmem>>, vector<1x128xf32>
    %194 = vector.broadcast %193 : vector<1x128xf32> to vector<64x128xf32>
    %195 = arith.addf %192, %194 : vector<64x128xf32>
    %cst_103 = arith.constant 2.000000e+01 : f32
    %196 = vector.broadcast %cst_103 : f32 to vector<64x128xf32>
    %197 = arith.minimumf %195, %196 : vector<64x128xf32>
    %198 = math.exp %197 : vector<64x128xf32>
    %cst_104 = arith.constant 2.000000e+00 : f32
    %199 = vector.broadcast %cst_104 : f32 to vector<64x128xf32>
    %200 = arith.addf %198, %199 : vector<64x128xf32>
    %201 = arith.mulf %198, %200 : vector<64x128xf32>
    %cst_105 = arith.constant 2.000000e+00 : f32
    %202 = vector.broadcast %cst_105 : f32 to vector<64x128xf32>
    %203 = arith.addf %201, %202 : vector<64x128xf32>
    %204 = tpu.reciprocal %203 {approx = true} : vector<64x128xf32> -> vector<64x128xf32>
    %205 = arith.mulf %201, %204 : vector<64x128xf32>
    %cst_106 = arith.constant 2.000000e+01 : f32
    %206 = vector.broadcast %cst_106 : f32 to vector<64x128xf32>
    %207 = arith.cmpf ogt, %195, %206 : vector<64x128xf32>
    %208 = arith.mulf %195, %205 : vector<64x128xf32>
    %209 = arith.select %207, %195, %208 : vector<64x128xi1>, vector<64x128xf32>
    %210 = arith.truncf %209 : vector<64x128xf32> to vector<64x128xbf16>
    %c0_107 = arith.constant 0 : index
    %c0_108 = arith.constant 0 : index
    %211 = vector.load %arg10[%c0_107, %c0_108] : memref<128x128xbf16, #tpu.memory_space<vmem>>, vector<128x128xbf16>
    %cst_109 = arith.constant dense<0.000000e+00> : vector<64x128xf32>
    %212 = tpu.matmul %210, %211, %cst_109 {dimension_numbers = #tpu.dot_dimension_numbers<[1], [0], [0], [1], [0, 0, 1, 1], [], []>} : vector<64x128xbf16>, vector<128x128xbf16>, vector<64x128xf32> -> vector<64x128xf32>
    %c0_110 = arith.constant 0 : index
    %c0_111 = arith.constant 0 : index
    %213 = vector.load %arg11[%c0_110, %c0_111] : memref<1x128xf32, #tpu.memory_space<vmem>>, vector<1x128xf32>
    %214 = vector.broadcast %213 : vector<1x128xf32> to vector<64x128xf32>
    %215 = arith.addf %212, %214 : vector<64x128xf32>
    %216 = vector.extract_strided_slice %215 {offsets = [0, 0], sizes = [64, 1], strides = [1, 1]} : vector<64x128xf32> to vector<64x1xf32>
    %217 = vector.extract_strided_slice %215 {offsets = [0, 1], sizes = [64, 1], strides = [1, 1]} : vector<64x128xf32> to vector<64x1xf32>
    %cst_112 = arith.constant -6.000000e+01 : f32
    %218 = vector.broadcast %cst_112 : f32 to vector<64x1xf32>
    %219 = arith.maximumf %217, %218 : vector<64x1xf32>
    %cst_113 = arith.constant 0.000000e+00 : f32
    %220 = vector.broadcast %cst_113 : f32 to vector<64x1xf32>
    %221 = arith.subf %220, %219 : vector<64x1xf32>
    %222 = math.exp %221 : vector<64x1xf32>
    %cst_114 = arith.constant 1.000000e+00 : f32
    %223 = vector.broadcast %cst_114 : f32 to vector<64x1xf32>
    %224 = arith.addf %223, %222 : vector<64x1xf32>
    %225 = tpu.reciprocal %224 {approx = true} : vector<64x1xf32> -> vector<64x1xf32>
    %226 = arith.mulf %216, %225 : vector<64x1xf32>
    %cst_115 = arith.constant dense<0.000000e+00> : vector<1xf32>
    %227 = vector.multi_reduction <add>, %226, %cst_115 [0] : vector<64x1xf32> to vector<1xf32>
    %228 = vector.shape_cast %227 : vector<1xf32> to vector<1x1xf32>
    %cst_116 = arith.constant dense<0.000000e+00> : vector<1xf32>
    %229 = vector.multi_reduction <add>, %225, %cst_116 [0] : vector<64x1xf32> to vector<1xf32>
    %230 = vector.shape_cast %229 : vector<1xf32> to vector<1x1xf32>
    %231 = tpu.reciprocal %230 {approx = true} : vector<1x1xf32> -> vector<1x1xf32>
    %232 = arith.mulf %228, %231 : vector<1x1xf32>
    %233 = vector.shape_cast %232 : vector<1x1xf32> to vector<1x1xf32>
    %234 = vector.broadcast %233 : vector<1x1xf32> to vector<1x128xf32>
    %c0_117 = arith.constant 0 : index
    %c0_118 = arith.constant 0 : index
    %c0_119 = arith.constant 0 : index
    %235 = vector.load %arg12[%c0_117, %c0_118, %c0_119] : memref<1x1x128xf32, #tpu.memory_space<vmem>>, vector<1x1x128xf32>
    %236 = vector.shape_cast %235 : vector<1x1x128xf32> to vector<1x128xf32>
    %237 = vector.shape_cast %234 : vector<1x128xf32> to vector<1x1x128xf32>
    tpu.vector_store %arg12[%c0_117, %c0_118, %c0_119], %237 {strides = array<i32>} : memref<1x1x128xf32, #tpu.memory_space<vmem>>, vector<1x1x128xf32>,
    return
  }
  func.func @transform_0(%arg0: i32) -> (i32, i32, i32) {
    %c0_i32 = arith.constant 0 : i32
    %c0_i32_0 = arith.constant 0 : i32
    %c0_i32_1 = arith.constant 0 : i32
    return %arg0, %c0_i32, %c0_i32_0 : i32, i32, i32
  }
  func.func @transform_1(%arg0: i32) -> (i32, i32) {
    %c0_i32 = arith.constant 0 : i32
    %c0_i32_0 = arith.constant 0 : i32
    %c0_i32_1 = arith.constant 0 : i32
    return %c0_i32, %c0_i32_0 : i32, i32
  }
  func.func @transform_2(%arg0: i32) -> (i32, i32) {
    %c0_i32 = arith.constant 0 : i32
    %c0_i32_0 = arith.constant 0 : i32
    %c0_i32_1 = arith.constant 0 : i32
    return %c0_i32, %c0_i32_0 : i32, i32
  }
  func.func @transform_3(%arg0: i32) -> (i32, i32) {
    %c0_i32 = arith.constant 0 : i32
    %c0_i32_0 = arith.constant 0 : i32
    %c0_i32_1 = arith.constant 0 : i32
    return %c0_i32, %c0_i32_0 : i32, i32
  }
  func.func @transform_4(%arg0: i32) -> (i32, i32) {
    %c0_i32 = arith.constant 0 : i32
    %c0_i32_0 = arith.constant 0 : i32
    %c0_i32_1 = arith.constant 0 : i32
    return %c0_i32, %c0_i32_0 : i32, i32
  }
  func.func @transform_5(%arg0: i32) -> (i32, i32) {
    %c0_i32 = arith.constant 0 : i32
    %c0_i32_0 = arith.constant 0 : i32
    %c0_i32_1 = arith.constant 0 : i32
    return %c0_i32, %c0_i32_0 : i32, i32
  }
  func.func @transform_6(%arg0: i32) -> (i32, i32) {
    %c0_i32 = arith.constant 0 : i32
    %c0_i32_0 = arith.constant 0 : i32
    %c0_i32_1 = arith.constant 0 : i32
    return %c0_i32, %c0_i32_0 : i32, i32
  }
  func.func @transform_7(%arg0: i32) -> (i32, i32) {
    %c0_i32 = arith.constant 0 : i32
    %c0_i32_0 = arith.constant 0 : i32
    %c0_i32_1 = arith.constant 0 : i32
    return %c0_i32, %c0_i32_0 : i32, i32
  }
  func.func @transform_8(%arg0: i32) -> (i32, i32) {
    %c0_i32 = arith.constant 0 : i32
    %c0_i32_0 = arith.constant 0 : i32
    %c0_i32_1 = arith.constant 0 : i32
    return %c0_i32, %c0_i32_0 : i32, i32
  }
  func.func @transform_9(%arg0: i32) -> (i32, i32) {
    %c0_i32 = arith.constant 0 : i32
    %c0_i32_0 = arith.constant 0 : i32
    %c0_i32_1 = arith.constant 0 : i32
    return %c0_i32, %c0_i32_0 : i32, i32
  }
  func.func @transform_10(%arg0: i32) -> (i32, i32) {
    %c0_i32 = arith.constant 0 : i32
    %c0_i32_0 = arith.constant 0 : i32
    %c0_i32_1 = arith.constant 0 : i32
    return %c0_i32, %c0_i32_0 : i32, i32
  }
  func.func @transform_11(%arg0: i32) -> (i32, i32, i32) {
    %c0_i32 = arith.constant 0 : i32
    %c0_i32_0 = arith.constant 0 : i32
    %c0_i32_1 = arith.constant 0 : i32
    return %arg0, %c0_i32, %c0_i32_0 : i32, i32, i32
  }
}

</mosaic_0001>

<bundles_post_ra>
// kernel: pixel_prediction_forward.1
= control target key start
LH: loop header
LB: loop body
LE: loop exit
PB: predicated region body
PF: predicated region fallthrough
CT: control target
= control target key end

     0   :  { %s16376_s17 = smov 0   ;;  %s22988_s0 = inlined_call_operand.vmem [shape: bf16[2,128,128], index: 0, kind: input, shape index: {}]   ;;  %s22989_s1 = inlined_call_operand.vmem [shape: bf16[128,128], index: 1, kind: input, shape index: {}]   ;;  %s22990_s2 = inlined_call_operand.vmem [shape: f32[1,128], index: 2, kind: input, shape index: {}]   ;;  %s22991_s3 = inlined_call_operand.vmem [shape: bf16[3456,256], index: 3, kind: input, shape index: {}]   ;;  %s22992_s4 = inlined_call_operand.vmem [shape: f32[1,256], index: 4, kind: input, shape index: {}]   ;;  %s22993_s5 = inlined_call_operand.vmem [shape: bf16[2304,128], index: 5, kind: input, shape index: {}]   ;;  %s22994_s6 = inlined_call_operand.vmem [shape: f32[1,128], index: 6, kind: input, shape index: {}]   ;;  %s22995_s7 = inlined_call_operand.vmem [shape: bf16[1152,128], index: 7, kind: input, shape index: {}]   ;;  %s22996_s8 = inlined_call_operand.vmem [shape: f32[1,128], index: 8, kind: input, shape index: {}]   ;;  %s22997_s9 = inlined_call_operand.vmem [shape: bf16[128,128], index: 9, kind: input, shape index: {}]   ;;  %s22998_s10 = inlined_call_operand.vmem [shape: f32[1,128], index: 10, kind: input, shape index: {}]   ;;  %s22999_s11 = inlined_call_operand.vmem [shape: f32[2,1,128], index: 11, kind: output, shape index: {}]  }
   0x1 LB: > { %s11677_s18 = sadd.s32 4294967295, %s16312_s17   ;;  %p11681_p0 = scmp.ge.s32.totalorder %s16312_s17, 1  ;;  %s16312_s17 = sphi %s16376_s17, %s21_s17  }
   0x2   : > { %p337_p1 = scmp.lt.s32.totalorder %s16312_s17, 3 }
   0x4   : > { %p338_p2 = pnand %p11681_p0, %p337_p1 }
   0x6   : > { %341 = sbr.rel (%p338_p2) target bundleno = 2825 (0xb09), region = 64 }
   0xb   : > { %v15254_v0 = vld [vmem:[%s22989_s1 + $0x38] sm:$0xff]  ;;  %v15253_v1 = vld [vmem:[%s22989_s1 + $0x30] sm:$0xff]  ;;  %v15252_v2 = vld [vmem:[%s22989_s1 + $0x28] sm:$0xff]  ;;  %p375_p3 = scmp.lt.s32.totalorder %s11677_s18, 1  ;;  %v384_v23 = vlaneseq  ;;  %v23168_v57 = vmov 0  ;;  %v23171_v58 = vmov 0 }
   0xc   : > { %549 = vmatpush.bf16.msra.mxu0 %v15254_v0  ;;  %v15251_v3 = vld [vmem:[%s22989_s1 + $0x20] sm:$0xff]  ;;  %v15250_v4 = vld [vmem:[%s22989_s1 + $0x18] sm:$0xff]  ;;  %v15249_v5 = vld [vmem:[%s22989_s1 + $0x10] sm:$0xff]  ;;  %vm23025_vm4 = vcmask 1043456   ;;  %vm23028_vm9 = vsmask.f32 4352 }
   0xd   : > { %s23580_s18 = smov (!%p375_p3, %s11677_s18), 1  ;;  %v15248_v6 = vld [vmem:[%s22989_s1 + $0x8] sm:$0xff]  ;;  %v15247_v7 = vld [vmem:[%s22989_s1] sm:$0xff]  ;;  %v16422_v24 = vshrl.u32 %v384_v23, 7  ;;  %v12366_v25 = vld [vmem:[%s22991_s3 + $0x170] sm:$0xf] }
   0xe   : > { %s15238_s14 = sshll.u32 %s23580_s18, 6  ;;  %v15410_v26 = vld [vmem:[%s22991_s3 + $0x174] sm:$0xf0]  ;;  %v12238_v30 = vld [vmem:[%s22991_s3 + $0x70] sm:$0xf]  ;;  %vm858_vm10 = vcmask 1044480   ;;  %s382_s22 = scalar_lea.vmem %s22999_s11, %s23580_s18 }
   0xf   : > { %s379_s21 = scalar_lea.vmem %s22988_s0, %s15238_s14  ;;  %v393_v28 = vand.u32 7, %v16422_v24  ;;  %v12367_v29 = vor.u32 %v15410_v26, %v12366_v25  ;;  %v15378_v31 = vld [vmem:[%s22991_s3 + $0x74] sm:$0xf0]  ;;  %v12302_v32 = vld [vmem:[%s22991_s3 + $0xf0] sm:$0xf]  ;;  %v386_v41 = vadd.s32 8, %v16422_v24  ;;  %vm16656_vm12 = vmand %vm858_vm10, %vm23028_vm9 }
  0x10   : > { %550 = vmatpush.bf16.msra.mxu0 %v15253_v1  ;;  %v15239_v8 = vld [vmem:[%s379_s21] sm:$0xff]  ;;  %v15240_v9 = vld [vmem:[%s379_s21 + $0x8] sm:$0xff]  ;;  %v15241_v10 = vld [vmem:[%s379_s21 + $0x10] sm:$0xff]  ;;  %v12239_v33 = vor.u32 %v15378_v31, %v12238_v30  ;;  %v16499_v60 = vadd.s32 16, %v16422_v24  ;;  %vm23027_vm11 = vsmask.f32 3328 }
  0x11   : > { %v15242_v11 = vld [vmem:[%s379_s21 + $0x18] sm:$0xff]  ;;  %v15243_v12 = vld [vmem:[%s379_s21 + $0x20] sm:$0xff]  ;;  %v15244_v13 = vld [vmem:[%s379_s21 + $0x28] sm:$0xff]  ;;  %5165 = vmatpush.bf16.msra.mxu3 %v12367_v29  ;;  %vm16459_vm0 = vcmp.eq.s32.totalorder %v393_v28, 7  ;;  %vm401_vm1 = vcmp.eq.s32.totalorder %v393_v28, 0  ;;  %v394_v59 = vand.u32 7, %v386_v41 }
  0x12   : > { %v15245_v14 = vld [vmem:[%s379_s21 + $0x30] sm:$0xff]  ;;  %v15246_v15 = vld [vmem:[%s379_s21 + $0x38] sm:$0xff]  ;;  %v12358_v38 = vld [vmem:[%s22991_s3 + $0x160] sm:$0xf]  ;;  %5107 = vmatpush.bf16.msra.mxu1 %v12239_v33  ;;  %vm23026_vm13 = vsmask.f32 256 }
  0x13   : > { %v15394_v34 = vld [vmem:[%s22991_s3 + $0xf4] sm:$0xf0]  ;;  %v12622_v35 = vld [vmem:[%s22991_s3 + $0x370] sm:$0xf]  ;;  %v16457_v39 = vld [vmem:[%s22990_s2] ss:$0 sm:$0xff] }
  0x14   : > { %551 = vmatpush.bf16.msra.mxu0 %v15252_v2  ;;  %v12303_v36 = vor.u32 %v15394_v34, %v12302_v32  ;;  %v15474_v37 = vld [vmem:[%s22991_s3 + $0x374] sm:$0xf0]  ;;  %v15408_v43 = vld [vmem:[%s22991_s3 + $0x164] sm:$0xf0]  ;;  %v12230_v45 = vld [vmem:[%s22991_s3 + $0x60] sm:$0xf] }
  0x15   : > { %v12623_v42 = vor.u32 %v15474_v37, %v12622_v35  ;;  %v12359_v44 = vor.u32 %v15408_v43, %v12358_v38  ;;  %v15376_v46 = vld [vmem:[%s22991_s3 + $0x64] sm:$0xf0]  ;;  %v12294_v47 = vld [vmem:[%s22991_s3 + $0xe0] sm:$0xf]  ;;  %vm16490_vm2 = vmpackc.low %vm16459_vm0, %vm16459_vm0  ;;  %vm16511_vm5 = vcmp.eq.s32.totalorder %v394_v59, 0  ;;  %vm16515_vm6 = vcmp.eq.s32.totalorder %v394_v59, 7 }
  0x16   : > { %5136 = vmatpush.bf16.msra.mxu2 %v12303_v36  ;;  %v12231_v48 = vor.u32 %v15376_v46, %v12230_v45  ;;  %v15392_v49 = vld [vmem:[%s22991_s3 + $0xe4] sm:$0xf0]  ;;  %v12614_v50 = vld [vmem:[%s22991_s3 + $0x360] sm:$0xf]  ;;  %v23169_v57 = vsel %vm16490_vm2, 4294967295, %v23168_v57  ;;  %vm16494_vm3 = vmpackc.low %vm401_vm1, %vm401_vm1  ;;  %vm1342_vm14 = vcmask 1040384  }
  0x17   : > { %v15472_v51 = vld [vmem:[%s22991_s3 + $0x364] sm:$0xf0]  ;;  %5166 = vmatpush.bf16.msra.mxu3 %v12359_v44  ;;  %v12295_v52 = vor.u32 %v15392_v49, %v12294_v47  ;;  %23170 = vst [vmem:[#allocation3_spill] sm:$0xff] %v23169_v57  ;;  %v23172_v58 = vsel %vm16494_vm3, 4294967295, %v23171_v58  ;;  %v12222_v29 = vld [vmem:[%s22991_s3 + $0x50] sm:$0xf]  ;;  %vm16560_vm7 = vmpackc.low %vm16515_vm6, %vm16515_vm6 }
  0x18   : > { %552 = vmatpush.bf16.msra.mxu0 %v15251_v3  ;;  %v12615_v53 = vor.u32 %v15472_v51, %v12614_v50  ;;  %5108 = vmatpush.bf16.msra.mxu1 %v12231_v48  ;;  %23173 = vst [vmem:[#allocation4_spill] sm:$0xff] %v23172_v58  ;;  %v15374_v30 = vld [vmem:[%s22991_s3 + $0x54] sm:$0xf0]  ;;  %v12286_v35 = vld [vmem:[%s22991_s3 + $0xd0] sm:$0xf]  ;;  %vm16573_vm8 = vmpackc.low %vm16511_vm5, %vm16511_vm5  ;;  %v23181_v49 = vmov 0 }
  0x19   : > { %v12223_v34 = vor.u32 %v15374_v30, %v12222_v29  ;;  %v15390_v36 = vld [vmem:[%s22991_s3 + $0xd4] sm:$0xf0]  ;;  %v12606_v43 = vld [vmem:[%s22991_s3 + $0x350] sm:$0xf]  ;;  %v23182_v49 = vsel %vm16573_vm8, 4294967295, %v23181_v49  ;;  %vm16698_vm0 = vmand %vm23025_vm4, %vm23027_vm11  ;;  %s16314_s19 = smov 127  }
  0x1a   : > { %5137 = vmatpush.bf16.msra.mxu2 %v12295_v52  ;;  %v15470_v44 = vld [vmem:[%s22991_s3 + $0x354] sm:$0xf0]  ;;  %23183 = vst [vmem:[#allocation6_spill] sm:$0xff] %v23182_v49  ;;  %v12342_v50 = vld [vmem:[%s22991_s3 + $0x140] sm:$0xf]  ;;  %vm16736_vm5 = vmand %vm1342_vm14, %vm23026_vm13 }
  0x1b   : > { %v15372_v59 = vld [vmem:[%s22991_s3 + $0x44] sm:$0xf0] }
  0x1c   : > { %553 = vmatpush.bf16.msra.mxu0 %v15250_v4  ;;  %5109 = vmatpush.bf16.msra.mxu1 %v12223_v34 }
  0x20   : > { %554 = vmatpush.bf16.msra.mxu0 %v15249_v5 }
  0x24   : > { %555 = vmatpush.bf16.msra.mxu0 %v15248_v6 }
  0x28   : > { %556 = vmatpush.bf16.msra.mxu0 %v15247_v7  ;;  %v395_v7 = vand.u32 7, %v16499_v60 }
  0x2a   : > { %vm16686_vm15 = vcmp.eq.s32.totalorder %v395_v7, 0  ;;  %vm16728_vm1 = vcmp.eq.s32.totalorder %v395_v7, 7 }
  0x2b   : > { %557 = vmatmul.bf16.vlgmr.msra.gmra.mxu0 %v15239_v8  ;;  %vm16765_vm6 = vmpackc.low %vm16686_vm15, %vm16686_vm15 }
  0x2c   : > { %5281 = vmatpush.bf16.msrb.mxu0 %v12623_v42  ;;  %v23178_v42 = vmov 0  ;;  %vm16789_vm10 = vmpackc.low %vm16728_vm1, %vm16728_vm1 }
  0x2d   : > { %v23179_v42 = vsel %vm16560_vm7, 4294967295, %v23178_v42 }
  0x2e   : > { %23180 = vst [vmem:[#allocation5_spill] sm:$0xff] %v23179_v42  ;;  %v389_v42 = vadd.s32 32, %v16422_v24 }
  0x30   : > { %5282 = vmatpush.bf16.msrb.mxu0 %v12615_v53 }
  0x3b   : > { %562 = vmatmul.bf16.gmra.mxu0 %v15240_v9 }
  0x4b   : > { %567 = vmatmul.bf16.gmra.mxu0 %v15241_v10 }
  0x5b   : > { %572 = vmatmul.bf16.gmra.mxu0 %v15242_v11 }
  0x6b   : > { %577 = vmatmul.bf16.gmra.mxu0 %v15243_v12  ;;  %v12350_v12 = vld [vmem:[%s22991_s3 + $0x150] sm:$0xf] }
  0x7b   : > { %582 = vmatmul.bf16.gmra.mxu0 %v15244_v13 }
  0x8b   : > { %587 = vmatmul.bf16.gmra.mxu0 %v15245_v14 }
  0x9b   : > { %592 = vmatmul.bf16.gmra.mxu0 %v15246_v15 }
  0xa8   : > { %v558_v16 = vpop.f32.mrf.mxu0 }
  0xa9   : > { %v559_v55 = vadd.f32 %v16457_v39, %v558_v16 }
  0xb0   : > { %v560_v17 = vpop.f32.mrf.mxu0 }
  0xb1   : > { %v16502_v63 = vadd.f32 %v16457_v39, %v560_v17 }
  0xb8   : > { %v563_v18 = vpop.f32.mrf.mxu0 }
  0xb9   : > { %v16505_v0 = vadd.f32 %v16457_v39, %v563_v18  ;;  %v15406_v18 = vld [vmem:[%s22991_s3 + $0x154] sm:$0xf0] }
  0xba   : > { %v12351_v33 = vor.u32 %v15406_v18, %v12350_v12 }
  0xbc   : > { %5167 = vmatpush.bf16.msra.mxu3 %v12351_v33 }
  0xc0   : > { %v16414_v19 = vpop.f32.mrf.mxu0 }
  0xc8   : > { %v16416_v20 = vpop.f32.mrf.mxu0 }
  0xd0   : > { %v16418_v21 = vpop.f32.mrf.mxu0 }
  0xd8   : > { %v16420_v22 = vpop.f32.mrf.mxu0 }
  0xe0   : > { %v16430_v27 = vpop.f32.mrf.mxu0 }
  0xe8   : > { %v578_v54 = vpop.f32.mrf.mxu0 }
  0xe9   : > { %v579_v56 = vadd.f32 %v16457_v39, %v578_v54 }
  0xeb   : > { %v598_v61 = vsub.f32 %v559_v55, %v579_v56  ;;  %v607_v62 = vpack.c.bf16 %v579_v56, %v579_v56  ;;  %v12214_v56 = vld [vmem:[%s22991_s3 + $0x40] sm:$0xf] }
  0xed   : > { %v606_v1 = vpack.c.bf16 %v559_v55, %v598_v61  ;;  %v647_v2 = vsel %vm16490_vm2, 0, %v607_v62  ;;  %v687_v3 = vsel %vm16494_vm3, 0, %v607_v62  ;;  %v954_v4 = vunpack.c.l.b16 %v607_v62  ;;  %1423 = vst [vmem:[#allocation2 + $0x38] sm:$0xf] %v607_v62  ;;  %v15404_v55 = vld [vmem:[%s22991_s3 + $0x144] sm:$0xf0] }
  0xee   : > { %v16532_v14 = vunpack.c.l.b16 %v647_v2  ;;  %v16534_v16 = vunpack.c.l.b16 %v687_v3  ;;  %v12607_v2 = vor.u32 %v15470_v44, %v12606_v43 }
  0xef   : > { %v16522_v8 = vsel %vm16490_vm2, 0, %v606_v1  ;;  %v16526_v9 = vsel %vm16494_vm3, 0, %v606_v1  ;;  %v952_v10 = vunpack.c.l.b16 %v606_v1  ;;  %v953_v11 = vunpack.c.h.b16 %v606_v1  ;;  %1422 = vst [vmem:[#allocation2 + $0x30] sm:$0xff] %v606_v1 }
  0xf0   : > { %v716_v13 = vunpack.c.l.b16 %v16522_v8  ;;  %v975_v15 = vpack.c.b16 %v954_v4, %v954_v4  ;;  %v580_v17 = vpop.f32.mrf.mxu0  ;;  %v717_v23 = vunpack.c.h.b16 %v16522_v8  ;;  %v1057_v32 = vunpack.c.l.b16 %v16526_v9  ;;  %5283 = vmatpush.bf16.msrb.mxu0 %v12607_v2 }
  0xf1   : > { %v973_v25 = vpack.c.b16 %v952_v10, %v952_v10  ;;  %v974_v26 = vpack.c.b16 %v953_v11, %v953_v11  ;;  %v581_v28 = vadd.f32 %v16457_v39, %v580_v17  ;;  %v12287_v1 = vor.u32 %v15390_v36, %v12286_v35 }
  0xf2   : > { %v983_v31 = vsel %vm23025_vm4, 0, %v975_v15  ;;  %v12343_v15 = vor.u32 %v15404_v55, %v12342_v50  ;;  %v12215_v17 = vor.u32 %v15372_v59, %v12214_v56  ;;  %v1058_v33 = vunpack.c.h.b16 %v16526_v9 }
  0xf3   : > { %v979_v37 = vsel %vm23025_vm4, 0, %v973_v25  ;;  %v981_v38 = vsel %vm23025_vm4, 0, %v974_v26  ;;  %v989_v40 = vunpack.c.l.b16 %v983_v31  ;;  %v992_v41 = vunpack.c.h.b16 %v983_v31  ;;  %5138 = vmatpush.bf16.msra.mxu2 %v12287_v1 }
  0xf4   : > { %v987_v45 = vunpack.c.l.b16 %v979_v37  ;;  %v988_v46 = vunpack.c.l.b16 %v981_v38  ;;  %v990_v47 = vunpack.c.h.b16 %v979_v37  ;;  %v991_v48 = vunpack.c.h.b16 %v981_v38  ;;  %5168 = vmatpush.bf16.msra.mxu3 %v12343_v15  ;;  %5110 = vmatpush.bf16.msra.mxu1 %v12215_v17 }
  0xf5   : > { %v994_v51 = vpack.c.b16 %v989_v40, %v989_v40  ;;  %v996_v52 = vpack.c.b16 %v992_v41, %v992_v41  ;;  %v599_v53 = vsub.f32 %v16502_v63, %v581_v28  ;;  %v609_v54 = vpack.c.bf16 %v581_v28, %v581_v28 }
  0xf6   : > { %v993_v61 = vpack.c.b16 %v988_v46, %v987_v45  ;;  %v995_v62 = vpack.c.b16 %v991_v48, %v990_v47 }
  0xf7   : > { %1026 = vst [vmem:[#allocation2 + $0x14] sm:$0xf] %v994_v51  ;;  %v608_v3 = vpack.c.bf16 %v16502_v63, %v599_v53  ;;  %v649_v4 = vsel %vm16560_vm7, 0, %v609_v54  ;;  %v689_v5 = vsel %vm16573_vm8, 0, %v609_v54  ;;  %v957_v6 = vunpack.c.l.b16 %v609_v54 }
  0xf8   : > { %1025 = vst [vmem:[#allocation2 + $0xc] sm:$0xff] %v993_v61  ;;  %v721_v10 = vunpack.c.l.b16 %v649_v4  ;;  %v16595_v11 = vunpack.c.l.b16 %v689_v5  ;;  %v583_v12 = vpop.f32.mrf.mxu0  ;;  %v23184_v53 = vmov 0 }
  0xf9   : > { %1027 = vst [vmem:[#allocation2 + $0x78] sm:$0xff] %v995_v62  ;;  %v648_v63 = vsel %vm16560_vm7, 0, %v608_v3  ;;  %v16601_v18 = vsel %vm16573_vm8, 0, %v608_v3  ;;  %v998_v25 = vpack.c.b16 %v957_v6, %v957_v6  ;;  %v16604_v26 = vadd.f32 %v16457_v39, %v583_v12 }
  0xfa   : > { %1028 = vst [vmem:[#allocation2 + $0x80] sm:$0xf] %v996_v52  ;;  %v719_v28 = vunpack.c.l.b16 %v648_v63  ;;  %v720_v29 = vunpack.c.h.b16 %v648_v63  ;;  %v16607_v30 = vpack.c.b16 %v721_v10, %v16532_v14  ;;  %v1060_v31 = vunpack.c.l.b16 %v16601_v18 }
  0xfb   : > { %1029 = vst [vmem:[#allocation2 + $0xe4] sm:$0xff] %v608_v3  ;;  %v1061_v34 = vunpack.c.h.b16 %v16601_v18  ;;  %v16614_v35 = vpack.c.b16 %v16595_v11, %v16534_v16  ;;  %v16618_v36 = vpack.c.bf16 %v16604_v26, %v16604_v26  ;;  %v23185_v53 = vsel %vm16656_vm12, 4294967295, %v23184_v53  ;;  %v12270_v18 = vld [vmem:[%s22991_s3 + $0xb0] sm:$0xf] }
  0xfc   : > { %v16622_v14 = vpack.c.b16 %v719_v28, %v716_v13  ;;  %v16626_v37 = vpack.c.b16 %v720_v29, %v717_v23  ;;  %v767_v38 = vshrl.u32 %v16607_v30, 16  ;;  %v770_v40 = vshll.u32 %v16607_v30, 16  ;;  %1030 = vst [vmem:[#allocation2 + $0xec] sm:$0xf] %v998_v25 }
  0xfd   : > { %v16634_v16 = vpack.c.b16 %v1060_v31, %v1057_v32  ;;  %v16638_v41 = vpack.c.b16 %v1061_v34, %v1058_v33  ;;  %v1111_v13 = vshrl.u32 %v16614_v35, 16  ;;  %v1114_v8 = vshll.u32 %v16614_v35, 16  ;;  %1424 = vst [vmem:[#allocation2 + $0x9c] sm:$0xff] %v608_v3 }
  0xfe   : > { %v751_v23 = vshrl.u32 %v16622_v14, 16  ;;  %v754_v43 = vshll.u32 %v16622_v14, 16  ;;  %v759_v44 = vshrl.u32 %v16626_v37, 16  ;;  %v762_v9 = vshll.u32 %v16626_v37, 16  ;;  %1425 = vst [vmem:[#allocation2 + $0xa4] sm:$0xf] %v609_v54 }
  0xff   : > { %v769_v32 = vrot.slane %v767_v38, 3  ;;  %v772_v45 = vrot.slane %v770_v40, 4  ;;  %v1095_v46 = vshrl.u32 %v16634_v16, 16  ;;  %v1098_v47 = vshll.u32 %v16634_v16, 16  ;;  %1651 = vst [vmem:[#allocation2 + $0x54] sm:$0xff] %v608_v3 }
 0x100   : > { %v753_v48 = vrot.slane %v751_v23, 3  ;;  %v756_v50 = vrot.slane %v754_v43, 4  ;;  %v761_v51 = vrot.slane %v759_v44, 3  ;;  %v764_v52 = vrot.slane %v762_v9, 4  ;;  %23186 = vst [vmem:[#allocation7_spill] sm:$0xff] %v23185_v53 }
 0x101   : > { %1652 = vst [vmem:[#allocation2 + $0x5c] sm:$0xf] %v998_v25  ;;  %v16660_v54 = vor.u32 %v772_v45, %v769_v32  ;;  %v1097_v55 = vrot.slane %v1095_v46, 4  ;;  %v1100_v56 = vrot.slane %v1098_v47, 5  ;;  %v1103_v59 = vshrl.u32 %v16638_v41, 16 }
 0x102   : > { %1427 = vst [vmem:[#allocation2 + $0x110] sm:$0xf] %v16618_v36  ;;  %v16668_v61 = vor.u32 %v756_v50, %v753_v48  ;;  %v16670_v62 = vor.u32 %v764_v52, %v761_v51  ;;  %v1106_v1 = vshll.u32 %v16638_v41, 16  ;;  %v1113_v2 = vrot.slane %v1111_v13, 4  ;;  %v15468_v16 = vld [vmem:[%s22991_s3 + $0x344] sm:$0xf0] }
 0x103   : > { %v862_v3 = vsel %vm16656_vm12, 0, %v16660_v54  ;;  %v16678_v4 = vor.u32 %v1100_v56, %v1097_v55  ;;  %v1105_v5 = vrot.slane %v1103_v59, 4  ;;  %v1116_v6 = vrot.slane %v1114_v8, 5 }
 0x104   : > { %v860_v12 = vsel %vm16656_vm12, 0, %v16668_v61  ;;  %v861_v15 = vsel %vm16656_vm12, 0, %v16670_v62  ;;  %v868_v17 = vunpack.c.l.b16 %v862_v3  ;;  %v871_v63 = vunpack.c.h.b16 %v862_v3 }
 0x105   : > { %v866_v25 = vunpack.c.l.b16 %v860_v12  ;;  %v867_v28 = vunpack.c.l.b16 %v861_v15  ;;  %v869_v29 = vunpack.c.h.b16 %v860_v12  ;;  %v870_v33 = vunpack.c.h.b16 %v861_v15 }
 0x106   : > { %v23189_v14 = vmov 0  ;;  %v891_v32 = vpack.c.b16 %v868_v17, %v868_v17  ;;  %v893_v45 = vpack.c.b16 %v871_v63, %v871_v63  ;;  %v1108_v48 = vrot.slane %v1106_v1, 5 }
 0x107   : > { %v23190_v14 = vsel %vm16698_vm0, 4294967295, %v23189_v14  ;;  %v16704_v50 = vor.u32 %v1116_v6, %v1113_v2  ;;  %v890_v51 = vpack.c.b16 %v867_v28, %v866_v25  ;;  %v892_v52 = vpack.c.b16 %v870_v33, %v869_v29  ;;  %v12334_v28 = vld [vmem:[%s22991_s3 + $0x130] sm:$0xf] }
 0x108   : > { %23191 = vst [vmem:[#allocation8_spill] sm:$0xff] %v23190_v14  ;;  %v1204_v55 = vsel %vm16698_vm0, 0, %v16678_v4  ;;  %v16709_v56 = vrot.slane %v751_v23, 7  ;;  %v16711_v3 = vor.u32 %v1108_v48, %v1105_v5  ;;  %v16717_v25 = vrot.slane %v759_v44, 7 }
 0x109   : > { %923 = vst [vmem:[#allocation2 + $0x8] sm:$0xf] %v891_v32  ;;  %v1206_v12 = vsel %vm16698_vm0, 0, %v16704_v50  ;;  %v1210_v15 = vunpack.c.l.b16 %v1204_v55  ;;  %v1213_v17 = vunpack.c.h.b16 %v1204_v55  ;;  %v16724_v5 = vrot.slane %v767_v38, 7  ;;  %v11914_v53 = vld [vmem:[#allocation2 + $0x110] sm:$0xf] }
 0x10a   : > { %922 = vst [vmem:[#allocation2] sm:$0xff] %v890_v51  ;;  %v1212_v2 = vunpack.c.l.b16 %v1206_v12  ;;  %v1215_v6 = vunpack.c.h.b16 %v1206_v12  ;;  %v1292_v63 = vor.u32 %v16709_v56, %v754_v43  ;;  %v1205_v23 = vsel %vm16698_vm0, 0, %v16711_v3 }
 0x10b   : > { %924 = vst [vmem:[#allocation2 + $0x6c] sm:$0xff] %v892_v52  ;;  %v600_v43 = vsub.f32 %v16505_v0, %v16604_v26  ;;  %v1211_v44 = vunpack.c.l.b16 %v1205_v23  ;;  %v1214_v29 = vunpack.c.h.b16 %v1205_v23  ;;  %v23194_v48 = vmov 0 }
 0x10c   : > { %925 = vst [vmem:[#allocation2 + $0x74] sm:$0xf] %v893_v45  ;;  %v1235_v33 = vpack.c.b16 %v1212_v2, %v1212_v2  ;;  %v1237_v32 = vpack.c.b16 %v1215_v6, %v1215_v6  ;;  %v23195_v48 = vsel %vm16736_vm5, 4294967295, %v23194_v48  ;;  %v1294_v60 = vor.u32 %v16717_v25, %v762_v9  ;;  %v15388_v2 = vld [vmem:[%s22991_s3 + $0xc4] sm:$0xf0] }
 0x10d   : > { %23196 = vst [vmem:[#allocation9_spill] sm:$0xff] %v23195_v48  ;;  %v1296_v7 = vor.u32 %v16724_v5, %v770_v40  ;;  %v1344_v26 = vsel %vm16736_vm5, 0, %v1292_v63  ;;  %v1439_v38 = vrot.slane %v1098_v47, 1  ;;  %v1234_v45 = vpack.c.b16 %v1211_v44, %v1210_v15 }
 0x10e   : > { %v1236_v51 = vpack.c.b16 %v1214_v29, %v1213_v17  ;;  %1267 = vst [vmem:[#allocation2 + $0x20] sm:$0xf] %v1235_v33  ;;  %v1350_v52 = vunpack.c.l.b16 %v1344_v26  ;;  %v1353_v55 = vunpack.c.h.b16 %v1344_v26  ;;  %v16752_v37 = vadd.f32 %v16457_v39, %v16414_v19  ;;  %v12278_v17 = vld [vmem:[%s22991_s3 + $0xc0] sm:$0xf]  ;;  %v585_v26 = vpop.f32.mrf.mxu0 }
 0x10f   : > { %v16756_v30 = vadd.f32 %v16457_v39, %v16416_v20  ;;  %1269 = vst [vmem:[#allocation2 + $0x8c] sm:$0xf] %v1237_v32  ;;  %v1345_v40 = vsel %vm16736_vm5, 0, %v1294_v60  ;;  %v1346_v9 = vsel %vm16736_vm5, 0, %v1296_v7  ;;  %v23197_v47 = vmov 0 }
 0x110   : > { %v23198_v47 = vsel %vm16765_vm6, 4294967295, %v23197_v47  ;;  %1266 = vst [vmem:[#allocation2 + $0x18] sm:$0xff] %v1234_v45  ;;  %v1351_v19 = vunpack.c.l.b16 %v1345_v40  ;;  %v1352_v12 = vunpack.c.l.b16 %v1346_v9  ;;  %v1354_v15 = vunpack.c.h.b16 %v1345_v40 }
 0x111   : > { %23199 = vst [vmem:[#allocation10_spill] sm:$0xff] %v23198_v47  ;;  %v1355_v20 = vunpack.c.h.b16 %v1346_v9  ;;  %v16777_v10 = vadd.f32 %v16457_v39, %v16418_v21  ;;  %v16781_v6 = vor.u32 %v1439_v38, %v1095_v46  ;;  %v1443_v63 = vrot.slane %v1106_v1, 1  ;;  %v12598_v21 = vld [vmem:[%s22991_s3 + $0x340] sm:$0xf]  ;;  %v12206_v38 = vld [vmem:[%s22991_s3 + $0x30] sm:$0xf] }
 0x112   : > { %1268 = vst [vmem:[#allocation2 + $0x84] sm:$0xff] %v1236_v51  ;;  %v610_v23 = vpack.c.bf16 %v16505_v0, %v600_v43  ;;  %v23200_v44 = vmov 0  ;;  %v1374_v46 = vpack.c.b16 %v1351_v19, %v1350_v52  ;;  %v1375_v29 = vpack.c.b16 %v1352_v12, %v1352_v12  ;;  %v15402_v43 = vld [vmem:[%s22991_s3 + $0x134] sm:$0xf0] }
 0x113   : > { %v23201_v44 = vsel %vm16789_vm10, 4294967295, %v23200_v44  ;;  %v1376_v1 = vpack.c.b16 %v1354_v15, %v1353_v55  ;;  %v691_v0 = vsel %vm16765_vm6, 0, %v16618_v36  ;;  %v1377_v33 = vpack.c.b16 %v1355_v20, %v1355_v20  ;;  %v15370_v55 = vld [vmem:[%s22991_s3 + $0x34] sm:$0xf0] }
 0x114   : > { %23202 = vst [vmem:[#allocation11_spill] sm:$0xff] %v23201_v44  ;;  %v1447_v32 = vrot.slane %v1114_v8, 1  ;;  %v16812_v60 = vsel %vm16765_vm6, 0, %v610_v23  ;;  %v960_v7 = vunpack.c.l.b16 %v16618_v36  ;;  %v16820_v45 = vsel %vm16789_vm10, 0, %v610_v23 }
 0x115   : > { %1031 = vst [vmem:[#allocation2 + $0x150] sm:$0xff] %v610_v23  ;;  %v651_v8 = vsel %vm16789_vm10, 0, %v16618_v36  ;;  %v1063_v51 = vunpack.c.l.b16 %v16812_v60  ;;  %v1064_v52 = vunpack.c.h.b16 %v16812_v60  ;;  %v16830_v9 = vunpack.c.l.b16 %v691_v0 }
 0x116   : > { %1406 = vst [vmem:[#allocation2 + $0x24] sm:$0xff] %v1374_v46  ;;  %v1000_v40 = vpack.c.b16 %v960_v7, %v960_v7  ;;  %v12279_v19 = vor.u32 %v15388_v2, %v12278_v17  ;;  %v12599_v12 = vor.u32 %v15468_v16, %v12598_v21  ;;  %v388_v20 = vadd.s32 24, %v16422_v24  ;;  %v12590_v16 = vld [vmem:[%s22991_s3 + $0x330] sm:$0xf]  ;;  %v15400_v7 = vld [vmem:[%s22991_s3 + $0x124] sm:$0xf0] }
 0x117   : > { %1407 = vst [vmem:[#allocation2 + $0x2c] sm:$0xf] %v1375_v29  ;;  %v16836_v36 = vpack.c.b16 %v1063_v51, %v1060_v31  ;;  %v16842_v15 = vpack.c.b16 %v1064_v52, %v1061_v34  ;;  %v586_v46 = vadd.f32 %v16457_v39, %v585_v26  ;;  %v16848_v17 = vor.u32 %v1443_v63, %v1103_v59  ;;  %v15386_v34 = vld [vmem:[%s22991_s3 + $0xb4] sm:$0xf0] }
 0x118   : > { %1408 = vst [vmem:[#allocation2 + $0x90] sm:$0xff] %v1376_v1  ;;  %5139 = vmatpush.bf16.msra.mxu2 %v12279_v19  ;;  %5284 = vmatpush.bf16.msrb.mxu0 %v12599_v12  ;;  %v12335_v2 = vor.u32 %v15402_v43, %v12334_v28  ;;  %v12207_v31 = vor.u32 %v15370_v55, %v12206_v38  ;;  %v722_v41 = vunpack.c.l.b16 %v16820_v45  ;;  %v724_v59 = vunpack.c.l.b16 %v651_v8  ;;  %v15466_v29 = vld [vmem:[%s22991_s3 + $0x334] sm:$0xf0] }
 0x119   : > { %1409 = vst [vmem:[#allocation2 + $0x98] sm:$0xf] %v1377_v33  ;;  %v16858_v21 = vor.u32 %v1447_v32, %v1111_v13  ;;  %v16863_v63 = vpack.c.b16 %v16830_v9, %v16595_v11  ;;  %v723_v35 = vunpack.c.h.b16 %v16820_v45  ;;  %v1682_v13 = vshll.u32 %v16836_v36, 16  ;;  %v12326_v11 = vld [vmem:[%s22991_s3 + $0x120] sm:$0xf] }
 0x11a   : > { %1032 = vst [vmem:[#allocation2 + $0x158] sm:$0xf] %v1000_v40  ;;  %v396_v1 = vand.u32 7, %v388_v20  ;;  %v601_v0 = vsub.f32 %v16752_v37, %v586_v46  ;;  %5169 = vmatpush.bf16.msra.mxu3 %v12335_v2  ;;  %5111 = vmatpush.bf16.msra.mxu1 %v12207_v31  ;;  %v613_v33 = vpack.c.bf16 %v586_v46, %v586_v46  ;;  %v23203_v55 = vmov 0 }
 0x11b   : > { %1426 = vst [vmem:[#allocation2 + $0x108] sm:$0xff] %v610_v23  ;;  %v12271_v32 = vor.u32 %v15386_v34, %v12270_v18  ;;  %v16896_v12 = vrot.slane %v1682_v13, 1  ;;  %v23206_v2 = vmov 0  ;;  %v12327_v31 = vor.u32 %v15400_v7, %v12326_v11  ;;  %v12262_v18 = vld [vmem:[%s22991_s3 + $0xa0] sm:$0xf] }
 0x11c   : > { %1653 = vst [vmem:[#allocation2 + $0xc0] sm:$0xff] %v610_v23  ;;  %vm404_vm14 = vcmp.eq.s32.totalorder %v396_v1, 0  ;;  %vm412_vm15 = vcmp.eq.s32.totalorder %v396_v1, 7  ;;  %v612_v38 = vpack.c.bf16 %v16752_v37, %v601_v0  ;;  %v12198_v23 = vld [vmem:[%s22991_s3 + $0x20] sm:$0xf]  ;;  %v963_v19 = vunpack.c.l.b16 %v613_v33 }
 0x11d   : > { %1654 = vst [vmem:[#allocation2 + $0xc8] sm:$0xf] %v1000_v40  ;;  %vm16889_vm1 = vmpackc.low %vm412_vm15, %vm412_vm15  ;;  %5140 = vmatpush.bf16.msra.mxu2 %v12271_v32  ;;  %v12591_v40 = vor.u32 %v15466_v29, %v12590_v16  ;;  %v15368_v37 = vld [vmem:[%s22991_s3 + $0x24] sm:$0xf0] }
 0x11e   : > { %v23204_v55 = vsel %vm16889_vm1, 4294967295, %v23203_v55  ;;  %1429 = vst [vmem:[#allocation2 + $0x17c] sm:$0xf] %v613_v33  ;;  %v652_v20 = vsel %vm16889_vm1, 0, %v612_v38  ;;  %v653_v46 = vsel %vm16889_vm1, 0, %v613_v33  ;;  %vm16902_vm15 = vmpackc.low %vm404_vm14, %vm404_vm14  ;;  %v1002_v11 = vpack.c.b16 %v963_v19, %v963_v19  ;;  %5170 = vmatpush.bf16.msra.mxu3 %v12327_v31 }
 0x11f   : > { %23205 = vst [vmem:[#allocation12_spill] sm:$0xff] %v23204_v55  ;;  %v23207_v2 = vsel %vm16902_vm15, 4294967295, %v23206_v2  ;;  %v16911_v34 = vsel %vm16902_vm15, 0, %v612_v38  ;;  %v693_v16 = vsel %vm16902_vm15, 0, %v613_v33  ;;  %v725_v29 = vunpack.c.l.b16 %v652_v20  ;;  %5285 = vmatpush.bf16.msrb.mxu0 %v12591_v40  ;;  %v15384_v1 = vld [vmem:[%s22991_s3 + $0xa4] sm:$0xf0] }
 0x120   : > { %23208 = vst [vmem:[#allocation13_spill] sm:$0xff] %v23207_v2  ;;  %v726_v13 = vunpack.c.h.b16 %v652_v20  ;;  %v727_v0 = vunpack.c.l.b16 %v653_v46  ;;  %v23001_v32 = vunpack.c.l.b16 %v16911_v34  ;;  %v23000_v7 = vunpack.c.h.b16 %v16911_v34 }
 0x121   : > { %1033 = vst [vmem:[#allocation2 + $0x1bc] sm:$0xff] %v612_v38  ;;  %v16920_v45 = vpack.c.b16 %v725_v29, %v722_v41  ;;  %v16924_v33 = vunpack.c.l.b16 %v693_v16  ;;  %v12199_v20 = vor.u32 %v15368_v37, %v12198_v23  ;;  %vm23029_vm14 = vsmask.f32 7424 }
 0x122   : > { %1428 = vst [vmem:[#allocation2 + $0x174] sm:$0xff] %v612_v38  ;;  %v16922_v43 = vpack.c.b16 %v726_v13, %v723_v35  ;;  %v16926_v40 = vpack.c.b16 %v727_v0, %v724_v59  ;;  %v16932_v19 = vpack.c.b16 %v23001_v32, %v1063_v51  ;;  %v16938_v41 = vpack.c.b16 %v23000_v7, %v1064_v52 }
 0x123   : > { %1655 = vst [vmem:[#allocation2 + $0x12c] sm:$0xff] %v612_v38  ;;  %v12263_v35 = vor.u32 %v15384_v1, %v12262_v18  ;;  %v775_v38 = vshrl.u32 %v16920_v45, 16  ;;  %v23005_v23 = vshll.u32 %v16920_v45, 16  ;;  %5112 = vmatpush.bf16.msra.mxu1 %v12199_v20  ;;  %v16948_v60 = vpack.c.b16 %v16924_v33, %v16830_v9 }
 0x124   : > { %1034 = vst [vmem:[#allocation2 + $0x1c4] sm:$0xf] %v1002_v11  ;;  %v784_v59 = vshrl.u32 %v16922_v43, 16  ;;  %v23004_v37 = vshll.u32 %v16922_v43, 16  ;;  %v793_v51 = vshrl.u32 %v16926_v40, 16  ;;  %v23003_v46 = vshll.u32 %v16926_v40, 16 }
 0x125   : > { %1656 = vst [vmem:[#allocation2 + $0x134] sm:$0xf] %v1002_v11  ;;  %v23002_v52 = vshrl.u32 %v16932_v19, 16  ;;  %5141 = vmatpush.bf16.msra.mxu2 %v12263_v35  ;;  %v777_v31 = vrot.slane %v775_v38, 3  ;;  %v780_v18 = vrot.slane %v23005_v23, 4  ;;  %v1122_v9 = vshll.u32 %v16932_v19, 16 }
 0x126   : > { %v786_v16 = vrot.slane %v784_v59, 3  ;;  %v789_v29 = vrot.slane %v23004_v37, 4  ;;  %v795_v13 = vrot.slane %v793_v51, 3  ;;  %v798_v1 = vrot.slane %v23003_v46, 4 }
 0x127   : > { %v1121_v0 = vrot.slane %v23002_v52, 4  ;;  %v16960_v11 = vor.u32 %v780_v18, %v777_v31  ;;  %v23010_v35 = vshrl.u32 %v16938_v41, 16  ;;  %v1131_v7 = vshll.u32 %v16938_v41, 16 }
 0x128   : > { %v16962_v20 = vor.u32 %v789_v29, %v786_v16  ;;  %v16966_v32 = vor.u32 %v798_v1, %v795_v13  ;;  %v1124_v28 = vrot.slane %v1122_v9, 5  ;;  %v1140_v26 = vshll.u32 %v16948_v60, 16 }
 0x129   : > { %v782_v52 = vsel %vm23028_vm9, %v16668_v61, %v16960_v11  ;;  %v1130_v18 = vrot.slane %v23010_v35, 4  ;;  %v1133_v16 = vrot.slane %v1131_v7, 5 }
 0x12a   : > { %v791_v31 = vsel %vm23028_vm9, %v16670_v62, %v16962_v20  ;;  %v800_v29 = vsel %vm23028_vm9, %v16660_v54, %v16966_v32  ;;  %v872_v13 = vunpack.c.l.b16 %v782_v52  ;;  %v875_v46 = vunpack.c.h.b16 %v782_v52 }
 0x12b   : > { %v873_v1 = vunpack.c.l.b16 %v791_v31  ;;  %v874_v37 = vunpack.c.l.b16 %v800_v29  ;;  %v876_v23 = vunpack.c.h.b16 %v791_v31  ;;  %v877_v8 = vunpack.c.h.b16 %v800_v29 }
 0x12c   : > { %v16981_v61 = vor.u32 %v1124_v28, %v1121_v0  ;;  %v16983_v55 = vor.u32 %v1133_v16, %v1130_v18  ;;  %v23209_v62 = vshrl.u32 %v16948_v60, 16  ;;  %v1142_v44 = vrot.slane %v1140_v26, 5 }
 0x12d   : > { %v894_v2 = vpack.c.b16 %v873_v1, %v872_v13  ;;  %v895_v47 = vpack.c.b16 %v874_v37, %v874_v37  ;;  %v896_v48 = vpack.c.b16 %v876_v23, %v875_v46  ;;  %v897_v49 = vpack.c.b16 %v877_v8, %v877_v8 }
 0x12e   : > { %v1139_v35 = vrot.slane %v23209_v62, 4  ;;  %v1126_v54 = vsel %vm23027_vm11, %v16678_v4, %v16981_v61  ;;  %v1135_v52 = vsel %vm23027_vm11, %v16711_v3, %v16983_v55  ;;  %v16995_v29 = vrot.slane %v775_v38, 7 }
 0x12f   : > { %v1216_v0 = vunpack.c.l.b16 %v1126_v54  ;;  %v1219_v31 = vunpack.c.h.b16 %v1126_v54  ;;  %1604 = vst [vmem:[#allocation2 + $0x48] sm:$0xff] %v894_v2  ;;  %v1217_v18 = vunpack.c.l.b16 %v1135_v52  ;;  %v1220_v16 = vunpack.c.h.b16 %v1135_v52 }
 0x130   : > { %v16993_v28 = vor.u32 %v1142_v44, %v1139_v35  ;;  %927 = vst [vmem:[#allocation2 + $0xe0] sm:$0xf] %v895_v47  ;;  %v16997_v23 = vrot.slane %v784_v59, 7  ;;  %v17002_v8 = vrot.slane %v793_v51, 7  ;;  %v17004_v3 = vrot.slane %v1122_v9, 1 }
 0x131   : > { %929 = vst [vmem:[#allocation2 + $0x14c] sm:$0xf] %v897_v49  ;;  %v17006_v44 = vrot.slane %v1131_v7, 1  ;;  %v1238_v35 = vpack.c.b16 %v1217_v18, %v1216_v0  ;;  %v17008_v13 = vpack.c.b16 %v1220_v16, %v1219_v31  ;;  %v23210_v38 = vshll.u32 %v16920_v45, 16 }
 0x132   : > { %v1144_v4 = vsel %vm23027_vm11, %v16704_v50, %v16993_v28  ;;  %1605 = vst [vmem:[#allocation2 + $0x50] sm:$0xf] %v895_v47  ;;  %v23211_v1 = vshll.u32 %v16922_v43, 16  ;;  %v23212_v51 = vshll.u32 %v16926_v40, 16  ;;  %v1442_v7 = vsel %vm23029_vm14, %v16781_v6, %v17004_v3 }
 0x133   : > { %v1218_v37 = vunpack.c.l.b16 %v1144_v4  ;;  %v1221_v46 = vunpack.c.h.b16 %v1144_v4  ;;  %v1298_v59 = vor.u32 %v16995_v29, %v23210_v38  ;;  %1606 = vst [vmem:[#allocation2 + $0xb4] sm:$0xff] %v896_v48  ;;  %v1446_v47 = vsel %vm23029_vm14, %v16848_v17, %v17006_v44  ;;  %v588_v4 = vpop.f32.mrf.mxu0 }
 0x134   : > { %v1301_v50 = vor.u32 %v16997_v23, %v23211_v1  ;;  %v1304_v9 = vor.u32 %v17002_v8, %v23212_v51  ;;  %v17025_v45 = vrot.slane %v1140_v26, 1  ;;  %1607 = vst [vmem:[#allocation2 + $0xbc] sm:$0xf] %v897_v49  ;;  %v23213_v43 = vshll.u32 %v16842_v15, 16  ;;  %v12582_v49 = vld [vmem:[%s22991_s3 + $0x320] sm:$0xf] }
 0x135   : > { %v1239_v62 = vpack.c.b16 %v1218_v37, %v1218_v37  ;;  %v1241_v54 = vpack.c.b16 %v1221_v46, %v1221_v46  ;;  %v1299_v40 = vsel %vm23026_vm13, %v16709_v56, %v1298_v59  ;;  %926 = vst [vmem:[#allocation2 + $0xd8] sm:$0xff] %v894_v2  ;;  %v15464_v56 = vld [vmem:[%s22991_s3 + $0x324] sm:$0xf0]  ;;  %v12318_v37 = vld [vmem:[%s22991_s3 + $0x110] sm:$0xf]  ;;  %v23214_v38 = vshll.u32 %v16863_v63, 16 }
 0x136   : > { %v17029_v52 = vrot.slane %v23213_v43, 1  ;;  %v1302_v6 = vsel %vm23026_vm13, %v16717_v25, %v1301_v50  ;;  %v1305_v0 = vsel %vm23026_vm13, %v16724_v5, %v1304_v9  ;;  %v1356_v31 = vunpack.c.l.b16 %v1299_v40  ;;  %v15398_v46 = vld [vmem:[%s22991_s3 + $0x114] sm:$0xf0]  ;;  %928 = vst [vmem:[#allocation2 + $0x144] sm:$0xff] %v896_v48 }
 0x137   : > { %1271 = vst [vmem:[#allocation2 + $0xf8] sm:$0xf] %v1239_v62  ;;  %v1357_v17 = vunpack.c.l.b16 %v1302_v6  ;;  %v1358_v26 = vunpack.c.l.b16 %v1305_v0  ;;  %v1359_v18 = vunpack.c.h.b16 %v1299_v40  ;;  %v17045_v25 = vadd.f32 %v16457_v39, %v16420_v22  ;;  %v15366_v51 = vld [vmem:[%s22991_s3 + $0x14] sm:$0xf0]  ;;  %v12254_v40 = vld [vmem:[%s22991_s3 + $0x90] sm:$0xf] }
 0x138   : > { %1273 = vst [vmem:[#allocation2 + $0x164] sm:$0xf] %v1241_v54  ;;  %v1360_v5 = vunpack.c.h.b16 %v1302_v6  ;;  %v1361_v2 = vunpack.c.h.b16 %v1305_v0  ;;  %v1450_v16 = vsel %vm23029_vm14, %v16858_v21, %v17025_v45  ;;  %v17058_v22 = vrot.slane %v23214_v38, 1  ;;  %v12190_v21 = vld [vmem:[%s22991_s3 + $0x10] sm:$0xf] }
 0x139   : > { %v1378_v59 = vpack.c.b16 %v1357_v17, %v1356_v31  ;;  %v1379_v1 = vpack.c.b16 %v1358_v26, %v1358_v26  ;;  %v1483_v50 = vunpack.c.l.b16 %v1442_v7  ;;  %v1484_v54 = vunpack.c.l.b16 %v1446_v47  ;;  %1270 = vst [vmem:[#allocation2 + $0xf0] sm:$0xff] %v1238_v35  ;;  %v15382_v48 = vld [vmem:[%s22991_s3 + $0x94] sm:$0xf0]  ;;  %v12574_v6 = vld [vmem:[%s22991_s3 + $0x310] sm:$0xf] }
 0x13a   : > { %v1380_v9 = vpack.c.b16 %v1360_v5, %v1359_v18  ;;  %v1381_v62 = vpack.c.b16 %v1361_v2, %v1361_v2  ;;  %v1485_v43 = vunpack.c.l.b16 %v1450_v16  ;;  %v15462_v0 = vld [vmem:[%s22991_s3 + $0x314] sm:$0xf0]  ;;  %v1486_v31 = vunpack.c.h.b16 %v1442_v7  ;;  %v12310_v18 = vld [vmem:[%s22991_s3 + $0x100] sm:$0xf]  ;;  %v15396_v5 = vld [vmem:[%s22991_s3 + $0x104] sm:$0xf0] }
 0x13b   : > { %1410 = vst [vmem:[#allocation2 + $0xfc] sm:$0xff] %v1378_v59  ;;  %v1487_v17 = vunpack.c.h.b16 %v1446_v47  ;;  %v1488_v35 = vunpack.c.h.b16 %v1450_v16  ;;  %v12583_v26 = vor.u32 %v15464_v56, %v12582_v49  ;;  %v1507_v2 = vpack.c.b16 %v1484_v54, %v1483_v50  ;;  %v12182_v7 = vld [vmem:[%s22991_s3] sm:$0xf]  ;;  %v15364_v47 = vld [vmem:[%s22991_s3 + $0x4] sm:$0xf0] }
 0x13c   : > { %1411 = vst [vmem:[#allocation2 + $0x104] sm:$0xf] %v1379_v1  ;;  %v1508_v38 = vpack.c.b16 %v1485_v43, %v1485_v43  ;;  %v589_v58 = vadd.f32 %v16457_v39, %v588_v4  ;;  %v12246_v49 = vld [vmem:[%s22991_s3 + $0x80] sm:$0xf]  ;;  %v12319_v59 = vor.u32 %v15398_v46, %v12318_v37  ;;  %v15380_v39 = vld [vmem:[%s22991_s3 + $0x84] sm:$0xf0]  ;;  %v12191_v43 = vor.u32 %v15366_v51, %v12190_v21 }
 0x13d   : > { %1412 = vst [vmem:[#allocation2 + $0x168] sm:$0xff] %v1380_v9  ;;  %v1509_v56 = vpack.c.b16 %v1487_v17, %v1486_v31  ;;  %v1510_v16 = vpack.c.b16 %v1488_v35, %v1488_v35  ;;  %5286 = vmatpush.bf16.msrb.mxu0 %v12583_v26  ;;  %v12566_v4 = vld [vmem:[%s22991_s3 + $0x300] sm:$0xf]  ;;  %v17102_v1 = vadd.s32 40, %v16422_v24  ;;  %v397_v50 = vand.u32 7, %v389_v42 }
 0x13e   : > { %1413 = vst [vmem:[#allocation2 + $0x170] sm:$0xf] %v1381_v62  ;;  %v602_v54 = vsub.f32 %v16756_v30, %v589_v58  ;;  %v17105_v9 = vpack.c.bf16 %v589_v58, %v589_v58  ;;  %v15460_v37 = vld [vmem:[%s22991_s3 + $0x304] sm:$0xf0]  ;;  %5171 = vmatpush.bf16.msra.mxu3 %v12319_v59  ;;  %v12255_v46 = vor.u32 %v15382_v48, %v12254_v40  ;;  %v15269_v26 = vld [vmem:[#allocation2 + $0x70] sm:$0xf0] }
 0x13f   : > { %1539 = vst [vmem:[#allocation2 + $0x3c] sm:$0xff] %v1507_v2  ;;  %v12575_v31 = vor.u32 %v15462_v0, %v12574_v6  ;;  %v12311_v17 = vor.u32 %v15396_v5, %v12310_v18  ;;  %v11758_v35 = vld [vmem:[#allocation2 + $0x8] sm:$0xf]  ;;  %v398_v57 = vand.u32 7, %v17102_v1  ;;  %vm405_vm4 = vcmp.eq.s32.totalorder %v397_v50, 0  ;;  %5113 = vmatpush.bf16.msra.mxu1 %v12191_v43 }
 0x140   : > { %1540 = vst [vmem:[#allocation2 + $0x44] sm:$0xf] %v1508_v38  ;;  %vm17111_vm13 = vcmp.eq.s32.totalorder %v397_v50, 7  ;;  %v614_v58 = vpack.c.bf16 %v16756_v30, %v602_v54  ;;  %v966_v21 = vunpack.c.l.b16 %v17105_v9  ;;  %5142 = vmatpush.bf16.msra.mxu2 %v12255_v46  ;;  %v12183_v51 = vor.u32 %v15364_v47, %v12182_v7  ;;  %vm17127_vm11 = vmpackc.low %vm405_vm4, %vm405_vm4  ;;  %v590_v38 = vpop.f32.mrf.mxu0  ;;  %v11750_v7 = vld [vmem:[#allocation2] sm:$0xf] }
 0x141   : > { %1541 = vst [vmem:[#allocation2 + $0xa8] sm:$0xff] %v1509_v56  ;;  %5287 = vmatpush.bf16.msrb.mxu0 %v12575_v31  ;;  %v12247_v62 = vor.u32 %v15380_v39, %v12246_v49  ;;  %v12567_v40 = vor.u32 %v15460_v37, %v12566_v4  ;;  %v23217_v48 = vshrl.u32 %v16836_v36, 16  ;;  %v23218_v0 = vshrl.u32 %v16842_v15, 16  ;;  %v15268_v47 = vld [vmem:[#allocation2 + $0x68] sm:$0xf0]  ;;  %vm17145_vm4 = vmpackc.low %vm17111_vm13, %vm17111_vm13 }
 0x142   : > { %1542 = vst [vmem:[#allocation2 + $0xb0] sm:$0xf] %v1510_v16  ;;  %v23219_v30 = vmov 0  ;;  %v1004_v5 = vpack.c.b16 %v966_v21, %v966_v21  ;;  %v17131_v2 = vor.u32 %v15269_v26, %v11758_v35  ;;  %v23222_v36 = vshrl.u32 %v16863_v63, 16  ;;  %5172 = vmatpush.bf16.msra.mxu3 %v12311_v17  ;;  %v15255_v59 = vld [vmem:[#allocation2 + $0x4] sm:$0xf] }
 0x143   : > { %v17120_v6 = vor.u32 %v16896_v12, %v23217_v48  ;;  %v17125_v18 = vor.u32 %v17029_v52, %v23218_v0  ;;  %v23220_v30 = vsel %vm17127_vm11, 4294967295, %v23219_v30  ;;  %v23223_v15 = vshrl.u32 %v16932_v19, 16  ;;  %1272 = vst [vmem:[#allocation2 + $0x15c] sm:$0xff] %v17008_v13  ;;  %5114 = vmatpush.bf16.msra.mxu1 %v12183_v51  ;;  %v11752_v39 = vld [vmem:[#allocation2 + $0x6c] sm:$0xf0] }
 0x144   : > { %23221 = vst [vmem:[#allocation14_spill] sm:$0xff] %v23220_v30  ;;  %v1709_v12 = vor.u32 %v17058_v22, %v23222_v36  ;;  %v23224_v49 = vmov 0  ;;  %v17151_v56 = vsel %vm17127_vm11, 0, %v614_v58  ;;  %v695_v63 = vsel %vm17127_vm11, 0, %v17105_v9  ;;  %5143 = vmatpush.bf16.msra.mxu2 %v12247_v62  ;;  %v15302_v30 = vld [vmem:[#allocation2 + $0x178] sm:$0xf0] }
 0x145   : > { %v17139_v52 = vor.u32 %v17004_v3, %v23223_v15  ;;  %v23225_v49 = vsel %vm17145_vm4, 4294967295, %v23224_v49  ;;  %v23227_v19 = vshrl.u32 %v16938_v41, 16  ;;  %1035 = vst [vmem:[#allocation2 + $0x228] sm:$0xff] %v614_v58  ;;  %v1069_v13 = vunpack.c.l.b16 %v17151_v56  ;;  %5288 = vmatpush.bf16.msrb.mxu0 %v12567_v40  ;;  %v17172_v41 = vld [vmem:[%s22990_s2] ss:$0 sm:$0xff]  ;;  %5173 = vmatmul.bf16.vlgmr.msra.gmra.mxu3 %v17131_v2 }
 0x146   : > { %23226 = vst [vmem:[#allocation15_spill] sm:$0xff] %v23225_v49  ;;  %v1070_v22 = vunpack.c.h.b16 %v17151_v56  ;;  %v17163_v16 = vunpack.c.l.b16 %v695_v63  ;;  %v17167_v4 = vsel %vm17145_vm4, 0, %v614_v58  ;;  %vm414_vm13 = vcmp.eq.s32.totalorder %v398_v57, 7 }
 0x147   : > { %v17159_v3 = vor.u32 %v17006_v44, %v23227_v19  ;;  %1036 = vst [vmem:[#allocation2 + $0x230] sm:$0xf] %v1004_v5  ;;  %v591_v44 = vadd.f32 %v17172_v41, %v590_v38  ;;  %v17175_v1 = vor.u32 %v15268_v47, %v11750_v7  ;;  %v655_v50 = vsel %vm17145_vm4, 0, %v17105_v9  ;;  %vm17197_vm9 = vmpackc.low %vm414_vm13, %vm414_vm13 }
 0x148   : > { %1430 = vst [vmem:[#allocation2 + $0x1e0] sm:$0xff] %v614_v58  ;;  %v23228_v54 = vunpack.c.l.b16 %v16911_v34  ;;  %v23229_v37 = vunpack.c.h.b16 %v16911_v34  ;;  %v17194_v31 = vpack.c.b16 %v17163_v16, %v16924_v33  ;;  %v23230_v17 = vmov 0 }
 0x149   : > { %v23231_v17 = vsel %vm17197_vm9, 4294967295, %v23230_v17  ;;  %1431 = vst [vmem:[#allocation2 + $0x1e8] sm:$0xf] %v17105_v9  ;;  %vm17202_vm14 = vcmp.eq.s32.totalorder %v398_v57, 0  ;;  %v603_v34 = vsub.f32 %v16777_v10, %v591_v44  ;;  %v617_v26 = vpack.c.bf16 %v591_v44, %v591_v44  ;;  %5115 = vmatmul.bf16.vlgmr.msra.gmra.mxu1 %v17175_v1 }
 0x14a   : > { %v17184_v43 = vpack.c.b16 %v1069_v13, %v23228_v54  ;;  %v17190_v46 = vpack.c.b16 %v1070_v22, %v23229_v37  ;;  %23232 = vst [vmem:[#allocation16_spill] sm:$0xff] %v23231_v17  ;;  %v17208_v42 = vor.u32 %v15255_v59, %v11752_v39  ;;  %v23235_v33 = vshrl.u32 %v16948_v60, 16  ;;  %vm17233_vm13 = vmpackc.low %vm17202_vm14, %vm17202_vm14 }
 0x14b   : > { %1657 = vst [vmem:[#allocation2 + $0x198] sm:$0xff] %v614_v58  ;;  %v1711_v9 = vshll.u32 %v17194_v31, 16  ;;  %v728_v62 = vunpack.c.l.b16 %v17167_v4  ;;  %v729_v40 = vunpack.c.h.b16 %v17167_v4  ;;  %v616_v48 = vpack.c.bf16 %v16777_v10, %v603_v34 }
 0x14c   : > { %v17213_v21 = vor.u32 %v17025_v45, %v23235_v33  ;;  %v1687_v51 = vshll.u32 %v17184_v43, 16  ;;  %v1699_v57 = vshll.u32 %v17190_v46, 16  ;;  %1658 = vst [vmem:[#allocation2 + $0x1a0] sm:$0xf] %v1004_v5  ;;  %v657_v60 = vsel %vm17197_vm9, 0, %v617_v26  ;;  %5144 = vmatmul.bf16.vlgmr.msra.gmra.mxu2 %v17208_v42 }
 0x14d   : > { %v730_v45 = vunpack.c.l.b16 %v655_v50  ;;  %v17228_v38 = vrot.slane %v1711_v9, 1  ;;  %v23236_v7 = vmov 0  ;;  %1433 = vst [vmem:[#allocation2 + $0x254] sm:$0xf] %v617_v26  ;;  %v656_v47 = vsel %vm17197_vm9, 0, %v616_v48 }
 0x14e   : > { %v17224_v58 = vrot.slane %v1687_v51, 1  ;;  %v17226_v0 = vrot.slane %v1699_v57, 1  ;;  %v23237_v7 = vsel %vm17233_vm13, 4294967295, %v23236_v7  ;;  %v733_v36 = vunpack.c.l.b16 %v657_v60  ;;  %1037 = vst [vmem:[#allocation2 + $0x294] sm:$0xff] %v616_v48  ;;  %v12494_v5 = vld [vmem:[%s22991_s3 + $0x270] sm:$0xf] }
 0x14f   : > { %23238 = vst [vmem:[#allocation17_spill] sm:$0xff] %v23237_v7  ;;  %vm23239_vm4 = vsmask.f32 7424  ;;  %v969_v59 = vunpack.c.l.b16 %v617_v26  ;;  %v17251_v44 = vsel %vm17233_vm13, 0, %v616_v48  ;;  %v697_v50 = vsel %vm17233_vm13, 0, %v617_v26 }
 0x150   : > { %v1690_v15 = vsel %vm23239_vm4, %v17120_v6, %v17224_v58  ;;  %vm23240_vm14 = vmmov %vm23239_vm4  ;;  %1432 = vst [vmem:[#allocation2 + $0x24c] sm:$0xff] %v616_v48  ;;  %v731_v34 = vunpack.c.l.b16 %v656_v47  ;;  %v732_v33 = vunpack.c.h.b16 %v656_v47  ;;  %v15442_v26 = vld [vmem:[%s22991_s3 + $0x274] sm:$0xf0]  ;;  %vm23252_vm13 = vsmask.f32 3328 }
 0x151   : > { %v1702_v63 = vsel %vm23240_vm14, %v17125_v18, %v17226_v0  ;;  %vm23241_vm11 = vmmov %vm23239_vm4  ;;  %v1781_v39 = vunpack.c.l.b16 %v1690_v15  ;;  %1659 = vst [vmem:[#allocation2 + $0x204] sm:$0xff] %v616_v48  ;;  %v1784_v54 = vunpack.c.h.b16 %v1690_v15  ;;  %v1006_v60 = vpack.c.b16 %v969_v59, %v969_v59 }
 0x152   : > { %v1714_v19 = vsel %vm23241_vm11, %v1709_v12, %v17228_v38  ;;  %v1782_v4 = vunpack.c.l.b16 %v1702_v63  ;;  %v1785_v37 = vunpack.c.h.b16 %v1702_v63  ;;  %v17255_v12 = vpack.c.b16 %v733_v36, %v730_v45 }
 0x153   : > { %v1783_v6 = vunpack.c.l.b16 %v1714_v19  ;;  %v1786_v35 = vunpack.c.h.b16 %v1714_v19  ;;  %v17263_v48 = vpack.c.b16 %v731_v34, %v728_v62  ;;  %v17265_v15 = vpack.c.b16 %v732_v33, %v729_v40  ;;  %1038 = vst [vmem:[#allocation2 + $0x29c] sm:$0xf] %v1006_v60 }
 0x154   : > { %v1805_v18 = vpack.c.b16 %v1782_v4, %v1781_v39  ;;  %v1807_v57 = vpack.c.b16 %v1785_v37, %v1784_v54  ;;  %v820_v45 = vshrl.u32 %v17255_v12, 16  ;;  %v23037_v47 = vshll.u32 %v17255_v12, 16  ;;  %1660 = vst [vmem:[#allocation2 + $0x20c] sm:$0xf] %v1006_v60 }
 0x155   : > { %v1806_v51 = vpack.c.b16 %v1783_v6, %v1783_v6  ;;  %v1808_v9 = vpack.c.b16 %v1786_v35, %v1786_v35  ;;  %v23035_v36 = vunpack.c.l.b16 %v17251_v44  ;;  %v23034_v63 = vunpack.c.h.b16 %v17251_v44 }
 0x156   : > { %1837 = vst [vmem:[#allocation2 + $0x60] sm:$0xff] %v1805_v18  ;;  %v17271_v19 = vunpack.c.l.b16 %v697_v50  ;;  %v12495_v59 = vor.u32 %v15442_v26, %v12494_v5  ;;  %v802_v39 = vshrl.u32 %v17263_v48, 16  ;;  %v805_v62 = vshll.u32 %v17263_v48, 16 }
 0x157   : > { %1838 = vst [vmem:[#allocation2 + $0x68] sm:$0xf] %v1806_v51  ;;  %v811_v40 = vshrl.u32 %v17265_v15, 16  ;;  %v814_v4 = vshll.u32 %v17265_v15, 16  ;;  %v822_v6 = vrot.slane %v820_v45, 3  ;;  %v825_v54 = vrot.slane %v23037_v47, 4 }
 0x158   : > { %1839 = vst [vmem:[#allocation2 + $0xcc] sm:$0xff] %v1807_v57  ;;  %v17283_v50 = vpack.c.b16 %v23035_v36, %v1069_v13  ;;  %v17289_v5 = vpack.c.b16 %v23034_v63, %v1070_v22  ;;  %5223 = vmatpush.bf16.msrb.mxu2 %v12495_v59  ;;  %v804_v37 = vrot.slane %v802_v39, 3  ;;  %v807_v35 = vrot.slane %v805_v62, 4 }
 0x159   : > { %1840 = vst [vmem:[#allocation2 + $0xd4] sm:$0xf] %v1808_v9  ;;  %v813_v18 = vrot.slane %v811_v40, 3  ;;  %v816_v34 = vrot.slane %v814_v4, 4  ;;  %v17291_v33 = vor.u32 %v825_v54, %v822_v6  ;;  %v17295_v51 = vpack.c.b16 %v17271_v19, %v17163_v16 }
 0x15a   : > { %v23036_v13 = vshrl.u32 %v17283_v50, 16  ;;  %v1149_v56 = vshll.u32 %v17283_v50, 16  ;;  %v17299_v57 = vor.u32 %v807_v35, %v804_v37  ;;  %v23044_v9 = vshrl.u32 %v17289_v5, 16 }
 0x15b   : > { %v17301_v22 = vor.u32 %v816_v34, %v813_v18  ;;  %v1158_v26 = vshll.u32 %v17289_v5, 16  ;;  %vm23242_vm11 = vsmask.f32 4352  ;;  %v23245_v7 = vshrl.u32 %v17295_v51, 16 }
 0x15c   : > { %v827_v48 = vsel %vm23242_vm11, %v16966_v32, %v17291_v33  ;;  %v1148_v16 = vrot.slane %v23036_v13, 4  ;;  %v1151_v15 = vrot.slane %v1149_v56, 5  ;;  %vm23243_vm4 = vmmov %vm23242_vm11  ;;  %v1157_v10 = vrot.slane %v23044_v9, 4 }
 0x15d   : > { %v809_v60 = vsel %vm23243_vm4, %v16960_v11, %v17299_v57  ;;  %vm23244_vm14 = vmmov %vm23243_vm4  ;;  %v880_v54 = vunpack.c.l.b16 %v827_v48  ;;  %v883_v37 = vunpack.c.h.b16 %v827_v48  ;;  %v1160_v11 = vrot.slane %v1158_v26, 5 }
 0x15e   : > { %v818_v6 = vsel %vm23244_vm14, %v16962_v20, %v17301_v22  ;;  %v878_v35 = vunpack.c.l.b16 %v809_v60  ;;  %v881_v34 = vunpack.c.h.b16 %v809_v60  ;;  %v17317_v13 = vor.u32 %v1151_v15, %v1148_v16 }
 0x15f   : > { %v879_v18 = vunpack.c.l.b16 %v818_v6  ;;  %v882_v32 = vunpack.c.h.b16 %v818_v6  ;;  %v899_v63 = vpack.c.b16 %v880_v54, %v880_v54  ;;  %v901_v36 = vpack.c.b16 %v883_v37, %v883_v37 }
 0x160   : > { %v1166_v17 = vrot.slane %v23245_v7, 4  ;;  %vm23246_vm11 = vsmask.f32 3328  ;;  %v1167_v48 = vshll.u32 %v17295_v51, 16  ;;  %v17327_v60 = vrot.slane %v802_v39, 7 }
 0x161   : > { %v898_v47 = vpack.c.b16 %v879_v18, %v878_v35  ;;  %v900_v59 = vpack.c.b16 %v882_v32, %v881_v34  ;;  %931 = vst [vmem:[#allocation2 + $0x1b8] sm:$0xf] %v899_v63  ;;  %v1153_v20 = vsel %vm23246_vm11, %v16981_v61, %v17317_v13  ;;  %v17329_v16 = vrot.slane %v811_v40, 7  ;;  %vm23247_vm4 = vmmov %vm23246_vm11 }
 0x162   : > { %933 = vst [vmem:[#allocation2 + $0x224] sm:$0xf] %v901_v36  ;;  %v17331_v15 = vor.u32 %v1160_v11, %v1157_v10  ;;  %v1222_v6 = vunpack.c.l.b16 %v1153_v20  ;;  %v1225_v54 = vunpack.c.h.b16 %v1153_v20  ;;  %v17333_v37 = vrot.slane %v820_v45, 7  ;;  %v17353_v11 = vpop.f32.mrf.mxu0 }
 0x163   : > { %v1169_v35 = vrot.slane %v1167_v48, 5  ;;  %v1307_v7 = vor.u32 %v17327_v60, %v805_v62  ;;  %v1310_v18 = vor.u32 %v17329_v16, %v814_v4  ;;  %v17337_v34 = vrot.slane %v1149_v56, 1  ;;  %1608 = vst [vmem:[#allocation2 + $0x120] sm:$0xff] %v898_v47 }
 0x164   : > { %v1162_v61 = vsel %vm23247_vm4, %v16983_v55, %v17331_v15  ;;  %v23248_v39 = vshll.u32 %v17255_v12, 16  ;;  %v17345_v40 = vrot.slane %v1158_v26, 1  ;;  %v17347_v45 = vrot.slane %v1167_v48, 1  ;;  %1609 = vst [vmem:[#allocation2 + $0x128] sm:$0xf] %v899_v63 }
 0x165   : > { %v17349_v32 = vor.u32 %v1169_v35, %v1166_v17  ;;  %v1223_v62 = vunpack.c.l.b16 %v1162_v61  ;;  %v1226_v4 = vunpack.c.h.b16 %v1162_v61  ;;  %vm23249_vm14 = vsmask.f32 256  ;;  %1610 = vst [vmem:[#allocation2 + $0x18c] sm:$0xff] %v900_v59 }
 0x166   : > { %v1313_v10 = vor.u32 %v17333_v37, %v23248_v39  ;;  %v1308_v56 = vsel %vm23249_vm14, %v16995_v29, %v1307_v7  ;;  %vm23250_vm11 = vmmov %vm23249_vm14  ;;  %1611 = vst [vmem:[#allocation2 + $0x194] sm:$0xf] %v901_v36  ;;  %vm23253_vm14 = vsmask.f32 7424  ;;  %vm23275_vm9 = vsmask.f32 4352 }
 0x167   : > { %v1311_v55 = vsel %vm23250_vm11, %v16997_v23, %v1310_v18  ;;  %vm23251_vm4 = vmmov %vm23250_vm11  ;;  %v1362_v26 = vunpack.c.l.b16 %v1308_v56  ;;  %v1365_v20 = vunpack.c.h.b16 %v1308_v56  ;;  %v1171_v17 = vsel %vm23252_vm13, %v16993_v28, %v17349_v32  ;;  %930 = vst [vmem:[#allocation2 + $0x1b0] sm:$0xff] %v898_v47  ;;  %v11774_v28 = vld [vmem:[#allocation2 + $0x18] sm:$0xf] }
 0x168   : > { %v1314_v12 = vsel %vm23251_vm4, %v17002_v8, %v1313_v10  ;;  %v1242_v63 = vpack.c.b16 %v1223_v62, %v1222_v6  ;;  %v1244_v48 = vpack.c.b16 %v1226_v4, %v1225_v54  ;;  %v1363_v35 = vunpack.c.l.b16 %v1311_v55  ;;  %932 = vst [vmem:[#allocation2 + $0x21c] sm:$0xff] %v900_v59  ;;  %vm23254_vm11 = vmmov %vm23253_vm14  ;;  %v15271_v6 = vld [vmem:[#allocation2 + $0x80] sm:$0xf0]  ;;  %v12558_v59 = vld [vmem:[%s22991_s3 + $0x2f0] sm:$0xf] }
 0x169   : > { %v1224_v29 = vunpack.c.l.b16 %v1171_v17  ;;  %v1227_v7 = vunpack.c.h.b16 %v1171_v17  ;;  %v1364_v61 = vunpack.c.l.b16 %v1314_v12  ;;  %v1366_v39 = vunpack.c.h.b16 %v1311_v55  ;;  %vm23256_vm13 = vmmov %vm23254_vm11 }
 0x16a   : > { %v1367_v23 = vunpack.c.h.b16 %v1314_v12  ;;  %v1382_v18 = vpack.c.b16 %v1363_v35, %v1362_v26  ;;  %v1453_v8 = vsel %vm23253_vm14, %v17139_v52, %v17337_v34  ;;  %v1456_v36 = vsel %vm23254_vm11, %v17159_v3, %v17345_v40  ;;  %1274 = vst [vmem:[#allocation2 + $0x1c8] sm:$0xff] %v1242_v63  ;;  %v15458_v52 = vld [vmem:[%s22991_s3 + $0x2f4] sm:$0xf0]  ;;  %v12430_v26 = vld [vmem:[%s22991_s3 + $0x1f0] sm:$0xf]  ;;  %vm23276_vm15 = vmmov %vm23275_vm9 }
 0x16b   : > { %v1243_v54 = vpack.c.b16 %v1224_v29, %v1224_v29  ;;  %v1245_v47 = vpack.c.b16 %v1227_v7, %v1227_v7  ;;  %v1383_v10 = vpack.c.b16 %v1364_v61, %v1364_v61  ;;  %v1384_v62 = vpack.c.b16 %v1366_v39, %v1365_v20  ;;  %1276 = vst [vmem:[#allocation2 + $0x234] sm:$0xff] %v1244_v48  ;;  %v11866_v63 = vld [vmem:[#allocation2 + $0xe0] sm:$0xf]  ;;  %v15296_v48 = vld [vmem:[#allocation2 + $0x148] sm:$0xf0]  ;;  %vm23277_vm1 = vmmov %vm23275_vm9 }
 0x16c   : > { %v17376_v4 = vadd.f32 %v17172_v41, %v16430_v27  ;;  %v23255_v3 = vshrl.u32 %v17184_v43, 16  ;;  %v1731_v55 = vshrl.u32 %v17194_v31, 16  ;;  %1414 = vst [vmem:[#allocation2 + $0x1d4] sm:$0xff] %v1382_v18  ;;  %v1459_v12 = vsel %vm23256_vm13, %v17213_v21, %v17347_v45  ;;  %v15426_v27 = vld [vmem:[%s22991_s3 + $0x1f4] sm:$0xf0] }
 0x16d   : > { %1275 = vst [vmem:[#allocation2 + $0x1d0] sm:$0xf] %v1243_v54  ;;  %v1385_v20 = vpack.c.b16 %v1367_v23, %v1367_v23  ;;  %v1489_v43 = vunpack.c.l.b16 %v1453_v8  ;;  %v1491_v17 = vunpack.c.l.b16 %v1459_v12  ;;  %v12486_v31 = vld [vmem:[%s22991_s3 + $0x260] sm:$0xf]  ;;  %v15440_v21 = vld [vmem:[%s22991_s3 + $0x264] sm:$0xf0]  ;;  %v1492_v35 = vunpack.c.h.b16 %v1453_v8 }
 0x16e   : > { %v17381_v56 = vor.u32 %v23255_v3, %v17224_v58  ;;  %v1490_v58 = vunpack.c.l.b16 %v1456_v36  ;;  %1277 = vst [vmem:[#allocation2 + $0x23c] sm:$0xf] %v1245_v47  ;;  %v1493_v29 = vunpack.c.h.b16 %v1456_v36  ;;  %v1494_v7 = vunpack.c.h.b16 %v1459_v12  ;;  %v12550_v39 = vld [vmem:[%s22991_s3 + $0x2e0] sm:$0xf]  ;;  %v15456_v23 = vld [vmem:[%s22991_s3 + $0x2e4] sm:$0xf0] }
 0x16f   : > { %v17399_v61 = vor.u32 %v15271_v6, %v11774_v28  ;;  %1415 = vst [vmem:[#allocation2 + $0x1dc] sm:$0xf] %v1383_v10  ;;  %v1512_v54 = vpack.c.b16 %v1491_v17, %v1491_v17  ;;  %v12559_v3 = vor.u32 %v15458_v52, %v12558_v59  ;;  %v12431_v9 = vor.u32 %v15426_v27, %v12430_v26  ;;  %v12422_v8 = vld [vmem:[%s22991_s3 + $0x1e0] sm:$0xf]  ;;  %v15424_v36 = vld [vmem:[%s22991_s3 + $0x1e4] sm:$0xf0]  ;;  %v595_v59 = vpop.f32.mrf.mxu0 }
 0x170   : > { %v1511_v18 = vpack.c.b16 %v1490_v58, %v1489_v43  ;;  %1416 = vst [vmem:[#allocation2 + $0x240] sm:$0xff] %v1384_v62  ;;  %v1513_v28 = vpack.c.b16 %v1493_v29, %v1492_v35  ;;  %v1514_v6 = vpack.c.b16 %v1494_v7, %v1494_v7  ;;  %v391_v47 = vadd.s32 48, %v16422_v24 }
 0x171   : > { %5289 = vmatmul.bf16.vlgmr.msrb.gmra.mxu0 %v17399_v61  ;;  %v594_v10 = vadd.f32 %v17172_v41, %v17353_v11  ;;  %1417 = vst [vmem:[#allocation2 + $0x248] sm:$0xf] %v1385_v20  ;;  %5252 = vmatpush.bf16.msrb.mxu3 %v12559_v3  ;;  %v12487_v52 = vor.u32 %v15440_v21, %v12486_v31  ;;  %v23257_v17 = vshrl.u32 %v17190_v46, 16  ;;  %v23258_v46 = vshrl.u32 %v17283_v50, 16 }
 0x172   : > { %5194 = vmatpush.bf16.msrb.mxu1 %v12431_v9  ;;  %v12551_v12 = vor.u32 %v15456_v23, %v12550_v39  ;;  %v12423_v26 = vor.u32 %v15424_v36, %v12422_v8  ;;  %1543 = vst [vmem:[#allocation2 + $0x114] sm:$0xff] %v1511_v18  ;;  %v399_v27 = vand.u32 7, %v391_v47  ;;  %v17418_v58 = vor.u32 %v15296_v48, %v11866_v63 }
 0x173   : > { %v604_v62 = vsub.f32 %v17045_v25, %v594_v10  ;;  %v619_v43 = vpack.c.bf16 %v594_v10, %v594_v10  ;;  %v17423_v35 = vor.u32 %v23257_v17, %v17226_v0  ;;  %v17426_v11 = vor.u32 %v1731_v55, %v17228_v38  ;;  %1544 = vst [vmem:[#allocation2 + $0x11c] sm:$0xf] %v1512_v54 }
 0x174   : > { %5224 = vmatpush.bf16.msrb.mxu2 %v12487_v52  ;;  %v17429_v9 = vadd.s32 56, %v16422_v24  ;;  %v17432_v20 = vadd.f32 %v17172_v41, %v595_v59  ;;  %1545 = vst [vmem:[#allocation2 + $0x180] sm:$0xff] %v1513_v28  ;;  %vm407_vm4 = vcmp.eq.s32.totalorder %v399_v27, 0  ;;  %vm415_vm14 = vcmp.eq.s32.totalorder %v399_v27, 7  ;;  %5178 = vmatmul.bf16.gmra.mxu3 %v17418_v58 }
 0x175   : > { %v618_v31 = vpack.c.bf16 %v17045_v25, %v604_v62  ;;  %v972_v21 = vunpack.c.l.b16 %v619_v43  ;;  %v17439_v0 = vor.u32 %v17337_v34, %v23258_v46  ;;  %v23259_v38 = vshrl.u32 %v17289_v5, 16  ;;  %1546 = vst [vmem:[#allocation2 + $0x188] sm:$0xf] %v1514_v6  ;;  %vm17446_vm11 = vmpackc.low %vm415_vm14, %vm415_vm14  ;;  %5253 = vmatpush.bf16.msrb.mxu3 %v12551_v12 }
 0x176   : > { %v23260_v41 = vmov 0  ;;  %5195 = vmatpush.bf16.msrb.mxu1 %v12423_v26  ;;  %v400_v25 = vand.u32 7, %v17429_v9  ;;  %v659_v34 = vsel %vm17446_vm11, 0, %v619_v43  ;;  %vm17455_vm13 = vmpackc.low %vm407_vm4, %vm407_vm4  ;;  %v23263_v5 = vmov 0  ;;  %1435 = vst [vmem:[#allocation2 + $0x2c0] sm:$0xf] %v619_v43 }
 0x177   : > { %v17444_v24 = vor.u32 %v17345_v40, %v23259_v38  ;;  %v23261_v41 = vsel %vm17446_vm11, 4294967295, %v23260_v41  ;;  %v658_v50 = vsel %vm17446_vm11, 0, %v618_v31  ;;  %v23264_v5 = vsel %vm17455_vm13, 4294967295, %v23263_v5  ;;  %1039 = vst [vmem:[#allocation2 + $0x300] sm:$0xff] %v618_v31 }
 0x178   : > { %23262 = vst [vmem:[#allocation18_spill] sm:$0xff] %v23261_v41  ;;  %v1008_v40 = vpack.c.b16 %v972_v21, %v972_v21  ;;  %v17461_v55 = vpack.c.bf16 %v17432_v20, %v17432_v20  ;;  %v17465_v63 = vsel %vm17455_vm13, 0, %v618_v31  ;;  %v699_v48 = vsel %vm17455_vm13, 0, %v619_v43  ;;  %v15664_v41 = vld [vmem:[%s22991_s3 + $0x964] sm:$0xf0] }
 0x179   : > { %23265 = vst [vmem:[#allocation19_spill] sm:$0xff] %v23264_v5  ;;  %v17469_v29 = vunpack.c.l.b16 %v658_v50  ;;  %v17471_v7 = vunpack.c.h.b16 %v658_v50  ;;  %v17473_v39 = vunpack.c.l.b16 %v659_v34  ;;  %v1075_v23 = vunpack.c.l.b16 %v17465_v63  ;;  %v13382_v5 = vld [vmem:[%s22991_s3 + $0x960] sm:$0xf] }
 0x17a   : > { %1434 = vst [vmem:[#allocation2 + $0x2b8] sm:$0xff] %v618_v31  ;;  %v1076_v18 = vunpack.c.h.b16 %v17465_v63  ;;  %v17477_v54 = vunpack.c.l.b16 %v699_v48  ;;  %v23266_v3 = vshrl.u32 %v17295_v51, 16  ;;  %v605_v6 = vsub.f32 %v17376_v4, %v17432_v20 }
 0x17b   : > { %1040 = vst [vmem:[#allocation2 + $0x308] sm:$0xf] %v1008_v40  ;;  %v746_v36 = vpack.c.b16 %v17469_v29, %v17469_v29  ;;  %v747_v28 = vpack.c.b16 %v17471_v7, %v17471_v7  ;;  %v748_v47 = vpack.c.b16 %v17473_v39, %v17473_v39  ;;  %v23267_v10 = vunpack.c.l.b16 %v17251_v44 }
 0x17c   : > { %v17482_v8 = vor.u32 %v17347_v45, %v23266_v3  ;;  %1661 = vst [vmem:[#allocation2 + $0x270] sm:$0xff] %v618_v31  ;;  %v23268_v45 = vunpack.c.h.b16 %v17251_v44  ;;  %v17502_v52 = vpack.c.b16 %v17477_v54, %v17271_v19  ;;  %vm17504_vm4 = vcmp.eq.s32.totalorder %v400_v25, 0 }
 0x17d   : > { %v1673_v51 = vpack.c.b16 %v1075_v23, %v23267_v10  ;;  %v829_v26 = vshrl.u32 %v746_v36, 16  ;;  %v832_v27 = vshll.u32 %v746_v36, 16  ;;  %v838_v62 = vshrl.u32 %v747_v28, 16  ;;  %1662 = vst [vmem:[#allocation2 + $0x278] sm:$0xf] %v1008_v40 }
 0x17e   : > { %v1674_v59 = vpack.c.b16 %v1076_v18, %v23268_v45  ;;  %v841_v43 = vshll.u32 %v747_v28, 16  ;;  %v847_v17 = vshrl.u32 %v748_v47, 16  ;;  %v850_v9 = vshll.u32 %v748_v47, 16  ;;  %1437 = vst [vmem:[#allocation2 + $0x32c] sm:$0xf] %v17461_v55 }
 0x17f   : > { %v1719_v31 = vshll.u32 %v1673_v51, 16  ;;  %v831_v21 = vrot.slane %v829_v26, 3  ;;  %v834_v46 = vrot.slane %v832_v27, 4  ;;  %v840_v38 = vrot.slane %v838_v62, 3 }
 0x180   : > { %v1727_v44 = vshll.u32 %v1674_v59, 16  ;;  %v843_v19 = vrot.slane %v841_v43, 4  ;;  %v849_v50 = vrot.slane %v847_v17, 3  ;;  %v852_v34 = vrot.slane %v850_v9, 4 }
 0x181   : > { %v1721_v48 = vrot.slane %v1719_v31, 1  ;;  %v835_v10 = vor.u32 %v834_v46, %v831_v21  ;;  %v1735_v36 = vshll.u32 %v17502_v52, 16  ;;  %vm17510_vm14 = vcmp.eq.s32.totalorder %v400_v25, 7 }
 0x182   : > { %v1729_v3 = vrot.slane %v1727_v44, 1  ;;  %v844_v45 = vor.u32 %v843_v19, %v840_v38  ;;  %v853_v28 = vor.u32 %v852_v34, %v849_v50  ;;  %vm23273_vm13 = vsmask.f32 7424 }
 0x183   : > { %v1722_v47 = vsel %vm23273_vm13, %v17381_v56, %v1721_v48  ;;  %vm23274_vm11 = vmmov %vm23273_vm13  ;;  %v1739_v27 = vshrl.u32 %v1673_v51, 16  ;;  %v836_v62 = vsel %vm23275_vm9, %v17299_v57, %v835_v10  ;;  %v1737_v17 = vrot.slane %v1735_v36, 1 }
 0x184   : > { %v1730_v26 = vsel %vm23274_vm11, %v17423_v35, %v1729_v3  ;;  %v845_v43 = vsel %vm23276_vm15, %v17301_v22, %v844_v45  ;;  %v1747_v9 = vshrl.u32 %v1674_v59, 16  ;;  %v854_v25 = vsel %vm23277_vm1, %v17291_v33, %v853_v28  ;;  %vm17533_vm9 = vmpackc.low %vm17510_vm14, %vm17510_vm14 }
 0x185   : > { %v884_v31 = vunpack.c.l.b16 %v836_v62  ;;  %v885_v44 = vunpack.c.l.b16 %v845_v43  ;;  %v887_v21 = vunpack.c.h.b16 %v836_v62  ;;  %v886_v46 = vunpack.c.l.b16 %v854_v25  ;;  %vm17540_vm1 = vmpackc.low %vm17504_vm4, %vm17504_vm4 }
 0x186   : > { %v888_v56 = vunpack.c.h.b16 %v845_v43  ;;  %v889_v38 = vunpack.c.h.b16 %v854_v25  ;;  %v1738_v35 = vsel %vm23274_vm11, %v17426_v11, %v1737_v17  ;;  %v17526_v19 = vor.u32 %v1739_v27, %v1721_v48 }
 0x187   : > { %v902_v51 = vpack.c.b16 %v885_v44, %v884_v31  ;;  %v17528_v50 = vor.u32 %v1747_v9, %v1729_v3  ;;  %v1787_v34 = vunpack.c.l.b16 %v1722_v47  ;;  %v23278_v59 = vmov 0 }
 0x188   : > { %v23279_v59 = vsel %vm17533_vm9, 4294967295, %v23278_v59  ;;  %v903_v10 = vpack.c.b16 %v886_v46, %v886_v46  ;;  %v904_v45 = vpack.c.b16 %v888_v56, %v887_v21  ;;  %v905_v36 = vpack.c.b16 %v889_v38, %v889_v38 }
 0x189   : > { %23280 = vst [vmem:[#allocation20_spill] sm:$0xff] %v23279_v59  ;;  %v1788_v28 = vunpack.c.l.b16 %v1730_v26  ;;  %v23281_v11 = vmov 0  ;;  %v1755_v48 = vshrl.u32 %v17502_v52, 16  ;;  %v1789_v3 = vunpack.c.l.b16 %v1738_v35 }
 0x18a   : > { %v23282_v11 = vsel %vm17540_vm1, 4294967295, %v23281_v11  ;;  %934 = vst [vmem:[#allocation2 + $0x288] sm:$0xff] %v902_v51  ;;  %v1790_v40 = vunpack.c.h.b16 %v1722_v47  ;;  %v1791_v27 = vunpack.c.h.b16 %v1730_v26  ;;  %v1792_v62 = vunpack.c.h.b16 %v1738_v35 }
 0x18b   : > { %23283 = vst [vmem:[#allocation21_spill] sm:$0xff] %v23282_v11  ;;  %v1809_v43 = vpack.c.b16 %v1788_v28, %v1787_v34  ;;  %v17549_v9 = vpack.c.bf16 %v17376_v4, %v605_v6  ;;  %v661_v12 = vsel %vm17533_vm9, 0, %v17461_v55  ;;  %v1810_v25 = vpack.c.b16 %v1789_v3, %v1789_v3  ;;  %v15299_v11 = vld [vmem:[#allocation2 + $0x160] sm:$0xf0] }
 0x18c   : > { %935 = vst [vmem:[#allocation2 + $0x290] sm:$0xf] %v903_v10  ;;  %v1811_v31 = vpack.c.b16 %v1791_v27, %v1790_v40  ;;  %v701_v52 = vsel %vm17540_vm1, 0, %v17461_v55  ;;  %v1286_v47 = vunpack.c.l.b16 %v661_v12  ;;  %v1812_v26 = vpack.c.b16 %v1792_v62, %v1792_v62 }
 0x18d   : > { %936 = vst [vmem:[#allocation2 + $0x2f4] sm:$0xff] %v904_v45  ;;  %v660_v20 = vsel %vm17533_vm9, 0, %v17549_v9  ;;  %v700_v4 = vsel %vm17540_vm1, 0, %v17549_v9  ;;  %v17563_v6 = vunpack.c.l.b16 %v701_v52  ;;  %v17569_v38 = vor.u32 %v1755_v48, %v1737_v17 }
 0x18e   : > { %937 = vst [vmem:[#allocation2 + $0x2fc] sm:$0xf] %v905_v36  ;;  %v17565_v44 = vunpack.c.l.b16 %v700_v4  ;;  %v17567_v21 = vunpack.c.h.b16 %v700_v4  ;;  %v1284_v46 = vunpack.c.l.b16 %v660_v20  ;;  %v1285_v56 = vunpack.c.h.b16 %v660_v20 }
 0x18f   : > { %1841 = vst [vmem:[#allocation2 + $0x138] sm:$0xff] %v1809_v43  ;;  %v17573_v35 = vpack.c.b16 %v17563_v6, %v17477_v54  ;;  %v17576_v51 = vpack.c.b16 %v1286_v47, %v17473_v39  ;;  %vm23284_vm13 = vsmask.f32 3328  ;;  %vm23287_vm11 = vsmask.f32 256 }
 0x190   : > { %1842 = vst [vmem:[#allocation2 + $0x140] sm:$0xf] %v1810_v25  ;;  %v17582_v10 = vpack.c.b16 %v17565_v44, %v1075_v23  ;;  %v17587_v17 = vpack.c.b16 %v17567_v21, %v1076_v18  ;;  %v17590_v45 = vpack.c.b16 %v1284_v46, %v17469_v29  ;;  %v17593_v54 = vpack.c.b16 %v1285_v56, %v17471_v7  ;;  %vm23285_vm4 = vmmov %vm23284_vm13 }
 0x191   : > { %1843 = vst [vmem:[#allocation2 + $0x1a4] sm:$0xff] %v1811_v31  ;;  %v1191_v39 = vshrl.u32 %v17573_v35, 16  ;;  %v1194_v36 = vshll.u32 %v17573_v35, 16  ;;  %v23055_v28 = vshrl.u32 %v17576_v51, 16  ;;  %v1335_v23 = vshll.u32 %v17576_v51, 16  ;;  %vm23286_vm14 = vmmov %vm23285_vm4 }
 0x192   : > { %1844 = vst [vmem:[#allocation2 + $0x1ac] sm:$0xf] %v1812_v26  ;;  %v1173_v63 = vshrl.u32 %v17582_v10, 16  ;;  %v1176_v18 = vshll.u32 %v17582_v10, 16  ;;  %v1182_v48 = vshrl.u32 %v17587_v17, 16  ;;  %v1185_v29 = vshll.u32 %v17587_v17, 16 }
 0x193   : > { %1436 = vst [vmem:[#allocation2 + $0x324] sm:$0xff] %v17549_v9  ;;  %v1193_v7 = vrot.slane %v1191_v39, 4  ;;  %v1196_v3 = vrot.slane %v1194_v36, 5  ;;  %v23056_v40 = vshrl.u32 %v17590_v45, 16  ;;  %v23058_v27 = vshll.u32 %v17590_v45, 16 }
 0x194   : > { %v1175_v62 = vrot.slane %v1173_v63, 4  ;;  %v1178_v43 = vrot.slane %v1176_v18, 5  ;;  %v1184_v12 = vrot.slane %v1182_v48, 4  ;;  %v1187_v25 = vrot.slane %v1185_v29, 5 }
 0x195   : > { %v1197_v31 = vor.u32 %v1196_v3, %v1193_v7  ;;  %v1318_v52 = vrot.slane %v23056_v40, 7  ;;  %v23057_v47 = vshrl.u32 %v17593_v54, 16  ;;  %v1327_v26 = vshll.u32 %v17593_v54, 16 }
 0x196   : > { %v1179_v20 = vor.u32 %v1178_v43, %v1175_v62  ;;  %v1188_v4 = vor.u32 %v1187_v25, %v1184_v12  ;;  %v1334_v46 = vrot.slane %v23055_v28, 7  ;;  %v1461_v56 = vrot.slane %v1176_v18, 1 }
 0x197   : > { %v1198_v10 = vsel %vm23284_vm13, %v17349_v32, %v1197_v31  ;;  %v1321_v17 = vor.u32 %v23058_v27, %v1318_v52  ;;  %v1326_v7 = vrot.slane %v23057_v47, 7  ;;  %v1464_v3 = vrot.slane %v1185_v29, 1  ;;  %vm23288_vm13 = vmmov %vm23287_vm11 }
 0x198   : > { %v1180_v34 = vsel %vm23285_vm4, %v17317_v13, %v1179_v20  ;;  %v1189_v62 = vsel %vm23286_vm14, %v17331_v15, %v1188_v4  ;;  %v1230_v43 = vunpack.c.l.b16 %v1198_v10  ;;  %v1233_v12 = vunpack.c.h.b16 %v1198_v10 }
 0x199   : > { %v1228_v25 = vunpack.c.l.b16 %v1180_v34  ;;  %v1229_v18 = vunpack.c.l.b16 %v1189_v62  ;;  %v1231_v28 = vunpack.c.h.b16 %v1180_v34  ;;  %v1232_v40 = vunpack.c.h.b16 %v1189_v62 }
 0x19a   : > { %v1247_v32 = vpack.c.b16 %v1230_v43, %v1230_v43  ;;  %v1249_v31 = vpack.c.b16 %v1233_v12, %v1233_v12  ;;  %v1322_v52 = vsel %vm23287_vm11, %v17327_v60, %v1321_v17  ;;  %v1329_v29 = vor.u32 %v1327_v26, %v1326_v7 }
 0x19b   : > { %v1246_v47 = vpack.c.b16 %v1229_v18, %v1228_v25  ;;  %v1248_v27 = vpack.c.b16 %v1232_v40, %v1231_v28  ;;  %v1337_v13 = vor.u32 %v1335_v23, %v1334_v46  ;;  %v1368_v15 = vunpack.c.l.b16 %v1322_v52 }
 0x19c   : > { %1279 = vst [vmem:[#allocation2 + $0x2a8] sm:$0xf] %v1247_v32  ;;  %v1330_v20 = vsel %vm23288_vm13, %v17329_v16, %v1329_v29  ;;  %v1371_v34 = vunpack.c.h.b16 %v1322_v52  ;;  %vm23289_vm4 = vsmask.f32 7424  ;;  %v1467_v17 = vrot.slane %v1194_v36, 1 }
 0x19d   : > { %v1462_v4 = vsel %vm23289_vm4, %v17439_v0, %v1461_v56  ;;  %vm23290_vm14 = vmmov %vm23289_vm4  ;;  %1281 = vst [vmem:[#allocation2 + $0x314] sm:$0xf] %v1249_v31  ;;  %v1338_v10 = vsel %vm23287_vm11, %v17333_v37, %v1337_v13  ;;  %v1369_v28 = vunpack.c.l.b16 %v1330_v20  ;;  %v1372_v40 = vunpack.c.h.b16 %v1330_v20 }
 0x19e   : > { %v1465_v60 = vsel %vm23290_vm14, %v17444_v24, %v1464_v3  ;;  %v1370_v46 = vunpack.c.l.b16 %v1338_v10  ;;  %v1373_v7 = vunpack.c.h.b16 %v1338_v10  ;;  %v1469_v62 = vor.u32 %v1461_v56, %v1173_v63  ;;  %vm23291_vm15 = vmmov %vm23289_vm4  ;;  %1278 = vst [vmem:[#allocation2 + $0x2a0] sm:$0xff] %v1246_v47 }
 0x19f   : > { %v1470_v43 = vor.u32 %v1464_v3, %v1182_v48  ;;  %vm23292_vm13 = vcmask 1047552   ;;  %v23293_v16 = vmov 0  ;;  %v1386_v0 = vpack.c.b16 %v1369_v28, %v1368_v15  ;;  %1280 = vst [vmem:[#allocation2 + $0x30c] sm:$0xff] %v1248_v27 }
 0x1a0   : > { %vm17640_vm1 = vmand %vm23292_vm13, %vm23291_vm15  ;;  %v1388_v24 = vpack.c.b16 %v1372_v40, %v1371_v34  ;;  %v1468_v12 = vsel %vm23289_vm4, %v17482_v8, %v1467_v17  ;;  %v1471_v37 = vor.u32 %v1467_v17, %v1191_v39  ;;  %v1387_v36 = vpack.c.b16 %v1370_v46, %v1370_v46 }
 0x1a1   : > { %v23294_v16 = vsel %vm17640_vm1, 4294967295, %v23293_v16  ;;  %v1389_v25 = vpack.c.b16 %v1373_v7, %v1373_v7  ;;  %v1477_v63 = vsel %vm17640_vm1, %v1469_v62, 0  ;;  %v1478_v48 = vsel %vm17640_vm1, %v1470_v43, 0  ;;  %1418 = vst [vmem:[#allocation2 + $0x2ac] sm:$0xff] %v1386_v0 }
 0x1a2   : > { %23295 = vst [vmem:[#allocation22_spill] sm:$0xff] %v23294_v16  ;;  %v1479_v47 = vsel %vm17640_vm1, %v1471_v37, 0  ;;  %v1495_v56 = vunpack.c.l.b16 %v1462_v4  ;;  %v1496_v3 = vunpack.c.l.b16 %v1465_v60  ;;  %v1497_v18 = vunpack.c.l.b16 %v1468_v12  ;;  %v11884_v16 = vld [vmem:[#allocation2 + $0x15c] sm:$0xf0] }
 0x1a3   : > { %1419 = vst [vmem:[#allocation2 + $0x2b4] sm:$0xf] %v1387_v36  ;;  %v1498_v8 = vunpack.c.h.b16 %v1462_v4  ;;  %v1499_v35 = vunpack.c.h.b16 %v1465_v60  ;;  %v1500_v39 = vunpack.c.h.b16 %v1468_v12  ;;  %v1501_v27 = vunpack.c.l.b16 %v1477_v63 }
 0x1a4   : > { %1420 = vst [vmem:[#allocation2 + $0x318] sm:$0xff] %v1388_v24  ;;  %v1502_v32 = vunpack.c.l.b16 %v1478_v48  ;;  %v1503_v31 = vunpack.c.l.b16 %v1479_v47  ;;  %v1504_v52 = vunpack.c.h.b16 %v1477_v63  ;;  %v1505_v29 = vunpack.c.h.b16 %v1478_v48 }
 0x1a5   : > { %1421 = vst [vmem:[#allocation2 + $0x320] sm:$0xf] %v1389_v25  ;;  %v1506_v13 = vunpack.c.h.b16 %v1479_v47  ;;  %v1515_v15 = vpack.c.b16 %v1496_v3, %v1495_v56  ;;  %v1516_v20 = vpack.c.b16 %v1497_v18, %v1497_v18  ;;  %v1517_v34 = vpack.c.b16 %v1499_v35, %v1498_v8 }
 0x1a6   : > { %v1518_v10 = vpack.c.b16 %v1500_v39, %v1500_v39  ;;  %v1519_v28 = vpack.c.b16 %v1502_v32, %v1501_v27  ;;  %v1520_v40 = vpack.c.b16 %v1503_v31, %v1503_v31  ;;  %v1521_v17 = vpack.c.b16 %v1505_v29, %v1504_v52 }
 0x1a7   : > { %v1522_v46 = vpack.c.b16 %v1506_v13, %v1506_v13  ;;  %1547 = vst [vmem:[#allocation2 + $0x1ec] sm:$0xff] %v1515_v15  ;;  %v23296_v4 = vshrl.u32 %v17590_v45, 16  ;;  %v23297_v7 = vshll.u32 %v17590_v45, 16  ;;  %v23298_v43 = vshrl.u32 %v17593_v54, 16 }
 0x1a8   : > { %1548 = vst [vmem:[#allocation2 + $0x1f4] sm:$0xf] %v1516_v20  ;;  %v1560_v24 = vrot.slane %v1327_v26, 4  ;;  %v23299_v12 = vshrl.u32 %v17576_v51, 16  ;;  %v1564_v36 = vrot.slane %v1335_v23, 4  ;;  %v1623_v25 = vunpack.c.h.b16 %v17549_v9 }
 0x1a9   : > { %v1555_v60 = vrot.slane %v23296_v4, 3  ;;  %v1556_v62 = vrot.slane %v23297_v7, 4  ;;  %v1559_v0 = vrot.slane %v23298_v43, 3  ;;  %1549 = vst [vmem:[#allocation2 + $0x258] sm:$0xff] %v1517_v34  ;;  %v1624_v45 = vunpack.c.l.b16 %v17461_v55 }
 0x1aa   : > { %v1563_v37 = vrot.slane %v23299_v12, 3  ;;  %v23300_v48 = vunpack.c.l.b16 %v17549_v9  ;;  %v17673_v54 = vpack.c.b16 %v17565_v44, %v17565_v44  ;;  %1550 = vst [vmem:[#allocation2 + $0x260] sm:$0xf] %v1518_v10  ;;  %v1626_v3 = vpack.c.b16 %v1623_v25, %v1623_v25  ;;  %v15295_v12 = vld [vmem:[#allocation2 + $0x140] sm:$0xf0] }
 0x1ab   : > { %v1557_v63 = vor.u32 %v1556_v62, %v1555_v60  ;;  %v1561_v26 = vor.u32 %v1560_v24, %v1559_v0  ;;  %v17677_v51 = vpack.c.b16 %v17567_v21, %v17567_v21  ;;  %1551 = vst [vmem:[#allocation2 + $0x2c4] sm:$0xff] %v1519_v28  ;;  %vm23301_vm15 = vsmask.f32 4352  ;;  %v11858_v24 = vld [vmem:[#allocation2 + $0xd8] sm:$0xf] }
 0x1ac   : > { %v1625_v47 = vpack.c.b16 %v23300_v48, %v23300_v48  ;;  %v1565_v56 = vor.u32 %v1564_v36, %v1563_v37  ;;  %v1627_v23 = vpack.c.b16 %v1624_v45, %v1624_v45  ;;  %vm23302_vm14 = vcmask 1043456   ;;  %1552 = vst [vmem:[#allocation2 + $0x2cc] sm:$0xf] %v1520_v40  ;;  %vm23303_vm11 = vmmov %vm23301_vm15  ;;  %v15282_v37 = vld [vmem:[#allocation2 + $0xdc] sm:$0xf] }
 0x1ad   : > { %v1558_v55 = vsel %vm23301_vm15, %v17299_v57, %v1557_v63  ;;  %v1570_v9 = vsel %vm16656_vm12, %v1557_v63, 0  ;;  %v1562_v44 = vsel %vm23303_vm11, %v17301_v22, %v1561_v26  ;;  %vm23304_vm13 = vmmov %vm23303_vm11  ;;  %v1571_v21 = vsel %vm16656_vm12, %v1561_v26, 0  ;;  %1553 = vst [vmem:[#allocation2 + $0x330] sm:$0xff] %v1521_v17  ;;  %v11860_v48 = vld [vmem:[#allocation2 + $0x144] sm:$0xf0] }
 0x1ae   : > { %v1629_v18 = vsel %vm23302_vm14, %v1625_v47, 0  ;;  %v1566_v8 = vsel %vm23304_vm13, %v17291_v33, %v1565_v56  ;;  %v1572_v35 = vsel %vm16656_vm12, %v1565_v56, 0  ;;  %v1576_v57 = vunpack.c.l.b16 %v1558_v55  ;;  %1554 = vst [vmem:[#allocation2 + $0x338] sm:$0xf] %v1522_v46  ;;  %vm23305_vm4 = vmmov %vm23302_vm14  ;;  %v12478_v47 = vld [vmem:[%s22991_s3 + $0x250] sm:$0xf] }
 0x1af   : > { %v1577_v39 = vunpack.c.l.b16 %v1562_v44  ;;  %v1578_v27 = vunpack.c.l.b16 %v1566_v8  ;;  %v1579_v32 = vunpack.c.h.b16 %v1558_v55  ;;  %v1580_v31 = vunpack.c.h.b16 %v1562_v44  ;;  %vm23306_vm15 = vmmov %vm23305_vm4 }
 0x1b0   : > { %v1581_v52 = vunpack.c.h.b16 %v1566_v8  ;;  %v1582_v29 = vunpack.c.l.b16 %v1570_v9  ;;  %v1583_v13 = vunpack.c.l.b16 %v1571_v21  ;;  %v1584_v22 = vunpack.c.l.b16 %v1572_v35 }
 0x1b1   : > { %v1585_v15 = vunpack.c.h.b16 %v1570_v9  ;;  %v1586_v20 = vunpack.c.h.b16 %v1571_v21  ;;  %v1587_v33 = vunpack.c.h.b16 %v1572_v35  ;;  %v1588_v34 = vpack.c.b16 %v1577_v39, %v1576_v57  ;;  %v15438_v9 = vld [vmem:[%s22991_s3 + $0x254] sm:$0xf0] }
 0x1b2   : > { %v1589_v10 = vpack.c.b16 %v1578_v27, %v1578_v27  ;;  %v1590_v28 = vpack.c.b16 %v1580_v31, %v1579_v32  ;;  %v1591_v40 = vpack.c.b16 %v1581_v52, %v1581_v52  ;;  %v1592_v4 = vpack.c.b16 %v1583_v13, %v1582_v29 }
 0x1b3   : > { %v1593_v60 = vpack.c.b16 %v1584_v22, %v1584_v22  ;;  %v1594_v17 = vpack.c.b16 %v1586_v20, %v1585_v15  ;;  %v1595_v7 = vpack.c.b16 %v1587_v33, %v1587_v33  ;;  %1612 = vst [vmem:[#allocation2 + $0x1f8] sm:$0xff] %v1588_v34  ;;  %v1631_v62 = vsel %vm23305_vm4, %v1626_v3, 0 }
 0x1b4   : > { %v1633_v46 = vsel %vm23306_vm15, %v1627_v23, 0  ;;  %v1637_v43 = vunpack.c.l.b16 %v1629_v18  ;;  %v1640_v0 = vunpack.c.h.b16 %v1629_v18  ;;  %1613 = vst [vmem:[#allocation2 + $0x200] sm:$0xf] %v1589_v10  ;;  %v1638_v36 = vunpack.c.l.b16 %v1631_v62  ;;  %v11882_v10 = vld [vmem:[#allocation2 + $0xf0] sm:$0xf] }
 0x1b5   : > { %v1639_v25 = vunpack.c.l.b16 %v1633_v46  ;;  %v1641_v63 = vunpack.c.h.b16 %v1631_v62  ;;  %v1642_v45 = vunpack.c.h.b16 %v1633_v46  ;;  %1614 = vst [vmem:[#allocation2 + $0x264] sm:$0xff] %v1590_v28  ;;  %v1678_v26 = vpack.c.b16 %v17563_v6, %v17563_v6  ;;  %v15298_v28 = vld [vmem:[#allocation2 + $0x158] sm:$0xf0]  ;;  %v12414_v62 = vld [vmem:[%s22991_s3 + $0x1d0] sm:$0xf] }
 0x1b6   : > { %v1743_v56 = vshll.u32 %v17673_v54, 16  ;;  %v1751_v3 = vshll.u32 %v17677_v51, 16  ;;  %v1763_v55 = vshrl.u32 %v17673_v54, 16  ;;  %1615 = vst [vmem:[#allocation2 + $0x26c] sm:$0xf] %v1591_v40  ;;  %v1643_v23 = vpack.c.b16 %v1638_v36, %v1637_v43 }
 0x1b7   : > { %v1644_v18 = vpack.c.b16 %v1639_v25, %v1639_v25  ;;  %v1645_v44 = vpack.c.b16 %v1641_v63, %v1640_v0  ;;  %v1646_v8 = vpack.c.b16 %v1642_v45, %v1642_v45  ;;  %1616 = vst [vmem:[#allocation2 + $0x2d0] sm:$0xff] %v1592_v4  ;;  %v1759_v57 = vshll.u32 %v1678_v26, 16  ;;  %v12542_v40 = vld [vmem:[%s22991_s3 + $0x2d0] sm:$0xf]  ;;  %v15454_v4 = vld [vmem:[%s22991_s3 + $0x2d4] sm:$0xf0] }
 0x1b8   : > { %v1745_v21 = vrot.slane %v1743_v56, 1  ;;  %v1753_v35 = vrot.slane %v1751_v3, 1  ;;  %v1766_v6 = vshrl.u32 %v17677_v51, 16  ;;  %1617 = vst [vmem:[#allocation2 + $0x2d8] sm:$0xf] %v1593_v60  ;;  %v1769_v39 = vshrl.u32 %v1678_v26, 16 }
 0x1b9   : > { %v17706_v27 = vor.u32 %v15295_v12, %v11858_v24  ;;  %v17708_v54 = vor.u32 %v15282_v37, %v11860_v48  ;;  %v12479_v32 = vor.u32 %v15438_v9, %v12478_v47  ;;  %1618 = vst [vmem:[#allocation2 + $0x33c] sm:$0xff] %v1594_v17  ;;  %vm23307_vm14 = vsmask.f32 7424  ;;  %v15422_v46 = vld [vmem:[%s22991_s3 + $0x1d4] sm:$0xf0] }
 0x1ba   : > { %v1746_v31 = vsel %vm23307_vm14, %v17526_v19, %v1745_v21  ;;  %vm23308_vm11 = vmmov %vm23307_vm14  ;;  %v1761_v29 = vrot.slane %v1759_v57, 1  ;;  %v1765_v13 = vor.u32 %v1763_v55, %v1745_v21  ;;  %1619 = vst [vmem:[#allocation2 + $0x344] sm:$0xf] %v1595_v7  ;;  %v1768_v22 = vor.u32 %v1766_v6, %v1753_v35  ;;  %v12470_v43 = vld [vmem:[%s22991_s3 + $0x240] sm:$0xf] }
 0x1bb   : > { %v1754_v52 = vsel %vm23308_vm11, %v17528_v50, %v1753_v35  ;;  %v1793_v15 = vunpack.c.l.b16 %v1746_v31  ;;  %v1796_v20 = vunpack.c.h.b16 %v1746_v31  ;;  %5120 = vmatmul.bf16.gmra.mxu1 %v17706_v27  ;;  %5149 = vmatmul.bf16.gmra.mxu2 %v17708_v54  ;;  %1663 = vst [vmem:[#allocation2 + $0x2dc] sm:$0xff] %v1643_v23  ;;  %vm23309_vm13 = vmmov %vm23308_vm11  ;;  %v15436_v0 = vld [vmem:[%s22991_s3 + $0x244] sm:$0xf0]  ;;  %v12534_v25 = vld [vmem:[%s22991_s3 + $0x2c0] sm:$0xf]  ;;  %v17760_v35 = vor.u32 %v15298_v28, %v11882_v10 }
 0x1bc   : > { %v1794_v51 = vunpack.c.l.b16 %v1754_v52  ;;  %v1762_v33 = vsel %vm23309_vm13, %v17569_v38, %v1761_v29  ;;  %v1771_v34 = vor.u32 %v1769_v39, %v1761_v29  ;;  %v1775_v19 = vsel %vm16698_vm0, %v1765_v13, 0  ;;  %5225 = vmatpush.bf16.msrb.mxu2 %v12479_v32  ;;  %1664 = vst [vmem:[#allocation2 + $0x2e4] sm:$0xf] %v1644_v18  ;;  %v15452_v63 = vld [vmem:[%s22991_s3 + $0x2c4] sm:$0xf0] }
 0x1bd   : > { %v1797_v50 = vunpack.c.h.b16 %v1754_v52  ;;  %v1776_v38 = vsel %vm16698_vm0, %v1768_v22, 0  ;;  %v1795_v60 = vunpack.c.l.b16 %v1762_v33  ;;  %v1798_v17 = vunpack.c.h.b16 %v1762_v33  ;;  %1665 = vst [vmem:[#allocation2 + $0x348] sm:$0xff] %v1645_v44  ;;  %v12406_v56 = vld [vmem:[%s22991_s3 + $0x1c0] sm:$0xf]  ;;  %v15420_v3 = vld [vmem:[%s22991_s3 + $0x1c4] sm:$0xf0]  ;;  %5294 = vmatmul.bf16.gmra.mxu0 %v17760_v35 }
 0x1be   : > { %v1799_v7 = vunpack.c.l.b16 %v1775_v19  ;;  %v1777_v24 = vsel %vm16698_vm0, %v1771_v34, 0  ;;  %v1800_v12 = vunpack.c.l.b16 %v1776_v38  ;;  %v1802_v37 = vunpack.c.h.b16 %v1775_v19  ;;  %1666 = vst [vmem:[#allocation2 + $0x350] sm:$0xf] %v1646_v8  ;;  %v11974_v55 = vld [vmem:[#allocation2 + $0x1b8] sm:$0xf] }
 0x1bf   : > { %v1803_v36 = vunpack.c.h.b16 %v1776_v38  ;;  %v1801_v45 = vunpack.c.l.b16 %v1777_v24  ;;  %v1804_v48 = vunpack.c.h.b16 %v1777_v24  ;;  %v1813_v47 = vpack.c.b16 %v1794_v51, %v1793_v15  ;;  %v15323_v18 = vld [vmem:[#allocation2 + $0x220] sm:$0xf0]  ;;  %v12462_v44 = vld [vmem:[%s22991_s3 + $0x230] sm:$0xf]  ;;  %v15434_v8 = vld [vmem:[%s22991_s3 + $0x234] sm:$0xf0] }
 0x1c0   : > { %v1814_v26 = vpack.c.b16 %v1795_v60, %v1795_v60  ;;  %v1815_v9 = vpack.c.b16 %v1797_v50, %v1796_v20  ;;  %v1816_v23 = vpack.c.b16 %v1798_v17, %v1798_v17  ;;  %v1817_v21 = vpack.c.b16 %v1800_v12, %v1799_v7  ;;  %23310 = vst [vmem:[#allocation23_spill] sm:$0xff] %v17760_v35  ;;  %v12878_v6 = vld [vmem:[%s22991_s3 + $0x570] sm:$0xf]  ;;  %v15538_v39 = vld [vmem:[%s22991_s3 + $0x574] sm:$0xf0] }
 0x1c1   : > { %1845 = vst [vmem:[#allocation2 + $0x210] sm:$0xff] %v1813_v47  ;;  %v12543_v57 = vor.u32 %v15454_v4, %v12542_v40  ;;  %v1818_v32 = vpack.c.b16 %v1801_v45, %v1801_v45  ;;  %v1819_v31 = vpack.c.b16 %v1803_v36, %v1802_v37  ;;  %v12415_v52 = vor.u32 %v15422_v46, %v12414_v62  ;;  %v11966_v13 = vld [vmem:[#allocation2 + $0x1b0] sm:$0xf]  ;;  %v15322_v22 = vld [vmem:[#allocation2 + $0x218] sm:$0xf0] }
 0x1c2   : > { %1846 = vst [vmem:[#allocation2 + $0x218] sm:$0xf] %v1814_v26  ;;  %v12471_v29 = vor.u32 %v15436_v0, %v12470_v43  ;;  %v15309_v15 = vld [vmem:[#allocation2 + $0x1b4] sm:$0xf]  ;;  %v11968_v51 = vld [vmem:[#allocation2 + $0x21c] sm:$0xf0]  ;;  %v1820_v20 = vpack.c.b16 %v1804_v48, %v1804_v48  ;;  %v12535_v33 = vor.u32 %v15452_v63, %v12534_v25  ;;  %v17769_v34 = vor.u32 %v15323_v18, %v11974_v55 }
 0x1c3   : > { %1847 = vst [vmem:[#allocation2 + $0x27c] sm:$0xff] %v1815_v9  ;;  %5254 = vmatpush.bf16.msrb.mxu3 %v12543_v57  ;;  %v12870_v19 = vld [vmem:[%s22991_s3 + $0x560] sm:$0xf]  ;;  %v15536_v50 = vld [vmem:[%s22991_s3 + $0x564] sm:$0xf0]  ;;  %5196 = vmatpush.bf16.msrb.mxu1 %v12415_v52  ;;  %v12407_v10 = vor.u32 %v15420_v3, %v12406_v56  ;;  %v12463_v28 = vor.u32 %v15434_v8, %v12462_v44  ;;  %vm23473_vm14 = vcmask 1043456  }
 0x1c4   : > { %1848 = vst [vmem:[#allocation2 + $0x284] sm:$0xf] %v1816_v23  ;;  %5226 = vmatpush.bf16.msrb.mxu2 %v12471_v29  ;;  %v12879_v40 = vor.u32 %v15538_v39, %v12878_v6  ;;  %v12526_v4 = vld [vmem:[%s22991_s3 + $0x2b0] sm:$0xf]  ;;  %v15450_v38 = vld [vmem:[%s22991_s3 + $0x2b4] sm:$0xf0]  ;;  %5183 = vmatmul.bf16.gmra.mxu3 %v17769_v34  ;;  %v12871_v7 = vor.u32 %v15536_v50, %v12870_v19  ;;  %vm23474_vm11 = vmmov %vm23473_vm14 }
 0x1c5   : > { %1849 = vst [vmem:[#allocation2 + $0x2e8] sm:$0xff] %v1817_v21  ;;  %v12398_v60 = vld [vmem:[%s22991_s3 + $0x1b0] sm:$0xf]  ;;  %v15418_v17 = vld [vmem:[%s22991_s3 + $0x1b4] sm:$0xf0]  ;;  %v17796_v43 = vor.u32 %v15322_v22, %v11966_v13  ;;  %v17798_v0 = vor.u32 %v15309_v15, %v11968_v51  ;;  %v12527_v37 = vor.u32 %v15450_v38, %v12526_v4 }
 0x1c6   : > { %1850 = vst [vmem:[#allocation2 + $0x2f0] sm:$0xf] %v1818_v32  ;;  %5397 = vmatpush.bf16.msra.mxu0 %v12879_v40  ;;  %v12454_v62 = vld [vmem:[%s22991_s3 + $0x220] sm:$0xf]  ;;  %v15432_v46 = vld [vmem:[%s22991_s3 + $0x224] sm:$0xf0]  ;;  %v12399_v36 = vor.u32 %v15418_v17, %v12398_v60 }
 0x1c7   : > { %1851 = vst [vmem:[#allocation2 + $0x354] sm:$0xff] %v1819_v31  ;;  %5255 = vmatpush.bf16.msrb.mxu3 %v12535_v33  ;;  %v12862_v24 = vld [vmem:[%s22991_s3 + $0x550] sm:$0xf]  ;;  %v15534_v12 = vld [vmem:[%s22991_s3 + $0x554] sm:$0xf0]  ;;  %5197 = vmatpush.bf16.msrb.mxu1 %v12407_v10  ;;  %v12455_v63 = vor.u32 %v15432_v46, %v12454_v62 }
 0x1c8   : > { %1852 = vst [vmem:[#allocation2 + $0x35c] sm:$0xf] %v1820_v20  ;;  %5227 = vmatpush.bf16.msrb.mxu2 %v12463_v28  ;;  %v12518_v25 = vld [vmem:[%s22991_s3 + $0x2a0] sm:$0xf]  ;;  %v15448_v45 = vld [vmem:[%s22991_s3 + $0x2a4] sm:$0xf0]  ;;  %v12863_v26 = vor.u32 %v15534_v12, %v12862_v24 }
 0x1c9   : > { %v12390_v48 = vld [vmem:[%s22991_s3 + $0x1a0] sm:$0xf]  ;;  %v15416_v47 = vld [vmem:[%s22991_s3 + $0x1a4] sm:$0xf0]  ;;  %v12446_v56 = vld [vmem:[%s22991_s3 + $0x210] sm:$0xf]  ;;  %v12519_v44 = vor.u32 %v15448_v45, %v12518_v25 }
 0x1ca   : > { %5398 = vmatpush.bf16.msra.mxu0 %v12871_v7  ;;  %v15430_v3 = vld [vmem:[%s22991_s3 + $0x214] sm:$0xf0]  ;;  %v12854_v55 = vld [vmem:[%s22991_s3 + $0x540] sm:$0xf]  ;;  %v15532_v9 = vld [vmem:[%s22991_s3 + $0x544] sm:$0xf0]  ;;  %v12391_v8 = vor.u32 %v15416_v47, %v12390_v48 }
 0x1cb   : > { %5125 = vmatmul.bf16.gmra.mxu1 %v17796_v43  ;;  %5154 = vmatmul.bf16.gmra.mxu2 %v17798_v0  ;;  %v11990_v23 = vld [vmem:[#allocation2 + $0x1c8] sm:$0xf]  ;;  %v15325_v18 = vld [vmem:[#allocation2 + $0x230] sm:$0xf0]  ;;  %v12510_v21 = vld [vmem:[%s22991_s3 + $0x290] sm:$0xf]  ;;  %v12447_v57 = vor.u32 %v15430_v3, %v12446_v56  ;;  %v12855_v31 = vor.u32 %v15532_v9, %v12854_v55 }
 0x1cc   : > { %5256 = vmatpush.bf16.msrb.mxu3 %v12527_v37  ;;  %5198 = vmatpush.bf16.msrb.mxu1 %v12399_v36  ;;  %v15446_v6 = vld [vmem:[%s22991_s3 + $0x294] sm:$0xf0]  ;;  %v12382_v39 = vld [vmem:[%s22991_s3 + $0x190] sm:$0xf]  ;;  %v12438_v29 = vld [vmem:[%s22991_s3 + $0x200] sm:$0xf]  ;;  %v17853_v22 = vor.u32 %v15325_v18, %v11990_v23 }
 0x1cd   : > { %5228 = vmatpush.bf16.msrb.mxu2 %v12455_v63  ;;  %v15414_v32 = vld [vmem:[%s22991_s3 + $0x194] sm:$0xf0]  ;;  %v12846_v52 = vld [vmem:[%s22991_s3 + $0x530] sm:$0xf]  ;;  %v15428_v13 = vld [vmem:[%s22991_s3 + $0x204] sm:$0xf0]  ;;  %v12511_v50 = vor.u32 %v15446_v6, %v12510_v21 }
 0x1ce   : > { %5399 = vmatpush.bf16.msra.mxu0 %v12863_v26  ;;  %23311 = vst [vmem:[#allocation24_spill] sm:$0xff] %v17853_v22  ;;  %v15530_v15 = vld [vmem:[%s22991_s3 + $0x534] sm:$0xf0]  ;;  %v12750_v51 = vld [vmem:[%s22991_s3 + $0x470] sm:$0xf]  ;;  %v12383_v10 = vor.u32 %v15414_v32, %v12382_v39  ;;  %v12439_v40 = vor.u32 %v15428_v13, %v12438_v29 }
 0x1cf   : > { %v15506_v20 = vld [vmem:[%s22991_s3 + $0x474] sm:$0xf0]  ;;  %v12082_v33 = vld [vmem:[#allocation2 + $0x290] sm:$0xf]  ;;  %v15350_v19 = vld [vmem:[#allocation2 + $0x2f8] sm:$0xf0]  ;;  %v12847_v17 = vor.u32 %v15530_v15, %v12846_v52  ;;  %5299 = vmatmul.bf16.gmra.mxu0 %v17853_v22 }
 0x1d0   : > { %5257 = vmatpush.bf16.msrb.mxu3 %v12519_v44  ;;  %5199 = vmatpush.bf16.msrb.mxu1 %v12391_v8  ;;  %v12502_v28 = vld [vmem:[%s22991_s3 + $0x280] sm:$0xf]  ;;  %v15444_v4 = vld [vmem:[%s22991_s3 + $0x284] sm:$0xf0]  ;;  %v12751_v46 = vor.u32 %v15506_v20, %v12750_v51  ;;  %v17883_v24 = vor.u32 %v15350_v19, %v12082_v33  ;;  %v15349_v37 = vld [vmem:[#allocation2 + $0x2f0] sm:$0xf0] }
 0x1d1   : > { %5229 = vmatpush.bf16.msrb.mxu2 %v12447_v57  ;;  %v12374_v38 = vld [vmem:[%s22991_s3 + $0x180] sm:$0xf]  ;;  %v15412_v60 = vld [vmem:[%s22991_s3 + $0x184] sm:$0xf0]  ;;  %v12814_v36 = vld [vmem:[%s22991_s3 + $0x4f0] sm:$0xf]  ;;  %v12503_v45 = vor.u32 %v15444_v4, %v12502_v28 }
 0x1d2   : > { %5400 = vmatpush.bf16.msra.mxu0 %v12855_v31  ;;  %v12838_v7 = vld [vmem:[%s22991_s3 + $0x520] sm:$0xf]  ;;  %v15528_v62 = vld [vmem:[%s22991_s3 + $0x524] sm:$0xf0]  ;;  %v15522_v25 = vld [vmem:[%s22991_s3 + $0x4f4] sm:$0xf0]  ;;  %v12375_v48 = vor.u32 %v15412_v60, %v12374_v38 }
 0x1d3   : > { %v12074_v12 = vld [vmem:[#allocation2 + $0x288] sm:$0xf]  ;;  %v12686_v63 = vld [vmem:[%s22991_s3 + $0x3f0] sm:$0xf]  ;;  %v15490_v47 = vld [vmem:[%s22991_s3 + $0x3f4] sm:$0xf0]  ;;  %v12815_v9 = vor.u32 %v15522_v25, %v12814_v36  ;;  %v12839_v44 = vor.u32 %v15528_v62, %v12838_v7 }
 0x1d4   : > { %5258 = vmatpush.bf16.msrb.mxu3 %v12511_v50  ;;  %5200 = vmatpush.bf16.msrb.mxu1 %v12383_v10  ;;  %v12742_v26 = vld [vmem:[%s22991_s3 + $0x460] sm:$0xf]  ;;  %v15504_v56 = vld [vmem:[%s22991_s3 + $0x464] sm:$0xf0]  ;;  %v15336_v3 = vld [vmem:[#allocation2 + $0x28c] sm:$0xf]  ;;  %v12687_v23 = vor.u32 %v15490_v47, %v12686_v63  ;;  %v17922_v31 = vor.u32 %v15349_v37, %v12074_v12 }
 0x1d5   : > { %5188 = vmatmul.bf16.gmra.mxu3 %v17883_v24  ;;  %v12076_v55 = vld [vmem:[#allocation2 + $0x2f4] sm:$0xf0]  ;;  %5230 = vmatpush.bf16.msrb.mxu2 %v12439_v40  ;;  %v12806_v18 = vld [vmem:[%s22991_s3 + $0x4e0] sm:$0xf]  ;;  %v12743_v8 = vor.u32 %v15504_v56, %v12742_v26  ;;  %v15520_v21 = vld [vmem:[%s22991_s3 + $0x4e4] sm:$0xf0] }
 0x1d6   : > { %5401 = vmatpush.bf16.msra.mxu0 %v12847_v17  ;;  %v12678_v57 = vld [vmem:[%s22991_s3 + $0x3e0] sm:$0xf]  ;;  %v15488_v6 = vld [vmem:[%s22991_s3 + $0x3e4] sm:$0xf0]  ;;  %v12830_v39 = vld [vmem:[%s22991_s3 + $0x510] sm:$0xf]  ;;  %v17924_v52 = vor.u32 %v15336_v3, %v12076_v55  ;;  %v12807_v29 = vor.u32 %v15520_v21, %v12806_v18 }
 0x1d7   : > { %v15526_v32 = vld [vmem:[%s22991_s3 + $0x514] sm:$0xf0]  ;;  %v12679_v13 = vor.u32 %v15488_v6, %v12678_v57  ;;  %v12822_v51 = vld [vmem:[%s22991_s3 + $0x500] sm:$0xf]  ;;  %v15524_v20 = vld [vmem:[%s22991_s3 + $0x504] sm:$0xf0] }
 0x1d8   : > { %5259 = vmatpush.bf16.msrb.mxu3 %v12503_v45  ;;  %5201 = vmatpush.bf16.msrb.mxu1 %v12375_v48  ;;  %v12831_v15 = vor.u32 %v15526_v32, %v12830_v39  ;;  %v12734_v33 = vld [vmem:[%s22991_s3 + $0x450] sm:$0xf]  ;;  %v15502_v19 = vld [vmem:[%s22991_s3 + $0x454] sm:$0xf0]  ;;  %v12098_v50 = vld [vmem:[#allocation2 + $0x2a0] sm:$0xf]  ;;  %v12823_v40 = vor.u32 %v15524_v20, %v12822_v51 }
 0x1d9   : > { %5339 = vmatpush.bf16.msra.mxu2 %v12751_v46  ;;  %v15352_v10 = vld [vmem:[#allocation2 + $0x308] sm:$0xf0]  ;;  %v12735_v28 = vor.u32 %v15502_v19, %v12734_v33  ;;  %v15257_v38 = vld [vmem:[#allocation2 + $0x14] sm:$0xf]  ;;  %v11768_v60 = vld [vmem:[#allocation2 + $0x7c] sm:$0xf0] }
 0x1da   : > { %5402 = vmatpush.bf16.msra.mxu0 %v12839_v44  ;;  %v17940_v4 = vor.u32 %v15352_v10, %v12098_v50  ;;  %v17943_v17 = vor.u32 %v15257_v38, %v11768_v60  ;;  %v12798_v7 = vld [vmem:[%s22991_s3 + $0x4d0] sm:$0xf]  ;;  %v15518_v62 = vld [vmem:[%s22991_s3 + $0x4d4] sm:$0xf0]  ;;  %v15256_v12 = vld [vmem:[#allocation2 + $0xc] sm:$0xf] }
 0x1db   : > { %5130 = vmatmul.bf16.gmra.mxu1 %v17922_v31  ;;  %5159 = vmatmul.bf16.gmra.mxu2 %v17924_v52  ;;  %v12670_v46 = vld [vmem:[%s22991_s3 + $0x3d0] sm:$0xf]  ;;  %v11760_v37 = vld [vmem:[#allocation2 + $0x74] sm:$0xf0]  ;;  %v12799_v36 = vor.u32 %v15518_v62, %v12798_v7  ;;  %v12726_v63 = vld [vmem:[%s22991_s3 + $0x440] sm:$0xf] }
 0x1dc   : > { %5368 = vmatpush.bf16.msra.mxu3 %v12815_v9  ;;  %5310 = vmatpush.bf16.msra.mxu1 %v12687_v23  ;;  %23312 = vst [vmem:[#allocation25_spill] sm:$0xff] %v17940_v4  ;;  %v15486_v25 = vld [vmem:[%s22991_s3 + $0x3d4] sm:$0xf0]  ;;  %v15500_v45 = vld [vmem:[%s22991_s3 + $0x444] sm:$0xf0] }
 0x1dd   : > { %5340 = vmatpush.bf16.msra.mxu2 %v12743_v8  ;;  %23313 = vst [vmem:[#allocation26_spill] sm:$0xff] %v17943_v17  ;;  %v12671_v48 = vor.u32 %v15486_v25, %v12670_v46  ;;  %v12727_v47 = vor.u32 %v15500_v45, %v12726_v63  ;;  %v12790_v26 = vld [vmem:[%s22991_s3 + $0x4c0] sm:$0xf]  ;;  %v15516_v56 = vld [vmem:[%s22991_s3 + $0x4c4] sm:$0xf0]  ;;  %v17976_v8 = vor.u32 %v15256_v12, %v11760_v37 }
 0x1de   : > { %5403 = vmatpush.bf16.msra.mxu0 %v12831_v15  ;;  %v12662_v3 = vld [vmem:[%s22991_s3 + $0x3c0] sm:$0xf]  ;;  %v11766_v55 = vld [vmem:[#allocation2 + $0x10] sm:$0xf]  ;;  %v15270_v9 = vld [vmem:[#allocation2 + $0x78] sm:$0xf0]  ;;  %v12791_v23 = vor.u32 %v15516_v56, %v12790_v26 }
 0x1df   : > { %5304 = vmatmul.bf16.gmra.mxu0 %v17940_v4  ;;  %v15484_v18 = vld [vmem:[%s22991_s3 + $0x3c4] sm:$0xf0]  ;;  %v17978_v21 = vor.u32 %v15270_v9, %v11766_v55  ;;  %v12718_v57 = vld [vmem:[%s22991_s3 + $0x430] sm:$0xf]  ;;  %v15498_v6 = vld [vmem:[%s22991_s3 + $0x434] sm:$0xf0] }
 0x1e0   : > { %5369 = vmatpush.bf16.msra.mxu3 %v12807_v29  ;;  %5311 = vmatpush.bf16.msra.mxu1 %v12679_v13  ;;  %v12663_v44 = vor.u32 %v15484_v18, %v12662_v3  ;;  %v12719_v39 = vor.u32 %v15498_v6, %v12718_v57  ;;  %v11790_v32 = vld [vmem:[#allocation2 + $0x28] sm:$0xf]  ;;  %v15273_v29 = vld [vmem:[#allocation2 + $0x90] sm:$0xf0]  ;;  %v11876_v13 = vld [vmem:[#allocation2 + $0x154] sm:$0xf0] }
 0x1e1   : > { %5341 = vmatpush.bf16.msra.mxu2 %v12735_v28  ;;  %v17988_v15 = vor.u32 %v15273_v29, %v11790_v32  ;;  %v15284_v51 = vld [vmem:[#allocation2 + $0xec] sm:$0xf]  ;;  %v13134_v33 = vld [vmem:[%s22991_s3 + $0x770] sm:$0xf]  ;;  %v15602_v19 = vld [vmem:[%s22991_s3 + $0x774] sm:$0xf0] }
 0x1e2   : > { %5404 = vmatpush.bf16.msra.mxu0 %v12823_v40  ;;  %v17991_v20 = vor.u32 %v15284_v51, %v11876_v13  ;;  %v12782_v50 = vld [vmem:[%s22991_s3 + $0x4b0] sm:$0xf]  ;;  %v15297_v28 = vld [vmem:[#allocation2 + $0x150] sm:$0xf0]  ;;  %v13135_v40 = vor.u32 %v15602_v19, %v13134_v33  ;;  %v15514_v38 = vld [vmem:[%s22991_s3 + $0x4b4] sm:$0xf0] }
 0x1e3   : > { %23314 = vst [vmem:[#allocation27_spill] sm:$0xff] %v17988_v15  ;;  %v11868_v10 = vld [vmem:[#allocation2 + $0x14c] sm:$0xf0]  ;;  %v15482_v7 = vld [vmem:[%s22991_s3 + $0x3b4] sm:$0xf0]  ;;  %v12783_v62 = vor.u32 %v15514_v38, %v12782_v50 }
 0x1e4   : > { %5370 = vmatpush.bf16.msra.mxu3 %v12799_v36  ;;  %5312 = vmatpush.bf16.msra.mxu1 %v12671_v48  ;;  %23315 = vst [vmem:[#allocation28_spill] sm:$0xff] %v17991_v20  ;;  %v12654_v60 = vld [vmem:[%s22991_s3 + $0x3b0] sm:$0xf]  ;;  %v13126_v12 = vld [vmem:[%s22991_s3 + $0x760] sm:$0xf] }
 0x1e5   : > { %5260 = vmatmul.bf16.vlgmr.msrb.gmra.mxu3 %v17943_v17  ;;  %5342 = vmatpush.bf16.msra.mxu2 %v12727_v47  ;;  %v12655_v46 = vor.u32 %v15482_v7, %v12654_v60  ;;  %v15600_v37 = vld [vmem:[%s22991_s3 + $0x764] sm:$0xf0]  ;;  %v12710_v36 = vld [vmem:[%s22991_s3 + $0x420] sm:$0xf]  ;;  %v13118_v45 = vld [vmem:[%s22991_s3 + $0x750] sm:$0xf] }
 0x1e6   : > { %5513 = vmatpush.bf16.msrb.mxu0 %v13135_v40  ;;  %v13127_v25 = vor.u32 %v15600_v37, %v13126_v12  ;;  %v15496_v63 = vld [vmem:[%s22991_s3 + $0x424] sm:$0xf0]  ;;  %v15598_v48 = vld [vmem:[%s22991_s3 + $0x754] sm:$0xf0]  ;;  %v12774_v26 = vld [vmem:[%s22991_s3 + $0x4a0] sm:$0xf] }
 0x1e7   : > { %v12711_v47 = vor.u32 %v15496_v63, %v12710_v36  ;;  %v15512_v56 = vld [vmem:[%s22991_s3 + $0x4a4] sm:$0xf0]  ;;  %v12646_v3 = vld [vmem:[%s22991_s3 + $0x3a0] sm:$0xf]  ;;  %v15283_v55 = vld [vmem:[#allocation2 + $0xe4] sm:$0xf] }
 0x1e8   : > { %5371 = vmatpush.bf16.msra.mxu3 %v12791_v23  ;;  %5313 = vmatpush.bf16.msra.mxu1 %v12663_v44  ;;  %v11874_v9 = vld [vmem:[#allocation2 + $0xe8] sm:$0xf]  ;;  %v12775_v23 = vor.u32 %v15512_v56, %v12774_v26  ;;  %v18042_v44 = vor.u32 %v15283_v55, %v11868_v10  ;;  %v13110_v32 = vld [vmem:[%s22991_s3 + $0x740] sm:$0xf]  ;;  %v12702_v13 = vld [vmem:[%s22991_s3 + $0x410] sm:$0xf] }
 0x1e9   : > { %5343 = vmatpush.bf16.msra.mxu2 %v12719_v39  ;;  %v15480_v18 = vld [vmem:[%s22991_s3 + $0x3a4] sm:$0xf0]  ;;  %v18044_v57 = vor.u32 %v15297_v28, %v11874_v9  ;;  %v13119_v39 = vor.u32 %v15598_v48, %v13118_v45  ;;  %v15494_v51 = vld [vmem:[%s22991_s3 + $0x414] sm:$0xf0]  ;;  %v11898_v19 = vld [vmem:[#allocation2 + $0x100] sm:$0xf] }
 0x1ea   : > { %v12647_v6 = vor.u32 %v15480_v18, %v12646_v3  ;;  %5514 = vmatpush.bf16.msrb.mxu0 %v13127_v25  ;;  %v15596_v29 = vld [vmem:[%s22991_s3 + $0x744] sm:$0xf0]  ;;  %v12703_v33 = vor.u32 %v15494_v51, %v12702_v13  ;;  %v15300_v50 = vld [vmem:[#allocation2 + $0x168] sm:$0xf0]  ;;  %v11984_v28 = vld [vmem:[#allocation2 + $0x22c] sm:$0xf0] }
 0x1eb   : > { %5202 = vmatmul.bf16.vlgmr.msrb.gmra.mxu1 %v17976_v8  ;;  %5231 = vmatmul.bf16.vlgmr.msrb.gmra.mxu2 %v17978_v21  ;;  %23316 = vst [vmem:[#allocation29_spill] sm:$0xff] %v18044_v57  ;;  %v13111_v10 = vor.u32 %v15596_v29, %v13110_v32  ;;  %v18060_v40 = vor.u32 %v15300_v50, %v11898_v19  ;;  %v15311_v38 = vld [vmem:[#allocation2 + $0x1c4] sm:$0xf]  ;;  %v13102_v7 = vld [vmem:[%s22991_s3 + $0x730] sm:$0xf] }
 0x1ec   : > { %5372 = vmatpush.bf16.msra.mxu3 %v12783_v62  ;;  %5314 = vmatpush.bf16.msra.mxu1 %v12655_v46  ;;  %v18063_v60 = vor.u32 %v15311_v38, %v11984_v28  ;;  %v15594_v62 = vld [vmem:[%s22991_s3 + $0x734] sm:$0xf0]  ;;  %v12766_v46 = vld [vmem:[%s22991_s3 + $0x490] sm:$0xf]  ;;  %v11976_v12 = vld [vmem:[#allocation2 + $0x224] sm:$0xf0] }
 0x1ed   : > { %5344 = vmatpush.bf16.msra.mxu2 %v12711_v47  ;;  %23317 = vst [vmem:[#allocation30_spill] sm:$0xff] %v18060_v40  ;;  %v15324_v37 = vld [vmem:[#allocation2 + $0x228] sm:$0xf0]  ;;  %v13103_v36 = vor.u32 %v15594_v62, %v13102_v7  ;;  %v15510_v25 = vld [vmem:[%s22991_s3 + $0x494] sm:$0xf0] }
 0x1ee   : > { %5515 = vmatpush.bf16.msrb.mxu0 %v13119_v39  ;;  %23318 = vst [vmem:[#allocation31_spill] sm:$0xff] %v18063_v60  ;;  %v12638_v63 = vld [vmem:[%s22991_s3 + $0x390] sm:$0xf]  ;;  %v15478_v45 = vld [vmem:[%s22991_s3 + $0x394] sm:$0xf0]  ;;  %v12767_v48 = vor.u32 %v15510_v25, %v12766_v46 }
 0x1ef   : > { %5405 = vmatmul.bf16.vlgmr.msra.gmra.mxu0 %v17988_v15  ;;  %v12639_v47 = vor.u32 %v15478_v45, %v12638_v63  ;;  %v13094_v26 = vld [vmem:[%s22991_s3 + $0x720] sm:$0xf]  ;;  %v15592_v56 = vld [vmem:[%s22991_s3 + $0x724] sm:$0xf0]  ;;  %v15590_v18 = vld [vmem:[%s22991_s3 + $0x714] sm:$0xf0] }
 0x1f0   : > { %5373 = vmatpush.bf16.msra.mxu3 %v12775_v23  ;;  %5315 = vmatpush.bf16.msra.mxu1 %v12647_v6  ;;  %v12694_v3 = vld [vmem:[%s22991_s3 + $0x400] sm:$0xf]  ;;  %v13095_v55 = vor.u32 %v15592_v56, %v13094_v26  ;;  %v15492_v9 = vld [vmem:[%s22991_s3 + $0x404] sm:$0xf0]  ;;  %v13086_v23 = vld [vmem:[%s22991_s3 + $0x710] sm:$0xf] }
 0x1f1   : > { %5345 = vmatpush.bf16.msra.mxu2 %v12703_v33  ;;  %v12695_v6 = vor.u32 %v15492_v9, %v12694_v3  ;;  %v12758_v39 = vld [vmem:[%s22991_s3 + $0x480] sm:$0xf]  ;;  %v15508_v32 = vld [vmem:[%s22991_s3 + $0x484] sm:$0xf0]  ;;  %v15310_v13 = vld [vmem:[#allocation2 + $0x1bc] sm:$0xf]  ;;  %v13087_v38 = vor.u32 %v15590_v18, %v13086_v23 }
 0x1f2   : > { %5516 = vmatpush.bf16.msrb.mxu0 %v13111_v10  ;;  %v12630_v29 = vld [vmem:[%s22991_s3 + $0x380] sm:$0xf]  ;;  %v12759_v33 = vor.u32 %v15508_v32, %v12758_v39  ;;  %v15476_v19 = vld [vmem:[%s22991_s3 + $0x384] sm:$0xf0]  ;;  %v18114_v50 = vor.u32 %v15310_v13, %v11976_v12  ;;  %v13006_v12 = vld [vmem:[%s22991_s3 + $0x670] sm:$0xf] }
 0x1f3   : > { %v11982_v51 = vld [vmem:[#allocation2 + $0x1c0] sm:$0xf]  ;;  %v12631_v28 = vor.u32 %v15476_v19, %v12630_v29  ;;  %v15588_v46 = vld [vmem:[%s22991_s3 + $0x704] sm:$0xf0]  ;;  %v12006_v25 = vld [vmem:[#allocation2 + $0x1d8] sm:$0xf] }
 0x1f4   : > { %5374 = vmatpush.bf16.msra.mxu3 %v12767_v48  ;;  %5316 = vmatpush.bf16.msra.mxu1 %v12639_v47  ;;  %v18116_v10 = vor.u32 %v15324_v37, %v11982_v51  ;;  %v2397_v7 = vld [vmem:[%s22992_s4] sm:$0x3]  ;;  %v15570_v37 = vld [vmem:[%s22991_s3 + $0x674] sm:$0xf0]  ;;  %v15327_v63 = vld [vmem:[#allocation2 + $0x240] sm:$0xf0]  ;;  %v5116_v47 = vpop.f32.mrf.mxu1 }
 0x1f5   : > { %5265 = vmatmul.bf16.gmra.mxu3 %v17991_v20  ;;  %5346 = vmatpush.bf16.msra.mxu2 %v12695_v6  ;;  %v13078_v62 = vld [vmem:[%s22991_s3 + $0x700] sm:$0xf]  ;;  %v18135_v45 = vperm.slane %v2397_v7, 0  ;;  %v12092_v26 = vld [vmem:[#allocation2 + $0x304] sm:$0xf0]  ;;  %v18137_v56 = vor.u32 %v15327_v63, %v12006_v25  ;;  %v5145_v6 = vpop.f32.mrf.mxu2 }
 0x1f6   : > { %5517 = vmatpush.bf16.msrb.mxu0 %v13103_v36  ;;  %23319 = vst [vmem:[#allocation32_spill] sm:$0xff] %v18116_v10  ;;  %v13007_v36 = vor.u32 %v15570_v37, %v13006_v12  ;;  %v13079_v48 = vor.u32 %v15588_v46, %v13078_v62  ;;  %v15338_v3 = vld [vmem:[#allocation2 + $0x29c] sm:$0xf]  ;;  %v13070_v23 = vld [vmem:[%s22991_s3 + $0x6f0] sm:$0xf] }
 0x1f7   : > { %23320 = vst [vmem:[#allocation33_spill] sm:$0xff] %v18137_v56  ;;  %v18141_v9 = vor.u32 %v15338_v3, %v12092_v26  ;;  %v15586_v18 = vld [vmem:[%s22991_s3 + $0x6f4] sm:$0xf0]  ;;  %v12942_v39 = vld [vmem:[%s22991_s3 + $0x5f0] sm:$0xf] }
 0x1f8   : > { %5375 = vmatpush.bf16.msra.mxu3 %v12759_v33  ;;  %5317 = vmatpush.bf16.msra.mxu1 %v12631_v28  ;;  %v13071_v32 = vor.u32 %v15586_v18, %v13070_v23  ;;  %v15554_v13 = vld [vmem:[%s22991_s3 + $0x5f4] sm:$0xf0]  ;;  %v12998_v51 = vld [vmem:[%s22991_s3 + $0x660] sm:$0xf]  ;;  %v15568_v33 = vld [vmem:[%s22991_s3 + $0x664] sm:$0xf0] }
 0x1f9   : > { %5455 = vmatpush.bf16.msrb.mxu2 %v13007_v36  ;;  %23321 = vst [vmem:[#allocation34_spill] sm:$0xff] %v18141_v9  ;;  %v12943_v19 = vor.u32 %v15554_v13, %v12942_v39  ;;  %v12999_v28 = vor.u32 %v15568_v33, %v12998_v51  ;;  %v15584_v7 = vld [vmem:[%s22991_s3 + $0x6e4] sm:$0xf0]  ;;  %v12934_v62 = vld [vmem:[%s22991_s3 + $0x5e0] sm:$0xf]  ;;  %v18190_v13 = vpop.f32.mrf.mxu3 }
 0x1fa   : > { %5518 = vmatpush.bf16.msrb.mxu0 %v13095_v55  ;;  %v5117_v55 = vadd.f32 %v5116_v47, %v18135_v45  ;;  %v12084_v46 = vld [vmem:[#allocation2 + $0x2fc] sm:$0xf0]  ;;  %v15351_v12 = vld [vmem:[#allocation2 + $0x300] sm:$0xf0]  ;;  %v15552_v36 = vld [vmem:[%s22991_s3 + $0x5e4] sm:$0xf0] }
 0x1fb   : > { %5207 = vmatmul.bf16.gmra.mxu1 %v18042_v44  ;;  %5236 = vmatmul.bf16.gmra.mxu2 %v18044_v57  ;;  %v15337_v25 = vld [vmem:[#allocation2 + $0x294] sm:$0xf]  ;;  %v12090_v63 = vld [vmem:[#allocation2 + $0x298] sm:$0xf]  ;;  %v12114_v3 = vld [vmem:[#allocation2 + $0x2b0] sm:$0xf] }
 0x1fc   : > { %v18152_v29 = vadd.f32 %v5145_v6, %v5117_v55  ;;  %5484 = vmatpush.bf16.msrb.mxu3 %v13071_v32  ;;  %5426 = vmatpush.bf16.msrb.mxu1 %v12943_v19  ;;  %v18176_v47 = vor.u32 %v15337_v25, %v12084_v46  ;;  %v18178_v26 = vor.u32 %v15351_v12, %v12090_v63  ;;  %v15354_v55 = vld [vmem:[#allocation2 + $0x318] sm:$0xf0]  ;;  %v15259_v23 = vld [vmem:[#allocation2 + $0x24] sm:$0xf]  ;;  %v11784_v18 = vld [vmem:[#allocation2 + $0x8c] sm:$0xf0] }
 0x1fd   : > { %5456 = vmatpush.bf16.msrb.mxu2 %v12999_v28  ;;  %v12990_v6 = vld [vmem:[%s22991_s3 + $0x650] sm:$0xf]  ;;  %v15566_v39 = vld [vmem:[%s22991_s3 + $0x654] sm:$0xf0]  ;;  %v18188_v32 = vor.u32 %v15354_v55, %v12114_v3  ;;  %v18193_v33 = vor.u32 %v15259_v23, %v11784_v18  ;;  %v15258_v46 = vld [vmem:[#allocation2 + $0x1c] sm:$0xf] }
 0x1fe   : > { %5519 = vmatpush.bf16.msrb.mxu0 %v13087_v38  ;;  %v13062_v38 = vld [vmem:[%s22991_s3 + $0x6e0] sm:$0xf]  ;;  %23322 = vst [vmem:[#allocation35_spill] sm:$0xff] %v18178_v26  ;;  %v12991_v51 = vor.u32 %v15566_v39, %v12990_v6  ;;  %v13054_v19 = vld [vmem:[%s22991_s3 + $0x6d0] sm:$0xf] }
 0x1ff   : > { %5410 = vmatmul.bf16.gmra.mxu0 %v18060_v40  ;;  %v13063_v37 = vor.u32 %v15584_v7, %v13062_v38  ;;  %23323 = vst [vmem:[#allocation36_spill] sm:$0xff] %v18188_v32  ;;  %v15582_v28 = vld [vmem:[%s22991_s3 + $0x6d4] sm:$0xf0]  ;;  %v12926_v38 = vld [vmem:[%s22991_s3 + $0x5d0] sm:$0xf] }
 0x200   : > { %23324 = vst [vmem:[#allocation37_spill] sm:$0xff] %v18193_v33  ;;  %v13055_v7 = vor.u32 %v15582_v28, %v13054_v19  ;;  %v15272_v25 = vld [vmem:[#allocation2 + $0x88] sm:$0xf0]  ;;  %v12982_v63 = vld [vmem:[%s22991_s3 + $0x640] sm:$0xf] }
 0x201   : > { %5485 = vmatpush.bf16.msrb.mxu3 %v13063_v37  ;;  %5457 = vmatpush.bf16.msrb.mxu2 %v12991_v51  ;;  %v11776_v37 = vld [vmem:[#allocation2 + $0x84] sm:$0xf0]  ;;  %v13046_v3 = vld [vmem:[%s22991_s3 + $0x6c0] sm:$0xf]  ;;  %v15340_v15 = vld [vmem:[#allocation2 + $0x2ac] sm:$0xf] }
 0x202   : > { %5520 = vmatpush.bf16.msrb.mxu0 %v13079_v48  ;;  %v12935_v48 = vor.u32 %v15552_v36, %v12934_v62  ;;  %v15550_v62 = vld [vmem:[%s22991_s3 + $0x5d4] sm:$0xf0]  ;;  %v11782_v36 = vld [vmem:[#allocation2 + $0x20] sm:$0xf]  ;;  %v18217_v55 = vor.u32 %v15258_v46, %v11776_v37  ;;  %v15580_v6 = vld [vmem:[%s22991_s3 + $0x6c4] sm:$0xf0]  ;;  %v18236_v46 = vpop.f32.mrf.mxu1 }
 0x203   : > { %v12927_v12 = vor.u32 %v15550_v62, %v12926_v38  ;;  %v18219_v23 = vor.u32 %v15272_v25, %v11782_v36  ;;  %v12918_v39 = vld [vmem:[%s22991_s3 + $0x5c0] sm:$0xf]  ;;  %v15548_v51 = vld [vmem:[%s22991_s3 + $0x5c4] sm:$0xf0]  ;;  %v13047_v19 = vor.u32 %v15580_v6, %v13046_v3  ;;  %v18232_v38 = vpop.f32.mrf.mxu3  ;;  %v15275_v62 = vld [vmem:[#allocation2 + $0xa0] sm:$0xf0] }
 0x204   : > { %5427 = vmatpush.bf16.msrb.mxu1 %v12935_v48  ;;  %v15564_v48 = vld [vmem:[%s22991_s3 + $0x644] sm:$0xf0]  ;;  %v12919_v28 = vor.u32 %v15548_v51, %v12918_v39  ;;  %v15286_v37 = vld [vmem:[#allocation2 + $0xfc] sm:$0xf]  ;;  %v12974_v25 = vld [vmem:[%s22991_s3 + $0x630] sm:$0xf] }
 0x205   : > { %5270 = vmatmul.bf16.gmra.mxu3 %v18063_v60  ;;  %23325 = vst [vmem:[#allocation38_spill] sm:$0xff] %v18219_v23  ;;  %v12983_v18 = vor.u32 %v15564_v48, %v12982_v63  ;;  %v11892_v36 = vld [vmem:[#allocation2 + $0x164] sm:$0xf0]  ;;  %v15562_v63 = vld [vmem:[%s22991_s3 + $0x634] sm:$0xf0] }
 0x206   : > { %5486 = vmatpush.bf16.msrb.mxu3 %v13055_v7  ;;  %v18234_v7 = vpop.f32.mrf.mxu0  ;;  %v12975_v3 = vor.u32 %v15562_v63, %v12974_v25  ;;  %v13390_v6 = vld [vmem:[%s22991_s3 + $0x970] sm:$0xf]  ;;  %v15666_v39 = vld [vmem:[%s22991_s3 + $0x974] sm:$0xf0] }
 0x207   : > { %5458 = vmatpush.bf16.msrb.mxu2 %v12983_v18  ;;  %v18247_v18 = vor.u32 %v15286_v37, %v11892_v36  ;;  %v13038_v51 = vld [vmem:[%s22991_s3 + $0x6b0] sm:$0xf]  ;;  %v15546_v37 = vld [vmem:[%s22991_s3 + $0x5b4] sm:$0xf0] }
 0x208   : > { %5428 = vmatpush.bf16.msrb.mxu1 %v12927_v12  ;;  %v11806_v12 = vld [vmem:[#allocation2 + $0x38] sm:$0xf]  ;;  %v11798_v22 = vld [vmem:[#allocation2 + $0x30] sm:$0xf] }
 0x209   : > { %v18244_v48 = vor.u32 %v15275_v62, %v11806_v12  ;;  %23327 = vst [vmem:[#allocation40_spill] sm:$0xff] %v18247_v18  ;;  %v15578_v62 = vld [vmem:[%s22991_s3 + $0x6b4] sm:$0xf0]  ;;  %v12910_v12 = vld [vmem:[%s22991_s3 + $0x5b0] sm:$0xf] }
 0x20a   : > { %5487 = vmatpush.bf16.msrb.mxu3 %v13047_v19  ;;  %v18258_v19 = vpop.f32.mrf.mxu2  ;;  %v11890_v36 = vld [vmem:[#allocation2 + $0xf8] sm:$0xf]  ;;  %v13039_v63 = vor.u32 %v15578_v62, %v13038_v51  ;;  %v12966_v51 = vld [vmem:[%s22991_s3 + $0x620] sm:$0xf] }
 0x20b   : > { %5212 = vmatmul.bf16.gmra.mxu1 %v18114_v50  ;;  %5241 = vmatmul.bf16.gmra.mxu2 %v18116_v10  ;;  %23326 = vst [vmem:[#allocation39_spill] sm:$0xff] %v18244_v48  ;;  %v18270_v25 = vpop.f32.mrf.mxu3 }
 0x20c   : > { %5429 = vmatpush.bf16.msrb.mxu1 %v12919_v28  ;;  %5459 = vmatpush.bf16.msrb.mxu2 %v12975_v3  ;;  %v13391_v28 = vor.u32 %v15666_v39, %v13390_v6  ;;  %v12911_v3 = vor.u32 %v15546_v37, %v12910_v12  ;;  %v15285_v39 = vld [vmem:[#allocation2 + $0xf4] sm:$0xf]  ;;  %v18285_v12 = vor.u32 %v15299_v11, %v11890_v36  ;;  %v15560_v37 = vld [vmem:[%s22991_s3 + $0x624] sm:$0xf0] }
 0x20d   : > { %v18283_v62 = vor.u32 %v15285_v39, %v11884_v16  ;;  %v12967_v49 = vor.u32 %v15560_v37, %v12966_v51  ;;  %v13030_v16 = vld [vmem:[%s22991_s3 + $0x6a0] sm:$0xf]  ;;  %v15544_v36 = vld [vmem:[%s22991_s3 + $0x5a4] sm:$0xf0] }
 0x20e   : > { %v18272_v6 = vpop.f32.mrf.mxu0  ;;  %5629 = vmatpush.bf16.msra.mxu0 %v13391_v28  ;;  %5488 = vmatpush.bf16.msrb.mxu3 %v13039_v63  ;;  %23328 = vst [vmem:[#allocation41_spill] sm:$0xff] %v18285_v12  ;;  %v13383_v28 = vor.u32 %v15664_v41, %v13382_v5  ;;  %v13374_v63 = vld [vmem:[%s22991_s3 + $0x950] sm:$0xf]  ;;  %v15576_v41 = vld [vmem:[%s22991_s3 + $0x6a4] sm:$0xf0] }
 0x20f   : > { %5415 = vmatmul.bf16.gmra.mxu0 %v18137_v56  ;;  %v12902_v5 = vld [vmem:[%s22991_s3 + $0x5a0] sm:$0xf]  ;;  %v13031_v11 = vor.u32 %v15576_v41, %v13030_v16  ;;  %v15313_v16 = vld [vmem:[#allocation2 + $0x1d4] sm:$0xf] }
 0x210   : > { %5430 = vmatpush.bf16.msrb.mxu1 %v12911_v3  ;;  %v15662_v3 = vld [vmem:[%s22991_s3 + $0x954] sm:$0xf0]  ;;  %5460 = vmatpush.bf16.msrb.mxu2 %v12967_v49  ;;  %v12903_v51 = vor.u32 %v15544_v36, %v12902_v5  ;;  %v12000_v41 = vld [vmem:[#allocation2 + $0x23c] sm:$0xf0]  ;;  %v13358_v36 = vld [vmem:[%s22991_s3 + $0x930] sm:$0xf] }
 0x211   : > { %v13375_v39 = vor.u32 %v15662_v3, %v13374_v63  ;;  %v13366_v49 = vld [vmem:[%s22991_s3 + $0x940] sm:$0xf]  ;;  %v15558_v3 = vld [vmem:[%s22991_s3 + $0x614] sm:$0xf0] }
 0x212   : > { %5630 = vmatpush.bf16.msra.mxu0 %v13383_v28  ;;  %5489 = vmatpush.bf16.msrb.mxu3 %v13031_v11  ;;  %v18326_v28 = vor.u32 %v15302_v30, %v11914_v53  ;;  %v18332_v11 = vor.u32 %v15313_v16, %v12000_v41  ;;  %v13022_v53 = vld [vmem:[%s22991_s3 + $0x690] sm:$0xf]  ;;  %v15542_v16 = vld [vmem:[%s22991_s3 + $0x594] sm:$0xf0] }
 0x214   : > { %5431 = vmatpush.bf16.msrb.mxu1 %v12903_v51  ;;  %23329 = vst [vmem:[#allocation42_spill] sm:$0xff] %v18326_v28  ;;  %v15574_v51 = vld [vmem:[%s22991_s3 + $0x694] sm:$0xf0] }
 0x215   : > { %5275 = vmatmul.bf16.gmra.mxu3 %v18141_v9  ;;  %23330 = vst [vmem:[#allocation43_spill] sm:$0xff] %v18332_v11 }
 0x216   : > { %5631 = vmatpush.bf16.msra.mxu0 %v13375_v39  ;;  %v15658_v39 = vld [vmem:[%s22991_s3 + $0x934] sm:$0xf0] }
 0x217   : > { %v13359_v30 = vor.u32 %v15658_v39, %v13358_v36  ;;  %v15326_v36 = vld [vmem:[#allocation2 + $0x238] sm:$0xf0] }
 0x21b   : > { %5217 = vmatmul.bf16.gmra.mxu1 %v18176_v47  ;;  %5246 = vmatmul.bf16.gmra.mxu2 %v18178_v26 }
 0x21f   : > { %5420 = vmatmul.bf16.gmra.mxu0 %v18188_v32  ;;  %v18313_v32 = vpop.f32.mrf.mxu3 }
 0x225   : > { %5376 = vmatmul.bf16.vlgmr.msra.gmra.mxu3 %v18193_v33 }
 0x22b   : > { %5318 = vmatmul.bf16.vlgmr.msra.gmra.mxu1 %v18217_v55  ;;  %5347 = vmatmul.bf16.vlgmr.msra.gmra.mxu2 %v18219_v23  ;;  %v12022_v23 = vld [vmem:[#allocation2 + $0x1e8] sm:$0xf] }
 0x22f   : > { %5521 = vmatmul.bf16.vlgmr.msrb.gmra.mxu0 %v18244_v48 }
 0x235   : > { %5381 = vmatmul.bf16.gmra.mxu3 %v18247_v18 }
 0x238   : > { %v5121_v59 = vpop.f32.mrf.mxu1 }
 0x239   : > { %v5122_v37 = vadd.f32 %v5121_v59, %v18135_v45  ;;  %v15660_v59 = vld [vmem:[%s22991_s3 + $0x944] sm:$0xf0] }
 0x23a   : > { %v18315_v56 = vpop.f32.mrf.mxu0  ;;  %v13367_v63 = vor.u32 %v15660_v59, %v13366_v49  ;;  %v11998_v49 = vld [vmem:[#allocation2 + $0x1d0] sm:$0xf]  ;;  %v13023_v59 = vor.u32 %v15574_v51, %v13022_v53  ;;  %v15656_v53 = vld [vmem:[%s22991_s3 + $0x924] sm:$0xf0]  ;;  %v12950_v51 = vld [vmem:[%s22991_s3 + $0x600] sm:$0xf] }
 0x23b   : > { %5323 = vmatmul.bf16.gmra.mxu1 %v18283_v62  ;;  %5352 = vmatmul.bf16.gmra.mxu2 %v18285_v12 }
 0x23c   : > { %5632 = vmatpush.bf16.msra.mxu0 %v13367_v63  ;;  %5490 = vmatpush.bf16.msrb.mxu3 %v13023_v59 }
 0x23e   : > { %v5150_v14 = vpop.f32.mrf.mxu2 }
 0x23f   : > { %v18311_v48 = vadd.f32 %v5150_v14, %v5122_v37  ;;  %v12958_v14 = vld [vmem:[%s22991_s3 + $0x610] sm:$0xf]  ;;  %5526 = vmatmul.bf16.gmra.mxu0 %v18326_v28 }
 0x240   : > { %v5123_v12 = vpop.f32.mrf.mxu1  ;;  %v12959_v5 = vor.u32 %v15558_v3, %v12958_v14  ;;  %v12894_v37 = vld [vmem:[%s22991_s3 + $0x590] sm:$0xf]  ;;  %v15312_v3 = vld [vmem:[#allocation2 + $0x1cc] sm:$0xf]  ;;  %5633 = vmatpush.bf16.msra.mxu0 %v13359_v30 }
 0x241   : > { %v5124_v41 = vadd.f32 %v5123_v12, %v18135_v45  ;;  %v12895_v14 = vor.u32 %v15542_v16, %v12894_v37  ;;  %v13350_v12 = vld [vmem:[%s22991_s3 + $0x920] sm:$0xf]  ;;  %v18369_v37 = vadd.f32 %v18190_v13, %v18152_v29  ;;  %v15654_v29 = vld [vmem:[%s22991_s3 + $0x914] sm:$0xf0] }
 0x242   : > { %5461 = vmatpush.bf16.msrb.mxu2 %v12959_v5  ;;  %v11992_v5 = vld [vmem:[#allocation2 + $0x234] sm:$0xf0]  ;;  %v18356_v28 = vpop.f32.mrf.mxu0  ;;  %v13351_v59 = vor.u32 %v15656_v53, %v13350_v12  ;;  %v15540_v12 = vld [vmem:[%s22991_s3 + $0x584] sm:$0xf0] }
 0x243   : > { %5432 = vmatpush.bf16.msrb.mxu1 %v12895_v14  ;;  %v18371_v16 = vor.u32 %v15312_v3, %v11992_v5  ;;  %v15556_v14 = vld [vmem:[%s22991_s3 + $0x604] sm:$0xf0]  ;;  %v12886_v5 = vld [vmem:[%s22991_s3 + $0x580] sm:$0xf] }
 0x244   : > { %v12951_v13 = vor.u32 %v15556_v14, %v12950_v51  ;;  %v15572_v3 = vld [vmem:[%s22991_s3 + $0x684] sm:$0xf0]  ;;  %5634 = vmatpush.bf16.msra.mxu0 %v13351_v59  ;;  %v12887_v51 = vor.u32 %v15540_v12, %v12886_v5  ;;  %v13334_v59 = vld [vmem:[%s22991_s3 + $0x900] sm:$0xf]  ;;  %v15634_v5 = vld [vmem:[%s22991_s3 + $0x874] sm:$0xf0] }
 0x245   : > { %5386 = vmatmul.bf16.gmra.mxu3 %v18332_v11  ;;  %v15329_v11 = vld [vmem:[#allocation2 + $0x250] sm:$0xf0] }
 0x246   : > { %v5152_v63 = vpop.f32.mrf.mxu2  ;;  %5462 = vmatpush.bf16.msrb.mxu2 %v12951_v13 }
 0x247   : > { %v18354_v39 = vadd.f32 %v5152_v63, %v5124_v41  ;;  %v18373_v41 = vor.u32 %v15326_v36, %v11998_v49  ;;  %v18375_v30 = vpop.f32.mrf.mxu3  ;;  %v13342_v63 = vld [vmem:[%s22991_s3 + $0x910] sm:$0xf]  ;;  %v13014_v49 = vld [vmem:[%s22991_s3 + $0x680] sm:$0xf]  ;;  %5433 = vmatpush.bf16.msrb.mxu1 %v12887_v51 }
 0x248   : > { %v5126_v18 = vpop.f32.mrf.mxu1  ;;  %v13015_v36 = vor.u32 %v15572_v3, %v13014_v49  ;;  %v13343_v53 = vor.u32 %v15654_v29, %v13342_v63  ;;  %v13262_v63 = vld [vmem:[%s22991_s3 + $0x870] sm:$0xf] }
 0x249   : > { %23331 = vst [vmem:[#allocation44_spill] sm:$0xff] %v18373_v41  ;;  %v5127_v14 = vadd.f32 %v5126_v18, %v18135_v45  ;;  %v15652_v18 = vld [vmem:[%s22991_s3 + $0x904] sm:$0xf0] }
 0x24a   : > { %5491 = vmatpush.bf16.msrb.mxu3 %v13015_v36  ;;  %5635 = vmatpush.bf16.msra.mxu0 %v13343_v53  ;;  %v13335_v13 = vor.u32 %v15652_v18, %v13334_v59  ;;  %v13263_v36 = vor.u32 %v15634_v5, %v13262_v63  ;;  %v13326_v53 = vld [vmem:[%s22991_s3 + $0x8f0] sm:$0xf]  ;;  %v15339_v63 = vld [vmem:[#allocation2 + $0x2a4] sm:$0xf] }
 0x24b   : > { %5328 = vmatmul.bf16.gmra.mxu1 %v18371_v16  ;;  %5357 = vmatmul.bf16.gmra.mxu2 %v18373_v41  ;;  %v12108_v41 = vld [vmem:[#allocation2 + $0x314] sm:$0xf0]  ;;  %v12100_v5 = vld [vmem:[#allocation2 + $0x30c] sm:$0xf0] }
 0x24c   : > { %v18403_v49 = vpop.f32.mrf.mxu0  ;;  %v18422_v12 = vor.u32 %v15340_v15, %v12108_v41  ;;  %5571 = vmatpush.bf16.msra.mxu2 %v13263_v36  ;;  %v15618_v15 = vld [vmem:[%s22991_s3 + $0x7f4] sm:$0xf0] }
 0x24e   : > { %v5155_v40 = vpop.f32.mrf.mxu2  ;;  %23333 = vst [vmem:[#allocation46_spill] sm:$0xff] %v18422_v12  ;;  %5636 = vmatpush.bf16.msra.mxu0 %v13335_v13 }
 0x24f   : > { %v18401_v33 = vadd.f32 %v5155_v40, %v5127_v14  ;;  %v18414_v40 = vor.u32 %v15329_v11, %v12022_v23  ;;  %v18416_v29 = vpop.f32.mrf.mxu3  ;;  %v15650_v23 = vld [vmem:[%s22991_s3 + $0x8f4] sm:$0xf0]  ;;  %v13198_v11 = vld [vmem:[%s22991_s3 + $0x7f0] sm:$0xf]  ;;  %v12106_v14 = vld [vmem:[#allocation2 + $0x2a8] sm:$0xf] }
 0x250   : > { %v5128_v3 = vpop.f32.mrf.mxu1  ;;  %v13327_v51 = vor.u32 %v15650_v23, %v13326_v53  ;;  %v13199_v59 = vor.u32 %v15618_v15, %v13198_v11  ;;  %v13254_v53 = vld [vmem:[%s22991_s3 + $0x860] sm:$0xf]  ;;  %v18451_v11 = vor.u32 %v15339_v63, %v12100_v5  ;;  %v18468_v63 = vadd.f32 %v18270_v25, %v18311_v48 }
 0x251   : > { %23332 = vst [vmem:[#allocation45_spill] sm:$0xff] %v18414_v40  ;;  %5531 = vmatmul.bf16.gmra.mxu0 %v18414_v40  ;;  %v5129_v41 = vadd.f32 %v5128_v3, %v18135_v45  ;;  %v15353_v40 = vld [vmem:[#allocation2 + $0x310] sm:$0xf0]  ;;  %v15632_v3 = vld [vmem:[%s22991_s3 + $0x864] sm:$0xf0] }
 0x252   : > { %5600 = vmatpush.bf16.msra.mxu3 %v13327_v51  ;;  %5542 = vmatpush.bf16.msra.mxu1 %v13199_v59  ;;  %v13318_v23 = vld [vmem:[%s22991_s3 + $0x8e0] sm:$0xf]  ;;  %v18453_v51 = vor.u32 %v15353_v40, %v12106_v14  ;;  %v15648_v59 = vld [vmem:[%s22991_s3 + $0x8e4] sm:$0xf0] }
 0x253   : > { %v13319_v40 = vor.u32 %v15648_v59, %v13318_v23  ;;  %v11800_v25 = vld [vmem:[#allocation2 + $0x9c] sm:$0xf0]  ;;  %v15630_v23 = vld [vmem:[%s22991_s3 + $0x854] sm:$0xf0] }
 0x254   : > { %v18440_v13 = vpop.f32.mrf.mxu0  ;;  %23334 = vst [vmem:[#allocation47_spill] sm:$0xff] %v18453_v51 }
 0x255   : > { %5391 = vmatmul.bf16.gmra.mxu3 %v18422_v12  ;;  %v15616_v12 = vld [vmem:[%s22991_s3 + $0x7e4] sm:$0xf0] }
 0x256   : > { %v5157_v18 = vpop.f32.mrf.mxu2  ;;  %5601 = vmatpush.bf16.msra.mxu3 %v13319_v40  ;;  %v13310_v40 = vld [vmem:[%s22991_s3 + $0x8d0] sm:$0xf] }
 0x257   : > { %v18438_v9 = vadd.f32 %v5157_v18, %v5129_v41  ;;  %v13255_v41 = vor.u32 %v15632_v3, %v13254_v53  ;;  %v13190_v18 = vld [vmem:[%s22991_s3 + $0x7e0] sm:$0xf]  ;;  %v15356_v3 = vld [vmem:[#allocation2 + $0x328] sm:$0xf0] }
 0x258   : > { %v5131_v36 = vpop.f32.mrf.mxu1  ;;  %v18455_v15 = vpop.f32.mrf.mxu3  ;;  %v13191_v14 = vor.u32 %v15616_v12, %v13190_v18  ;;  %v12130_v53 = vld [vmem:[#allocation2 + $0x2c0] sm:$0xf]  ;;  %v13246_v12 = vld [vmem:[%s22991_s3 + $0x850] sm:$0xf]  ;;  %v15261_v18 = vld [vmem:[#allocation2 + $0x34] sm:$0xf] }
 0x259   : > { %5572 = vmatpush.bf16.msra.mxu2 %v13255_v41  ;;  %v5132_v5 = vadd.f32 %v5131_v36, %v18135_v45  ;;  %v18483_v41 = vor.u32 %v15356_v3, %v12130_v53  ;;  %v13247_v59 = vor.u32 %v15630_v23, %v13246_v12  ;;  %v18501_v53 = vadd.f32 %v18313_v32, %v18354_v39  ;;  %v15260_v23 = vld [vmem:[#allocation2 + $0x2c] sm:$0xf] }
 0x25a   : > { %5543 = vmatpush.bf16.msra.mxu1 %v13191_v14  ;;  %v15646_v14 = vld [vmem:[%s22991_s3 + $0x8d4] sm:$0xf0] }
 0x25b   : > { %5333 = vmatmul.bf16.gmra.mxu1 %v18451_v11  ;;  %5362 = vmatmul.bf16.gmra.mxu2 %v18453_v51  ;;  %23335 = vst [vmem:[#allocation48_spill] sm:$0xff] %v18483_v41  ;;  %v13311_v3 = vor.u32 %v15646_v14, %v13310_v40  ;;  %v15274_v51 = vld [vmem:[#allocation2 + $0x98] sm:$0xf0]  ;;  %v15628_v14 = vld [vmem:[%s22991_s3 + $0x844] sm:$0xf0] }
 0x25c   : > { %v18475_v60 = vpop.f32.mrf.mxu0 }
 0x25d   : > { %5573 = vmatpush.bf16.msra.mxu2 %v13247_v59  ;;  %v11792_v59 = vld [vmem:[#allocation2 + $0x94] sm:$0xf0]  ;;  %5602 = vmatpush.bf16.msra.mxu3 %v13311_v3  ;;  %v18524_v3 = vor.u32 %v15274_v51, %v11798_v22  ;;  %v5119_v51 = vadd.f32 %v18236_v46, %v18135_v45 }
 0x25e   : > { %v5160_v26 = vpop.f32.mrf.mxu2  ;;  %v18512_v40 = vor.u32 %v15260_v23, %v11792_v59  ;;  %v15644_v23 = vld [vmem:[%s22991_s3 + $0x8c4] sm:$0xf0]  ;;  %v13174_v59 = vld [vmem:[%s22991_s3 + $0x7c0] sm:$0xf] }
 0x25f   : > { %v18473_v4 = vadd.f32 %v5160_v26, %v5132_v5  ;;  %v18488_v26 = vor.u32 %v15261_v18, %v11800_v25  ;;  %v13182_v5 = vld [vmem:[%s22991_s3 + $0x7d0] sm:$0xf]  ;;  %v15614_v25 = vld [vmem:[%s22991_s3 + $0x7d4] sm:$0xf0]  ;;  %23338 = vst [vmem:[#allocation51_spill] sm:$0xff] %v18524_v3  ;;  %v5148_v20 = vadd.f32 %v18258_v19, %v5119_v51 }
 0x260   : > { %v5133_v48 = vpop.f32.mrf.mxu1  ;;  %v18485_v36 = vpop.f32.mrf.mxu3  ;;  %v13183_v18 = vor.u32 %v15614_v25, %v13182_v5  ;;  %23337 = vst [vmem:[#allocation50_spill] sm:$0xff] %v18512_v40  ;;  %v15288_v19 = vld [vmem:[#allocation2 + $0x10c] sm:$0xf]  ;;  %v15730_v51 = vld [vmem:[%s22991_s3 + $0xb74] sm:$0xf0] }
 0x261   : > { %5536 = vmatmul.bf16.gmra.mxu0 %v18483_v41  ;;  %23336 = vst [vmem:[#allocation49_spill] sm:$0xff] %v18488_v26  ;;  %v5134_v12 = vadd.f32 %v5133_v48, %v18135_v45  ;;  %v13238_v48 = vld [vmem:[%s22991_s3 + $0x840] sm:$0xf] }
 0x262   : > { %5544 = vmatpush.bf16.msra.mxu1 %v13183_v18  ;;  %v15612_v18 = vld [vmem:[%s22991_s3 + $0x7c4] sm:$0xf0] }
 0x264   : > { %v18510_v32 = vpop.f32.mrf.mxu0 }
 0x265   : > { %5492 = vmatmul.bf16.vlgmr.msrb.gmra.mxu3 %v18488_v26  ;;  %v18537_v26 = vadd.f32 %v18375_v30, %v18401_v33 }
 0x266   : > { %v5162_v41 = vpop.f32.mrf.mxu2 }
 0x267   : > { %v18508_v10 = vadd.f32 %v5162_v41, %v5134_v12  ;;  %v13302_v41 = vld [vmem:[%s22991_s3 + $0x8c0] sm:$0xf]  ;;  %v13239_v12 = vor.u32 %v15628_v14, %v13238_v48  ;;  %v15277_v48 = vld [vmem:[#allocation2 + $0xb0] sm:$0xf0] }
 0x268   : > { %v5203_v39 = vpop.f32.mrf.mxu1  ;;  %v5261_v25 = vpop.f32.mrf.mxu3  ;;  %v13303_v22 = vor.u32 %v15644_v23, %v13302_v41  ;;  %v11908_v41 = vld [vmem:[#allocation2 + $0x174] sm:$0xf0]  ;;  %v13230_v23 = vld [vmem:[%s22991_s3 + $0x830] sm:$0xf] }
 0x269   : > { %v5204_v5 = vadd.f32 %v5203_v39, %v18369_v37  ;;  %v13175_v37 = vor.u32 %v15612_v18, %v13174_v59  ;;  %5574 = vmatpush.bf16.msra.mxu2 %v13239_v12  ;;  %v11822_v39 = vld [vmem:[#allocation2 + $0x48] sm:$0xf]  ;;  %v15626_v12 = vld [vmem:[%s22991_s3 + $0x834] sm:$0xf0] }
 0x26a   : > { %5603 = vmatpush.bf16.msra.mxu3 %v13303_v22  ;;  %v18552_v45 = vor.u32 %v15277_v48, %v11822_v39  ;;  %v13231_v18 = vor.u32 %v15626_v12, %v13230_v23  ;;  %v18558_v22 = vor.u32 %v15288_v19, %v11908_v41  ;;  %v13166_v39 = vld [vmem:[%s22991_s3 + $0x7b0] sm:$0xf]  ;;  %v15610_v48 = vld [vmem:[%s22991_s3 + $0x7b4] sm:$0xf0]  ;;  %v15287_v41 = vld [vmem:[#allocation2 + $0x104] sm:$0xf] }
 0x26b   : > { %5434 = vmatmul.bf16.vlgmr.msrb.gmra.mxu1 %v18512_v40  ;;  %5463 = vmatmul.bf16.vlgmr.msrb.gmra.mxu2 %v18524_v3  ;;  %v11900_v23 = vld [vmem:[#allocation2 + $0x16c] sm:$0xf0]  ;;  %v13167_v12 = vor.u32 %v15610_v48, %v13166_v39 }
 0x26c   : > { %5545 = vmatpush.bf16.msra.mxu1 %v13175_v37  ;;  %v18544_v33 = vpop.f32.mrf.mxu0  ;;  %23339 = vst [vmem:[#allocation52_spill] sm:$0xff] %v18552_v45  ;;  %v13646_v37 = vld [vmem:[%s22991_s3 + $0xb70] sm:$0xf]  ;;  %v18585_v3 = vor.u32 %v15287_v41, %v11900_v23  ;;  %v15726_v23 = vld [vmem:[%s22991_s3 + $0xb54] sm:$0xf0] }
 0x26d   : > { %23340 = vst [vmem:[#allocation53_spill] sm:$0xff] %v18558_v22  ;;  %5575 = vmatpush.bf16.msra.mxu2 %v13231_v18  ;;  %v13630_v41 = vld [vmem:[%s22991_s3 + $0xb50] sm:$0xf] }
 0x26e   : > { %v5232_v14 = vpop.f32.mrf.mxu2  ;;  %23341 = vst [vmem:[#allocation54_spill] sm:$0xff] %v18585_v3 }
 0x26f   : > { %v5233_v57 = vadd.f32 %v5232_v14, %v5204_v5  ;;  %v5177_v5 = vadd.f32 %v18232_v38, %v5148_v20  ;;  %v13647_v20 = vor.u32 %v15730_v51, %v13646_v37  ;;  %v15642_v38 = vld [vmem:[%s22991_s3 + $0x8b4] sm:$0xf0]  ;;  %v11906_v37 = vld [vmem:[#allocation2 + $0x108] sm:$0xf] }
 0x270   : > { %v5205_v30 = vpop.f32.mrf.mxu1  ;;  %v5263_v59 = vpop.f32.mrf.mxu3  ;;  %5546 = vmatpush.bf16.msra.mxu1 %v13167_v12 }
 0x271   : > { %v18554_v46 = vadd.f32 %v5261_v25, %v5233_v57  ;;  %5637 = vmatmul.bf16.vlgmr.msra.gmra.mxu0 %v18552_v45  ;;  %v13294_v57 = vld [vmem:[%s22991_s3 + $0x8b0] sm:$0xf]  ;;  %v18571_v25 = vadd.f32 %v18416_v29, %v18438_v9  ;;  %v5206_v14 = vadd.f32 %v5205_v30, %v5177_v5  ;;  %v15301_v9 = vld [vmem:[#allocation2 + $0x170] sm:$0xf0]  ;;  %v13638_v30 = vld [vmem:[%s22991_s3 + $0xb60] sm:$0xf] }
 0x272   : > { %v13295_v29 = vor.u32 %v15642_v38, %v13294_v57  ;;  %5745 = vmatpush.bf16.msrb.mxu0 %v13647_v20  ;;  %v18587_v35 = vor.u32 %v15301_v9, %v11906_v37  ;;  %v15728_v5 = vld [vmem:[%s22991_s3 + $0xb64] sm:$0xf0]  ;;  %v13222_v57 = vld [vmem:[%s22991_s3 + $0x820] sm:$0xf]  ;;  %v15304_v37 = vld [vmem:[#allocation2 + $0x188] sm:$0xf0] }
 0x273   : > { %v13639_v48 = vor.u32 %v15728_v5, %v13638_v30 }
 0x274   : > { %5604 = vmatpush.bf16.msra.mxu3 %v13295_v29  ;;  %v18583_v51 = vpop.f32.mrf.mxu0  ;;  %23342 = vst [vmem:[#allocation55_spill] sm:$0xff] %v18587_v35  ;;  %v13158_v29 = vld [vmem:[%s22991_s3 + $0x7a0] sm:$0xf] }
 0x275   : > { %5497 = vmatmul.bf16.gmra.mxu3 %v18558_v22 }
 0x276   : > { %v5234_v18 = vpop.f32.mrf.mxu2  ;;  %5746 = vmatpush.bf16.msrb.mxu0 %v13639_v48  ;;  %v15724_v48 = vld [vmem:[%s22991_s3 + $0xb44] sm:$0xf0] }
 0x277   : > { %v5235_v19 = vadd.f32 %v5234_v18, %v5206_v14  ;;  %v15624_v14 = vld [vmem:[%s22991_s3 + $0x824] sm:$0xf0] }
 0x278   : > { %v5208_v45 = vpop.f32.mrf.mxu1  ;;  %v5266_v39 = vpop.f32.mrf.mxu3  ;;  %v13223_v9 = vor.u32 %v15624_v14, %v13222_v57  ;;  %v12016_v57 = vld [vmem:[#allocation2 + $0x24c] sm:$0xf0] }
 0x279   : > { %v18598_v20 = vadd.f32 %v5263_v59, %v5235_v19  ;;  %v5209_v38 = vadd.f32 %v5208_v45, %v18468_v63  ;;  %v18612_v59 = vadd.f32 %v18455_v15, %v18473_v4  ;;  %v13286_v63 = vld [vmem:[%s22991_s3 + $0x8a0] sm:$0xf]  ;;  %v15640_v45 = vld [vmem:[%s22991_s3 + $0x8a4] sm:$0xf0]  ;;  %v13631_v15 = vor.u32 %v15726_v23, %v13630_v41  ;;  %v13214_v41 = vld [vmem:[%s22991_s3 + $0x810] sm:$0xf] }
 0x27a   : > { %v13287_v12 = vor.u32 %v15640_v45, %v13286_v63  ;;  %v15608_v4 = vld [vmem:[%s22991_s3 + $0x7a4] sm:$0xf0]  ;;  %5576 = vmatpush.bf16.msra.mxu2 %v13223_v9  ;;  %v11930_v19 = vld [vmem:[#allocation2 + $0x120] sm:$0xf] }
 0x27b   : > { %5439 = vmatmul.bf16.gmra.mxu1 %v18585_v3  ;;  %5468 = vmatmul.bf16.gmra.mxu2 %v18587_v35  ;;  %v13159_v18 = vor.u32 %v15608_v4, %v13158_v29  ;;  %v13622_v63 = vld [vmem:[%s22991_s3 + $0xb40] sm:$0xf]  ;;  %v18639_v23 = vor.u32 %v15304_v37, %v11930_v19  ;;  %v15315_v4 = vld [vmem:[#allocation2 + $0x1e4] sm:$0xf]  ;;  %v13614_v19 = vld [vmem:[%s22991_s3 + $0xb30] sm:$0xf] }
 0x27c   : > { %5605 = vmatpush.bf16.msra.mxu3 %v13287_v12  ;;  %v18628_v14 = vpop.f32.mrf.mxu0  ;;  %5747 = vmatpush.bf16.msrb.mxu0 %v13631_v15  ;;  %v13623_v29 = vor.u32 %v15724_v48, %v13622_v63  ;;  %v15622_v12 = vld [vmem:[%s22991_s3 + $0x814] sm:$0xf0]  ;;  %v15328_v63 = vld [vmem:[#allocation2 + $0x248] sm:$0xf0]  ;;  %v12124_v35 = vld [vmem:[#allocation2 + $0x324] sm:$0xf0] }
 0x27d   : > { %5547 = vmatpush.bf16.msra.mxu1 %v13159_v18  ;;  %23343 = vst [vmem:[#allocation56_spill] sm:$0xff] %v18639_v23  ;;  %v13215_v15 = vor.u32 %v15622_v12, %v13214_v41  ;;  %v18648_v18 = vor.u32 %v15315_v4, %v12016_v57  ;;  %v15606_v57 = vld [vmem:[%s22991_s3 + $0x794] sm:$0xf0]  ;;  %v15314_v41 = vld [vmem:[#allocation2 + $0x1dc] sm:$0xf] }
 0x27e   : > { %v5237_v30 = vpop.f32.mrf.mxu2  ;;  %v12014_v4 = vld [vmem:[#allocation2 + $0x1e0] sm:$0xf] }
 0x27f   : > { %v5238_v5 = vadd.f32 %v5237_v30, %v5209_v38  ;;  %23344 = vst [vmem:[#allocation57_spill] sm:$0xff] %v18648_v18  ;;  %5577 = vmatpush.bf16.msra.mxu2 %v13215_v15  ;;  %v15638_v30 = vld [vmem:[%s22991_s3 + $0x894] sm:$0xf0] }
 0x280   : > { %v5210_v22 = vpop.f32.mrf.mxu1  ;;  %v5268_v45 = vpop.f32.mrf.mxu3  ;;  %5748 = vmatpush.bf16.msrb.mxu0 %v13623_v29  ;;  %v12008_v29 = vld [vmem:[#allocation2 + $0x244] sm:$0xf0] }
 0x281   : > { %v18641_v38 = vadd.f32 %v5266_v39, %v5238_v5  ;;  %v5211_v9 = vadd.f32 %v5210_v22, %v18501_v53  ;;  %5642 = vmatmul.bf16.gmra.mxu0 %v18639_v23  ;;  %v15722_v53 = vld [vmem:[%s22991_s3 + $0xb34] sm:$0xf0]  ;;  %v13278_v22 = vld [vmem:[%s22991_s3 + $0x890] sm:$0xf]  ;;  %v18661_v39 = vadd.f32 %v18485_v36, %v18508_v10  ;;  %v13606_v23 = vld [vmem:[%s22991_s3 + $0xb20] sm:$0xf] }
 0x282   : > { %v13615_v37 = vor.u32 %v15722_v53, %v13614_v19  ;;  %v13150_v5 = vld [vmem:[%s22991_s3 + $0x790] sm:$0xf]  ;;  %v13279_v10 = vor.u32 %v15638_v30, %v13278_v22  ;;  %v18675_v53 = vor.u32 %v15328_v63, %v12014_v4  ;;  %v15720_v22 = vld [vmem:[%s22991_s3 + $0xb24] sm:$0xf0] }
 0x283   : > { %v13151_v36 = vor.u32 %v15606_v57, %v13150_v5  ;;  %v18689_v57 = vor.u32 %v15314_v41, %v12008_v29  ;;  %v13142_v41 = vld [vmem:[%s22991_s3 + $0x780] sm:$0xf] }
 0x284   : > { %5606 = vmatpush.bf16.msra.mxu3 %v13279_v10  ;;  %v18673_v15 = vpop.f32.mrf.mxu0  ;;  %23345 = vst [vmem:[#allocation58_spill] sm:$0xff] %v18675_v53  ;;  %5749 = vmatpush.bf16.msrb.mxu0 %v13615_v37  ;;  %v13607_v37 = vor.u32 %v15720_v22, %v13606_v23  ;;  %v15620_v10 = vld [vmem:[%s22991_s3 + $0x804] sm:$0xf0]  ;;  %v12038_v22 = vld [vmem:[#allocation2 + $0x1f8] sm:$0xf] }
 0x285   : > { %5502 = vmatmul.bf16.gmra.mxu3 %v18648_v18  ;;  %5548 = vmatpush.bf16.msra.mxu1 %v13151_v36  ;;  %23346 = vst [vmem:[#allocation59_spill] sm:$0xff] %v18689_v57  ;;  %v13598_v36 = vld [vmem:[%s22991_s3 + $0xb10] sm:$0xf]  ;;  %v15636_v23 = vld [vmem:[%s22991_s3 + $0x884] sm:$0xf0] }
 0x286   : > { %v5239_v48 = vpop.f32.mrf.mxu2 }
 0x287   : > { %v5240_v12 = vadd.f32 %v5239_v48, %v5211_v9  ;;  %v13206_v9 = vld [vmem:[%s22991_s3 + $0x800] sm:$0xf]  ;;  %v15718_v48 = vld [vmem:[%s22991_s3 + $0xb14] sm:$0xf0] }
 0x288   : > { %v5213_v19 = vpop.f32.mrf.mxu1  ;;  %v5271_v63 = vpop.f32.mrf.mxu3  ;;  %5750 = vmatpush.bf16.msrb.mxu0 %v13607_v37  ;;  %v13599_v4 = vor.u32 %v15718_v48, %v13598_v36  ;;  %v15716_v37 = vld [vmem:[%s22991_s3 + $0xb04] sm:$0xf0]  ;;  %v13518_v36 = vld [vmem:[%s22991_s3 + $0xa70] sm:$0xf] }
 0x289   : > { %v18686_v30 = vadd.f32 %v5268_v45, %v5240_v12  ;;  %v5214_v5 = vadd.f32 %v5213_v19, %v18537_v26  ;;  %v13207_v45 = vor.u32 %v15620_v10, %v13206_v9  ;;  %v13270_v26 = vld [vmem:[%s22991_s3 + $0x880] sm:$0xf]  ;;  %v15604_v12 = vld [vmem:[%s22991_s3 + $0x784] sm:$0xf0]  ;;  %v15331_v9 = vld [vmem:[#allocation2 + $0x260] sm:$0xf0] }
 0x28a   : > { %v13271_v29 = vor.u32 %v15636_v23, %v13270_v26  ;;  %v13143_v19 = vor.u32 %v15604_v12, %v13142_v41  ;;  %v13590_v26 = vld [vmem:[%s22991_s3 + $0xb00] sm:$0xf]  ;;  %v18725_v48 = vor.u32 %v15331_v9, %v12038_v22  ;;  %v15342_v12 = vld [vmem:[#allocation2 + $0x2bc] sm:$0xf]  ;;  %v13582_v22 = vld [vmem:[%s22991_s3 + $0xaf0] sm:$0xf] }
 0x28b   : > { %5444 = vmatmul.bf16.gmra.mxu1 %v18689_v57  ;;  %5473 = vmatmul.bf16.gmra.mxu2 %v18675_v53  ;;  %v13591_v41 = vor.u32 %v15716_v37, %v13590_v26  ;;  %v15341_v26 = vld [vmem:[#allocation2 + $0x2b4] sm:$0xf]  ;;  %v12116_v37 = vld [vmem:[#allocation2 + $0x31c] sm:$0xf0]  ;;  %v11816_v53 = vld [vmem:[#allocation2 + $0xac] sm:$0xf0] }
 0x28c   : > { %5578 = vmatpush.bf16.msra.mxu2 %v13207_v45  ;;  %5607 = vmatpush.bf16.msra.mxu3 %v13271_v29  ;;  %v18714_v3 = vpop.f32.mrf.mxu0  ;;  %23347 = vst [vmem:[#allocation60_spill] sm:$0xff] %v18725_v48  ;;  %v15698_v29 = vld [vmem:[%s22991_s3 + $0xa74] sm:$0xf0] }
 0x28d   : > { %5549 = vmatpush.bf16.msra.mxu1 %v13143_v19  ;;  %5751 = vmatpush.bf16.msrb.mxu0 %v13599_v4  ;;  %v13519_v4 = vor.u32 %v15698_v29, %v13518_v36  ;;  %v18734_v19 = vor.u32 %v15342_v12, %v12124_v35  ;;  %v15682_v35 = vld [vmem:[%s22991_s3 + $0x9f4] sm:$0xf0] }
 0x28e   : > { %v5242_v10 = vpop.f32.mrf.mxu2  ;;  %v12122_v29 = vld [vmem:[#allocation2 + $0x2b8] sm:$0xf] }
 0x28f   : > { %v5243_v18 = vadd.f32 %v5242_v10, %v5214_v5  ;;  %23348 = vst [vmem:[#allocation61_spill] sm:$0xff] %v18734_v19 }
 0x290   : > { %v5215_v57 = vpop.f32.mrf.mxu1  ;;  %v5273_v23 = vpop.f32.mrf.mxu3  ;;  %5687 = vmatpush.bf16.msrb.mxu2 %v13519_v4 }
 0x291   : > { %v18727_v5 = vadd.f32 %v5271_v63, %v5243_v18  ;;  %v5216_v45 = vadd.f32 %v5215_v57, %v18571_v25  ;;  %5647 = vmatmul.bf16.gmra.mxu0 %v18725_v48  ;;  %v15714_v25 = vld [vmem:[%s22991_s3 + $0xaf4] sm:$0xf0]  ;;  %v13454_v18 = vld [vmem:[%s22991_s3 + $0x9f0] sm:$0xf]  ;;  %v15355_v63 = vld [vmem:[#allocation2 + $0x320] sm:$0xf0] }
 0x292   : > { %5752 = vmatpush.bf16.msrb.mxu0 %v13591_v41  ;;  %v13583_v57 = vor.u32 %v15714_v25, %v13582_v22  ;;  %v13455_v9 = vor.u32 %v15682_v35, %v13454_v18  ;;  %v18751_v4 = vor.u32 %v15355_v63, %v12122_v29  ;;  %v13510_v22 = vld [vmem:[%s22991_s3 + $0xa60] sm:$0xf]  ;;  %v15696_v25 = vld [vmem:[%s22991_s3 + $0xa64] sm:$0xf0]  ;;  %v18765_v35 = vor.u32 %v15341_v26, %v12116_v37  ;;  %v15358_v26 = vld [vmem:[#allocation2 + $0x338] sm:$0xf0] }
 0x293   : > { %v13574_v18 = vld [vmem:[%s22991_s3 + $0xae0] sm:$0xf]  ;;  %v15680_v48 = vld [vmem:[%s22991_s3 + $0x9e4] sm:$0xf0] }
 0x294   : > { %5716 = vmatpush.bf16.msrb.mxu3 %v13583_v57  ;;  %5658 = vmatpush.bf16.msrb.mxu1 %v13455_v9  ;;  %v18749_v12 = vpop.f32.mrf.mxu0  ;;  %23349 = vst [vmem:[#allocation62_spill] sm:$0xff] %v18751_v4  ;;  %v13511_v9 = vor.u32 %v15696_v25, %v13510_v22  ;;  %v13446_v29 = vld [vmem:[%s22991_s3 + $0x9e0] sm:$0xf]  ;;  %v15263_v22 = vld [vmem:[#allocation2 + $0x44] sm:$0xf] }
 0x295   : > { %5507 = vmatmul.bf16.gmra.mxu3 %v18734_v19  ;;  %23350 = vst [vmem:[#allocation63_spill] sm:$0xff] %v18765_v35 }
 0x296   : > { %v5244_v10 = vpop.f32.mrf.mxu2  ;;  %5688 = vmatpush.bf16.msrb.mxu2 %v13511_v9 }
 0x297   : > { %v5245_v36 = vadd.f32 %v5244_v10, %v5216_v45  ;;  %v15712_v10 = vld [vmem:[%s22991_s3 + $0xae4] sm:$0xf0] }
 0x298   : > { %v5218_v41 = vpop.f32.mrf.mxu1  ;;  %v5276_v63 = vpop.f32.mrf.mxu3 }
 0x299   : > { %v18762_v45 = vadd.f32 %v5273_v23, %v5245_v36  ;;  %v5219_v57 = vadd.f32 %v5218_v41, %v18612_v59  ;;  %v13575_v23 = vor.u32 %v15712_v10, %v13574_v18  ;;  %v13447_v36 = vor.u32 %v15680_v48, %v13446_v29  ;;  %v12146_v59 = vld [vmem:[#allocation2 + $0x2d0] sm:$0xf]  ;;  %v15694_v18 = vld [vmem:[%s22991_s3 + $0xa54] sm:$0xf0] }
 0x29a   : > { %v13502_v48 = vld [vmem:[%s22991_s3 + $0xa50] sm:$0xf]  ;;  %v18786_v9 = vor.u32 %v15358_v26, %v12146_v59  ;;  %v15710_v59 = vld [vmem:[%s22991_s3 + $0xad4] sm:$0xf0]  ;;  %v11808_v26 = vld [vmem:[#allocation2 + $0xa4] sm:$0xf0] }
 0x29b   : > { %5449 = vmatmul.bf16.gmra.mxu1 %v18765_v35  ;;  %5478 = vmatmul.bf16.gmra.mxu2 %v18751_v4 }
 0x29c   : > { %5717 = vmatpush.bf16.msrb.mxu3 %v13575_v23  ;;  %5659 = vmatpush.bf16.msrb.mxu1 %v13447_v36  ;;  %v18778_v25 = vpop.f32.mrf.mxu0  ;;  %23351 = vst [vmem:[#allocation64_spill] sm:$0xff] %v18786_v9  ;;  %v13503_v23 = vor.u32 %v15694_v18, %v13502_v48  ;;  %v18792_v36 = vor.u32 %v15263_v22, %v11816_v53  ;;  %v15262_v53 = vld [vmem:[#allocation2 + $0x3c] sm:$0xf]  ;;  %v11814_v48 = vld [vmem:[#allocation2 + $0x40] sm:$0xf] }
 0x29d   : > { %v15276_v18 = vld [vmem:[#allocation2 + $0xa8] sm:$0xf0] }
 0x29e   : > { %v5247_v37 = vpop.f32.mrf.mxu2  ;;  %23352 = vst [vmem:[#allocation65_spill] sm:$0xff] %v18792_v36  ;;  %5689 = vmatpush.bf16.msrb.mxu2 %v13503_v23 }
 0x29f   : > { %v5248_v41 = vadd.f32 %v5247_v37, %v5219_v57  ;;  %v13566_v37 = vld [vmem:[%s22991_s3 + $0xad0] sm:$0xf] }
 0x2a0   : > { %v5220_v19 = vpop.f32.mrf.mxu1  ;;  %v5278_v57 = vpop.f32.mrf.mxu3 }
 0x2a1   : > { %v18788_v10 = vadd.f32 %v5276_v63, %v5248_v41  ;;  %v5221_v29 = vadd.f32 %v5220_v19, %v18661_v39  ;;  %5652 = vmatmul.bf16.gmra.mxu0 %v18786_v9  ;;  %v13438_v63 = vld [vmem:[%s22991_s3 + $0x9d0] sm:$0xf]  ;;  %v13567_v39 = vor.u32 %v15710_v59, %v13566_v37  ;;  %v15678_v19 = vld [vmem:[%s22991_s3 + $0x9d4] sm:$0xf0]  ;;  %v5291_v9 = vadd.f32 %v18234_v7, %v18554_v46 }
 0x2a2   : > { %v13439_v41 = vor.u32 %v15678_v19, %v13438_v63  ;;  %v18811_v59 = vor.u32 %v15262_v53, %v11808_v26  ;;  %v15692_v63 = vld [vmem:[%s22991_s3 + $0xa44] sm:$0xf0]  ;;  %v18824_v46 = vor.u32 %v15276_v18, %v11814_v48  ;;  %v11838_v48 = vld [vmem:[#allocation2 + $0x58] sm:$0xf] }
 0x2a3   : > { %5718 = vmatpush.bf16.msrb.mxu3 %v13567_v39  ;;  %v15708_v26 = vld [vmem:[%s22991_s3 + $0xac4] sm:$0xf0] }
 0x2a4   : > { %5660 = vmatpush.bf16.msrb.mxu1 %v13439_v41  ;;  %v18809_v4 = vpop.f32.mrf.mxu0  ;;  %23353 = vst [vmem:[#allocation66_spill] sm:$0xff] %v18811_v59  ;;  %v13430_v41 = vld [vmem:[%s22991_s3 + $0x9c0] sm:$0xf] }
 0x2a5   : > { %5608 = vmatmul.bf16.vlgmr.msra.gmra.mxu3 %v18792_v36  ;;  %v13494_v36 = vld [vmem:[%s22991_s3 + $0xa40] sm:$0xf]  ;;  %23354 = vst [vmem:[#allocation67_spill] sm:$0xff] %v18824_v46 }
 0x2a6   : > { %v5249_v22 = vpop.f32.mrf.mxu2  ;;  %v13495_v53 = vor.u32 %v15692_v63, %v13494_v36 }
 0x2a7   : > { %v5250_v23 = vadd.f32 %v5249_v22, %v5221_v29  ;;  %v13558_v29 = vld [vmem:[%s22991_s3 + $0xac0] sm:$0xf]  ;;  %v15676_v22 = vld [vmem:[%s22991_s3 + $0x9c4] sm:$0xf0] }
 0x2a8   : > { %v5319_v37 = vpop.f32.mrf.mxu1  ;;  %v5377_v19 = vpop.f32.mrf.mxu3  ;;  %v13559_v35 = vor.u32 %v15708_v26, %v13558_v29  ;;  %5690 = vmatpush.bf16.msrb.mxu2 %v13495_v53  ;;  %v11924_v29 = vld [vmem:[#allocation2 + $0x184] sm:$0xf0]  ;;  %v13486_v26 = vld [vmem:[%s22991_s3 + $0xa30] sm:$0xf] }
 0x2a9   : > { %v18822_v39 = vadd.f32 %v5278_v57, %v5250_v23  ;;  %v5320_v7 = vadd.f32 %v5319_v37, %v5291_v9  ;;  %v13431_v57 = vor.u32 %v15676_v22, %v13430_v41  ;;  %v15279_v9 = vld [vmem:[#allocation2 + $0xc0] sm:$0xf0]  ;;  %v5293_v23 = vadd.f32 %v18272_v6, %v18598_v20  ;;  %v15290_v37 = vld [vmem:[#allocation2 + $0x11c] sm:$0xf] }
 0x2aa   : > { %5719 = vmatpush.bf16.msrb.mxu3 %v13559_v35  ;;  %v15690_v35 = vld [vmem:[%s22991_s3 + $0xa34] sm:$0xf0]  ;;  %v18847_v53 = vor.u32 %v15279_v9, %v11838_v48  ;;  %v18852_v20 = vor.u32 %v15290_v37, %v11924_v29  ;;  %v13422_v48 = vld [vmem:[%s22991_s3 + $0x9b0] sm:$0xf]  ;;  %v11916_v37 = vld [vmem:[#allocation2 + $0x17c] sm:$0xf0] }
 0x2ab   : > { %5550 = vmatmul.bf16.vlgmr.msra.gmra.mxu1 %v18811_v59  ;;  %5579 = vmatmul.bf16.vlgmr.msra.gmra.mxu2 %v18824_v46  ;;  %v13487_v6 = vor.u32 %v15690_v35, %v13486_v26  ;;  %v15706_v9 = vld [vmem:[%s22991_s3 + $0xab4] sm:$0xf0] }
 0x2ac   : > { %5661 = vmatpush.bf16.msrb.mxu1 %v13431_v57  ;;  %v18839_v63 = vpop.f32.mrf.mxu0  ;;  %23355 = vst [vmem:[#allocation68_spill] sm:$0xff] %v18847_v53  ;;  %v13902_v57 = vld [vmem:[%s22991_s3 + $0xd70] sm:$0xf] }
 0x2ad   : > { %23356 = vst [vmem:[#allocation69_spill] sm:$0xff] %v18852_v20  ;;  %5691 = vmatpush.bf16.msrb.mxu2 %v13487_v6  ;;  %v11922_v6 = vld [vmem:[#allocation2 + $0x118] sm:$0xf] }
 0x2ae   : > { %v5348_v36 = vpop.f32.mrf.mxu2 }
 0x2af   : > { %v5349_v18 = vadd.f32 %v5348_v36, %v5320_v7  ;;  %v15794_v36 = vld [vmem:[%s22991_s3 + $0xd74] sm:$0xf0] }
 0x2b0   : > { %v5321_v40 = vpop.f32.mrf.mxu1  ;;  %v5379_v22 = vpop.f32.mrf.mxu3 }
 0x2b1   : > { %v18849_v41 = vadd.f32 %v5377_v19, %v5349_v18  ;;  %v5322_v7 = vadd.f32 %v5321_v40, %v5293_v23  ;;  %5753 = vmatmul.bf16.vlgmr.msrb.gmra.mxu0 %v18847_v53  ;;  %v13550_v19 = vld [vmem:[%s22991_s3 + $0xab0] sm:$0xf]  ;;  %v13903_v40 = vor.u32 %v15794_v36, %v13902_v57  ;;  %v15674_v18 = vld [vmem:[%s22991_s3 + $0x9b4] sm:$0xf0]  ;;  %v15289_v23 = vld [vmem:[#allocation2 + $0x114] sm:$0xf]  ;;  %v5296_v53 = vadd.f32 %v18315_v56, %v18641_v38 }
 0x2b2   : > { %v13551_v29 = vor.u32 %v15706_v9, %v13550_v19  ;;  %v13423_v26 = vor.u32 %v15674_v18, %v13422_v48  ;;  %v15303_v57 = vld [vmem:[#allocation2 + $0x180] sm:$0xf0]  ;;  %v18877_v17 = vor.u32 %v15289_v23, %v11916_v37  ;;  %v13894_v19 = vld [vmem:[%s22991_s3 + $0xd60] sm:$0xf]  ;;  %v15792_v9 = vld [vmem:[%s22991_s3 + $0xd64] sm:$0xf0] }
 0x2b3   : > { %5861 = vmatpush.bf16.msra.mxu0 %v13903_v40  ;;  %v18890_v40 = vor.u32 %v15303_v57, %v11922_v6  ;;  %v13895_v18 = vor.u32 %v15792_v9, %v13894_v19  ;;  %v15688_v23 = vld [vmem:[%s22991_s3 + $0xa24] sm:$0xf0]  ;;  %v13886_v37 = vld [vmem:[%s22991_s3 + $0xd50] sm:$0xf]  ;;  %v15306_v19 = vld [vmem:[#allocation2 + $0x198] sm:$0xf0] }
 0x2b4   : > { %5720 = vmatpush.bf16.msrb.mxu3 %v13551_v29  ;;  %5662 = vmatpush.bf16.msrb.mxu1 %v13423_v26  ;;  %v18875_v46 = vpop.f32.mrf.mxu0  ;;  %23357 = vst [vmem:[#allocation70_spill] sm:$0xff] %v18877_v17  ;;  %v15790_v29 = vld [vmem:[%s22991_s3 + $0xd54] sm:$0xf0]  ;;  %v15672_v6 = vld [vmem:[%s22991_s3 + $0x9a4] sm:$0xf0] }
 0x2b5   : > { %5613 = vmatmul.bf16.gmra.mxu3 %v18852_v20  ;;  %23358 = vst [vmem:[#allocation71_spill] sm:$0xff] %v18890_v40  ;;  %v13887_v57 = vor.u32 %v15790_v29, %v13886_v37  ;;  %v5298_v20 = vadd.f32 %v18356_v28, %v18686_v30  ;;  %v15788_v37 = vld [vmem:[%s22991_s3 + $0xd44] sm:$0xf0] }
 0x2b6   : > { %v5350_v35 = vpop.f32.mrf.mxu2 }
 0x2b7   : > { %v5351_v36 = vadd.f32 %v5350_v35, %v5322_v7  ;;  %v13478_v7 = vld [vmem:[%s22991_s3 + $0xa20] sm:$0xf]  ;;  %5862 = vmatpush.bf16.msra.mxu0 %v13895_v18 }
 0x2b8   : > { %v5324_v59 = vpop.f32.mrf.mxu1  ;;  %v5382_v48 = vpop.f32.mrf.mxu3  ;;  %v13479_v26 = vor.u32 %v15688_v23, %v13478_v7  ;;  %v11946_v7 = vld [vmem:[#allocation2 + $0x130] sm:$0xf]  ;;  %v13878_v18 = vld [vmem:[%s22991_s3 + $0xd40] sm:$0xf] }
 0x2b9   : > { %v18888_v56 = vadd.f32 %v5379_v22, %v5351_v36  ;;  %v5325_v38 = vadd.f32 %v5324_v59, %v5296_v53  ;;  %v13542_v59 = vld [vmem:[%s22991_s3 + $0xaa0] sm:$0xf]  ;;  %v15704_v53 = vld [vmem:[%s22991_s3 + $0xaa4] sm:$0xf0]  ;;  %v18928_v29 = vor.u32 %v15306_v19, %v11946_v7  ;;  %v15316_v7 = vld [vmem:[#allocation2 + $0x1ec] sm:$0xf] }
 0x2ba   : > { %v13414_v22 = vld [vmem:[%s22991_s3 + $0x9a0] sm:$0xf]  ;;  %v13543_v35 = vor.u32 %v15704_v53, %v13542_v59  ;;  %5692 = vmatpush.bf16.msrb.mxu2 %v13479_v26 }
 0x2bb   : > { %5555 = vmatmul.bf16.gmra.mxu1 %v18877_v17  ;;  %5584 = vmatmul.bf16.gmra.mxu2 %v18890_v40  ;;  %v13415_v36 = vor.u32 %v15672_v6, %v13414_v22  ;;  %v15317_v17 = vld [vmem:[#allocation2 + $0x1f4] sm:$0xf]  ;;  %v12032_v40 = vld [vmem:[#allocation2 + $0x25c] sm:$0xf0]  ;;  %23359 = vst [vmem:[#allocation72_spill] sm:$0xff] %v18928_v29  ;;  %v13879_v22 = vor.u32 %v15788_v37, %v13878_v18 }
 0x2bc   : > { %5721 = vmatpush.bf16.msrb.mxu3 %v13543_v35  ;;  %v18917_v59 = vpop.f32.mrf.mxu0  ;;  %5863 = vmatpush.bf16.msra.mxu0 %v13887_v57  ;;  %v15686_v35 = vld [vmem:[%s22991_s3 + $0xa14] sm:$0xf0]  ;;  %v18936_v57 = vor.u32 %v15317_v17, %v12032_v40  ;;  %v13406_v40 = vld [vmem:[%s22991_s3 + $0x990] sm:$0xf] }
 0x2bd   : > { %5663 = vmatpush.bf16.msrb.mxu1 %v13415_v36  ;;  %v13870_v36 = vld [vmem:[%s22991_s3 + $0xd30] sm:$0xf]  ;;  %v15702_v17 = vld [vmem:[%s22991_s3 + $0xa94] sm:$0xf0] }
 0x2be   : > { %v5353_v9 = vpop.f32.mrf.mxu2  ;;  %23360 = vst [vmem:[#allocation73_spill] sm:$0xff] %v18936_v57 }
 0x2bf   : > { %v5354_v23 = vadd.f32 %v5353_v9, %v5325_v38  ;;  %v13470_v38 = vld [vmem:[%s22991_s3 + $0xa10] sm:$0xf]  ;;  %v15670_v9 = vld [vmem:[%s22991_s3 + $0x994] sm:$0xf0] }
 0x2c0   : > { %v5326_v53 = vpop.f32.mrf.mxu1  ;;  %v5384_v26 = vpop.f32.mrf.mxu3  ;;  %v13471_v6 = vor.u32 %v15686_v35, %v13470_v38  ;;  %5864 = vmatpush.bf16.msra.mxu0 %v13879_v22  ;;  %v13407_v18 = vor.u32 %v15670_v9, %v13406_v40  ;;  %v12030_v38 = vld [vmem:[#allocation2 + $0x1f0] sm:$0xf]  ;;  %v15330_v22 = vld [vmem:[#allocation2 + $0x258] sm:$0xf0] }
 0x2c1   : > { %v18930_v28 = vadd.f32 %v5382_v48, %v5354_v23  ;;  %v5327_v30 = vadd.f32 %v5326_v53, %v5298_v20  ;;  %5758 = vmatmul.bf16.gmra.mxu0 %v18928_v29  ;;  %v15786_v48 = vld [vmem:[%s22991_s3 + $0xd34] sm:$0xf0]  ;;  %v13534_v20 = vld [vmem:[%s22991_s3 + $0xa90] sm:$0xf]  ;;  %v18974_v40 = vor.u32 %v15330_v22, %v12030_v38  ;;  %v13398_v38 = vld [vmem:[%s22991_s3 + $0x980] sm:$0xf] }
 0x2c2   : > { %5693 = vmatpush.bf16.msrb.mxu2 %v13471_v6  ;;  %v13871_v19 = vor.u32 %v15786_v48, %v13870_v36  ;;  %v12024_v23 = vld [vmem:[#allocation2 + $0x254] sm:$0xf0]  ;;  %v13535_v53 = vor.u32 %v15702_v17, %v13534_v20  ;;  %v5301_v6 = vadd.f32 %v18403_v49, %v18727_v5  ;;  %5664 = vmatpush.bf16.msrb.mxu1 %v13407_v18  ;;  %v13862_v20 = vld [vmem:[%s22991_s3 + $0xd20] sm:$0xf]  ;;  %v15784_v17 = vld [vmem:[%s22991_s3 + $0xd24] sm:$0xf0] }
 0x2c3   : > { %v18961_v29 = vor.u32 %v15316_v7, %v12024_v23  ;;  %v13462_v49 = vld [vmem:[%s22991_s3 + $0xa00] sm:$0xf]  ;;  %23362 = vst [vmem:[#allocation75_spill] sm:$0xff] %v18974_v40  ;;  %v13863_v7 = vor.u32 %v15784_v17, %v13862_v20  ;;  %v13854_v23 = vld [vmem:[%s22991_s3 + $0xd10] sm:$0xf] }
 0x2c4   : > { %5722 = vmatpush.bf16.msrb.mxu3 %v13535_v53  ;;  %v18959_v36 = vpop.f32.mrf.mxu0  ;;  %5865 = vmatpush.bf16.msra.mxu0 %v13871_v19  ;;  %v15684_v19 = vld [vmem:[%s22991_s3 + $0xa04] sm:$0xf0]  ;;  %v15782_v53 = vld [vmem:[%s22991_s3 + $0xd14] sm:$0xf0]  ;;  %v15333_v20 = vld [vmem:[#allocation2 + $0x270] sm:$0xf0] }
 0x2c5   : > { %5618 = vmatmul.bf16.gmra.mxu3 %v18936_v57  ;;  %23361 = vst [vmem:[#allocation74_spill] sm:$0xff] %v18961_v29  ;;  %v13463_v18 = vor.u32 %v15684_v19, %v13462_v49  ;;  %v12054_v49 = vld [vmem:[#allocation2 + $0x208] sm:$0xf]  ;;  %v5303_v57 = vadd.f32 %v18440_v13, %v18762_v45 }
 0x2c6   : > { %v5355_v37 = vpop.f32.mrf.mxu2 }
 0x2c7   : > { %v5356_v35 = vadd.f32 %v5355_v37, %v5327_v30  ;;  %v15700_v37 = vld [vmem:[%s22991_s3 + $0xa84] sm:$0xf0]  ;;  %5694 = vmatpush.bf16.msrb.mxu2 %v13463_v18 }
 0x2c8   : > { %v5329_v48 = vpop.f32.mrf.mxu1  ;;  %v5387_v9 = vpop.f32.mrf.mxu3  ;;  %5866 = vmatpush.bf16.msra.mxu0 %v13863_v7  ;;  %v13846_v7 = vld [vmem:[%s22991_s3 + $0xd00] sm:$0xf] }
 0x2c9   : > { %v18972_v5 = vadd.f32 %v5384_v26, %v5356_v35  ;;  %v5330_v30 = vadd.f32 %v5329_v48, %v5301_v6  ;;  %v13526_v26 = vld [vmem:[%s22991_s3 + $0xa80] sm:$0xf]  ;;  %v15668_v35 = vld [vmem:[%s22991_s3 + $0x984] sm:$0xf0]  ;;  %v13855_v6 = vor.u32 %v15782_v53, %v13854_v23  ;;  %v19012_v53 = vor.u32 %v15333_v20, %v12054_v49 }
 0x2ca   : > { %v13527_v22 = vor.u32 %v15700_v37, %v13526_v26  ;;  %v13399_v48 = vor.u32 %v15668_v35, %v13398_v38  ;;  %v15780_v23 = vld [vmem:[%s22991_s3 + $0xd04] sm:$0xf0] }
 0x2cb   : > { %5560 = vmatmul.bf16.gmra.mxu1 %v18961_v29  ;;  %5589 = vmatmul.bf16.gmra.mxu2 %v18974_v40  ;;  %v15344_v29 = vld [vmem:[#allocation2 + $0x2cc] sm:$0xf]  ;;  %v12140_v40 = vld [vmem:[#allocation2 + $0x334] sm:$0xf0]  ;;  %23363 = vst [vmem:[#allocation76_spill] sm:$0xff] %v19012_v53  ;;  %v13847_v38 = vor.u32 %v15780_v23, %v13846_v7 }
 0x2cc   : > { %5723 = vmatpush.bf16.msrb.mxu3 %v13527_v22  ;;  %5665 = vmatpush.bf16.msrb.mxu1 %v13399_v48  ;;  %v15762_v22 = vld [vmem:[%s22991_s3 + $0xc74] sm:$0xf0]  ;;  %v13838_v48 = vld [vmem:[%s22991_s3 + $0xcf0] sm:$0xf]  ;;  %v15357_v7 = vld [vmem:[#allocation2 + $0x330] sm:$0xf0] }
 0x2cd   : > { %5867 = vmatpush.bf16.msra.mxu0 %v13855_v6  ;;  %v19020_v6 = vor.u32 %v15344_v29, %v12140_v40  ;;  %v15746_v29 = vld [vmem:[%s22991_s3 + $0xbf4] sm:$0xf0]  ;;  %v15343_v40 = vld [vmem:[#allocation2 + $0x2c4] sm:$0xf] }
 0x2ce   : > { %v5358_v17 = vpop.f32.mrf.mxu2  ;;  %v19001_v26 = vpop.f32.mrf.mxu0 }
 0x2cf   : > { %v5359_v19 = vadd.f32 %v5358_v17, %v5330_v30  ;;  %v13774_v30 = vld [vmem:[%s22991_s3 + $0xc70] sm:$0xf]  ;;  %23364 = vst [vmem:[#allocation77_spill] sm:$0xff] %v19020_v6 }
 0x2d0   : > { %v5331_v37 = vpop.f32.mrf.mxu1  ;;  %v5389_v18 = vpop.f32.mrf.mxu3  ;;  %v13775_v35 = vor.u32 %v15762_v22, %v13774_v30  ;;  %v12132_v17 = vld [vmem:[#allocation2 + $0x32c] sm:$0xf0]  ;;  %v5306_v30 = vadd.f32 %v18475_v60, %v18788_v10 }
 0x2d1   : > { %v19014_v13 = vadd.f32 %v5387_v9, %v5359_v19  ;;  %v5332_v45 = vadd.f32 %v5331_v37, %v5303_v57  ;;  %5763 = vmatmul.bf16.gmra.mxu0 %v19012_v53  ;;  %v15778_v9 = vld [vmem:[%s22991_s3 + $0xcf4] sm:$0xf0]  ;;  %v13710_v57 = vld [vmem:[%s22991_s3 + $0xbf0] sm:$0xf]  ;;  %v12138_v37 = vld [vmem:[#allocation2 + $0x2c8] sm:$0xf] }
 0x2d2   : > { %5868 = vmatpush.bf16.msra.mxu0 %v13847_v38  ;;  %5803 = vmatpush.bf16.msra.mxu2 %v13775_v35  ;;  %v13839_v20 = vor.u32 %v15778_v9, %v13838_v48  ;;  %v13711_v49 = vor.u32 %v15746_v29, %v13710_v57  ;;  %v19039_v35 = vor.u32 %v15343_v40, %v12132_v17  ;;  %v13766_v48 = vld [vmem:[%s22991_s3 + $0xc60] sm:$0xf]  ;;  %v15760_v9 = vld [vmem:[%s22991_s3 + $0xc64] sm:$0xf0] }
 0x2d3   : > { %v19052_v10 = vor.u32 %v15357_v7, %v12138_v37  ;;  %v13767_v29 = vor.u32 %v15760_v9, %v13766_v48  ;;  %v15776_v40 = vld [vmem:[%s22991_s3 + $0xce4] sm:$0xf0]  ;;  %v13702_v17 = vld [vmem:[%s22991_s3 + $0xbe0] sm:$0xf]  ;;  %v15360_v7 = vld [vmem:[#allocation2 + $0x348] sm:$0xf0] }
 0x2d4   : > { %5832 = vmatpush.bf16.msra.mxu3 %v13839_v20  ;;  %5774 = vmatpush.bf16.msra.mxu1 %v13711_v49  ;;  %23365 = vst [vmem:[#allocation78_spill] sm:$0xff] %v19039_v35  ;;  %v15744_v49 = vld [vmem:[%s22991_s3 + $0xbe4] sm:$0xf0]  ;;  %v12162_v37 = vld [vmem:[#allocation2 + $0x2e0] sm:$0xf] }
 0x2d5   : > { %5623 = vmatmul.bf16.gmra.mxu3 %v19020_v6  ;;  %23366 = vst [vmem:[#allocation79_spill] sm:$0xff] %v19052_v10  ;;  %v11832_v53 = vld [vmem:[#allocation2 + $0xbc] sm:$0xf0]  ;;  %v11940_v6 = vld [vmem:[#allocation2 + $0x194] sm:$0xf0] }
 0x2d6   : > { %v5360_v19 = vpop.f32.mrf.mxu2  ;;  %v19037_v38 = vpop.f32.mrf.mxu0  ;;  %5804 = vmatpush.bf16.msra.mxu2 %v13767_v29  ;;  %v15758_v29 = vld [vmem:[%s22991_s3 + $0xc54] sm:$0xf0] }
 0x2d7   : > { %v5361_v23 = vadd.f32 %v5360_v19, %v5332_v45  ;;  %v13830_v45 = vld [vmem:[%s22991_s3 + $0xce0] sm:$0xf] }
 0x2d8   : > { %v5334_v22 = vpop.f32.mrf.mxu1  ;;  %v5392_v20 = vpop.f32.mrf.mxu3  ;;  %v13831_v19 = vor.u32 %v15776_v40, %v13830_v45  ;;  %v13758_v45 = vld [vmem:[%s22991_s3 + $0xc50] sm:$0xf]  ;;  %v19075_v40 = vor.u32 %v15360_v7, %v12162_v37  ;;  %v15774_v37 = vld [vmem:[%s22991_s3 + $0xcd4] sm:$0xf0] }
 0x2d9   : > { %v19050_v57 = vadd.f32 %v5389_v18, %v5361_v23  ;;  %v5335_v60 = vadd.f32 %v5334_v22, %v5306_v30  ;;  %v13703_v18 = vor.u32 %v15744_v49, %v13702_v17  ;;  %v5308_v22 = vadd.f32 %v18510_v32, %v18822_v39  ;;  %v15265_v32 = vld [vmem:[#allocation2 + $0x54] sm:$0xf] }
 0x2da   : > { %5833 = vmatpush.bf16.msra.mxu3 %v13831_v19  ;;  %23367 = vst [vmem:[#allocation80_spill] sm:$0xff] %v19075_v40  ;;  %v13759_v19 = vor.u32 %v15758_v29, %v13758_v45  ;;  %v19080_v39 = vor.u32 %v15265_v32, %v11832_v53  ;;  %v15264_v53 = vld [vmem:[#allocation2 + $0x4c] sm:$0xf]  ;;  %v11830_v45 = vld [vmem:[#allocation2 + $0x50] sm:$0xf]  ;;  %v5407_v32 = vadd.f32 %v18544_v33, %v18849_v41 }
 0x2db   : > { %5565 = vmatmul.bf16.gmra.mxu1 %v19039_v35  ;;  %5594 = vmatmul.bf16.gmra.mxu2 %v19052_v10  ;;  %v15278_v29 = vld [vmem:[#allocation2 + $0xb8] sm:$0xf0] }
 0x2dc   : > { %5775 = vmatpush.bf16.msra.mxu1 %v13703_v18  ;;  %23368 = vst [vmem:[#allocation81_spill] sm:$0xff] %v19080_v39  ;;  %5805 = vmatpush.bf16.msra.mxu2 %v13759_v19  ;;  %v13822_v18 = vld [vmem:[%s22991_s3 + $0xcd0] sm:$0xf]  ;;  %v19112_v41 = vor.u32 %v15278_v29, %v11830_v45  ;;  %v15281_v45 = vld [vmem:[#allocation2 + $0xd0] sm:$0xf0] }
 0x2dd   : > { %v13823_v7 = vor.u32 %v15774_v37, %v13822_v18 }
 0x2de   : > { %v5363_v23 = vpop.f32.mrf.mxu2  ;;  %v19067_v48 = vpop.f32.mrf.mxu0  ;;  %23370 = vst [vmem:[#allocation83_spill] sm:$0xff] %v19112_v41 }
 0x2df   : > { %v5364_v30 = vadd.f32 %v5363_v23, %v5335_v60  ;;  %v15742_v23 = vld [vmem:[%s22991_s3 + $0xbd4] sm:$0xf0]  ;;  %5834 = vmatpush.bf16.msra.mxu3 %v13823_v7 }
 0x2e0   : > { %v5336_v9 = vpop.f32.mrf.mxu1  ;;  %v5394_v49 = vpop.f32.mrf.mxu3 }
 0x2e1   : > { %v19077_v17 = vadd.f32 %v5392_v20, %v5364_v30  ;;  %v5337_v60 = vadd.f32 %v5336_v9, %v5308_v22  ;;  %5768 = vmatmul.bf16.gmra.mxu0 %v19075_v40  ;;  %v13694_v20 = vld [vmem:[%s22991_s3 + $0xbd0] sm:$0xf]  ;;  %v11824_v30 = vld [vmem:[#allocation2 + $0xb4] sm:$0xf0] }
 0x2e2   : > { %v13695_v22 = vor.u32 %v15742_v23, %v13694_v20  ;;  %v19099_v37 = vor.u32 %v15264_v53, %v11824_v30  ;;  %v15756_v20 = vld [vmem:[%s22991_s3 + $0xc44] sm:$0xf0] }
 0x2e3   : > { %v15772_v30 = vld [vmem:[%s22991_s3 + $0xcc4] sm:$0xf0] }
 0x2e4   : > { %5776 = vmatpush.bf16.msra.mxu1 %v13695_v22  ;;  %23369 = vst [vmem:[#allocation82_spill] sm:$0xff] %v19099_v37  ;;  %v13686_v22 = vld [vmem:[%s22991_s3 + $0xbc0] sm:$0xf] }
 0x2e5   : > { %5724 = vmatmul.bf16.vlgmr.msrb.gmra.mxu3 %v19080_v39  ;;  %v13750_v39 = vld [vmem:[%s22991_s3 + $0xc40] sm:$0xf] }
 0x2e6   : > { %v5365_v9 = vpop.f32.mrf.mxu2  ;;  %v19097_v40 = vpop.f32.mrf.mxu0  ;;  %v13751_v53 = vor.u32 %v15756_v20, %v13750_v39  ;;  %v11854_v39 = vld [vmem:[#allocation2 + $0x68] sm:$0xf] }
 0x2e7   : > { %v5366_v19 = vadd.f32 %v5365_v9, %v5337_v60  ;;  %v13814_v60 = vld [vmem:[%s22991_s3 + $0xcc0] sm:$0xf]  ;;  %v15740_v9 = vld [vmem:[%s22991_s3 + $0xbc4] sm:$0xf0] }
 0x2e8   : > { %v5435_v18 = vpop.f32.mrf.mxu1  ;;  %v5493_v23 = vpop.f32.mrf.mxu3  ;;  %v13815_v10 = vor.u32 %v15772_v30, %v13814_v60  ;;  %5806 = vmatpush.bf16.msra.mxu2 %v13751_v53  ;;  %v13742_v60 = vld [vmem:[%s22991_s3 + $0xc30] sm:$0xf]  ;;  %v19135_v53 = vor.u32 %v15281_v45, %v11854_v39  ;;  %v12432_v39 = vld [vmem:[%s22991_s3 + $0x1f8] sm:$0xf0] }
 0x2e9   : > { %v19110_v7 = vadd.f32 %v5394_v49, %v5366_v19  ;;  %v5436_v33 = vadd.f32 %v5435_v18, %v5407_v32  ;;  %v13687_v49 = vor.u32 %v15740_v9, %v13686_v22  ;;  %v5409_v32 = vadd.f32 %v18583_v51, %v18888_v56  ;;  %v15292_v51 = vld [vmem:[#allocation2 + $0x12c] sm:$0xf] }
 0x2ea   : > { %5835 = vmatpush.bf16.msra.mxu3 %v13815_v10  ;;  %v15754_v10 = vld [vmem:[%s22991_s3 + $0xc34] sm:$0xf0]  ;;  %23371 = vst [vmem:[#allocation84_spill] sm:$0xff] %v19135_v53  ;;  %v19140_v56 = vor.u32 %v15292_v51, %v11940_v6  ;;  %v13678_v6 = vld [vmem:[%s22991_s3 + $0xbb0] sm:$0xf] }
 0x2eb   : > { %5666 = vmatmul.bf16.vlgmr.msrb.gmra.mxu1 %v19099_v37  ;;  %5695 = vmatmul.bf16.vlgmr.msrb.gmra.mxu2 %v19112_v41  ;;  %v13743_v9 = vor.u32 %v15754_v10, %v13742_v60  ;;  %v11938_v51 = vld [vmem:[#allocation2 + $0x128] sm:$0xf] }
 0x2ec   : > { %5777 = vmatpush.bf16.msra.mxu1 %v13687_v49  ;;  %23372 = vst [vmem:[#allocation85_spill] sm:$0xff] %v19140_v56  ;;  %v15425_v49 = vld [vmem:[%s22991_s3 + $0x1f4] sm:$0xf] }
 0x2ed   : > { %5807 = vmatpush.bf16.msra.mxu2 %v13743_v9  ;;  %v12435_v45 = vor.u32 %v15425_v49, %v12432_v39  ;;  %v15305_v49 = vld [vmem:[#allocation2 + $0x190] sm:$0xf0] }
 0x2ee   : > { %v5464_v29 = vpop.f32.mrf.mxu2  ;;  %v19127_v18 = vpop.f32.mrf.mxu0 }
 0x2ef   : > { %v5465_v19 = vadd.f32 %v5464_v29, %v5436_v33  ;;  %v15770_v29 = vld [vmem:[%s22991_s3 + $0xcb4] sm:$0xf0]  ;;  %5977 = vmatpush.bf16.msrb.mxu0 %v12435_v45  ;;  %v19178_v45 = vor.u32 %v15305_v49, %v11938_v51  ;;  %v15736_v51 = vld [vmem:[%s22991_s3 + $0xba4] sm:$0xf0] }
 0x2f0   : > { %v5437_v20 = vpop.f32.mrf.mxu1  ;;  %v5495_v22 = vpop.f32.mrf.mxu3 }
 0x2f1   : > { %v19137_v30 = vadd.f32 %v5493_v23, %v5465_v19  ;;  %v5438_v33 = vadd.f32 %v5437_v20, %v5409_v32  ;;  %5869 = vmatmul.bf16.vlgmr.msra.gmra.mxu0 %v19135_v53  ;;  %v13806_v23 = vld [vmem:[%s22991_s3 + $0xcb0] sm:$0xf]  ;;  %v15738_v19 = vld [vmem:[%s22991_s3 + $0xbb4] sm:$0xf0]  ;;  %v15291_v32 = vld [vmem:[#allocation2 + $0x124] sm:$0xf]  ;;  %v5412_v53 = vadd.f32 %v18628_v14, %v18930_v28 }
 0x2f2   : > { %v11932_v20 = vld [vmem:[#allocation2 + $0x18c] sm:$0xf0]  ;;  %v13807_v60 = vor.u32 %v15770_v29, %v13806_v23  ;;  %v13679_v10 = vor.u32 %v15738_v19, %v13678_v6  ;;  %v15423_v23 = vld [vmem:[%s22991_s3 + $0x1e4] sm:$0xf]  ;;  %v12424_v29 = vld [vmem:[%s22991_s3 + $0x1e8] sm:$0xf0] }
 0x2f3   : > { %v19165_v35 = vor.u32 %v15291_v32, %v11932_v20  ;;  %23374 = vst [vmem:[#allocation87_spill] sm:$0xff] %v19178_v45  ;;  %v12427_v19 = vor.u32 %v15423_v23, %v12424_v29  ;;  %v15752_v32 = vld [vmem:[%s22991_s3 + $0xc24] sm:$0xf0]  ;;  %v15421_v20 = vld [vmem:[%s22991_s3 + $0x1d4] sm:$0xf] }
 0x2f4   : > { %5836 = vmatpush.bf16.msra.mxu3 %v13807_v60  ;;  %5778 = vmatpush.bf16.msra.mxu1 %v13679_v10  ;;  %v12416_v60 = vld [vmem:[%s22991_s3 + $0x1d8] sm:$0xf0]  ;;  %v11962_v23 = vld [vmem:[#allocation2 + $0x140] sm:$0xf]  ;;  %v15308_v29 = vld [vmem:[#allocation2 + $0x1a8] sm:$0xf0] }
 0x2f5   : > { %5729 = vmatmul.bf16.gmra.mxu3 %v19140_v56  ;;  %23373 = vst [vmem:[#allocation86_spill] sm:$0xff] %v19165_v35  ;;  %5978 = vmatpush.bf16.msrb.mxu0 %v12427_v19  ;;  %v12419_v49 = vor.u32 %v15421_v20, %v12416_v60  ;;  %v5414_v56 = vadd.f32 %v18673_v15, %v18972_v5  ;;  %v15419_v19 = vld [vmem:[%s22991_s3 + $0x1c4] sm:$0xf]  ;;  %v12408_v20 = vld [vmem:[%s22991_s3 + $0x1c8] sm:$0xf0] }
 0x2f6   : > { %v5466_v9 = vpop.f32.mrf.mxu2  ;;  %v19163_v41 = vpop.f32.mrf.mxu0  ;;  %v19216_v60 = vor.u32 %v15308_v29, %v11962_v23  ;;  %v13662_v29 = vld [vmem:[%s22991_s3 + $0xb90] sm:$0xf] }
 0x2f7   : > { %v5467_v39 = vadd.f32 %v5466_v9, %v5438_v33  ;;  %v13734_v33 = vld [vmem:[%s22991_s3 + $0xc20] sm:$0xf] }
 0x2f8   : > { %v5440_v37 = vpop.f32.mrf.mxu1  ;;  %v5498_v6 = vpop.f32.mrf.mxu3  ;;  %v13735_v10 = vor.u32 %v15752_v32, %v13734_v33  ;;  %23375 = vst [vmem:[#allocation88_spill] sm:$0xff] %v19216_v60 }
 0x2f9   : > { %v19176_v14 = vadd.f32 %v5495_v22, %v5467_v39  ;;  %v5441_v28 = vadd.f32 %v5440_v37, %v5412_v53  ;;  %v13798_v37 = vld [vmem:[%s22991_s3 + $0xca0] sm:$0xf]  ;;  %v15768_v53 = vld [vmem:[%s22991_s3 + $0xca4] sm:$0xf0]  ;;  %5979 = vmatpush.bf16.msrb.mxu0 %v12419_v49 }
 0x2fa   : > { %v13670_v22 = vld [vmem:[%s22991_s3 + $0xba0] sm:$0xf]  ;;  %v13799_v9 = vor.u32 %v15768_v53, %v13798_v37  ;;  %5808 = vmatpush.bf16.msra.mxu2 %v13735_v10  ;;  %v12411_v53 = vor.u32 %v15419_v19, %v12408_v20 }
 0x2fb   : > { %5671 = vmatmul.bf16.gmra.mxu1 %v19165_v35  ;;  %5700 = vmatmul.bf16.gmra.mxu2 %v19178_v45  ;;  %v13671_v39 = vor.u32 %v15736_v51, %v13670_v22  ;;  %v12048_v35 = vld [vmem:[#allocation2 + $0x26c] sm:$0xf0]  ;;  %v15750_v22 = vld [vmem:[%s22991_s3 + $0xc14] sm:$0xf0] }
 0x2fc   : > { %5837 = vmatpush.bf16.msra.mxu3 %v13799_v9  ;;  %v15319_v9 = vld [vmem:[#allocation2 + $0x204] sm:$0xf] }
 0x2fd   : > { %5779 = vmatpush.bf16.msra.mxu1 %v13671_v39  ;;  %v19224_v49 = vor.u32 %v15319_v9, %v12048_v35  ;;  %v15417_v39 = vld [vmem:[%s22991_s3 + $0x1b4] sm:$0xf]  ;;  %5980 = vmatpush.bf16.msrb.mxu0 %v12411_v53  ;;  %v15766_v35 = vld [vmem:[%s22991_s3 + $0xc94] sm:$0xf0]  ;;  %v12046_v53 = vld [vmem:[#allocation2 + $0x200] sm:$0xf] }
 0x2fe   : > { %v5469_v33 = vpop.f32.mrf.mxu2  ;;  %v19205_v45 = vpop.f32.mrf.mxu0 }
 0x2ff   : > { %v5470_v32 = vadd.f32 %v5469_v33, %v5441_v28  ;;  %v13726_v28 = vld [vmem:[%s22991_s3 + $0xc10] sm:$0xf]  ;;  %23376 = vst [vmem:[#allocation89_spill] sm:$0xff] %v19224_v49  ;;  %v15734_v33 = vld [vmem:[%s22991_s3 + $0xb94] sm:$0xf0] }
 0x300   : > { %v5442_v37 = vpop.f32.mrf.mxu1  ;;  %v5500_v10 = vpop.f32.mrf.mxu3  ;;  %v13727_v51 = vor.u32 %v15750_v22, %v13726_v28  ;;  %v13663_v20 = vor.u32 %v15734_v33, %v13662_v29  ;;  %v15332_v22 = vld [vmem:[#allocation2 + $0x268] sm:$0xf0] }
 0x301   : > { %v19218_v15 = vadd.f32 %v5498_v6, %v5470_v32  ;;  %v5443_v5 = vadd.f32 %v5442_v37, %v5414_v56  ;;  %5874 = vmatmul.bf16.gmra.mxu0 %v19216_v60  ;;  %v12400_v56 = vld [vmem:[%s22991_s3 + $0x1b8] sm:$0xf0]  ;;  %v13790_v6 = vld [vmem:[%s22991_s3 + $0xc90] sm:$0xf]  ;;  %v12040_v37 = vld [vmem:[#allocation2 + $0x264] sm:$0xf0]  ;;  %v19262_v29 = vor.u32 %v15332_v22, %v12046_v53 }
 0x302   : > { %5809 = vmatpush.bf16.msra.mxu2 %v13727_v51  ;;  %v12403_v23 = vor.u32 %v15417_v39, %v12400_v56  ;;  %v15318_v32 = vld [vmem:[#allocation2 + $0x1fc] sm:$0xf]  ;;  %v13791_v19 = vor.u32 %v15766_v35, %v13790_v6  ;;  %v5417_v51 = vadd.f32 %v18714_v3, %v19014_v13  ;;  %5780 = vmatpush.bf16.msra.mxu1 %v13663_v20  ;;  %v15415_v6 = vld [vmem:[%s22991_s3 + $0x1a4] sm:$0xf]  ;;  %v12392_v35 = vld [vmem:[%s22991_s3 + $0x1a8] sm:$0xf0] }
 0x303   : > { %v19249_v60 = vor.u32 %v15318_v32, %v12040_v37  ;;  %v13718_v3 = vld [vmem:[%s22991_s3 + $0xc00] sm:$0xf]  ;;  %23378 = vst [vmem:[#allocation91_spill] sm:$0xff] %v19262_v29  ;;  %v12395_v32 = vor.u32 %v15415_v6, %v12392_v35  ;;  %v15413_v37 = vld [vmem:[%s22991_s3 + $0x194] sm:$0xf] }
 0x304   : > { %5838 = vmatpush.bf16.msra.mxu3 %v13791_v19  ;;  %5981 = vmatpush.bf16.msrb.mxu0 %v12403_v23  ;;  %v15748_v23 = vld [vmem:[%s22991_s3 + $0xc04] sm:$0xf0]  ;;  %v12384_v19 = vld [vmem:[%s22991_s3 + $0x198] sm:$0xf0]  ;;  %v13654_v53 = vld [vmem:[%s22991_s3 + $0xb80] sm:$0xf] }
 0x305   : > { %5734 = vmatmul.bf16.gmra.mxu3 %v19224_v49  ;;  %23377 = vst [vmem:[#allocation90_spill] sm:$0xff] %v19249_v60  ;;  %v13719_v20 = vor.u32 %v15748_v23, %v13718_v3  ;;  %v12070_v6 = vld [vmem:[#allocation2 + $0x218] sm:$0xf]  ;;  %v15335_v35 = vld [vmem:[#allocation2 + $0x280] sm:$0xf0]  ;;  %v5419_v49 = vadd.f32 %v18749_v12, %v19050_v57 }
 0x306   : > { %v5471_v28 = vpop.f32.mrf.mxu2  ;;  %v19247_v39 = vpop.f32.mrf.mxu0 }
 0x307   : > { %v5472_v9 = vadd.f32 %v5471_v28, %v5443_v5  ;;  %v15764_v28 = vld [vmem:[%s22991_s3 + $0xc84] sm:$0xf0]  ;;  %5810 = vmatpush.bf16.msra.mxu2 %v13719_v20 }
 0x308   : > { %v5445_v56 = vpop.f32.mrf.mxu1  ;;  %v5503_v33 = vpop.f32.mrf.mxu3  ;;  %5982 = vmatpush.bf16.msrb.mxu0 %v12395_v32  ;;  %v15411_v32 = vld [vmem:[%s22991_s3 + $0x184] sm:$0xf] }
 0x309   : > { %v19260_v13 = vadd.f32 %v5500_v10, %v5472_v9  ;;  %v5446_v5 = vadd.f32 %v5445_v56, %v5417_v51  ;;  %v13782_v10 = vld [vmem:[%s22991_s3 + $0xc80] sm:$0xf]  ;;  %v15732_v9 = vld [vmem:[%s22991_s3 + $0xb84] sm:$0xf0]  ;;  %v12387_v51 = vor.u32 %v15413_v37, %v12384_v19  ;;  %v12376_v37 = vld [vmem:[%s22991_s3 + $0x188] sm:$0xf0]  ;;  %v19300_v19 = vor.u32 %v15335_v35, %v12070_v6 }
 0x30a   : > { %v13783_v22 = vor.u32 %v15764_v28, %v13782_v10  ;;  %v13655_v56 = vor.u32 %v15732_v9, %v13654_v53  ;;  %v12379_v53 = vor.u32 %v15411_v32, %v12376_v37  ;;  %v12148_v35 = vld [vmem:[#allocation2 + $0x33c] sm:$0xf0]  ;;  %v15359_v32 = vld [vmem:[#allocation2 + $0x340] sm:$0xf0] }
 0x30b   : > { %5676 = vmatmul.bf16.gmra.mxu1 %v19249_v60  ;;  %5705 = vmatmul.bf16.gmra.mxu2 %v19262_v29  ;;  %v15346_v60 = vld [vmem:[#allocation2 + $0x2dc] sm:$0xf]  ;;  %v12156_v29 = vld [vmem:[#allocation2 + $0x344] sm:$0xf0]  ;;  %23379 = vst [vmem:[#allocation92_spill] sm:$0xff] %v19300_v19 }
 0x30c   : > { %5839 = vmatpush.bf16.msra.mxu3 %v13783_v22  ;;  %5781 = vmatpush.bf16.msra.mxu1 %v13655_v56  ;;  %v12304_v22 = vld [vmem:[%s22991_s3 + $0xf8] sm:$0xf0]  ;;  %v15409_v56 = vld [vmem:[%s22991_s3 + $0x174] sm:$0xf] }
 0x30d   : > { %5983 = vmatpush.bf16.msrb.mxu0 %v12387_v51  ;;  %v19308_v51 = vor.u32 %v15346_v60, %v12156_v29  ;;  %v12240_v60 = vld [vmem:[%s22991_s3 + $0x78] sm:$0xf0]  ;;  %v15345_v29 = vld [vmem:[#allocation2 + $0x2d4] sm:$0xf] }
 0x30e   : > { %v5474_v3 = vpop.f32.mrf.mxu2  ;;  %v19289_v10 = vpop.f32.mrf.mxu0 }
 0x30f   : > { %v5475_v23 = vadd.f32 %v5474_v3, %v5446_v5  ;;  %v15393_v5 = vld [vmem:[%s22991_s3 + $0xf4] sm:$0xf]  ;;  %23380 = vst [vmem:[#allocation93_spill] sm:$0xff] %v19308_v51 }
 0x310   : > { %v5447_v28 = vpop.f32.mrf.mxu1  ;;  %v5505_v20 = vpop.f32.mrf.mxu3  ;;  %v12307_v9 = vor.u32 %v15393_v5, %v12304_v22  ;;  %v5422_v5 = vadd.f32 %v18778_v25, %v19077_v17 }
 0x311   : > { %v19302_v12 = vadd.f32 %v5503_v33, %v5475_v23  ;;  %v5448_v57 = vadd.f32 %v5447_v28, %v5419_v49  ;;  %5879 = vmatmul.bf16.gmra.mxu0 %v19300_v19  ;;  %v12368_v33 = vld [vmem:[%s22991_s3 + $0x178] sm:$0xf0]  ;;  %v15377_v49 = vld [vmem:[%s22991_s3 + $0x74] sm:$0xf]  ;;  %v12154_v28 = vld [vmem:[#allocation2 + $0x2d8] sm:$0xf] }
 0x312   : > { %5984 = vmatpush.bf16.msrb.mxu0 %v12379_v53  ;;  %5919 = vmatpush.bf16.msrb.mxu2 %v12307_v9  ;;  %v12371_v6 = vor.u32 %v15409_v56, %v12368_v33  ;;  %v12243_v3 = vor.u32 %v15377_v49, %v12240_v60  ;;  %v19327_v9 = vor.u32 %v15345_v29, %v12148_v35  ;;  %v15391_v56 = vld [vmem:[%s22991_s3 + $0xe4] sm:$0xf]  ;;  %v12296_v33 = vld [vmem:[%s22991_s3 + $0xe8] sm:$0xf0] }
 0x313   : > { %v19340_v17 = vor.u32 %v15359_v32, %v12154_v28  ;;  %v12299_v60 = vor.u32 %v15391_v56, %v12296_v33  ;;  %v12360_v29 = vld [vmem:[%s22991_s3 + $0x168] sm:$0xf0]  ;;  %v15375_v35 = vld [vmem:[%s22991_s3 + $0x64] sm:$0xf]  ;;  %v12178_v28 = vld [vmem:[#allocation2 + $0x2f0] sm:$0xf] }
 0x314   : > { %5948 = vmatpush.bf16.msrb.mxu3 %v12371_v6  ;;  %5890 = vmatpush.bf16.msrb.mxu1 %v12243_v3  ;;  %v12232_v3 = vld [vmem:[%s22991_s3 + $0x68] sm:$0xf0]  ;;  %v15362_v32 = vld [vmem:[#allocation2 + $0x358] sm:$0xf0]  ;;  %v15267_v56 = vld [vmem:[#allocation2 + $0x64] sm:$0xf] }
 0x315   : > { %5739 = vmatmul.bf16.gmra.mxu3 %v19308_v51  ;;  %23381 = vst [vmem:[#allocation94_spill] sm:$0xff] %v19340_v17 }
 0x316   : > { %v5476_v23 = vpop.f32.mrf.mxu2  ;;  %v19325_v53 = vpop.f32.mrf.mxu0  ;;  %5920 = vmatpush.bf16.msrb.mxu2 %v12299_v60  ;;  %v12288_v60 = vld [vmem:[%s22991_s3 + $0xd8] sm:$0xf0] }
 0x317   : > { %v5477_v37 = vadd.f32 %v5476_v23, %v5448_v57  ;;  %v15407_v57 = vld [vmem:[%s22991_s3 + $0x164] sm:$0xf] }
 0x318   : > { %v5450_v22 = vpop.f32.mrf.mxu1  ;;  %v5508_v6 = vpop.f32.mrf.mxu3  ;;  %v12363_v23 = vor.u32 %v15407_v57, %v12360_v29  ;;  %v11848_v57 = vld [vmem:[#allocation2 + $0xcc] sm:$0xf0]  ;;  %v15389_v29 = vld [vmem:[%s22991_s3 + $0xd4] sm:$0xf] }
 0x319   : > { %v19338_v49 = vadd.f32 %v5505_v20, %v5477_v37  ;;  %v5451_v25 = vadd.f32 %v5450_v22, %v5422_v5  ;;  %v12235_v20 = vor.u32 %v15375_v35, %v12232_v3  ;;  %v5424_v22 = vadd.f32 %v18809_v4, %v19110_v7 }
 0x31a   : > { %5949 = vmatpush.bf16.msrb.mxu3 %v12363_v23  ;;  %v19363_v35 = vor.u32 %v15362_v32, %v12178_v28  ;;  %v12291_v4 = vor.u32 %v15389_v29, %v12288_v60  ;;  %v19368_v7 = vor.u32 %v15267_v56, %v11848_v57  ;;  %v12224_v28 = vld [vmem:[%s22991_s3 + $0x58] sm:$0xf0]  ;;  %v11840_v32 = vld [vmem:[#allocation2 + $0xc4] sm:$0xf0]  ;;  %v11846_v56 = vld [vmem:[#allocation2 + $0x60] sm:$0xf]  ;;  %v5523_v60 = vadd.f32 %v18839_v63, %v19137_v30 }
 0x31b   : > { %5681 = vmatmul.bf16.gmra.mxu1 %v19327_v9  ;;  %5710 = vmatmul.bf16.gmra.mxu2 %v19340_v17  ;;  %v15280_v57 = vld [vmem:[#allocation2 + $0xc8] sm:$0xf0] }
 0x31c   : > { %5891 = vmatpush.bf16.msrb.mxu1 %v12235_v20  ;;  %23382 = vst [vmem:[#allocation95_spill] sm:$0xff] %v19363_v35  ;;  %5921 = vmatpush.bf16.msrb.mxu2 %v12291_v4  ;;  %v15405_v20 = vld [vmem:[%s22991_s3 + $0x154] sm:$0xf]  ;;  %v15266_v4 = vld [vmem:[#allocation2 + $0x5c] sm:$0xf] }
 0x31d   : > { %23383 = vst [vmem:[#allocation96_spill] sm:$0xff] %v19368_v7 }
 0x31e   : > { %v5479_v37 = vpop.f32.mrf.mxu2  ;;  %v19355_v33 = vpop.f32.mrf.mxu0 }
 0x31f   : > { %v5480_v5 = vadd.f32 %v5479_v37, %v5451_v25  ;;  %v12352_v37 = vld [vmem:[%s22991_s3 + $0x158] sm:$0xf0] }
 0x320   : > { %v5452_v19 = vpop.f32.mrf.mxu1  ;;  %v5510_v23 = vpop.f32.mrf.mxu3 }
 0x321   : > { %v19365_v3 = vadd.f32 %v5508_v6, %v5480_v5  ;;  %v5453_v25 = vadd.f32 %v5452_v19, %v5424_v22  ;;  %5884 = vmatmul.bf16.gmra.mxu0 %v19363_v35  ;;  %v15373_v6 = vld [vmem:[%s22991_s3 + $0x54] sm:$0xf]  ;;  %v12355_v19 = vor.u32 %v15405_v20, %v12352_v37  ;;  %v19387_v37 = vor.u32 %v15266_v4, %v11840_v32  ;;  %v12216_v4 = vld [vmem:[%s22991_s3 + $0x48] sm:$0xf0] }
 0x322   : > { %v12227_v5 = vor.u32 %v15373_v6, %v12224_v28  ;;  %v12280_v6 = vld [vmem:[%s22991_s3 + $0xc8] sm:$0xf0] }
 0x323   : > { %5950 = vmatpush.bf16.msrb.mxu3 %v12355_v19  ;;  %23384 = vst [vmem:[#allocation97_spill] sm:$0xff] %v19387_v37  ;;  %v19400_v19 = vor.u32 %v15280_v57, %v11846_v56  ;;  %v5525_v57 = vadd.f32 %v18875_v46, %v19176_v14  ;;  %v15489_v14 = vld [vmem:[%s22991_s3 + $0x3f4] sm:$0xf] }
 0x324   : > { %5892 = vmatpush.bf16.msrb.mxu1 %v12227_v5  ;;  %v12344_v5 = vld [vmem:[%s22991_s3 + $0x148] sm:$0xf0] }
 0x325   : > { %5840 = vmatmul.bf16.vlgmr.msra.gmra.mxu3 %v19368_v7  ;;  %v15387_v7 = vld [vmem:[%s22991_s3 + $0xc4] sm:$0xf]  ;;  %23385 = vst [vmem:[#allocation98_spill] sm:$0xff] %v19400_v19 }
 0x326   : > { %v5481_v22 = vpop.f32.mrf.mxu2  ;;  %v19385_v35 = vpop.f32.mrf.mxu0  ;;  %v12283_v32 = vor.u32 %v15387_v7, %v12280_v6  ;;  %v11956_v6 = vld [vmem:[#allocation2 + $0x1a4] sm:$0xf0] }
 0x327   : > { %v5482_v29 = vadd.f32 %v5481_v22, %v5453_v25  ;;  %v15403_v25 = vld [vmem:[%s22991_s3 + $0x144] sm:$0xf] }
 0x328   : > { %v5551_v20 = vpop.f32.mrf.mxu1  ;;  %v5609_v28 = vpop.f32.mrf.mxu3  ;;  %v15371_v22 = vld [vmem:[%s22991_s3 + $0x44] sm:$0xf]  ;;  %v12347_v17 = vor.u32 %v15403_v25, %v12344_v5  ;;  %5922 = vmatpush.bf16.msrb.mxu2 %v12283_v32  ;;  %v15385_v25 = vld [vmem:[%s22991_s3 + $0xb4] sm:$0xf]  ;;  %v12272_v32 = vld [vmem:[%s22991_s3 + $0xb8] sm:$0xf0] }
 0x329   : > { %v19398_v63 = vadd.f32 %v5510_v23, %v5482_v29  ;;  %v5552_v30 = vadd.f32 %v5551_v20, %v5523_v60  ;;  %v12219_v23 = vor.u32 %v15371_v22, %v12216_v4  ;;  %v15294_v29 = vld [vmem:[#allocation2 + $0x13c] sm:$0xf]  ;;  %v12275_v22 = vor.u32 %v15385_v25, %v12272_v32  ;;  %v11954_v25 = vld [vmem:[#allocation2 + $0x138] sm:$0xf]  ;;  %v15307_v32 = vld [vmem:[#allocation2 + $0x1a0] sm:$0xf0] }
 0x32a   : > { %5951 = vmatpush.bf16.msrb.mxu3 %v12347_v17  ;;  %v19426_v46 = vor.u32 %v15294_v29, %v11956_v6  ;;  %v12688_v4 = vld [vmem:[%s22991_s3 + $0x3f8] sm:$0xf0] }
 0x32b   : > { %5782 = vmatmul.bf16.vlgmr.msra.gmra.mxu1 %v19387_v37  ;;  %5811 = vmatmul.bf16.vlgmr.msra.gmra.mxu2 %v19400_v19 }
 0x32c   : > { %5893 = vmatpush.bf16.msrb.mxu1 %v12219_v23  ;;  %23386 = vst [vmem:[#allocation99_spill] sm:$0xff] %v19426_v46  ;;  %5923 = vmatpush.bf16.msrb.mxu2 %v12275_v22  ;;  %v12691_v23 = vor.u32 %v15489_v14, %v12688_v4  ;;  %v5528_v14 = vadd.f32 %v18917_v59, %v19218_v15  ;;  %v15293_v4 = vld [vmem:[#allocation2 + $0x134] sm:$0xf]  ;;  %v15383_v59 = vld [vmem:[%s22991_s3 + $0xa4] sm:$0xf] }
 0x32e   : > { %v5580_v7 = vpop.f32.mrf.mxu2  ;;  %v19415_v60 = vpop.f32.mrf.mxu0  ;;  %6093 = vmatpush.bf16.msra.mxu0 %v12691_v23  ;;  %v12680_v23 = vld [vmem:[%s22991_s3 + $0x3e8] sm:$0xf0] }
 0x32f   : > { %v5581_v56 = vadd.f32 %v5580_v7, %v5552_v30  ;;  %v15369_v7 = vld [vmem:[%s22991_s3 + $0x34] sm:$0xf] }
 0x330   : > { %v5553_v20 = vpop.f32.mrf.mxu1  ;;  %v5611_v30 = vpop.f32.mrf.mxu3 }
 0x331   : > { %v19423_v17 = vadd.f32 %v5609_v28, %v5581_v56  ;;  %v5554_v5 = vadd.f32 %v5553_v20, %v5525_v57  ;;  %5985 = vmatmul.bf16.vlgmr.msrb.gmra.mxu0 %v17976_v8  ;;  %v15401_v28 = vld [vmem:[%s22991_s3 + $0x134] sm:$0xf]  ;;  %v12336_v8 = vld [vmem:[%s22991_s3 + $0x138] sm:$0xf0]  ;;  %v11948_v57 = vld [vmem:[#allocation2 + $0x19c] sm:$0xf0] }
 0x332   : > { %v12208_v56 = vld [vmem:[%s22991_s3 + $0x38] sm:$0xf0]  ;;  %v12339_v29 = vor.u32 %v15401_v28, %v12336_v8  ;;  %v19451_v37 = vor.u32 %v15293_v4, %v11948_v57  ;;  %v15487_v28 = vld [vmem:[%s22991_s3 + $0x3e4] sm:$0xf]  ;;  %v19464_v8 = vor.u32 %v15307_v32, %v11954_v25  ;;  %v12264_v57 = vld [vmem:[%s22991_s3 + $0xa8] sm:$0xf0] }
 0x333   : > { %v12211_v20 = vor.u32 %v15369_v7, %v12208_v56  ;;  %v12683_v56 = vor.u32 %v15487_v28, %v12680_v23  ;;  %v15367_v25 = vld [vmem:[%s22991_s3 + $0x24] sm:$0xf] }
 0x334   : > { %5952 = vmatpush.bf16.msrb.mxu3 %v12339_v29  ;;  %23387 = vst [vmem:[#allocation100_spill] sm:$0xff] %v19451_v37  ;;  %v15485_v29 = vld [vmem:[%s22991_s3 + $0x3d4] sm:$0xf] }
 0x335   : > { %5845 = vmatmul.bf16.gmra.mxu3 %v19426_v46  ;;  %5894 = vmatpush.bf16.msrb.mxu1 %v12211_v20  ;;  %23388 = vst [vmem:[#allocation101_spill] sm:$0xff] %v19464_v8  ;;  %v12672_v20 = vld [vmem:[%s22991_s3 + $0x3d8] sm:$0xf0]  ;;  %v12064_v46 = vld [vmem:[#allocation2 + $0x27c] sm:$0xf0] }
 0x336   : > { %v5582_v6 = vpop.f32.mrf.mxu2  ;;  %v19449_v19 = vpop.f32.mrf.mxu0  ;;  %6094 = vmatpush.bf16.msra.mxu0 %v12683_v56  ;;  %v15483_v56 = vld [vmem:[%s22991_s3 + $0x3c4] sm:$0xf] }
 0x337   : > { %v5583_v22 = vadd.f32 %v5582_v6, %v5554_v5  ;;  %v12267_v6 = vor.u32 %v15383_v59, %v12264_v57  ;;  %v5530_v59 = vadd.f32 %v18959_v36, %v19260_v13  ;;  %v15321_v57 = vld [vmem:[#allocation2 + $0x214] sm:$0xf] }
 0x338   : > { %v5556_v51 = vpop.f32.mrf.mxu1  ;;  %v5614_v7 = vpop.f32.mrf.mxu3 }
 0x339   : > { %v19462_v15 = vadd.f32 %v5611_v30, %v5583_v22  ;;  %v5557_v5 = vadd.f32 %v5556_v51, %v5528_v14  ;;  %v15399_v51 = vld [vmem:[%s22991_s3 + $0x124] sm:$0xf]  ;;  %v12328_v30 = vld [vmem:[%s22991_s3 + $0x128] sm:$0xf0]  ;;  %5924 = vmatpush.bf16.msrb.mxu2 %v12267_v6  ;;  %v12675_v14 = vor.u32 %v15485_v29, %v12672_v20 }
 0x33a   : > { %v12331_v32 = vor.u32 %v15399_v51, %v12328_v30  ;;  %v12200_v22 = vld [vmem:[%s22991_s3 + $0x28] sm:$0xf0]  ;;  %v12256_v30 = vld [vmem:[%s22991_s3 + $0x98] sm:$0xf0] }
 0x33b   : > { %5787 = vmatmul.bf16.gmra.mxu1 %v19451_v37  ;;  %5816 = vmatmul.bf16.gmra.mxu2 %v19464_v8  ;;  %v12203_v4 = vor.u32 %v15367_v25, %v12200_v22  ;;  %v12664_v29 = vld [vmem:[%s22991_s3 + $0x3c8] sm:$0xf0]  ;;  %v15481_v22 = vld [vmem:[%s22991_s3 + $0x3b4] sm:$0xf] }
 0x33c   : > { %5953 = vmatpush.bf16.msrb.mxu3 %v12331_v32  ;;  %6095 = vmatpush.bf16.msra.mxu0 %v12675_v14  ;;  %v12667_v6 = vor.u32 %v15483_v56, %v12664_v29  ;;  %v19508_v32 = vor.u32 %v15321_v57, %v12064_v46  ;;  %v15397_v14 = vld [vmem:[%s22991_s3 + $0x114] sm:$0xf]  ;;  %v12062_v56 = vld [vmem:[#allocation2 + $0x210] sm:$0xf]  ;;  %v15334_v29 = vld [vmem:[#allocation2 + $0x278] sm:$0xf0] }
 0x33d   : > { %5895 = vmatpush.bf16.msrb.mxu1 %v12203_v4  ;;  %v15365_v46 = vld [vmem:[%s22991_s3 + $0x14] sm:$0xf] }
 0x33e   : > { %v5585_v28 = vpop.f32.mrf.mxu2  ;;  %v19491_v37 = vpop.f32.mrf.mxu0  ;;  %23389 = vst [vmem:[#allocation102_spill] sm:$0xff] %v19508_v32 }
 0x33f   : > { %v5586_v23 = vadd.f32 %v5585_v28, %v5557_v5  ;;  %v15381_v5 = vld [vmem:[%s22991_s3 + $0x94] sm:$0xf]  ;;  %v12192_v28 = vld [vmem:[%s22991_s3 + $0x18] sm:$0xf0] }
 0x340   : > { %v5558_v51 = vpop.f32.mrf.mxu1  ;;  %v5616_v13 = vpop.f32.mrf.mxu3  ;;  %v12259_v25 = vor.u32 %v15381_v5, %v12256_v30  ;;  %6096 = vmatpush.bf16.msra.mxu0 %v12667_v6  ;;  %v12195_v57 = vor.u32 %v15365_v46, %v12192_v28  ;;  %v5533_v6 = vadd.f32 %v19001_v26, %v19302_v12  ;;  %v15320_v30 = vld [vmem:[#allocation2 + $0x20c] sm:$0xf]  ;;  %v15379_v26 = vld [vmem:[%s22991_s3 + $0x84] sm:$0xf]  ;;  %v19546_v46 = vor.u32 %v15334_v29, %v12062_v56 }
 0x341   : > { %v19502_v20 = vadd.f32 %v5614_v7, %v5586_v23  ;;  %v5559_v36 = vadd.f32 %v5558_v51, %v5530_v59  ;;  %5990 = vmatmul.bf16.gmra.mxu0 %v18042_v44  ;;  %v12656_v7 = vld [vmem:[%s22991_s3 + $0x3b8] sm:$0xf0]  ;;  %v12056_v23 = vld [vmem:[#allocation2 + $0x274] sm:$0xf0]  ;;  %v12312_v56 = vld [vmem:[%s22991_s3 + $0x108] sm:$0xf0] }
 0x342   : > { %5925 = vmatpush.bf16.msrb.mxu2 %v12259_v25  ;;  %v12659_v4 = vor.u32 %v15481_v22, %v12656_v7  ;;  %v12320_v44 = vld [vmem:[%s22991_s3 + $0x118] sm:$0xf0]  ;;  %5896 = vmatpush.bf16.msrb.mxu1 %v12195_v57  ;;  %v19533_v7 = vor.u32 %v15320_v30, %v12056_v23  ;;  %v15363_v29 = vld [vmem:[%s22991_s3 + $0x4] sm:$0xf] }
 0x343   : > { %v12323_v59 = vor.u32 %v15397_v14, %v12320_v44  ;;  %v15479_v14 = vld [vmem:[%s22991_s3 + $0x3a4] sm:$0xf]  ;;  %v12640_v57 = vld [vmem:[%s22991_s3 + $0x398] sm:$0xf0] }
 0x344   : > { %6097 = vmatpush.bf16.msra.mxu0 %v12659_v4  ;;  %v12248_v4 = vld [vmem:[%s22991_s3 + $0x88] sm:$0xf0] }
 0x345   : > { %5850 = vmatmul.bf16.gmra.mxu3 %v19508_v32  ;;  %v12172_v32 = vld [vmem:[#allocation2 + $0x354] sm:$0xf0] }
 0x346   : > { %v5587_v51 = vpop.f32.mrf.mxu2  ;;  %5954 = vmatpush.bf16.msrb.mxu3 %v12323_v59  ;;  %v19531_v25 = vpop.f32.mrf.mxu0  ;;  %v15477_v59 = vld [vmem:[%s22991_s3 + $0x394] sm:$0xf] }
 0x347   : > { %v5588_v5 = vadd.f32 %v5587_v51, %v5559_v36  ;;  %v12648_v36 = vld [vmem:[%s22991_s3 + $0x3a8] sm:$0xf0]  ;;  %v12251_v51 = vor.u32 %v15379_v26, %v12248_v4  ;;  %v12643_v30 = vor.u32 %v15477_v59, %v12640_v57  ;;  %v5535_v26 = vadd.f32 %v19037_v38, %v19338_v49 }
 0x348   : > { %v5561_v22 = vpop.f32.mrf.mxu1  ;;  %v5619_v28 = vpop.f32.mrf.mxu3  ;;  %v12651_v23 = vor.u32 %v15479_v14, %v12648_v36  ;;  %v15348_v4 = vld [vmem:[#allocation2 + $0x2ec] sm:$0xf] }
 0x349   : > { %v19544_v12 = vadd.f32 %v5616_v13, %v5588_v5  ;;  %v5562_v44 = vadd.f32 %v5561_v22, %v5533_v6  ;;  %v15395_v13 = vld [vmem:[%s22991_s3 + $0x104] sm:$0xf]  ;;  %v12184_v6 = vld [vmem:[%s22991_s3 + $0x8] sm:$0xf0]  ;;  %5926 = vmatpush.bf16.msrb.mxu2 %v12251_v51 }
 0x34a   : > { %v12315_v5 = vor.u32 %v15395_v13, %v12312_v56  ;;  %6098 = vmatpush.bf16.msra.mxu0 %v12651_v23  ;;  %v12187_v22 = vor.u32 %v15363_v29, %v12184_v6  ;;  %v15475_v23 = vld [vmem:[%s22991_s3 + $0x384] sm:$0xf]  ;;  %v12632_v59 = vld [vmem:[%s22991_s3 + $0x388] sm:$0xf0]  ;;  %v12560_v56 = vld [vmem:[%s22991_s3 + $0x2f8] sm:$0xf0] }
 0x34b   : > { %5792 = vmatmul.bf16.gmra.mxu1 %v19533_v7  ;;  %5821 = vmatmul.bf16.gmra.mxu2 %v19546_v46  ;;  %v12635_v51 = vor.u32 %v15475_v23, %v12632_v59  ;;  %v15473_v6 = vld [vmem:[%s22991_s3 + $0x374] sm:$0xf]  ;;  %v5538_v59 = vadd.f32 %v19067_v48, %v19365_v3 }
 0x34c   : > { %5955 = vmatpush.bf16.msrb.mxu3 %v12315_v5  ;;  %5897 = vmatpush.bf16.msrb.mxu1 %v12187_v22  ;;  %v19590_v5 = vor.u32 %v15348_v4, %v12172_v32  ;;  %v15347_v32 = vld [vmem:[#allocation2 + $0x2e4] sm:$0xf]  ;;  %v12170_v4 = vld [vmem:[#allocation2 + $0x2e8] sm:$0xf] }
 0x34e   : > { %v5590_v14 = vpop.f32.mrf.mxu2  ;;  %v19573_v8 = vpop.f32.mrf.mxu0  ;;  %6099 = vmatpush.bf16.msra.mxu0 %v12643_v30  ;;  %v15441_v30 = vld [vmem:[%s22991_s3 + $0x274] sm:$0xf] }
 0x34f   : > { %v5591_v36 = vadd.f32 %v5590_v14, %v5562_v44  ;;  %v15457_v44 = vld [vmem:[%s22991_s3 + $0x2f4] sm:$0xf]  ;;  %v12164_v14 = vld [vmem:[#allocation2 + $0x34c] sm:$0xf0] }
 0x350   : > { %v5563_v13 = vpop.f32.mrf.mxu1  ;;  %v5621_v49 = vpop.f32.mrf.mxu3  ;;  %v12563_v29 = vor.u32 %v15457_v44, %v12560_v56  ;;  %v19609_v56 = vor.u32 %v15347_v32, %v12164_v14  ;;  %v15439_v32 = vld [vmem:[%s22991_s3 + $0x264] sm:$0xf]  ;;  %v12488_v14 = vld [vmem:[%s22991_s3 + $0x268] sm:$0xf0] }
 0x351   : > { %v19584_v57 = vadd.f32 %v5619_v28, %v5591_v36  ;;  %v5564_v38 = vadd.f32 %v5563_v13, %v5535_v26  ;;  %5995 = vmatmul.bf16.gmra.mxu0 %v18114_v50  ;;  %v12624_v28 = vld [vmem:[%s22991_s3 + $0x378] sm:$0xf0]  ;;  %v15361_v13 = vld [vmem:[#allocation2 + $0x350] sm:$0xf0] }
 0x352   : > { %6100 = vmatpush.bf16.msra.mxu0 %v12635_v51  ;;  %6035 = vmatpush.bf16.msra.mxu2 %v12563_v29  ;;  %v12627_v22 = vor.u32 %v15473_v6, %v12624_v28  ;;  %v12496_v50 = vld [vmem:[%s22991_s3 + $0x278] sm:$0xf0]  ;;  %v15455_v29 = vld [vmem:[%s22991_s3 + $0x2e4] sm:$0xf]  ;;  %v12552_v6 = vld [vmem:[%s22991_s3 + $0x2e8] sm:$0xf0]  ;;  %v19622_v3 = vor.u32 %v15361_v13, %v12170_v4  ;;  %v5540_v13 = vadd.f32 %v19097_v40, %v19398_v63 }
 0x353   : > { %v12499_v36 = vor.u32 %v15441_v30, %v12496_v50  ;;  %v12616_v50 = vld [vmem:[%s22991_s3 + $0x368] sm:$0xf0]  ;;  %v15469_v40 = vld [vmem:[%s22991_s3 + $0x354] sm:$0xf]  ;;  %v12608_v63 = vld [vmem:[%s22991_s3 + $0x358] sm:$0xf0] }
 0x354   : > { %6064 = vmatpush.bf16.msra.mxu3 %v12627_v22  ;;  %v12555_v22 = vor.u32 %v15455_v29, %v12552_v6  ;;  %v12544_v29 = vld [vmem:[%s22991_s3 + $0x2d8] sm:$0xf0] }
 0x355   : > { %5855 = vmatmul.bf16.gmra.mxu3 %v19590_v5  ;;  %6006 = vmatpush.bf16.msra.mxu1 %v12499_v36 }
 0x356   : > { %v5592_v26 = vpop.f32.mrf.mxu2  ;;  %v19607_v44 = vpop.f32.mrf.mxu0  ;;  %6036 = vmatpush.bf16.msra.mxu2 %v12555_v22 }
 0x357   : > { %v5593_v23 = vadd.f32 %v5592_v26, %v5564_v38  ;;  %v15471_v38 = vld [vmem:[%s22991_s3 + $0x364] sm:$0xf] }
 0x358   : > { %v5566_v51 = vpop.f32.mrf.mxu1  ;;  %v5624_v30 = vpop.f32.mrf.mxu3  ;;  %v12619_v36 = vor.u32 %v15471_v38, %v12616_v50 }
 0x359   : > { %v19620_v28 = vadd.f32 %v5621_v49, %v5593_v23  ;;  %v5567_v48 = vadd.f32 %v5566_v51, %v5538_v59  ;;  %v12491_v49 = vor.u32 %v15439_v32, %v12488_v14  ;;  %v15453_v51 = vld [vmem:[%s22991_s3 + $0x2d4] sm:$0xf]  ;;  %v12480_v32 = vld [vmem:[%s22991_s3 + $0x258] sm:$0xf0] }
 0x35a   : > { %6065 = vmatpush.bf16.msra.mxu3 %v12619_v36  ;;  %v12547_v50 = vor.u32 %v15453_v51, %v12544_v29 }
 0x35b   : > { %5797 = vmatmul.bf16.gmra.mxu1 %v19609_v56  ;;  %5826 = vmatmul.bf16.gmra.mxu2 %v19622_v3 }
 0x35c   : > { %6007 = vmatpush.bf16.msra.mxu1 %v12491_v49  ;;  %6037 = vmatpush.bf16.msra.mxu2 %v12547_v50  ;;  %v5639_v49 = vadd.f32 %v19127_v18, %v19423_v17  ;;  %v15435_v50 = vld [vmem:[%s22991_s3 + $0x244] sm:$0xf] }
 0x35e   : > { %v5595_v26 = vpop.f32.mrf.mxu2  ;;  %v19637_v23 = vpop.f32.mrf.mxu0 }
 0x35f   : > { %v5596_v4 = vadd.f32 %v5595_v26, %v5567_v48  ;;  %v15437_v48 = vld [vmem:[%s22991_s3 + $0x254] sm:$0xf] }
 0x360   : > { %v5568_v59 = vpop.f32.mrf.mxu1  ;;  %v5626_v22 = vpop.f32.mrf.mxu3 }
 0x361   : > { %v19645_v6 = vadd.f32 %v5624_v30, %v5596_v4  ;;  %v5569_v38 = vadd.f32 %v5568_v59, %v5540_v13  ;;  %6000 = vmatmul.bf16.gmra.mxu0 %v18176_v47  ;;  %v12611_v30 = vor.u32 %v15469_v40, %v12608_v63  ;;  %v12483_v47 = vor.u32 %v15437_v48, %v12480_v32  ;;  %v15451_v13 = vld [vmem:[%s22991_s3 + $0x2c4] sm:$0xf]  ;;  %v12536_v59 = vld [vmem:[%s22991_s3 + $0x2c8] sm:$0xf0] }
 0x362   : > { %v12539_v17 = vor.u32 %v15451_v13, %v12536_v59  ;;  %v12472_v40 = vld [vmem:[%s22991_s3 + $0x248] sm:$0xf0]  ;;  %v5641_v32 = vadd.f32 %v19163_v41, %v19462_v15  ;;  %v15553_v41 = vld [vmem:[%s22991_s3 + $0x5f4] sm:$0xf]  ;;  %v12944_v15 = vld [vmem:[%s22991_s3 + $0x5f8] sm:$0xf0] }
 0x363   : > { %6066 = vmatpush.bf16.msra.mxu3 %v12611_v30  ;;  %6008 = vmatpush.bf16.msra.mxu1 %v12483_v47  ;;  %v12475_v48 = vor.u32 %v15435_v50, %v12472_v40  ;;  %v15465_v59 = vld [vmem:[%s22991_s3 + $0x334] sm:$0xf] }
 0x364   : > { %6038 = vmatpush.bf16.msra.mxu2 %v12539_v17 }
 0x365   : > { %5956 = vmatmul.bf16.vlgmr.msrb.gmra.mxu3 %v17131_v2  ;;  %v15467_v2 = vld [vmem:[%s22991_s3 + $0x344] sm:$0xf] }
 0x366   : > { %v5597_v14 = vpop.f32.mrf.mxu2  ;;  %v19663_v26 = vpop.f32.mrf.mxu0 }
 0x367   : > { %v5598_v36 = vadd.f32 %v5597_v14, %v5569_v38  ;;  %v12600_v38 = vld [vmem:[%s22991_s3 + $0x348] sm:$0xf0]  ;;  %6009 = vmatpush.bf16.msra.mxu1 %v12475_v48 }
 0x368   : > { %v5667_v4 = vpop.f32.mrf.mxu1  ;;  %v5725_v18 = vpop.f32.mrf.mxu3  ;;  %v12603_v63 = vor.u32 %v15467_v2, %v12600_v38  ;;  %v12947_v2 = vor.u32 %v15553_v41, %v12944_v15  ;;  %v12584_v15 = vld [vmem:[%s22991_s3 + $0x328] sm:$0xf0] }
 0x369   : > { %v19674_v51 = vadd.f32 %v5626_v22, %v5598_v36  ;;  %v5668_v29 = vadd.f32 %v5667_v4, %v5639_v49  ;;  %v15449_v36 = vld [vmem:[%s22991_s3 + $0x2b4] sm:$0xf] }
 0x36a   : > { %6067 = vmatpush.bf16.msra.mxu3 %v12603_v63  ;;  %6209 = vmatpush.bf16.msrb.mxu0 %v12947_v2  ;;  %v5644_v63 = vadd.f32 %v19205_v45, %v19502_v20 }
 0x36b   : > { %5898 = vmatmul.bf16.vlgmr.msrb.gmra.mxu1 %v17175_v1  ;;  %5927 = vmatmul.bf16.vlgmr.msrb.gmra.mxu2 %v17208_v42  ;;  %v12528_v1 = vld [vmem:[%s22991_s3 + $0x2b8] sm:$0xf0] }
 0x36c   : > { %v12531_v13 = vor.u32 %v15449_v36, %v12528_v1  ;;  %v12520_v1 = vld [vmem:[%s22991_s3 + $0x2a8] sm:$0xf0] }
 0x36e   : > { %v5696_v22 = vpop.f32.mrf.mxu2  ;;  %v19689_v47 = vpop.f32.mrf.mxu0  ;;  %6039 = vmatpush.bf16.msra.mxu2 %v12531_v13  ;;  %v12928_v13 = vld [vmem:[%s22991_s3 + $0x5d8] sm:$0xf0] }
 0x36f   : > { %v5697_v30 = vadd.f32 %v5696_v22, %v5668_v29  ;;  %v12592_v29 = vld [vmem:[%s22991_s3 + $0x338] sm:$0xf0] }
 0x370   : > { %v5669_v14 = vpop.f32.mrf.mxu1  ;;  %v5727_v4 = vpop.f32.mrf.mxu3  ;;  %v12595_v17 = vor.u32 %v15465_v59, %v12592_v29  ;;  %v15431_v59 = vld [vmem:[%s22991_s3 + $0x224] sm:$0xf]  ;;  %v12456_v29 = vld [vmem:[%s22991_s3 + $0x228] sm:$0xf0] }
 0x371   : > { %v19697_v42 = vadd.f32 %v5725_v18, %v5697_v30  ;;  %v5670_v49 = vadd.f32 %v5669_v14, %v5641_v32  ;;  %6101 = vmatmul.bf16.vlgmr.msra.gmra.mxu0 %v18217_v55  ;;  %v15433_v55 = vld [vmem:[%s22991_s3 + $0x234] sm:$0xf]  ;;  %v12464_v18 = vld [vmem:[%s22991_s3 + $0x238] sm:$0xf0]  ;;  %v15551_v30 = vld [vmem:[%s22991_s3 + $0x5e4] sm:$0xf] }
 0x372   : > { %v12467_v38 = vor.u32 %v15433_v55, %v12464_v18  ;;  %6068 = vmatpush.bf16.msra.mxu3 %v12595_v17  ;;  %v15447_v32 = vld [vmem:[%s22991_s3 + $0x2a4] sm:$0xf]  ;;  %v12459_v18 = vor.u32 %v15431_v59, %v12456_v29  ;;  %v5649_v29 = vadd.f32 %v19289_v10, %v19584_v57 }
 0x373   : > { %v12523_v41 = vor.u32 %v15447_v32, %v12520_v1  ;;  %v12512_v32 = vld [vmem:[%s22991_s3 + $0x298] sm:$0xf0] }
 0x374   : > { %6010 = vmatpush.bf16.msra.mxu1 %v12467_v38  ;;  %v12912_v1 = vld [vmem:[%s22991_s3 + $0x5b8] sm:$0xf0] }
 0x375   : > { %5961 = vmatmul.bf16.gmra.mxu3 %v17418_v58  ;;  %v12936_v58 = vld [vmem:[%s22991_s3 + $0x5e8] sm:$0xf0]  ;;  %6040 = vmatpush.bf16.msra.mxu2 %v12523_v41  ;;  %v12448_v41 = vld [vmem:[%s22991_s3 + $0x218] sm:$0xf0] }
 0x376   : > { %v5698_v50 = vpop.f32.mrf.mxu2  ;;  %v19721_v48 = vpop.f32.mrf.mxu0  ;;  %v12939_v36 = vor.u32 %v15551_v30, %v12936_v58 }
 0x377   : > { %v5699_v40 = vadd.f32 %v5698_v50, %v5670_v49  ;;  %v15549_v49 = vld [vmem:[%s22991_s3 + $0x5d4] sm:$0xf]  ;;  %v5646_v50 = vadd.f32 %v19247_v39, %v19544_v12 }
 0x378   : > { %v5672_v22 = vpop.f32.mrf.mxu1  ;;  %v5730_v20 = vpop.f32.mrf.mxu3  ;;  %6210 = vmatpush.bf16.msrb.mxu0 %v12939_v36  ;;  %v12931_v55 = vor.u32 %v15549_v49, %v12928_v13  ;;  %6011 = vmatpush.bf16.msra.mxu1 %v12459_v18  ;;  %v15545_v36 = vld [vmem:[%s22991_s3 + $0x5b4] sm:$0xf]  ;;  %v12576_v13 = vld [vmem:[%s22991_s3 + $0x318] sm:$0xf0]  ;;  %v15543_v18 = vld [vmem:[%s22991_s3 + $0x5a4] sm:$0xf] }
 0x379   : > { %v19732_v14 = vadd.f32 %v5727_v4, %v5699_v40  ;;  %v5673_v45 = vadd.f32 %v5672_v22, %v5644_v63  ;;  %v15463_v4 = vld [vmem:[%s22991_s3 + $0x324] sm:$0xf]  ;;  %v15445_v63 = vld [vmem:[%s22991_s3 + $0x294] sm:$0xf]  ;;  %v12915_v49 = vor.u32 %v15545_v36, %v12912_v1  ;;  %v12440_v36 = vld [vmem:[%s22991_s3 + $0x208] sm:$0xf0] }
 0x37a   : > { %v12587_v2 = vor.u32 %v15463_v4, %v12584_v15 }
 0x37b   : > { %5903 = vmatmul.bf16.gmra.mxu1 %v17706_v27  ;;  %5932 = vmatmul.bf16.gmra.mxu2 %v17708_v54  ;;  %v15547_v27 = vld [vmem:[%s22991_s3 + $0x5c4] sm:$0xf]  ;;  %v12920_v54 = vld [vmem:[%s22991_s3 + $0x5c8] sm:$0xf0] }
 0x37c   : > { %6069 = vmatpush.bf16.msra.mxu3 %v12587_v2  ;;  %6211 = vmatpush.bf16.msrb.mxu0 %v12931_v55  ;;  %v12923_v12 = vor.u32 %v15547_v27, %v12920_v54  ;;  %v15541_v27 = vld [vmem:[%s22991_s3 + $0x594] sm:$0xf]  ;;  %v12896_v54 = vld [vmem:[%s22991_s3 + $0x598] sm:$0xf0] }
 0x37d   : > { %v12899_v1 = vor.u32 %v15541_v27, %v12896_v54 }
 0x37e   : > { %v5701_v17 = vpop.f32.mrf.mxu2  ;;  %v19768_v22 = vpop.f32.mrf.mxu0 }
 0x37f   : > { %v5702_v38 = vadd.f32 %v5701_v17, %v5673_v45  ;;  %v12515_v45 = vor.u32 %v15445_v63, %v12512_v32  ;;  %v12904_v17 = vld [vmem:[%s22991_s3 + $0x5a8] sm:$0xf0] }
 0x380   : > { %v5674_v40 = vpop.f32.mrf.mxu1  ;;  %v5732_v39 = vpop.f32.mrf.mxu3  ;;  %6212 = vmatpush.bf16.msrb.mxu0 %v12923_v12  ;;  %v12907_v57 = vor.u32 %v15543_v18, %v12904_v17  ;;  %v15427_v12 = vld [vmem:[%s22991_s3 + $0x204] sm:$0xf]  ;;  %v12880_v18 = vld [vmem:[%s22991_s3 + $0x578] sm:$0xf0] }
 0x381   : > { %v19770_v30 = vadd.f32 %v5730_v20, %v5702_v38  ;;  %v5675_v58 = vadd.f32 %v5674_v40, %v5646_v50  ;;  %6106 = vmatmul.bf16.gmra.mxu0 %v18283_v62  ;;  %v15461_v20 = vld [vmem:[%s22991_s3 + $0x314] sm:$0xf]  ;;  %6041 = vmatpush.bf16.msra.mxu2 %v12515_v45  ;;  %v12504_v40 = vld [vmem:[%s22991_s3 + $0x288] sm:$0xf0] }
 0x382   : > { %v15429_v62 = vld [vmem:[%s22991_s3 + $0x214] sm:$0xf]  ;;  %v12579_v4 = vor.u32 %v15461_v20, %v12576_v13  ;;  %v12443_v20 = vor.u32 %v15427_v12, %v12440_v36 }
 0x383   : > { %v12451_v15 = vor.u32 %v15429_v62, %v12448_v41  ;;  %v5651_v62 = vadd.f32 %v19325_v53, %v19620_v28  ;;  %v12816_v53 = vld [vmem:[%s22991_s3 + $0x4f8] sm:$0xf0] }
 0x384   : > { %6070 = vmatpush.bf16.msra.mxu3 %v12579_v4  ;;  %6213 = vmatpush.bf16.msrb.mxu0 %v12915_v49  ;;  %v15521_v4 = vld [vmem:[%s22991_s3 + $0x4f4] sm:$0xf] }
 0x385   : > { %5966 = vmatmul.bf16.gmra.mxu3 %v17769_v34  ;;  %6012 = vmatpush.bf16.msra.mxu1 %v12451_v15  ;;  %v15443_v34 = vld [vmem:[%s22991_s3 + $0x284] sm:$0xf]  ;;  %v12819_v28 = vor.u32 %v15521_v4, %v12816_v53 }
 0x386   : > { %v5703_v59 = vpop.f32.mrf.mxu2  ;;  %v12507_v63 = vor.u32 %v15443_v34, %v12504_v40  ;;  %v19826_v32 = vpop.f32.mrf.mxu0  ;;  %v15535_v4 = vld [vmem:[%s22991_s3 + $0x564] sm:$0xf] }
 0x387   : > { %v5704_v2 = vadd.f32 %v5703_v59, %v5675_v58  ;;  %v15459_v58 = vld [vmem:[%s22991_s3 + $0x304] sm:$0xf] }
 0x388   : > { %v5677_v55 = vpop.f32.mrf.mxu1  ;;  %v5735_v10 = vpop.f32.mrf.mxu3  ;;  %6214 = vmatpush.bf16.msrb.mxu0 %v12907_v57  ;;  %6042 = vmatpush.bf16.msra.mxu2 %v12507_v63 }
 0x389   : > { %v19806_v38 = vadd.f32 %v5732_v39, %v5704_v2  ;;  %v5678_v50 = vadd.f32 %v5677_v55, %v5649_v29  ;;  %v12568_v39 = vld [vmem:[%s22991_s3 + $0x308] sm:$0xf0]  ;;  %6013 = vmatpush.bf16.msra.mxu1 %v12443_v20  ;;  %v15537_v55 = vld [vmem:[%s22991_s3 + $0x574] sm:$0xf] }
 0x38a   : > { %v12571_v45 = vor.u32 %v15459_v58, %v12568_v39  ;;  %v12883_v17 = vor.u32 %v15537_v55, %v12880_v18  ;;  %v23391_v55 = vld [vmem:[#allocation50_spill] sm:$0xff] }
 0x38b   : > { %5908 = vmatmul.bf16.gmra.mxu1 %v17796_v43  ;;  %5937 = vmatmul.bf16.gmra.mxu2 %v17798_v0  ;;  %v15539_v43 = vld [vmem:[%s22991_s3 + $0x584] sm:$0xf]  ;;  %v12888_v0 = vld [vmem:[%s22991_s3 + $0x588] sm:$0xf0] }
 0x38c   : > { %6071 = vmatpush.bf16.msra.mxu3 %v12571_v45  ;;  %6215 = vmatpush.bf16.msrb.mxu0 %v12899_v1  ;;  %v12891_v29 = vor.u32 %v15539_v43, %v12888_v0  ;;  %v12808_v0 = vld [vmem:[%s22991_s3 + $0x4e8] sm:$0xf0] }
 0x38d   : > { %6151 = vmatpush.bf16.msrb.mxu2 %v12819_v28 }
 0x38e   : > { %v5706_v49 = vpop.f32.mrf.mxu2  ;;  %v19856_v34 = vpop.f32.mrf.mxu0 }
 0x38f   : > { %v5707_v13 = vadd.f32 %v5706_v49, %v5678_v50 }
 0x390   : > { %v5679_v41 = vpop.f32.mrf.mxu1  ;;  %v5737_v2 = vpop.f32.mrf.mxu3  ;;  %6216 = vmatpush.bf16.msrb.mxu0 %v12891_v29  ;;  %6180 = vmatpush.bf16.msrb.mxu3 %v12883_v17  ;;  %v23392_v17 = vld [vmem:[#allocation23_spill] sm:$0xff] }
 0x391   : > { %v19844_v15 = vadd.f32 %v5735_v10, %v5707_v13  ;;  %v5680_v59 = vadd.f32 %v5679_v41, %v5651_v62  ;;  %6111 = vmatmul.bf16.gmra.mxu0 %v18371_v16  ;;  %v5654_v16 = vadd.f32 %v19355_v33, %v19645_v6  ;;  %v23390_v13 = vld [vmem:[#allocation26_spill] sm:$0xff]  ;;  %v15519_v41 = vld [vmem:[%s22991_s3 + $0x4e4] sm:$0xf] }
 0x395   : > { %5971 = vmatmul.bf16.gmra.mxu3 %v17883_v24  ;;  %v5656_v24 = vadd.f32 %v19385_v35, %v19674_v51 }
 0x396   : > { %v5708_v50 = vpop.f32.mrf.mxu2  ;;  %v19865_v58 = vpop.f32.mrf.mxu0 }
 0x397   : > { %v5709_v10 = vadd.f32 %v5708_v50, %v5680_v59  ;;  %v12872_v59 = vld [vmem:[%s22991_s3 + $0x568] sm:$0xf0] }
 0x398   : > { %v5682_v57 = vpop.f32.mrf.mxu1  ;;  %v5740_v54 = vpop.f32.mrf.mxu3  ;;  %v12875_v53 = vor.u32 %v15535_v4, %v12872_v59  ;;  %v15531_v59 = vld [vmem:[%s22991_s3 + $0x544] sm:$0xf] }
 0x399   : > { %v19861_v40 = vadd.f32 %v5737_v2, %v5709_v10  ;;  %v5683_v27 = vadd.f32 %v5682_v57, %v5654_v16  ;;  %v15503_v16 = vld [vmem:[%s22991_s3 + $0x464] sm:$0xf]  ;;  %v12744_v57 = vld [vmem:[%s22991_s3 + $0x468] sm:$0xf0] }
 0x39a   : > { %6181 = vmatpush.bf16.msrb.mxu3 %v12875_v53 }
 0x39b   : > { %5913 = vmatmul.bf16.gmra.mxu1 %v17922_v31  ;;  %5942 = vmatmul.bf16.gmra.mxu2 %v17924_v52  ;;  %v5755_v52 = vadd.f32 %v19415_v60, %v19697_v42  ;;  %v12752_v60 = vld [vmem:[%s22991_s3 + $0x478] sm:$0xf0]  ;;  %v5757_v42 = vadd.f32 %v19449_v19, %v19732_v14  ;;  %v12811_v14 = vor.u32 %v15519_v41, %v12808_v0  ;;  %v12792_v41 = vld [vmem:[%s22991_s3 + $0x4c8] sm:$0xf0] }
 0x39d   : > { %6152 = vmatpush.bf16.msrb.mxu2 %v12811_v14  ;;  %v23396_v14 = vld [vmem:[#allocation24_spill] sm:$0xff] }
 0x39e   : > { %v5711_v63 = vpop.f32.mrf.mxu2  ;;  %v19875_v20 = vpop.f32.mrf.mxu0 }
 0x39f   : > { %v5712_v39 = vadd.f32 %v5711_v63, %v5683_v27  ;;  %v5760_v27 = vadd.f32 %v19491_v37, %v19770_v30  ;;  %v15517_v63 = vld [vmem:[%s22991_s3 + $0x4d4] sm:$0xf]  ;;  %v12864_v37 = vld [vmem:[%s22991_s3 + $0x558] sm:$0xf0] }
 0x3a0   : > { %v5684_v12 = vpop.f32.mrf.mxu1  ;;  %v5742_v6 = vpop.f32.mrf.mxu3 }
 0x3a1   : > { %v19869_v45 = vadd.f32 %v5740_v54, %v5712_v39  ;;  %v5685_v33 = vadd.f32 %v5684_v12, %v5656_v24  ;;  %6116 = vmatmul.bf16.gmra.mxu0 %v18451_v11  ;;  %v12747_v54 = vor.u32 %v15503_v16, %v12744_v57  ;;  %v12800_v39 = vld [vmem:[%s22991_s3 + $0x4d8] sm:$0xf0]  ;;  %v15533_v24 = vld [vmem:[%s22991_s3 + $0x554] sm:$0xf] }
 0x3a2   : > { %v12867_v30 = vor.u32 %v15533_v24, %v12864_v37  ;;  %v15513_v57 = vld [vmem:[%s22991_s3 + $0x4b4] sm:$0xf]  ;;  %v23398_v37 = vld [vmem:[#allocation31_spill] sm:$0xff] }
 0x3a3   : > { %v15617_v24 = vld [vmem:[%s22991_s3 + $0x7f4] sm:$0xf] }
 0x3a4   : > { %6182 = vmatpush.bf16.msrb.mxu3 %v12867_v30 }
 0x3a5   : > { %6072 = vmatmul.bf16.vlgmr.msra.gmra.mxu3 %v17399_v61  ;;  %v15505_v61 = vld [vmem:[%s22991_s3 + $0x474] sm:$0xf] }
 0x3a6   : > { %v5713_v36 = vpop.f32.mrf.mxu2  ;;  %v19901_v28 = vpop.f32.mrf.mxu0 }
 0x3a7   : > { %v5714_v31 = vadd.f32 %v5713_v36, %v5685_v33 }
 0x3a8   : > { %v5783_v1 = vpop.f32.mrf.mxu1  ;;  %v5841_v51 = vpop.f32.mrf.mxu3 }
 0x3a9   : > { %v19877_v49 = vadd.f32 %v5742_v6, %v5714_v31  ;;  %v5784_v35 = vadd.f32 %v5783_v1, %v5755_v52  ;;  %v12803_v6 = vor.u32 %v15517_v63, %v12800_v39  ;;  %v23393_v52 = vld [vmem:[#allocation29_spill] sm:$0xff]  ;;  %v23394_v1 = vld [vmem:[#allocation28_spill] sm:$0xff] }
 0x3ab   : > { %6014 = vmatmul.bf16.vlgmr.msra.gmra.mxu1 %v17978_v21  ;;  %6043 = vmatmul.bf16.vlgmr.msra.gmra.mxu2 %v23390_v13  ;;  %v12755_v21 = vor.u32 %v15505_v61, %v12752_v60 }
 0x3ac   : > { %6153 = vmatpush.bf16.msrb.mxu2 %v12803_v6 }
 0x3ad   : > { %6122 = vmatpush.bf16.msrb.mxu1 %v12755_v21 }
 0x3ae   : > { %v5812_v62 = vpop.f32.mrf.mxu2 }
 0x3af   : > { %v5813_v11 = vadd.f32 %v5812_v62, %v5784_v35  ;;  %v19933_v35 = vpop.f32.mrf.mxu0  ;;  %v15501_v62 = vld [vmem:[%s22991_s3 + $0x454] sm:$0xf] }
 0x3b0   : > { %v5785_v43 = vpop.f32.mrf.mxu1  ;;  %v5843_v29 = vpop.f32.mrf.mxu3 }
 0x3b1   : > { %v5842_v2 = vadd.f32 %v5841_v51, %v5813_v11  ;;  %v5786_v19 = vadd.f32 %v5785_v43, %v5757_v42  ;;  %6217 = vmatmul.bf16.vlgmr.msrb.gmra.mxu0 %v23391_v55  ;;  %6123 = vmatpush.bf16.msrb.mxu1 %v12747_v54  ;;  %v12736_v11 = vld [vmem:[%s22991_s3 + $0x458] sm:$0xf0]  ;;  %v15515_v42 = vld [vmem:[%s22991_s3 + $0x4c4] sm:$0xf] }
 0x3b2   : > { %v12739_v61 = vor.u32 %v15501_v62, %v12736_v11  ;;  %v12795_v0 = vor.u32 %v15515_v42, %v12792_v41 }
 0x3b3   : > { %v19905_v18 = vadd.f32 %v19689_v47, %v5842_v2  ;;  %v23395_v2 = vld [vmem:[#allocation54_spill] sm:$0xff] }
 0x3b4   : > { %6154 = vmatpush.bf16.msrb.mxu2 %v12795_v0  ;;  %v15613_v0 = vld [vmem:[%s22991_s3 + $0x7d4] sm:$0xf] }
 0x3b5   : > { %6077 = vmatmul.bf16.gmra.mxu3 %v23392_v17  ;;  %6124 = vmatpush.bf16.msrb.mxu1 %v12739_v61  ;;  %v15499_v17 = vld [vmem:[%s22991_s3 + $0x444] sm:$0xf]  ;;  %v13192_v61 = vld [vmem:[%s22991_s3 + $0x7e8] sm:$0xf0]  ;;  %vm6801_vm4 = vcmp.gt.f32.partialorder %v19905_v18, 20.0 }
 0x3b6   : > { %v5814_v50 = vpop.f32.mrf.mxu2 }
 0x3b7   : > { %v5815_v10 = vadd.f32 %v5814_v50, %v5786_v19  ;;  %v19960_v53 = vpop.f32.mrf.mxu0  ;;  %v12728_v50 = vld [vmem:[%s22991_s3 + $0x448] sm:$0xf0] }
 0x3b8   : > { %v5788_v47 = vpop.f32.mrf.mxu1  ;;  %v5846_v36 = vpop.f32.mrf.mxu3 }
 0x3b9   : > { %v5844_v12 = vadd.f32 %v5843_v29, %v5815_v10  ;;  %v5789_v33 = vadd.f32 %v5788_v47, %v5760_v27  ;;  %v12731_v10 = vor.u32 %v15499_v17, %v12728_v50  ;;  %v12784_v27 = vld [vmem:[%s22991_s3 + $0x4b8] sm:$0xf0]  ;;  %v23400_v50 = vld [vmem:[#allocation25_spill] sm:$0xff] }
 0x3ba   : > { %v12787_v63 = vor.u32 %v15513_v57, %v12784_v27 }
 0x3bb   : > { %v19929_v31 = vadd.f32 %v19721_v48, %v5844_v12  ;;  %6019 = vmatmul.bf16.gmra.mxu1 %v23393_v52  ;;  %6048 = vmatmul.bf16.gmra.mxu2 %v23394_v1  ;;  %v5762_v48 = vadd.f32 %v19531_v25, %v19806_v38  ;;  %v12856_v25 = vld [vmem:[%s22991_s3 + $0x548] sm:$0xf0] }
 0x3bc   : > { %v12859_v38 = vor.u32 %v15531_v59, %v12856_v25  ;;  %6125 = vmatpush.bf16.msrb.mxu1 %v12731_v10  ;;  %6155 = vmatpush.bf16.msrb.mxu2 %v12787_v63  ;;  %v13184_v59 = vld [vmem:[%s22991_s3 + $0x7d8] sm:$0xf0]  ;;  %v15527_v25 = vld [vmem:[%s22991_s3 + $0x524] sm:$0xf] }
 0x3bd   : > { %v15495_v10 = vld [vmem:[%s22991_s3 + $0x424] sm:$0xf]  ;;  %vm6803_vm13 = vcmp.gt.f32.partialorder %v19929_v31, 20.0 }
 0x3be   : > { %v5817_v51 = vpop.f32.mrf.mxu2  ;;  %6183 = vmatpush.bf16.msrb.mxu3 %v12859_v38  ;;  %v12840_v38 = vld [vmem:[%s22991_s3 + $0x528] sm:$0xf0] }
 0x3bf   : > { %v5818_v13 = vadd.f32 %v5817_v51, %v5789_v33  ;;  %v12848_v33 = vld [vmem:[%s22991_s3 + $0x538] sm:$0xf0]  ;;  %v15497_v51 = vld [vmem:[%s22991_s3 + $0x434] sm:$0xf] }
 0x3c0   : > { %v5790_v60 = vpop.f32.mrf.mxu1  ;;  %v5848_v4 = vpop.f32.mrf.mxu3 }
 0x3c1   : > { %v5847_v21 = vadd.f32 %v5846_v36, %v5818_v13  ;;  %v5791_v43 = vadd.f32 %v5790_v60, %v5762_v48  ;;  %6222 = vmatmul.bf16.gmra.mxu0 %v23395_v2  ;;  %v23397_v36 = vld [vmem:[#allocation32_spill] sm:$0xff]  ;;  %v12720_v13 = vld [vmem:[%s22991_s3 + $0x438] sm:$0xf0]  ;;  %v15615_v48 = vld [vmem:[%s22991_s3 + $0x7e4] sm:$0xf]  ;;  %v20007_v60 = vpop.f32.mrf.mxu0 }
 0x3c2   : > { %v12723_v62 = vor.u32 %v15497_v51, %v12720_v13  ;;  %v23399_v2 = vld [vmem:[#allocation59_spill] sm:$0xff]  ;;  %v23402_v51 = vld [vmem:[#allocation34_spill] sm:$0xff] }
 0x3c3   : > { %v19957_v19 = vadd.f32 %v19768_v22, %v5847_v21  ;;  %v5765_v22 = vadd.f32 %v19573_v8, %v19844_v15  ;;  %v13200_v8 = vld [vmem:[%s22991_s3 + $0x7f8] sm:$0xf0]  ;;  %v15529_v15 = vld [vmem:[%s22991_s3 + $0x534] sm:$0xf]  ;;  %v13195_v21 = vor.u32 %v15615_v48, %v13192_v61  ;;  %v5772_v61 = vadd.f32 %v19663_v26, %v19877_v49  ;;  %v12760_v26 = vld [vmem:[%s22991_s3 + $0x488] sm:$0xf0] }
 0x3c4   : > { %v13203_v12 = vor.u32 %v15617_v24, %v13200_v8  ;;  %v12851_v30 = vor.u32 %v15529_v15, %v12848_v33  ;;  %6126 = vmatpush.bf16.msrb.mxu1 %v12723_v62  ;;  %v15509_v8 = vld [vmem:[%s22991_s3 + $0x494] sm:$0xf]  ;;  %v13168_v33 = vld [vmem:[%s22991_s3 + $0x7b8] sm:$0xf0] }
 0x3c5   : > { %6082 = vmatmul.bf16.gmra.mxu3 %v23396_v14  ;;  %v15609_v15 = vld [vmem:[%s22991_s3 + $0x7b4] sm:$0xf] }
 0x3c6   : > { %v5819_v29 = vpop.f32.mrf.mxu2  ;;  %6325 = vmatpush.bf16.msra.mxu0 %v13203_v12  ;;  %6184 = vmatpush.bf16.msrb.mxu3 %v12851_v30  ;;  %v15493_v48 = vld [vmem:[%s22991_s3 + $0x414] sm:$0xf] }
 0x3c7   : > { %v5820_v55 = vadd.f32 %v5819_v29, %v5791_v43  ;;  %v15511_v43 = vld [vmem:[%s22991_s3 + $0x4a4] sm:$0xf]  ;;  %v12843_v29 = vor.u32 %v15527_v25, %v12840_v38  ;;  %v13152_v38 = vld [vmem:[%s22991_s3 + $0x798] sm:$0xf0] }
 0x3c8   : > { %v5793_v16 = vpop.f32.mrf.mxu1  ;;  %v5851_v39 = vpop.f32.mrf.mxu3 }
 0x3c9   : > { %v5849_v54 = vadd.f32 %v5848_v4, %v5820_v55  ;;  %v5794_v47 = vadd.f32 %v5793_v16, %v5765_v22  ;;  %v13187_v55 = vor.u32 %v15613_v0, %v13184_v59  ;;  %v12712_v16 = vld [vmem:[%s22991_s3 + $0x428] sm:$0xf0]  ;;  %v20064_v30 = vpop.f32.mrf.mxu0  ;;  %v15605_v59 = vld [vmem:[%s22991_s3 + $0x794] sm:$0xf] }
 0x3ca   : > { %6326 = vmatpush.bf16.msra.mxu0 %v13195_v21  ;;  %6185 = vmatpush.bf16.msrb.mxu3 %v12843_v29  ;;  %v12715_v57 = vor.u32 %v15495_v10, %v12712_v16  ;;  %v15607_v21 = vld [vmem:[%s22991_s3 + $0x7a4] sm:$0xf]  ;;  %v12824_v29 = vld [vmem:[%s22991_s3 + $0x508] sm:$0xf0] }
 0x3cb   : > { %v19989_v6 = vadd.f32 %v19826_v32, %v5849_v54  ;;  %6024 = vmatmul.bf16.gmra.mxu1 %v23397_v36  ;;  %6053 = vmatmul.bf16.gmra.mxu2 %v23398_v37  ;;  %v5767_v32 = vadd.f32 %v19607_v44, %v19861_v40  ;;  %v12776_v44 = vld [vmem:[%s22991_s3 + $0x4a8] sm:$0xf0]  ;;  %v15611_v54 = vld [vmem:[%s22991_s3 + $0x7c4] sm:$0xf]  ;;  %v15525_v36 = vld [vmem:[%s22991_s3 + $0x514] sm:$0xf] }
 0x3cc   : > { %v12779_v4 = vor.u32 %v15511_v43, %v12776_v44  ;;  %6127 = vmatpush.bf16.msrb.mxu1 %v12715_v57  ;;  %v12832_v37 = vld [vmem:[%s22991_s3 + $0x518] sm:$0xf0]  ;;  %v13160_v43 = vld [vmem:[%s22991_s3 + $0x7a8] sm:$0xf0]  ;;  %v15491_v57 = vld [vmem:[%s22991_s3 + $0x404] sm:$0xf] }
 0x3cd   : > { %v12835_v13 = vor.u32 %v15525_v36, %v12832_v37  ;;  %v13163_v0 = vor.u32 %v15607_v21, %v13160_v43  ;;  %v15601_v36 = vld [vmem:[%s22991_s3 + $0x774] sm:$0xf]  ;;  %v15567_v21 = vld [vmem:[%s22991_s3 + $0x664] sm:$0xf] }
 0x3ce   : > { %v5822_v52 = vpop.f32.mrf.mxu2  ;;  %6156 = vmatpush.bf16.msrb.mxu2 %v12779_v4  ;;  %6327 = vmatpush.bf16.msra.mxu0 %v13187_v55  ;;  %v15507_v4 = vld [vmem:[%s22991_s3 + $0x484] sm:$0xf] }
 0x3cf   : > { %v5823_v1 = vadd.f32 %v5822_v52, %v5794_v47  ;;  %v13176_v47 = vld [vmem:[%s22991_s3 + $0x7c8] sm:$0xf0]  ;;  %6186 = vmatpush.bf16.msrb.mxu3 %v12835_v13  ;;  %v12763_v25 = vor.u32 %v15507_v4, %v12760_v26  ;;  %v23403_v55 = vld [vmem:[#allocation63_spill] sm:$0xff]  ;;  %v13008_v13 = vld [vmem:[%s22991_s3 + $0x678] sm:$0xf0] }
 0x3d0   : > { %v5795_v11 = vpop.f32.mrf.mxu1  ;;  %v5853_v40 = vpop.f32.mrf.mxu3  ;;  %v13179_v24 = vor.u32 %v15611_v54, %v13176_v47  ;;  %v16305_v54 = vld [vmem:[%s22992_s4] sm:$0x3]  ;;  %v15581_v4 = vld [vmem:[%s22991_s3 + $0x6d4] sm:$0xf] }
 0x3d1   : > { %v5852_v42 = vadd.f32 %v5851_v39, %v5823_v1  ;;  %v5796_v41 = vadd.f32 %v5795_v11, %v5767_v32  ;;  %6227 = vmatmul.bf16.gmra.mxu0 %v23399_v2  ;;  %v23401_v1 = vld [vmem:[#allocation35_spill] sm:$0xff]  ;;  %v13171_v32 = vor.u32 %v15609_v15, %v13168_v33  ;;  %v20107_v10 = vpop.f32.mrf.mxu0  ;;  %v20118_v47 = vperm.slane %v16305_v54, 1  ;;  %v15585_v15 = vld [vmem:[%s22991_s3 + $0x6f4] sm:$0xf]  ;;  %v13048_v54 = vld [vmem:[%s22991_s3 + $0x6c8] sm:$0xf0] }
 0x3d2   : > { %6328 = vmatpush.bf16.msra.mxu0 %v13179_v24  ;;  %v15523_v2 = vld [vmem:[%s22991_s3 + $0x504] sm:$0xf]  ;;  %v13144_v24 = vld [vmem:[%s22991_s3 + $0x788] sm:$0xf0] }
 0x3d3   : > { %v20029_v14 = vadd.f32 %v19856_v34, %v5852_v42  ;;  %v5770_v34 = vadd.f32 %v19637_v23, %v19869_v45  ;;  %v12768_v23 = vld [vmem:[%s22991_s3 + $0x498] sm:$0xf0] }
 0x3d4   : > { %v12771_v12 = vor.u32 %v15509_v8, %v12768_v23  ;;  %v23404_v8 = vld [vmem:[#allocation27_spill] sm:$0xff] }
 0x3d5   : > { %6087 = vmatmul.bf16.gmra.mxu3 %v23400_v50  ;;  %v12827_v50 = vor.u32 %v15523_v2, %v12824_v29 }
 0x3d6   : > { %v5824_v17 = vpop.f32.mrf.mxu2  ;;  %6157 = vmatpush.bf16.msrb.mxu2 %v12771_v12  ;;  %6329 = vmatpush.bf16.msra.mxu0 %v13171_v32  ;;  %v13072_v12 = vld [vmem:[%s22991_s3 + $0x6f8] sm:$0xf0] }
 0x3d7   : > { %v5825_v22 = vadd.f32 %v5824_v17, %v5796_v41  ;;  %6187 = vmatpush.bf16.msrb.mxu3 %v12827_v50  ;;  %v13075_v37 = vor.u32 %v15585_v15, %v13072_v12  ;;  %v12992_v50 = vld [vmem:[%s22991_s3 + $0x658] sm:$0xf0]  ;;  %v15681_v15 = vld [vmem:[%s22991_s3 + $0x9f4] sm:$0xf] }
 0x3d8   : > { %v5798_v27 = vpop.f32.mrf.mxu1  ;;  %v5856_v45 = vpop.f32.mrf.mxu3  ;;  %v13456_v12 = vld [vmem:[%s22991_s3 + $0x9f8] sm:$0xf0] }
 0x3d9   : > { %v5854_v63 = vadd.f32 %v5853_v40, %v5825_v22  ;;  %v5799_v39 = vadd.f32 %v5798_v27, %v5770_v34  ;;  %v13155_v22 = vor.u32 %v15605_v59, %v13152_v38  ;;  %v12696_v27 = vld [vmem:[%s22991_s3 + $0x408] sm:$0xf0]  ;;  %v13056_v59 = vld [vmem:[%s22991_s3 + $0x6d8] sm:$0xf0]  ;;  %v20181_v2 = vpop.f32.mrf.mxu0 }
 0x3da   : > { %6330 = vmatpush.bf16.msra.mxu0 %v13163_v0  ;;  %6158 = vmatpush.bf16.msrb.mxu2 %v12763_v25  ;;  %v13000_v0 = vld [vmem:[%s22991_s3 + $0x668] sm:$0xf0]  ;;  %v15597_v25 = vld [vmem:[%s22991_s3 + $0x754] sm:$0xf]  ;;  %v13120_v38 = vld [vmem:[%s22991_s3 + $0x758] sm:$0xf0] }
 0x3db   : > { %v20067_v52 = vadd.f32 %v19865_v58, %v5854_v63  ;;  %6029 = vmatmul.bf16.gmra.mxu1 %v23401_v1  ;;  %6058 = vmatmul.bf16.gmra.mxu2 %v23402_v51  ;;  %v12704_v58 = vld [vmem:[%s22991_s3 + $0x418] sm:$0xf0]  ;;  %v15569_v51 = vld [vmem:[%s22991_s3 + $0x674] sm:$0xf] }
 0x3dc   : > { %v12707_v42 = vor.u32 %v15493_v48, %v12704_v58  ;;  %v13136_v1 = vld [vmem:[%s22991_s3 + $0x778] sm:$0xf0]  ;;  %v13011_v48 = vor.u32 %v15569_v51, %v13008_v13  ;;  %v15583_v58 = vld [vmem:[%s22991_s3 + $0x6e4] sm:$0xf]  ;;  %v15577_v51 = vld [vmem:[%s22991_s3 + $0x6b4] sm:$0xf] }
 0x3dd   : > { %v13040_v13 = vld [vmem:[%s22991_s3 + $0x6b8] sm:$0xf0] }
 0x3de   : > { %v5827_v62 = vpop.f32.mrf.mxu2  ;;  %6128 = vmatpush.bf16.msrb.mxu1 %v12707_v42  ;;  %6331 = vmatpush.bf16.msra.mxu0 %v13155_v22  ;;  %v15599_v42 = vld [vmem:[%s22991_s3 + $0x764] sm:$0xf] }
 0x3df   : > { %v5828_v11 = vadd.f32 %v5827_v62, %v5799_v39  ;;  %v15603_v39 = vld [vmem:[%s22991_s3 + $0x784] sm:$0xf]  ;;  %v23405_v62 = vld [vmem:[#allocation37_spill] sm:$0xff]  ;;  %6267 = vmatpush.bf16.msra.mxu2 %v13075_v37 }
 0x3e0   : > { %v5800_v41 = vpop.f32.mrf.mxu1  ;;  %v5858_v49 = vpop.f32.mrf.mxu3 }
 0x3e1   : > { %v5857_v44 = vadd.f32 %v5856_v45, %v5828_v11  ;;  %v5801_v40 = vadd.f32 %v5800_v41, %v5772_v61  ;;  %6232 = vmatmul.bf16.gmra.mxu0 %v23403_v55  ;;  %v13147_v45 = vor.u32 %v15603_v39, %v13144_v24  ;;  %v13139_v11 = vor.u32 %v15601_v36, %v13136_v1  ;;  %v13064_v61 = vld [vmem:[%s22991_s3 + $0x6e8] sm:$0xf0]  ;;  %v15565_v55 = vld [vmem:[%s22991_s3 + $0x654] sm:$0xf]  ;;  %v15595_v39 = vld [vmem:[%s22991_s3 + $0x744] sm:$0xf] }
 0x3e2   : > { %v13128_v41 = vld [vmem:[%s22991_s3 + $0x768] sm:$0xf0]  ;;  %v13459_v36 = vor.u32 %v15681_v15, %v13456_v12 }
 0x3e3   : > { %v20105_v17 = vadd.f32 %v19875_v20, %v5857_v44  ;;  %v12699_v20 = vor.u32 %v15491_v57, %v12696_v27  ;;  %6332 = vmatpush.bf16.msra.mxu0 %v13147_v45  ;;  %v23406_v44 = vld [vmem:[#allocation38_spill] sm:$0xff]  ;;  %6296 = vmatpush.bf16.msra.mxu3 %v13139_v11  ;;  %v13123_v27 = vor.u32 %v15597_v25, %v13120_v38  ;;  %v13112_v24 = vld [vmem:[%s22991_s3 + $0x748] sm:$0xf0]  ;;  %v15575_v25 = vld [vmem:[%s22991_s3 + $0x6a4] sm:$0xf] }
 0x3e4   : > { %v12984_v45 = vld [vmem:[%s22991_s3 + $0x648] sm:$0xf0]  ;;  %v13115_v1 = vor.u32 %v15595_v39, %v13112_v24  ;;  %v23410_v24 = vld [vmem:[#allocation41_spill] sm:$0xff] }
 0x3e5   : > { %6188 = vmatmul.bf16.vlgmr.msrb.gmra.mxu3 %v23404_v8  ;;  %6129 = vmatpush.bf16.msrb.mxu1 %v12699_v20  ;;  %v15579_v20 = vld [vmem:[%s22991_s3 + $0x6c4] sm:$0xf]  ;;  %v13032_v38 = vld [vmem:[%s22991_s3 + $0x6a8] sm:$0xf0] }
 0x3e6   : > { %v5829_v16 = vpop.f32.mrf.mxu2  ;;  %v15563_v8 = vld [vmem:[%s22991_s3 + $0x644] sm:$0xf] }
 0x3e7   : > { %v5830_v34 = vadd.f32 %v5829_v16, %v5801_v40  ;;  %v13131_v40 = vor.u32 %v15599_v42, %v13128_v41  ;;  %v13059_v16 = vor.u32 %v15581_v4, %v13056_v59  ;;  %v12987_v11 = vor.u32 %v15563_v8, %v12984_v45  ;;  %6441 = vmatpush.bf16.msrb.mxu0 %v13459_v36  ;;  %v15561_v42 = vld [vmem:[%s22991_s3 + $0x634] sm:$0xf]  ;;  %v13432_v36 = vld [vmem:[%s22991_s3 + $0x9c8] sm:$0xf0] }
 0x3e8   : > { %v5899_v63 = vpop.f32.mrf.mxu1  ;;  %v5957_v33 = vpop.f32.mrf.mxu3 }
 0x3e9   : > { %v5859_v23 = vadd.f32 %v5858_v49, %v5830_v34  ;;  %v5900_v43 = vadd.f32 %v5899_v63, %v20118_v47  ;;  %6238 = vmatpush.bf16.msra.mxu1 %v13011_v48  ;;  %v13003_v49 = vor.u32 %v15567_v21, %v13000_v0  ;;  %6297 = vmatpush.bf16.msra.mxu3 %v13131_v40  ;;  %v15593_v48 = vld [vmem:[%s22991_s3 + $0x734] sm:$0xf]  ;;  %v23408_v21 = vld [vmem:[#allocation30_spill] sm:$0xff]  ;;  %v13448_v40 = vld [vmem:[%s22991_s3 + $0x9e8] sm:$0xf0]  ;;  %v20242_v0 = vpop.f32.mrf.mxu0 }
 0x3ea   : > { %v12995_v63 = vor.u32 %v15565_v55, %v12992_v50  ;;  %v13440_v50 = vld [vmem:[%s22991_s3 + $0x9d8] sm:$0xf0] }
 0x3eb   : > { %v20146_v32 = vadd.f32 %v19901_v28, %v5859_v23  ;;  %6159 = vmatmul.bf16.vlgmr.msrb.gmra.mxu2 %v23405_v62  ;;  %v13067_v28 = vor.u32 %v15583_v58, %v13064_v61  ;;  %6130 = vmatmul.bf16.vlgmr.msrb.gmra.mxu1 %v23406_v44  ;;  %v23407_v23 = vld [vmem:[#allocation66_spill] sm:$0xff]  ;;  %v15679_v44 = vld [vmem:[%s22991_s3 + $0x9e4] sm:$0xf] }
 0x3ec   : > { %v13104_v58 = vld [vmem:[%s22991_s3 + $0x738] sm:$0xf0]  ;;  %v13451_v59 = vor.u32 %v15679_v44, %v13448_v40  ;;  %v15557_v44 = vld [vmem:[%s22991_s3 + $0x614] sm:$0xf] }
 0x3ed   : > { %6268 = vmatpush.bf16.msra.mxu2 %v13067_v28  ;;  %6239 = vmatpush.bf16.msra.mxu1 %v13003_v49  ;;  %v12976_v28 = vld [vmem:[%s22991_s3 + $0x638] sm:$0xf0]  ;;  %v13107_v49 = vor.u32 %v15593_v48, %v13104_v58 }
 0x3ee   : > { %v5928_v26 = vpop.f32.mrf.mxu2  ;;  %6298 = vmatpush.bf16.msra.mxu3 %v13123_v27  ;;  %v12979_v55 = vor.u32 %v15561_v42, %v12976_v28  ;;  %6442 = vmatpush.bf16.msrb.mxu0 %v13451_v59  ;;  %v15673_v42 = vld [vmem:[%s22991_s3 + $0x9b4] sm:$0xf]  ;;  %v13424_v28 = vld [vmem:[%s22991_s3 + $0x9b8] sm:$0xf0] }
 0x3ef   : > { %v5929_v29 = vadd.f32 %v5928_v26, %v5900_v43  ;;  %v13043_v43 = vor.u32 %v15577_v51, %v13040_v13  ;;  %v12960_v40 = vld [vmem:[%s22991_s3 + $0x618] sm:$0xf0] }
 0x3f0   : > { %v5901_v22 = vpop.f32.mrf.mxu1  ;;  %v5959_v57 = vpop.f32.mrf.mxu3 }
 0x3f1   : > { %v20189_v34 = vadd.f32 %v5957_v33, %v5929_v29  ;;  %6333 = vmatmul.bf16.vlgmr.msra.gmra.mxu0 %v23407_v23  ;;  %6269 = vmatpush.bf16.msra.mxu2 %v13059_v16  ;;  %v13051_v33 = vor.u32 %v15579_v20, %v13048_v54  ;;  %v5902_v37 = vadd.f32 %v5901_v22, %v20118_v47  ;;  %v15677_v29 = vld [vmem:[%s22991_s3 + $0x9d4] sm:$0xf]  ;;  %v15591_v22 = vld [vmem:[%s22991_s3 + $0x724] sm:$0xf]  ;;  %v13096_v16 = vld [vmem:[%s22991_s3 + $0x728] sm:$0xf0]  ;;  %v20288_v58 = vpop.f32.mrf.mxu0 }
 0x3f2   : > { %6240 = vmatpush.bf16.msra.mxu1 %v12995_v63  ;;  %6299 = vmatpush.bf16.msra.mxu3 %v13115_v1  ;;  %v13443_v27 = vor.u32 %v15677_v29, %v13440_v50  ;;  %v15559_v20 = vld [vmem:[%s22991_s3 + $0x624] sm:$0xf]  ;;  %v12968_v54 = vld [vmem:[%s22991_s3 + $0x628] sm:$0xf0]  ;;  %v13035_v63 = vor.u32 %v15575_v25, %v13032_v38  ;;  %v13099_v8 = vor.u32 %v15591_v22, %v13096_v16  ;;  %v23412_v29 = vld [vmem:[#allocation33_spill] sm:$0xff] }
 0x3f3   : > { %v12971_v45 = vor.u32 %v15559_v20, %v12968_v54  ;;  %v13416_v50 = vld [vmem:[%s22991_s3 + $0x9a8] sm:$0xf0]  ;;  %v15571_v22 = vld [vmem:[%s22991_s3 + $0x684] sm:$0xf] }
 0x3f4   : > { %6443 = vmatpush.bf16.msrb.mxu0 %v13443_v27  ;;  %v13016_v54 = vld [vmem:[%s22991_s3 + $0x688] sm:$0xf0] }
 0x3f5   : > { %6193 = vmatmul.bf16.gmra.mxu3 %v23408_v21  ;;  %6270 = vmatpush.bf16.msra.mxu2 %v13051_v33  ;;  %v15675_v33 = vld [vmem:[%s22991_s3 + $0x9c4] sm:$0xf]  ;;  %v13427_v21 = vor.u32 %v15673_v42, %v13424_v28  ;;  %v13400_v42 = vld [vmem:[%s22991_s3 + $0x988] sm:$0xf0]  ;;  %v15649_v28 = vld [vmem:[%s22991_s3 + $0x8f4] sm:$0xf] }
 0x3f6   : > { %v5930_v62 = vpop.f32.mrf.mxu2  ;;  %6241 = vmatpush.bf16.msra.mxu1 %v12987_v11  ;;  %6300 = vmatpush.bf16.msra.mxu3 %v13107_v49  ;;  %v13024_v11 = vld [vmem:[%s22991_s3 + $0x698] sm:$0xf0]  ;;  %v12963_v49 = vor.u32 %v15557_v44, %v12960_v40 }
 0x3f7   : > { %v5931_v61 = vadd.f32 %v5930_v62, %v5902_v37  ;;  %v15573_v37 = vld [vmem:[%s22991_s3 + $0x694] sm:$0xf]  ;;  %v13435_v62 = vor.u32 %v15675_v33, %v13432_v36  ;;  %v12952_v33 = vld [vmem:[%s22991_s3 + $0x608] sm:$0xf0]  ;;  %v13328_v40 = vld [vmem:[%s22991_s3 + $0x8f8] sm:$0xf0] }
 0x3f8   : > { %v5904_v41 = vpop.f32.mrf.mxu1  ;;  %v5962_v26 = vpop.f32.mrf.mxu3  ;;  %v13027_v48 = vor.u32 %v15573_v37, %v13024_v11 }
 0x3f9   : > { %v20244_v4 = vadd.f32 %v5959_v57, %v5931_v61  ;;  %v23409_v57 = vld [vmem:[#allocation40_spill] sm:$0xff]  ;;  %6271 = vmatpush.bf16.msra.mxu2 %v13043_v43  ;;  %v5905_v39 = vadd.f32 %v5904_v41, %v20118_v47  ;;  %v23411_v61 = vld [vmem:[#allocation70_spill] sm:$0xff]  ;;  %v15589_v41 = vld [vmem:[%s22991_s3 + $0x714] sm:$0xf]  ;;  %6444 = vmatpush.bf16.msrb.mxu0 %v13435_v62 }
 0x3fa   : > { %6242 = vmatpush.bf16.msra.mxu1 %v12979_v55  ;;  %6301 = vmatpush.bf16.msra.mxu3 %v13099_v8  ;;  %v13088_v43 = vld [vmem:[%s22991_s3 + $0x718] sm:$0xf0]  ;;  %v15671_v55 = vld [vmem:[%s22991_s3 + $0x9a4] sm:$0xf] }
 0x3fb   : > { %6164 = vmatmul.bf16.gmra.mxu2 %v23409_v57  ;;  %6135 = vmatmul.bf16.gmra.mxu1 %v23410_v24  ;;  %v13419_v20 = vor.u32 %v15671_v55, %v13416_v50  ;;  %v13019_v24 = vor.u32 %v15571_v22, %v13016_v54  ;;  %v15587_v8 = vld [vmem:[%s22991_s3 + $0x704] sm:$0xf]  ;;  %v13264_v55 = vld [vmem:[%s22991_s3 + $0x878] sm:$0xf0]  ;;  %v23416_v54 = vld [vmem:[#allocation36_spill] sm:$0xff] }
 0x3fd   : > { %6272 = vmatpush.bf16.msra.mxu2 %v13035_v63  ;;  %6445 = vmatpush.bf16.msrb.mxu0 %v13427_v21  ;;  %v15669_v63 = vld [vmem:[%s22991_s3 + $0x994] sm:$0xf] }
 0x3fe   : > { %v5933_v23 = vpop.f32.mrf.mxu2  ;;  %6243 = vmatpush.bf16.msra.mxu1 %v12971_v45  ;;  %v15555_v45 = vld [vmem:[%s22991_s3 + $0x604] sm:$0xf] }
 0x3ff   : > { %v5934_v15 = vadd.f32 %v5933_v23, %v5905_v39  ;;  %v13408_v39 = vld [vmem:[%s22991_s3 + $0x998] sm:$0xf0]  ;;  %v13080_v23 = vld [vmem:[%s22991_s3 + $0x708] sm:$0xf0]  ;;  %v12955_v37 = vor.u32 %v15555_v45, %v12952_v33  ;;  %v15631_v33 = vld [vmem:[%s22991_s3 + $0x864] sm:$0xf] }
 0x400   : > { %v5906_v12 = vpop.f32.mrf.mxu1  ;;  %v5964_v13 = vpop.f32.mrf.mxu3  ;;  %v13411_v36 = vor.u32 %v15669_v63, %v13408_v39  ;;  %v15647_v63 = vld [vmem:[%s22991_s3 + $0x8e4] sm:$0xf]  ;;  %v13320_v39 = vld [vmem:[%s22991_s3 + $0x8e8] sm:$0xf0] }
 0x401   : > { %v20282_v1 = vadd.f32 %v5962_v26, %v5934_v15  ;;  %v5907_v51 = vadd.f32 %v5906_v12, %v20118_v47  ;;  %6338 = vmatmul.bf16.gmra.mxu0 %v23411_v61  ;;  %6273 = vmatpush.bf16.msra.mxu2 %v13027_v48  ;;  %v13091_v26 = vor.u32 %v15589_v41, %v13088_v43  ;;  %v23413_v15 = vld [vmem:[#allocation43_spill] sm:$0xff] }
 0x402   : > { %6244 = vmatpush.bf16.msra.mxu1 %v12963_v49  ;;  %v13083_v12 = vor.u32 %v15587_v8, %v13080_v23  ;;  %6446 = vmatpush.bf16.msrb.mxu0 %v13419_v20  ;;  %v15667_v61 = vld [vmem:[%s22991_s3 + $0x984] sm:$0xf]  ;;  %v23415_v49 = vld [vmem:[#allocation74_spill] sm:$0xff] }
 0x403   : > { %6302 = vmatpush.bf16.msra.mxu3 %v13091_v26  ;;  %v13403_v44 = vor.u32 %v15667_v61, %v13400_v42  ;;  %v13331_v26 = vor.u32 %v15649_v28, %v13328_v40  ;;  %v15645_v28 = vld [vmem:[%s22991_s3 + $0x8d4] sm:$0xf] }
 0x405   : > { %6198 = vmatmul.bf16.gmra.mxu3 %v23412_v29  ;;  %6274 = vmatpush.bf16.msra.mxu2 %v13019_v24  ;;  %v15663_v24 = vld [vmem:[%s22991_s3 + $0x964] sm:$0xf] }
 0x406   : > { %v5935_v59 = vpop.f32.mrf.mxu2  ;;  %6245 = vmatpush.bf16.msra.mxu1 %v12955_v37  ;;  %6447 = vmatpush.bf16.msrb.mxu0 %v13411_v36  ;;  %v13256_v36 = vld [vmem:[%s22991_s3 + $0x868] sm:$0xf0] }
 0x407   : > { %v5936_v25 = vadd.f32 %v5935_v59, %v5907_v51  ;;  %v20344_v51 = vpop.f32.mrf.mxu0  ;;  %6303 = vmatpush.bf16.msra.mxu3 %v13083_v12  ;;  %v15665_v59 = vld [vmem:[%s22991_s3 + $0x974] sm:$0xf]  ;;  %v13384_v12 = vld [vmem:[%s22991_s3 + $0x968] sm:$0xf0] }
 0x408   : > { %v5909_v38 = vpop.f32.mrf.mxu1  ;;  %v5967_v27 = vpop.f32.mrf.mxu3  ;;  %v13387_v37 = vor.u32 %v15663_v24, %v13384_v12  ;;  %v13304_v24 = vld [vmem:[%s22991_s3 + $0x8c8] sm:$0xf0] }
 0x409   : > { %v20319_v16 = vadd.f32 %v5964_v13, %v5936_v25  ;;  %v5910_v57 = vadd.f32 %v5909_v38, %v20118_v47  ;;  %v23414_v13 = vld [vmem:[#allocation44_spill] sm:$0xff]  ;;  %v13392_v25 = vld [vmem:[%s22991_s3 + $0x978] sm:$0xf0]  ;;  %v15633_v38 = vld [vmem:[%s22991_s3 + $0x874] sm:$0xf]  ;;  %6383 = vmatpush.bf16.msrb.mxu2 %v13331_v26 }
 0x40a   : > { %6448 = vmatpush.bf16.msrb.mxu0 %v13403_v44  ;;  %v13395_v29 = vor.u32 %v15665_v59, %v13392_v25  ;;  %v13267_v50 = vor.u32 %v15633_v38, %v13264_v55  ;;  %v23419_v59 = vld [vmem:[#allocation78_spill] sm:$0xff]  ;;  %v15661_v25 = vld [vmem:[%s22991_s3 + $0x954] sm:$0xf]  ;;  %v13368_v12 = vld [vmem:[%s22991_s3 + $0x948] sm:$0xf0] }
 0x40b   : > { %6169 = vmatmul.bf16.gmra.mxu2 %v23413_v15  ;;  %6140 = vmatmul.bf16.gmra.mxu1 %v23414_v13  ;;  %v13323_v15 = vor.u32 %v15647_v63, %v13320_v39  ;;  %v13259_v13 = vor.u32 %v15631_v33, %v13256_v36  ;;  %v13376_v38 = vld [vmem:[%s22991_s3 + $0x958] sm:$0xf0]  ;;  %v23420_v63 = vld [vmem:[#allocation39_spill] sm:$0xff]  ;;  %v13240_v36 = vld [vmem:[%s22991_s3 + $0x848] sm:$0xf0] }
 0x40c   : > { %6412 = vmatpush.bf16.msrb.mxu3 %v13395_v29  ;;  %6354 = vmatpush.bf16.msrb.mxu1 %v13267_v50  ;;  %v15629_v29 = vld [vmem:[%s22991_s3 + $0x854] sm:$0xf]  ;;  %v13379_v55 = vor.u32 %v15661_v25, %v13376_v38  ;;  %v15643_v39 = vld [vmem:[%s22991_s3 + $0x8c4] sm:$0xf] }
 0x40d   : > { %6384 = vmatpush.bf16.msrb.mxu2 %v13323_v15  ;;  %v15627_v33 = vld [vmem:[%s22991_s3 + $0x844] sm:$0xf] }
 0x40e   : > { %v5938_v62 = vpop.f32.mrf.mxu2 }
 0x40f   : > { %v5939_v11 = vadd.f32 %v5938_v62, %v5910_v57  ;;  %v20375_v57 = vpop.f32.mrf.mxu0  ;;  %v23417_v62 = vld [vmem:[#allocation46_spill] sm:$0xff] }
 0x410   : > { %v5911_v48 = vpop.f32.mrf.mxu1  ;;  %v5969_v43 = vpop.f32.mrf.mxu3  ;;  %6413 = vmatpush.bf16.msrb.mxu3 %v13387_v37  ;;  %6355 = vmatpush.bf16.msrb.mxu1 %v13259_v13  ;;  %v13243_v13 = vor.u32 %v15627_v33, %v13240_v36  ;;  %v15639_v33 = vld [vmem:[%s22991_s3 + $0x8a4] sm:$0xf] }
 0x411   : > { %v20356_v41 = vadd.f32 %v5967_v27, %v5939_v11  ;;  %v5912_v21 = vadd.f32 %v5911_v48, %v20118_v47  ;;  %6343 = vmatmul.bf16.gmra.mxu0 %v23415_v49  ;;  %v23418_v11 = vld [vmem:[#allocation47_spill] sm:$0xff] }
 0x414   : > { %6414 = vmatpush.bf16.msrb.mxu3 %v13379_v55  ;;  %v15657_v55 = vld [vmem:[%s22991_s3 + $0x934] sm:$0xf] }
 0x415   : > { %6203 = vmatmul.bf16.gmra.mxu3 %v23416_v54 }
 0x416   : > { %v5940_v22 = vpop.f32.mrf.mxu2 }
 0x417   : > { %v5941_v27 = vadd.f32 %v5940_v22, %v5912_v21  ;;  %v13312_v21 = vld [vmem:[%s22991_s3 + $0x8d8] sm:$0xf0] }
 0x418   : > { %v5914_v20 = vpop.f32.mrf.mxu1  ;;  %v5972_v45 = vpop.f32.mrf.mxu3  ;;  %v13315_v49 = vor.u32 %v15645_v28, %v13312_v21  ;;  %v5989_v28 = vadd.f32 %v19960_v53, %v20244_v4  ;;  %v15745_v53 = vld [vmem:[%s22991_s3 + $0xbf4] sm:$0xf]  ;;  %v13712_v4 = vld [vmem:[%s22991_s3 + $0xbf8] sm:$0xf0] }
 0x419   : > { %v20387_v8 = vadd.f32 %v5969_v43, %v5941_v27  ;;  %v5915_v23 = vadd.f32 %v5914_v20, %v20118_v47  ;;  %v20407_v43 = vpop.f32.mrf.mxu0  ;;  %v5987_v20 = vadd.f32 %v19933_v35, %v20189_v34  ;;  %v13307_v34 = vor.u32 %v15643_v39, %v13304_v24 }
 0x41a   : > { %6385 = vmatpush.bf16.msrb.mxu2 %v13315_v49 }
 0x41b   : > { %6174 = vmatmul.bf16.gmra.mxu2 %v23417_v62  ;;  %6145 = vmatmul.bf16.gmra.mxu1 %v23418_v11  ;;  %v23421_v11 = vld [vmem:[#allocation49_spill] sm:$0xff] }
 0x41e   : > { %v5943_v48 = vpop.f32.mrf.mxu2  ;;  %6386 = vmatpush.bf16.msrb.mxu2 %v13307_v34  ;;  %v15743_v34 = vld [vmem:[%s22991_s3 + $0xbe4] sm:$0xf] }
 0x41f   : > { %v5944_v61 = vadd.f32 %v5943_v48, %v5915_v23  ;;  %v15659_v23 = vld [vmem:[%s22991_s3 + $0x944] sm:$0xf] }
 0x420   : > { %v5916_v42 = vpop.f32.mrf.mxu1  ;;  %v5974_v26 = vpop.f32.mrf.mxu3  ;;  %v13371_v37 = vor.u32 %v15659_v23, %v13368_v12  ;;  %v23422_v48 = vld [vmem:[#allocation51_spill] sm:$0xff]  ;;  %v5992_v23 = vadd.f32 %v20007_v60, %v20282_v1  ;;  %v13704_v12 = vld [vmem:[%s22991_s3 + $0xbe8] sm:$0xf0] }
 0x421   : > { %v20409_v44 = vadd.f32 %v5972_v45, %v5944_v61  ;;  %v5917_v40 = vadd.f32 %v5916_v42, %v20118_v47  ;;  %6348 = vmatmul.bf16.gmra.mxu0 %v23419_v59  ;;  %v13248_v47 = vld [vmem:[%s22991_s3 + $0x858] sm:$0xf0]  ;;  %v20448_v62 = vpop.f32.mrf.mxu0 }
 0x422   : > { %v13251_v50 = vor.u32 %v15629_v29, %v13248_v47  ;;  %6415 = vmatpush.bf16.msrb.mxu3 %v13371_v37  ;;  %v23423_v29 = vld [vmem:[#allocation82_spill] sm:$0xff]  ;;  %v13715_v47 = vor.u32 %v15745_v53, %v13712_v4  ;;  %v13707_v37 = vor.u32 %v15743_v34, %v13704_v12  ;;  %v15653_v12 = vld [vmem:[%s22991_s3 + $0x914] sm:$0xf] }
 0x423   : > { %v13680_v34 = vld [vmem:[%s22991_s3 + $0xbb8] sm:$0xf0] }
 0x424   : > { %6356 = vmatpush.bf16.msrb.mxu1 %v13251_v50  ;;  %v13360_v50 = vld [vmem:[%s22991_s3 + $0x938] sm:$0xf0]  ;;  %6557 = vmatpush.bf16.msra.mxu0 %v13715_v47  ;;  %v5994_v47 = vadd.f32 %v20064_v30, %v20319_v16 }
 0x425   : > { %6304 = vmatmul.bf16.vlgmr.msra.gmra.mxu3 %v23420_v63  ;;  %v13280_v30 = vld [vmem:[%s22991_s3 + $0x898] sm:$0xf0] }
 0x426   : > { %v5945_v22 = vpop.f32.mrf.mxu2 }
 0x427   : > { %v5946_v27 = vadd.f32 %v5945_v22, %v5917_v40  ;;  %v15641_v40 = vld [vmem:[%s22991_s3 + $0x8b4] sm:$0xf] }
 0x428   : > { %v6015_v54 = vpop.f32.mrf.mxu1  ;;  %v6073_v35 = vpop.f32.mrf.mxu3  ;;  %6357 = vmatpush.bf16.msrb.mxu1 %v13243_v13  ;;  %v15625_v22 = vld [vmem:[%s22991_s3 + $0x834] sm:$0xf]  ;;  %v13288_v13 = vld [vmem:[%s22991_s3 + $0x8a8] sm:$0xf0]  ;;  %6558 = vmatpush.bf16.msra.mxu0 %v13707_v37  ;;  %v13216_v37 = vld [vmem:[%s22991_s3 + $0x818] sm:$0xf0] }
 0x429   : > { %v20437_v45 = vadd.f32 %v5974_v26, %v5946_v27  ;;  %v6016_v15 = vadd.f32 %v6015_v54, %v5987_v20  ;;  %v13296_v26 = vld [vmem:[%s22991_s3 + $0x8b8] sm:$0xf0]  ;;  %v20481_v20 = vpop.f32.mrf.mxu0  ;;  %v13363_v54 = vor.u32 %v15657_v55, %v13360_v50 }
 0x42a   : > { %v13299_v38 = vor.u32 %v15641_v40, %v13296_v26  ;;  %v13232_v27 = vld [vmem:[%s22991_s3 + $0x838] sm:$0xf0]  ;;  %v23425_v40 = vld [vmem:[#allocation53_spill] sm:$0xff] }
 0x42b   : > { %6275 = vmatmul.bf16.vlgmr.msra.gmra.mxu2 %v23421_v11  ;;  %6246 = vmatmul.bf16.vlgmr.msra.gmra.mxu1 %v23422_v48  ;;  %v13235_v63 = vor.u32 %v15625_v22, %v13232_v27  ;;  %v15741_v11 = vld [vmem:[%s22991_s3 + $0xbd4] sm:$0xf]  ;;  %v13696_v48 = vld [vmem:[%s22991_s3 + $0xbd8] sm:$0xf0]  ;;  %v15739_v22 = vld [vmem:[%s22991_s3 + $0xbc4] sm:$0xf] }
 0x42c   : > { %6387 = vmatpush.bf16.msrb.mxu2 %v13299_v38  ;;  %6416 = vmatpush.bf16.msrb.mxu3 %v13363_v54  ;;  %v13699_v26 = vor.u32 %v15741_v11, %v13696_v48  ;;  %v13688_v27 = vld [vmem:[%s22991_s3 + $0xbc8] sm:$0xf0]  ;;  %v15637_v54 = vld [vmem:[%s22991_s3 + $0x894] sm:$0xf] }
 0x42d   : > { %6358 = vmatpush.bf16.msrb.mxu1 %v13235_v63  ;;  %v13283_v16 = vor.u32 %v15637_v54, %v13280_v30  ;;  %v15619_v54 = vld [vmem:[%s22991_s3 + $0x804] sm:$0xf] }
 0x42e   : > { %v6044_v61 = vpop.f32.mrf.mxu2  ;;  %6559 = vmatpush.bf16.msra.mxu0 %v13699_v26  ;;  %v13672_v26 = vld [vmem:[%s22991_s3 + $0xba8] sm:$0xf0] }
 0x42f   : > { %v6045_v42 = vadd.f32 %v6044_v61, %v6016_v15  ;;  %v13291_v61 = vor.u32 %v15639_v33, %v13288_v13 }
 0x430   : > { %v6017_v21 = vpop.f32.mrf.mxu1  ;;  %v6075_v25 = vpop.f32.mrf.mxu3 }
 0x431   : > { %v20460_v49 = vadd.f32 %v6073_v35, %v6045_v42  ;;  %v6018_v59 = vadd.f32 %v6017_v21, %v5989_v28  ;;  %6449 = vmatmul.bf16.vlgmr.msrb.gmra.mxu0 %v23423_v29  ;;  %v23424_v35 = vld [vmem:[#allocation42_spill] sm:$0xff]  ;;  %v15655_v42 = vld [vmem:[%s22991_s3 + $0x924] sm:$0xf]  ;;  %v13352_v28 = vld [vmem:[%s22991_s3 + $0x928] sm:$0xf0]  ;;  %6388 = vmatpush.bf16.msrb.mxu2 %v13291_v61  ;;  %v20520_v4 = vpop.f32.mrf.mxu0 }
 0x432   : > { %v15623_v21 = vld [vmem:[%s22991_s3 + $0x824] sm:$0xf] }
 0x433   : > { %v23426_v29 = vld [vmem:[#allocation55_spill] sm:$0xff] }
 0x435   : > { %6309 = vmatmul.bf16.gmra.mxu3 %v23424_v35  ;;  %v15737_v35 = vld [vmem:[%s22991_s3 + $0xbb4] sm:$0xf]  ;;  %6389 = vmatpush.bf16.msrb.mxu2 %v13283_v16 }
 0x436   : > { %v6046_v39 = vpop.f32.mrf.mxu2  ;;  %v13683_v33 = vor.u32 %v15737_v35, %v13680_v34 }
 0x437   : > { %v6047_v24 = vadd.f32 %v6046_v39, %v6018_v59  ;;  %v13355_v59 = vor.u32 %v15655_v42, %v13352_v28  ;;  %v5997_v42 = vadd.f32 %v20107_v10, %v20356_v41 }
 0x438   : > { %v6020_v15 = vpop.f32.mrf.mxu1  ;;  %v6078_v1 = vpop.f32.mrf.mxu3 }
 0x439   : > { %v20495_v36 = vadd.f32 %v6075_v25, %v6047_v24  ;;  %v6021_v60 = vadd.f32 %v6020_v15, %v5992_v23  ;;  %v13224_v25 = vld [vmem:[%s22991_s3 + $0x828] sm:$0xf0]  ;;  %6417 = vmatpush.bf16.msrb.mxu3 %v13355_v59  ;;  %v13691_v23 = vor.u32 %v15739_v22, %v13688_v27  ;;  %v23427_v15 = vld [vmem:[#allocation86_spill] sm:$0xff]  ;;  %v15635_v59 = vld [vmem:[%s22991_s3 + $0x884] sm:$0xf] }
 0x43a   : > { %v13227_v38 = vor.u32 %v15623_v21, %v13224_v25  ;;  %v23428_v21 = vld [vmem:[#allocation45_spill] sm:$0xff]  ;;  %v20569_v25 = vpop.f32.mrf.mxu0  ;;  %v15651_v22 = vld [vmem:[%s22991_s3 + $0x904] sm:$0xf]  ;;  %v13336_v27 = vld [vmem:[%s22991_s3 + $0x908] sm:$0xf0] }
 0x43b   : > { %6280 = vmatmul.bf16.gmra.mxu2 %v23425_v40  ;;  %6251 = vmatmul.bf16.gmra.mxu1 %v23426_v29  ;;  %v15735_v40 = vld [vmem:[%s22991_s3 + $0xba4] sm:$0xf] }
 0x43c   : > { %6359 = vmatpush.bf16.msrb.mxu1 %v13227_v38  ;;  %6560 = vmatpush.bf16.msra.mxu0 %v13691_v23  ;;  %v13675_v29 = vor.u32 %v15735_v40, %v13672_v26  ;;  %v13208_v23 = vld [vmem:[%s22991_s3 + $0x808] sm:$0xf0]  ;;  %v13648_v40 = vld [vmem:[%s22991_s3 + $0xb78] sm:$0xf0]  ;;  %v15697_v26 = vld [vmem:[%s22991_s3 + $0xa74] sm:$0xf] }
 0x43d   : > { %v13211_v16 = vor.u32 %v15619_v54, %v13208_v23  ;;  %v15727_v54 = vld [vmem:[%s22991_s3 + $0xb64] sm:$0xf]  ;;  %v13640_v23 = vld [vmem:[%s22991_s3 + $0xb68] sm:$0xf0] }
 0x43e   : > { %v6049_v53 = vpop.f32.mrf.mxu2 }
 0x43f   : > { %v6050_v55 = vadd.f32 %v6049_v53, %v6021_v60  ;;  %v13344_v60 = vld [vmem:[%s22991_s3 + $0x918] sm:$0xf0]  ;;  %v13272_v53 = vld [vmem:[%s22991_s3 + $0x888] sm:$0xf0] }
 0x440   : > { %v6022_v50 = vpop.f32.mrf.mxu1  ;;  %v6080_v24 = vpop.f32.mrf.mxu3  ;;  %v13347_v13 = vor.u32 %v15653_v12, %v13344_v60  ;;  %6561 = vmatpush.bf16.msra.mxu0 %v13683_v33  ;;  %v5999_v12 = vadd.f32 %v20181_v2, %v20387_v8  ;;  %v15731_v60 = vld [vmem:[%s22991_s3 + $0xb84] sm:$0xf]  ;;  %v13584_v2 = vld [vmem:[%s22991_s3 + $0xaf8] sm:$0xf0] }
 0x441   : > { %v20533_v63 = vadd.f32 %v6078_v1, %v6050_v55  ;;  %v6023_v39 = vadd.f32 %v6022_v50, %v5994_v47  ;;  %6454 = vmatmul.bf16.gmra.mxu0 %v23427_v15  ;;  %v15621_v1 = vld [vmem:[%s22991_s3 + $0x814] sm:$0xf]  ;;  %v13664_v47 = vld [vmem:[%s22991_s3 + $0xb98] sm:$0xf0]  ;;  %v13275_v50 = vor.u32 %v15635_v59, %v13272_v53 }
 0x442   : > { %v13219_v11 = vor.u32 %v15621_v1, %v13216_v37  ;;  %6418 = vmatpush.bf16.msrb.mxu3 %v13347_v13  ;;  %v15733_v55 = vld [vmem:[%s22991_s3 + $0xb94] sm:$0xf]  ;;  %v23430_v15 = vld [vmem:[#allocation58_spill] sm:$0xff]  ;;  %v13656_v1 = vld [vmem:[%s22991_s3 + $0xb88] sm:$0xf0] }
 0x443   : > { %6390 = vmatpush.bf16.msrb.mxu2 %v13275_v50  ;;  %v13667_v30 = vor.u32 %v15733_v55, %v13664_v47  ;;  %v15713_v37 = vld [vmem:[%s22991_s3 + $0xaf4] sm:$0xf]  ;;  %v6002_v55 = vadd.f32 %v20242_v0, %v20409_v44  ;;  %v23432_v50 = vld [vmem:[#allocation48_spill] sm:$0xff] }
 0x444   : > { %6360 = vmatpush.bf16.msrb.mxu1 %v13219_v11  ;;  %6562 = vmatpush.bf16.msra.mxu0 %v13675_v29  ;;  %v13587_v8 = vor.u32 %v15713_v37, %v13584_v2  ;;  %v6004_v37 = vadd.f32 %v20288_v58, %v20437_v45  ;;  %v15725_v58 = vld [vmem:[%s22991_s3 + $0xb54] sm:$0xf]  ;;  %v13632_v45 = vld [vmem:[%s22991_s3 + $0xb58] sm:$0xf0] }
 0x445   : > { %6314 = vmatmul.bf16.gmra.mxu3 %v23428_v21  ;;  %v15729_v21 = vld [vmem:[%s22991_s3 + $0xb74] sm:$0xf] }
 0x446   : > { %v6051_v48 = vpop.f32.mrf.mxu2  ;;  %v13651_v59 = vor.u32 %v15729_v21, %v13648_v40  ;;  %v15693_v40 = vld [vmem:[%s22991_s3 + $0xa54] sm:$0xf] }
 0x447   : > { %v6052_v61 = vadd.f32 %v6051_v48, %v6023_v39  ;;  %v23429_v39 = vld [vmem:[#allocation57_spill] sm:$0xff]  ;;  %6499 = vmatpush.bf16.msra.mxu2 %v13587_v8 }
 0x448   : > { %v6025_v28 = vpop.f32.mrf.mxu1  ;;  %v6083_v38 = vpop.f32.mrf.mxu3  ;;  %6361 = vmatpush.bf16.msrb.mxu1 %v13211_v16  ;;  %6563 = vmatpush.bf16.msra.mxu0 %v13667_v30  ;;  %v15695_v30 = vld [vmem:[%s22991_s3 + $0xa64] sm:$0xf]  ;;  %v13512_v16 = vld [vmem:[%s22991_s3 + $0xa68] sm:$0xf0] }
 0x449   : > { %v20571_v10 = vadd.f32 %v6080_v24, %v6052_v61  ;;  %v6026_v41 = vadd.f32 %v6025_v28, %v5997_v42  ;;  %v13339_v24 = vor.u32 %v15651_v22, %v13336_v27  ;;  %v13659_v61 = vor.u32 %v15731_v60, %v13656_v1  ;;  %v20612_v42 = vpop.f32.mrf.mxu0  ;;  %v23431_v28 = vld [vmem:[#allocation90_spill] sm:$0xff]  ;;  %v15711_v22 = vld [vmem:[%s22991_s3 + $0xae4] sm:$0xf]  ;;  %v13576_v27 = vld [vmem:[%s22991_s3 + $0xae8] sm:$0xf0] }
 0x44a   : > { %v13579_v44 = vor.u32 %v15711_v22, %v13576_v27  ;;  %v6103_v27 = vadd.f32 %v20344_v51, %v20460_v49  ;;  %v23437_v49 = vld [vmem:[#allocation67_spill] sm:$0xff] }
 0x44b   : > { %6285 = vmatmul.bf16.gmra.mxu2 %v23429_v39  ;;  %6256 = vmatmul.bf16.gmra.mxu1 %v23430_v15  ;;  %v13643_v15 = vor.u32 %v15727_v54, %v13640_v23 }
 0x44c   : > { %6419 = vmatpush.bf16.msrb.mxu3 %v13339_v24  ;;  %6564 = vmatpush.bf16.msra.mxu0 %v13659_v61  ;;  %v13568_v61 = vld [vmem:[%s22991_s3 + $0xad8] sm:$0xf0] }
 0x44d   : > { %6500 = vmatpush.bf16.msra.mxu2 %v13579_v44  ;;  %v13496_v44 = vld [vmem:[%s22991_s3 + $0xa48] sm:$0xf0] }
 0x44e   : > { %v6054_v35 = vpop.f32.mrf.mxu2 }
 0x44f   : > { %v6055_v34 = vadd.f32 %v6054_v35, %v6026_v41  ;;  %v13520_v41 = vld [vmem:[%s22991_s3 + $0xa78] sm:$0xf0]  ;;  %v13515_v35 = vor.u32 %v15695_v30, %v13512_v16 }
 0x450   : > { %v6027_v33 = vpop.f32.mrf.mxu1  ;;  %v6085_v48 = vpop.f32.mrf.mxu3  ;;  %6528 = vmatpush.bf16.msra.mxu3 %v13651_v59  ;;  %v13504_v59 = vld [vmem:[%s22991_s3 + $0xa58] sm:$0xf0] }
 0x451   : > { %v20607_v13 = vadd.f32 %v6083_v38, %v6055_v34  ;;  %v6028_v11 = vadd.f32 %v6027_v33, %v5999_v12  ;;  %6459 = vmatmul.bf16.gmra.mxu0 %v23431_v28  ;;  %v13523_v38 = vor.u32 %v15697_v26, %v13520_v41  ;;  %v23433_v34 = vld [vmem:[#allocation61_spill] sm:$0xff]  ;;  %v20651_v12 = vpop.f32.mrf.mxu0  ;;  %v23434_v33 = vld [vmem:[#allocation62_spill] sm:$0xff]  ;;  %v13635_v26 = vor.u32 %v15725_v58, %v13632_v45 }
 0x452   : > { %v13507_v41 = vor.u32 %v15693_v40, %v13504_v59  ;;  %v15721_v45 = vld [vmem:[%s22991_s3 + $0xb34] sm:$0xf]  ;;  %v13616_v40 = vld [vmem:[%s22991_s3 + $0xb38] sm:$0xf0] }
 0x453   : > { %6470 = vmatpush.bf16.msra.mxu1 %v13523_v38 }
 0x454   : > { %6529 = vmatpush.bf16.msra.mxu3 %v13643_v15 }
 0x455   : > { %6319 = vmatmul.bf16.gmra.mxu3 %v23432_v50  ;;  %v15723_v50 = vld [vmem:[%s22991_s3 + $0xb44] sm:$0xf] }
 0x456   : > { %v6056_v29 = vpop.f32.mrf.mxu2 }
 0x457   : > { %v6057_v53 = vadd.f32 %v6056_v29, %v6028_v11  ;;  %6471 = vmatpush.bf16.msra.mxu1 %v13515_v35  ;;  %v23436_v35 = vld [vmem:[#allocation65_spill] sm:$0xff] }
 0x458   : > { %v6030_v47 = vpop.f32.mrf.mxu1  ;;  %v6088_v0 = vpop.f32.mrf.mxu3  ;;  %6530 = vmatpush.bf16.msra.mxu3 %v13635_v26  ;;  %v15689_v26 = vld [vmem:[%s22991_s3 + $0xa34] sm:$0xf] }
 0x459   : > { %v20639_v39 = vadd.f32 %v6085_v48, %v6057_v53  ;;  %v6031_v24 = vadd.f32 %v6030_v47, %v6002_v55  ;;  %v15709_v48 = vld [vmem:[%s22991_s3 + $0xad4] sm:$0xf]  ;;  %v20677_v38 = vpop.f32.mrf.mxu0  ;;  %v23435_v53 = vld [vmem:[#allocation52_spill] sm:$0xff]  ;;  %v15707_v55 = vld [vmem:[%s22991_s3 + $0xac4] sm:$0xf] }
 0x45a   : > { %v13571_v21 = vor.u32 %v15709_v48, %v13568_v61  ;;  %v13560_v47 = vld [vmem:[%s22991_s3 + $0xac8] sm:$0xf0]  ;;  %v6105_v48 = vadd.f32 %v20375_v57, %v20495_v36  ;;  %v13619_v57 = vor.u32 %v15721_v45, %v13616_v40  ;;  %v13488_v36 = vld [vmem:[%s22991_s3 + $0xa38] sm:$0xf0]  ;;  %v15717_v45 = vld [vmem:[%s22991_s3 + $0xb14] sm:$0xf] }
 0x45b   : > { %6290 = vmatmul.bf16.gmra.mxu2 %v23433_v34  ;;  %6261 = vmatmul.bf16.gmra.mxu1 %v23434_v33  ;;  %v13563_v54 = vor.u32 %v15707_v55, %v13560_v47  ;;  %v13491_v59 = vor.u32 %v15689_v26, %v13488_v36  ;;  %v13544_v55 = vld [vmem:[%s22991_s3 + $0xaa8] sm:$0xf0]  ;;  %v15719_v47 = vld [vmem:[%s22991_s3 + $0xb24] sm:$0xf]  ;;  %v13600_v40 = vld [vmem:[%s22991_s3 + $0xb18] sm:$0xf0] }
 0x45c   : > { %6501 = vmatpush.bf16.msra.mxu2 %v13571_v21  ;;  %6472 = vmatpush.bf16.msra.mxu1 %v13507_v41  ;;  %v15685_v26 = vld [vmem:[%s22991_s3 + $0xa14] sm:$0xf] }
 0x45e   : > { %v6059_v60 = vpop.f32.mrf.mxu2 }
 0x45f   : > { %v6060_v1 = vadd.f32 %v6059_v60, %v6031_v24  ;;  %v13624_v24 = vld [vmem:[%s22991_s3 + $0xb48] sm:$0xf0]  ;;  %v15705_v60 = vld [vmem:[%s22991_s3 + $0xab4] sm:$0xf] }
 0x460   : > { %v6032_v11 = vpop.f32.mrf.mxu1  ;;  %v6090_v28 = vpop.f32.mrf.mxu3  ;;  %v13627_v30 = vor.u32 %v15723_v50, %v13624_v24  ;;  %6502 = vmatpush.bf16.msra.mxu2 %v13563_v54  ;;  %v13608_v24 = vld [vmem:[%s22991_s3 + $0xb28] sm:$0xf0] }
 0x461   : > { %v20662_v2 = vadd.f32 %v6088_v0, %v6060_v1  ;;  %v6033_v8 = vadd.f32 %v6032_v11, %v6004_v37  ;;  %6464 = vmatmul.bf16.gmra.mxu0 %v19327_v9  ;;  %v15691_v0 = vld [vmem:[%s22991_s3 + $0xa44] sm:$0xf]  ;;  %v13552_v1 = vld [vmem:[%s22991_s3 + $0xab8] sm:$0xf0]  ;;  %v20710_v37 = vpop.f32.mrf.mxu0 }
 0x462   : > { %v13499_v16 = vor.u32 %v15691_v0, %v13496_v44  ;;  %6531 = vmatpush.bf16.msra.mxu3 %v13627_v30  ;;  %v13555_v61 = vor.u32 %v15705_v60, %v13552_v1  ;;  %v15687_v0 = vld [vmem:[%s22991_s3 + $0xa24] sm:$0xf]  ;;  %v13480_v44 = vld [vmem:[%s22991_s3 + $0xa28] sm:$0xf0]  ;;  %v13611_v30 = vor.u32 %v15719_v47, %v13608_v24  ;;  %v13536_v60 = vld [vmem:[%s22991_s3 + $0xa98] sm:$0xf0] }
 0x463   : > { %v13592_v24 = vld [vmem:[%s22991_s3 + $0xb08] sm:$0xf0] }
 0x464   : > { %6473 = vmatpush.bf16.msra.mxu1 %v13499_v16  ;;  %6503 = vmatpush.bf16.msra.mxu2 %v13555_v61  ;;  %v13483_v16 = vor.u32 %v15687_v0, %v13480_v44  ;;  %v15683_v0 = vld [vmem:[%s22991_s3 + $0xa04] sm:$0xf]  ;;  %v13464_v44 = vld [vmem:[%s22991_s3 + $0xa08] sm:$0xf0] }
 0x465   : > { %6420 = vmatmul.bf16.vlgmr.msrb.gmra.mxu3 %v23435_v53  ;;  %v15703_v53 = vld [vmem:[%s22991_s3 + $0xaa4] sm:$0xf] }
 0x466   : > { %v6061_v9 = vpop.f32.mrf.mxu2  ;;  %6532 = vmatpush.bf16.msra.mxu3 %v13619_v57  ;;  %v13547_v54 = vor.u32 %v15703_v53, %v13544_v55  ;;  %v13528_v53 = vld [vmem:[%s22991_s3 + $0xa88] sm:$0xf0]  ;;  %v15715_v55 = vld [vmem:[%s22991_s3 + $0xb04] sm:$0xf] }
 0x467   : > { %v6062_v29 = vadd.f32 %v6061_v9, %v6033_v8 }
 0x468   : > { %v6131_v23 = vpop.f32.mrf.mxu1  ;;  %v6189_v51 = vpop.f32.mrf.mxu3  ;;  %6474 = vmatpush.bf16.msra.mxu1 %v13491_v59  ;;  %6504 = vmatpush.bf16.msra.mxu2 %v13547_v54 }
 0x469   : > { %v20689_v22 = vadd.f32 %v6090_v28, %v6062_v29  ;;  %v6132_v15 = vadd.f32 %v6131_v23, %v6103_v27  ;;  %v23438_v28 = vld [vmem:[#allocation97_spill] sm:$0xff]  ;;  %v23439_v29 = vld [vmem:[#allocation56_spill] sm:$0xff]  ;;  %v6108_v27 = vadd.f32 %v20407_v43, %v20533_v63 }
 0x46a   : > { %v23440_v43 = vld [vmem:[#allocation69_spill] sm:$0xff]  ;;  %6533 = vmatpush.bf16.msra.mxu3 %v13611_v30  ;;  %v13595_v30 = vor.u32 %v15715_v55, %v13592_v24  ;;  %v13768_v24 = vld [vmem:[%s22991_s3 + $0xc68] sm:$0xf0] }
 0x46b   : > { %6391 = vmatmul.bf16.vlgmr.msrb.gmra.mxu2 %v23436_v35  ;;  %6362 = vmatmul.bf16.vlgmr.msrb.gmra.mxu1 %v23437_v49 }
 0x46c   : > { %6475 = vmatpush.bf16.msra.mxu1 %v13483_v16  ;;  %v13467_v16 = vor.u32 %v15683_v0, %v13464_v44 }
 0x46e   : > { %v6160_v34 = vpop.f32.mrf.mxu2 }
 0x46f   : > { %v6161_v33 = vadd.f32 %v6160_v34, %v6132_v15  ;;  %v20752_v15 = vpop.f32.mrf.mxu0 }
 0x470   : > { %v6133_v8 = vpop.f32.mrf.mxu1  ;;  %v6191_v58 = vpop.f32.mrf.mxu3 }
 0x471   : > { %v20712_v11 = vadd.f32 %v6189_v51, %v6161_v33  ;;  %6565 = vmatmul.bf16.vlgmr.msra.gmra.mxu0 %v23438_v28  ;;  %v6134_v21 = vadd.f32 %v6133_v8, %v6105_v48  ;;  %v23441_v51 = vld [vmem:[#allocation71_spill] sm:$0xff]  ;;  %v15701_v33 = vld [vmem:[%s22991_s3 + $0xa94] sm:$0xf]  ;;  %v6110_v48 = vadd.f32 %v20448_v62, %v20571_v10  ;;  %v23442_v28 = vld [vmem:[#allocation100_spill] sm:$0xff]  ;;  %v13603_v62 = vor.u32 %v15717_v45, %v13600_v40 }
 0x472   : > { %v13539_v61 = vor.u32 %v15701_v33, %v13536_v60  ;;  %v13472_v10 = vld [vmem:[%s22991_s3 + $0xa18] sm:$0xf0]  ;;  %v15793_v60 = vld [vmem:[%s22991_s3 + $0xd74] sm:$0xf] }
 0x473   : > { %v13475_v36 = vor.u32 %v15685_v26, %v13472_v10  ;;  %6534 = vmatpush.bf16.msra.mxu3 %v13603_v62  ;;  %v13840_v33 = vld [vmem:[%s22991_s3 + $0xcf8] sm:$0xf0] }
 0x474   : > { %6505 = vmatpush.bf16.msra.mxu2 %v13539_v61  ;;  %v6115_v61 = vadd.f32 %v20520_v4, %v20639_v39 }
 0x475   : > { %6425 = vmatmul.bf16.gmra.mxu3 %v23439_v29  ;;  %6476 = vmatpush.bf16.msra.mxu1 %v13475_v36  ;;  %v15699_v29 = vld [vmem:[%s22991_s3 + $0xa84] sm:$0xf]  ;;  %v23446_v36 = vld [vmem:[#allocation64_spill] sm:$0xff] }
 0x476   : > { %v6162_v41 = vpop.f32.mrf.mxu2  ;;  %v13531_v54 = vor.u32 %v15699_v29, %v13528_v53  ;;  %v6118_v53 = vadd.f32 %v20569_v25, %v20662_v2  ;;  %v23448_v2 = vld [vmem:[#allocation79_spill] sm:$0xff] }
 0x477   : > { %v6163_v9 = vadd.f32 %v6162_v41, %v6134_v21  ;;  %v20779_v57 = vpop.f32.mrf.mxu0  ;;  %6535 = vmatpush.bf16.msra.mxu3 %v13595_v30 }
 0x478   : > { %v6136_v23 = vpop.f32.mrf.mxu1  ;;  %v6194_v63 = vpop.f32.mrf.mxu3  ;;  %6506 = vmatpush.bf16.msra.mxu2 %v13531_v54  ;;  %v15759_v54 = vld [vmem:[%s22991_s3 + $0xc64] sm:$0xf] }
 0x479   : > { %v20739_v50 = vadd.f32 %v6191_v58, %v6163_v9  ;;  %v6137_v35 = vadd.f32 %v6136_v23, %v6108_v27  ;;  %v23443_v9 = vld [vmem:[#allocation60_spill] sm:$0xff]  ;;  %v6113_v27 = vadd.f32 %v20481_v20, %v20607_v13  ;;  %v23445_v13 = vld [vmem:[#allocation75_spill] sm:$0xff]  ;;  %6477 = vmatpush.bf16.msra.mxu1 %v13467_v16  ;;  %v23447_v16 = vld [vmem:[#allocation77_spill] sm:$0xff] }
 0x47b   : > { %6396 = vmatmul.bf16.gmra.mxu2 %v23440_v43  ;;  %6367 = vmatmul.bf16.gmra.mxu1 %v23441_v51  ;;  %v23444_v43 = vld [vmem:[#allocation73_spill] sm:$0xff] }
 0x47e   : > { %v6165_v49 = vpop.f32.mrf.mxu2 }
 0x47f   : > { %v6166_v34 = vadd.f32 %v6165_v49, %v6137_v35  ;;  %v20806_v51 = vpop.f32.mrf.mxu0 }
 0x480   : > { %v6138_v8 = vpop.f32.mrf.mxu1  ;;  %v6196_v58 = vpop.f32.mrf.mxu3 }
 0x481   : > { %v20762_v1 = vadd.f32 %v6194_v63, %v6166_v34  ;;  %6570 = vmatmul.bf16.gmra.mxu0 %v23442_v28  ;;  %v6139_v21 = vadd.f32 %v6138_v8, %v6110_v48  ;;  %v15777_v34 = vld [vmem:[%s22991_s3 + $0xcf4] sm:$0xf]  ;;  %v13904_v28 = vld [vmem:[%s22991_s3 + $0xd78] sm:$0xf0] }
 0x482   : > { %v13843_v8 = vor.u32 %v15777_v34, %v13840_v33  ;;  %v13907_v40 = vor.u32 %v15793_v60, %v13904_v28  ;;  %v6120_v34 = vadd.f32 %v20612_v42, %v20689_v22  ;;  %v13888_v60 = vld [vmem:[%s22991_s3 + $0xd58] sm:$0xf0] }
 0x484   : > { %6615 = vmatpush.bf16.msrb.mxu2 %v13843_v8  ;;  %6644 = vmatpush.bf16.msrb.mxu3 %v13907_v40  ;;  %v13760_v8 = vld [vmem:[%s22991_s3 + $0xc58] sm:$0xf0] }
 0x485   : > { %6430 = vmatmul.bf16.gmra.mxu3 %v23443_v9 }
 0x486   : > { %v6167_v59 = vpop.f32.mrf.mxu2 }
 0x487   : > { %v6168_v41 = vadd.f32 %v6167_v59, %v6139_v21  ;;  %v15761_v21 = vld [vmem:[%s22991_s3 + $0xc74] sm:$0xf]  ;;  %v15775_v59 = vld [vmem:[%s22991_s3 + $0xce4] sm:$0xf]  ;;  %v20841_v9 = vpop.f32.mrf.mxu0 }
 0x488   : > { %v6141_v23 = vpop.f32.mrf.mxu1  ;;  %v6199_v20 = vpop.f32.mrf.mxu3 }
 0x489   : > { %v20791_v47 = vadd.f32 %v6196_v58, %v6168_v41  ;;  %v6142_v35 = vadd.f32 %v6141_v23, %v6113_v27  ;;  %v13776_v58 = vld [vmem:[%s22991_s3 + $0xc78] sm:$0xf0]  ;;  %v13832_v41 = vld [vmem:[%s22991_s3 + $0xce8] sm:$0xf0]  ;;  %v13771_v23 = vor.u32 %v15759_v54, %v13768_v24 }
 0x48a   : > { %v13779_v26 = vor.u32 %v15761_v21, %v13776_v58  ;;  %v13835_v55 = vor.u32 %v15775_v59, %v13832_v41  ;;  %v13896_v27 = vld [vmem:[%s22991_s3 + $0xd68] sm:$0xf0] }
 0x48b   : > { %6401 = vmatmul.bf16.gmra.mxu2 %v23444_v43  ;;  %6372 = vmatmul.bf16.gmra.mxu1 %v23445_v13  ;;  %v13824_v13 = vld [vmem:[%s22991_s3 + $0xcd8] sm:$0xf0]  ;;  %v13880_v41 = vld [vmem:[%s22991_s3 + $0xd48] sm:$0xf0] }
 0x48c   : > { %6586 = vmatpush.bf16.msrb.mxu1 %v13779_v26  ;;  %6616 = vmatpush.bf16.msrb.mxu2 %v13835_v55 }
 0x48e   : > { %v6170_v63 = vpop.f32.mrf.mxu2 }
 0x48f   : > { %v6171_v49 = vadd.f32 %v6170_v63, %v6142_v35  ;;  %v15789_v63 = vld [vmem:[%s22991_s3 + $0xd54] sm:$0xf] }
 0x490   : > { %v6143_v45 = vpop.f32.mrf.mxu1  ;;  %v6201_v4 = vpop.f32.mrf.mxu3  ;;  %6587 = vmatpush.bf16.msrb.mxu1 %v13771_v23  ;;  %v13891_v21 = vor.u32 %v15789_v63, %v13888_v60  ;;  %v13744_v63 = vld [vmem:[%s22991_s3 + $0xc38] sm:$0xf0] }
 0x491   : > { %v20817_v48 = vadd.f32 %v6199_v20, %v6171_v49  ;;  %6575 = vmatmul.bf16.gmra.mxu0 %v19533_v7  ;;  %v6144_v62 = vadd.f32 %v6143_v45, %v6115_v61  ;;  %v15791_v7 = vld [vmem:[%s22991_s3 + $0xd64] sm:$0xf]  ;;  %v15773_v20 = vld [vmem:[%s22991_s3 + $0xcd4] sm:$0xf]  ;;  %v20880_v45 = vpop.f32.mrf.mxu0 }
 0x492   : > { %v13899_v44 = vor.u32 %v15791_v7, %v13896_v27  ;;  %v13827_v33 = vor.u32 %v15773_v20, %v13824_v13  ;;  %v15757_v61 = vld [vmem:[%s22991_s3 + $0xc54] sm:$0xf]  ;;  %v15755_v7 = vld [vmem:[%s22991_s3 + $0xc44] sm:$0xf]  ;;  %v13872_v20 = vld [vmem:[%s22991_s3 + $0xd38] sm:$0xf0] }
 0x493   : > { %v13763_v58 = vor.u32 %v15757_v61, %v13760_v8  ;;  %v15753_v13 = vld [vmem:[%s22991_s3 + $0xc34] sm:$0xf] }
 0x494   : > { %6645 = vmatpush.bf16.msrb.mxu3 %v13899_v44  ;;  %6617 = vmatpush.bf16.msrb.mxu2 %v13827_v33  ;;  %v13747_v60 = vor.u32 %v15753_v13, %v13744_v63  ;;  %v23455_v13 = vld [vmem:[#allocation76_spill] sm:$0xff]  ;;  %v15763_v63 = vld [vmem:[%s22991_s3 + $0xc84] sm:$0xf] }
 0x495   : > { %6435 = vmatmul.bf16.gmra.mxu3 %v23446_v36  ;;  %6588 = vmatpush.bf16.msrb.mxu1 %v13763_v58  ;;  %v6219_v36 = vadd.f32 %v20651_v12, %v20712_v11  ;;  %v23451_v11 = vld [vmem:[#allocation83_spill] sm:$0xff]  ;;  %v13800_v58 = vld [vmem:[%s22991_s3 + $0xca8] sm:$0xf0] }
 0x496   : > { %v6172_v39 = vpop.f32.mrf.mxu2 }
 0x497   : > { %v6173_v10 = vadd.f32 %v6172_v39, %v6144_v62  ;;  %v23449_v62 = vld [vmem:[#allocation68_spill] sm:$0xff] }
 0x498   : > { %v6146_v0 = vpop.f32.mrf.mxu1  ;;  %v6204_v25 = vpop.f32.mrf.mxu3  ;;  %6646 = vmatpush.bf16.msrb.mxu3 %v13891_v21  ;;  %v13816_v39 = vld [vmem:[%s22991_s3 + $0xcc8] sm:$0xf0]  ;;  %v15767_v21 = vld [vmem:[%s22991_s3 + $0xca4] sm:$0xf] }
 0x499   : > { %v20843_v29 = vadd.f32 %v6201_v4, %v6173_v10  ;;  %v6147_v30 = vadd.f32 %v6146_v0, %v6118_v53  ;;  %v15771_v4 = vld [vmem:[%s22991_s3 + $0xcc4] sm:$0xf]  ;;  %v13752_v53 = vld [vmem:[%s22991_s3 + $0xc48] sm:$0xf0]  ;;  %v23450_v0 = vld [vmem:[#allocation81_spill] sm:$0xff] }
 0x49a   : > { %v13819_v59 = vor.u32 %v15771_v4, %v13816_v39  ;;  %v13755_v54 = vor.u32 %v15755_v7, %v13752_v53  ;;  %v15751_v4 = vld [vmem:[%s22991_s3 + $0xc24] sm:$0xf]  ;;  %v13736_v39 = vld [vmem:[%s22991_s3 + $0xc28] sm:$0xf0]  ;;  %v23453_v7 = vld [vmem:[#allocation85_spill] sm:$0xff] }
 0x49b   : > { %6406 = vmatmul.bf16.gmra.mxu2 %v23447_v16  ;;  %6377 = vmatmul.bf16.gmra.mxu1 %v23448_v2  ;;  %v13808_v16 = vld [vmem:[%s22991_s3 + $0xcb8] sm:$0xf0] }
 0x49c   : > { %6618 = vmatpush.bf16.msrb.mxu2 %v13819_v59  ;;  %6589 = vmatpush.bf16.msrb.mxu1 %v13755_v54  ;;  %v13739_v59 = vor.u32 %v15751_v4, %v13736_v39  ;;  %v13792_v54 = vld [vmem:[%s22991_s3 + $0xc98] sm:$0xf0] }
 0x49e   : > { %v6175_v35 = vpop.f32.mrf.mxu2 }
 0x49f   : > { %v6176_v43 = vadd.f32 %v6175_v35, %v6147_v30  ;;  %v15769_v30 = vld [vmem:[%s22991_s3 + $0xcb4] sm:$0xf]  ;;  %v6221_v35 = vadd.f32 %v20677_v38, %v20739_v50 }
 0x4a0   : > { %v6148_v28 = vpop.f32.mrf.mxu1  ;;  %v6206_v22 = vpop.f32.mrf.mxu3  ;;  %6590 = vmatpush.bf16.msrb.mxu1 %v13747_v60 }
 0x4a1   : > { %v20867_v49 = vadd.f32 %v6204_v25, %v6176_v43  ;;  %6580 = vmatmul.bf16.gmra.mxu0 %v19609_v56  ;;  %v6149_v42 = vadd.f32 %v6148_v28, %v6120_v34  ;;  %v15787_v56 = vld [vmem:[%s22991_s3 + $0xd44] sm:$0xf]  ;;  %v15785_v25 = vld [vmem:[%s22991_s3 + $0xd34] sm:$0xf]  ;;  %v13811_v43 = vor.u32 %v15769_v30, %v13808_v16  ;;  %v23452_v28 = vld [vmem:[#allocation72_spill] sm:$0xff] }
 0x4a2   : > { %v13883_v27 = vor.u32 %v15787_v56, %v13880_v41  ;;  %v13875_v33 = vor.u32 %v15785_v25, %v13872_v20  ;;  %v13728_v30 = vld [vmem:[%s22991_s3 + $0xc18] sm:$0xf0] }
 0x4a3   : > { %6619 = vmatpush.bf16.msrb.mxu2 %v13811_v43 }
 0x4a4   : > { %6647 = vmatpush.bf16.msrb.mxu3 %v13883_v27  ;;  %6591 = vmatpush.bf16.msrb.mxu1 %v13739_v59  ;;  %v15765_v27 = vld [vmem:[%s22991_s3 + $0xc94] sm:$0xf] }
 0x4a5   : > { %6536 = vmatmul.bf16.vlgmr.msra.gmra.mxu3 %v23449_v62  ;;  %v13864_v62 = vld [vmem:[%s22991_s3 + $0xd28] sm:$0xf0] }
 0x4a6   : > { %v6177_v40 = vpop.f32.mrf.mxu2 }
 0x4a7   : > { %v6178_v26 = vadd.f32 %v6177_v40, %v6149_v42  ;;  %v15783_v42 = vld [vmem:[%s22991_s3 + $0xd24] sm:$0xf]  ;;  %v6224_v40 = vadd.f32 %v20710_v37, %v20762_v1 }
 0x4a8   : > { %v6247_v55 = vpop.f32.mrf.mxu1  ;;  %v6305_v12 = vpop.f32.mrf.mxu3  ;;  %6648 = vmatpush.bf16.msrb.mxu3 %v13875_v33  ;;  %v23454_v1 = vld [vmem:[#allocation87_spill] sm:$0xff] }
 0x4a9   : > { %v20893_v10 = vadd.f32 %v6206_v22, %v6178_v26  ;;  %v6248_v24 = vadd.f32 %v6247_v55, %v6219_v36  ;;  %v13803_v26 = vor.u32 %v15767_v21, %v13800_v58  ;;  %v13867_v36 = vor.u32 %v15783_v42, %v13864_v62  ;;  %v15779_v33 = vld [vmem:[%s22991_s3 + $0xd04] sm:$0xf]  ;;  %v6334_v21 = vpop.f32.mrf.mxu0  ;;  %v23456_v62 = vld [vmem:[#allocation89_spill] sm:$0xff] }
 0x4ab   : > { %6507 = vmatmul.bf16.vlgmr.msra.gmra.mxu2 %v23450_v0  ;;  %6478 = vmatmul.bf16.vlgmr.msra.gmra.mxu1 %v23451_v11  ;;  %v13795_v11 = vor.u32 %v15765_v27, %v13792_v54  ;;  %v6234_v54 = vadd.f32 %v20841_v9, %v20867_v49  ;;  %v23461_v49 = vld [vmem:[#allocation84_spill] sm:$0xff] }
 0x4ac   : > { %6620 = vmatpush.bf16.msrb.mxu2 %v13803_v26  ;;  %6649 = vmatpush.bf16.msrb.mxu3 %v13867_v36  ;;  %v6231_v36 = vadd.f32 %v20806_v51, %v20843_v29  ;;  %v23460_v51 = vld [vmem:[#allocation94_spill] sm:$0xff] }
 0x4ae   : > { %v6276_v44 = vpop.f32.mrf.mxu2 }
 0x4af   : > { %v6277_v23 = vadd.f32 %v6276_v44, %v6248_v24  ;;  %v15781_v24 = vld [vmem:[%s22991_s3 + $0xd14] sm:$0xf]  ;;  %v13856_v44 = vld [vmem:[%s22991_s3 + $0xd18] sm:$0xf0] }
 0x4b0   : > { %v6249_v34 = vpop.f32.mrf.mxu1  ;;  %v6307_v8 = vpop.f32.mrf.mxu3  ;;  %v13859_v25 = vor.u32 %v15781_v24, %v13856_v44  ;;  %6621 = vmatpush.bf16.msrb.mxu2 %v13795_v11  ;;  %v23459_v11 = vld [vmem:[#allocation93_spill] sm:$0xff] }
 0x4b1   : > { %v20917_v2 = vadd.f32 %v6305_v12, %v6277_v23  ;;  %v6250_v61 = vadd.f32 %v6249_v34, %v6221_v35  ;;  %v6226_v12 = vadd.f32 %v20752_v15, %v20791_v47  ;;  %v15749_v23 = vld [vmem:[%s22991_s3 + $0xc14] sm:$0xf]  ;;  %v13784_v34 = vld [vmem:[%s22991_s3 + $0xc88] sm:$0xf0] }
 0x4b2   : > { %v13731_v35 = vor.u32 %v15749_v23, %v13728_v30  ;;  %6650 = vmatpush.bf16.msrb.mxu3 %v13859_v25  ;;  %v6236_v25 = vadd.f32 %v20880_v45, %v20893_v10 }
 0x4b4   : > { %6592 = vmatpush.bf16.msrb.mxu1 %v13731_v35 }
 0x4b5   : > { %6541 = vmatmul.bf16.gmra.mxu3 %v23452_v28  ;;  %v13720_v28 = vld [vmem:[%s22991_s3 + $0xc08] sm:$0xf0] }
 0x4b6   : > { %v6278_v38 = vpop.f32.mrf.mxu2 }
 0x4b7   : > { %v6279_v50 = vadd.f32 %v6278_v38, %v6250_v61  ;;  %v6229_v61 = vadd.f32 %v20779_v57, %v20817_v48  ;;  %v13848_v38 = vld [vmem:[%s22991_s3 + $0xd08] sm:$0xf0]  ;;  %v23457_v48 = vld [vmem:[#allocation91_spill] sm:$0xff] }
 0x4b8   : > { %v6252_v56 = vpop.f32.mrf.mxu1  ;;  %v6310_v37 = vpop.f32.mrf.mxu3  ;;  %v13851_v42 = vor.u32 %v15779_v33, %v13848_v38  ;;  %v23463_v38 = vld [vmem:[#allocation98_spill] sm:$0xff] }
 0x4b9   : > { %v20940_v22 = vadd.f32 %v6307_v8, %v6279_v50  ;;  %v6253_v41 = vadd.f32 %v6252_v56, %v6224_v40  ;;  %v13787_v8 = vor.u32 %v15763_v63, %v13784_v34  ;;  %v15747_v50 = vld [vmem:[%s22991_s3 + $0xc04] sm:$0xf]  ;;  %v6335_v63 = vadd.f32 %v6334_v21, %v20917_v2 }
 0x4ba   : > { %v13723_v40 = vor.u32 %v15747_v50, %v13720_v28  ;;  %6651 = vmatpush.bf16.msrb.mxu3 %v13851_v42 }
 0x4bb   : > { %6512 = vmatmul.bf16.gmra.mxu2 %v23453_v7  ;;  %6483 = vmatmul.bf16.gmra.mxu1 %v23454_v1 }
 0x4bc   : > { %6622 = vmatpush.bf16.msrb.mxu2 %v13787_v8  ;;  %6593 = vmatpush.bf16.msrb.mxu1 %v13723_v40 }
 0x4be   : > { %v6281_v53 = vpop.f32.mrf.mxu2 }
 0x4bf   : > { %v6282_v55 = vadd.f32 %v6281_v53, %v6253_v41 }
 0x4c0   : > { %v6254_v16 = vpop.f32.mrf.mxu1  ;;  %v6312_v20 = vpop.f32.mrf.mxu3 }
 0x4c1   : > { %v20964_v0 = vadd.f32 %v6310_v37, %v6282_v55  ;;  %v6255_v43 = vadd.f32 %v6254_v16, %v6226_v12  ;;  %v21004_v37 = vpop.f32.mrf.mxu0  ;;  %v23458_v55 = vld [vmem:[#allocation80_spill] sm:$0xff] }
 0x4c5   : > { %6546 = vmatmul.bf16.gmra.mxu3 %v23455_v13 }
 0x4c6   : > { %v6283_v15 = vpop.f32.mrf.mxu2 }
 0x4c7   : > { %v6284_v47 = vadd.f32 %v6283_v15, %v6255_v43 }
 0x4c8   : > { %v6257_v58 = vpop.f32.mrf.mxu1  ;;  %v6315_v57 = vpop.f32.mrf.mxu3 }
 0x4c9   : > { %v20987_v60 = vadd.f32 %v6312_v20, %v6284_v47  ;;  %v6258_v26 = vadd.f32 %v6257_v58, %v6229_v61  ;;  %v6339_v29 = vpop.f32.mrf.mxu0  ;;  %v23462_v61 = vld [vmem:[#allocation96_spill] sm:$0xff] }
 0x4ca   : > { %v6340_v2 = vadd.f32 %v6339_v29, %v20964_v0  ;;  %v23467_v0 = vld [vmem:[#allocation92_spill] sm:$0xff] }
 0x4cb   : > { %6517 = vmatmul.bf16.gmra.mxu2 %v23456_v62  ;;  %6488 = vmatmul.bf16.gmra.mxu1 %v23457_v48 }
 0x4ce   : > { %v6286_v4 = vpop.f32.mrf.mxu2 }
 0x4cf   : > { %v6287_v39 = vadd.f32 %v6286_v4, %v6258_v26  ;;  %v23464_v26 = vld [vmem:[#allocation88_spill] sm:$0xff] }
 0x4d0   : > { %v6259_v59 = vpop.f32.mrf.mxu1  ;;  %v6317_v7 = vpop.f32.mrf.mxu3 }
 0x4d1   : > { %v6316_v56 = vadd.f32 %v6315_v57, %v6287_v39  ;;  %v6260_v41 = vadd.f32 %v6259_v59, %v6231_v36  ;;  %v21015_v9 = vpop.f32.mrf.mxu0  ;;  %v23465_v57 = vld [vmem:[#allocation99_spill] sm:$0xff]  ;;  %v23466_v39 = vld [vmem:[#allocation101_spill] sm:$0xff] }
 0x4d5   : > { %6551 = vmatmul.bf16.gmra.mxu3 %v23458_v55 }
 0x4d6   : > { %v6288_v1 = vpop.f32.mrf.mxu2 }
 0x4d7   : > { %v6289_v53 = vadd.f32 %v6288_v1, %v6260_v41 }
 0x4d8   : > { %v6262_v24 = vpop.f32.mrf.mxu1  ;;  %v6320_v44 = vpop.f32.mrf.mxu3 }
 0x4d9   : > { %v21007_v27 = vadd.f32 %v6317_v7, %v6289_v53  ;;  %v6263_v12 = vadd.f32 %v6262_v24, %v6234_v54  ;;  %v6344_v28 = vpop.f32.mrf.mxu0 }
 0x4da   : > { %v6345_v54 = vadd.f32 %v6344_v28, %v6316_v56 }
 0x4db   : > { %6522 = vmatmul.bf16.gmra.mxu2 %v23459_v11  ;;  %6493 = vmatmul.bf16.gmra.mxu1 %v23460_v51  ;;  %v23468_v11 = vld [vmem:[#allocation102_spill] sm:$0xff] }
 0x4de   : > { %v6291_v23 = vpop.f32.mrf.mxu2 }
 0x4df   : > { %v6292_v30 = vadd.f32 %v6291_v23, %v6263_v12 }
 0x4e0   : > { %v6264_v35 = vpop.f32.mrf.mxu1  ;;  %v6322_v20 = vpop.f32.mrf.mxu3 }
 0x4e1   : > { %v6321_v16 = vadd.f32 %v6320_v44, %v6292_v30  ;;  %v6265_v43 = vadd.f32 %v6264_v35, %v6236_v25  ;;  %v21034_v4 = vpop.f32.mrf.mxu0 }
 0x4e5   : > { %6652 = vmatmul.bf16.vlgmr.msrb.gmra.mxu3 %v23461_v49 }
 0x4e6   : > { %v6293_v15 = vpop.f32.mrf.mxu2 }
 0x4e7   : > { %v6294_v47 = vadd.f32 %v6293_v15, %v6265_v43 }
 0x4e8   : > { %v6363_v34 = vpop.f32.mrf.mxu1  ;;  %v6421_v8 = vpop.f32.mrf.mxu3 }
 0x4e9   : > { %v21018_v13 = vadd.f32 %v6322_v20, %v6294_v47  ;;  %v6364_v33 = vadd.f32 %v6363_v34, %v6335_v63  ;;  %v6349_v53 = vpop.f32.mrf.mxu0  ;;  %v23469_v20 = vld [vmem:[#allocation95_spill] sm:$0xff] }
 0x4ea   : > { %v6350_v56 = vadd.f32 %v6349_v53, %v6321_v16 }
 0x4eb   : > { %6623 = vmatmul.bf16.vlgmr.msrb.gmra.mxu2 %v23462_v61  ;;  %6594 = vmatmul.bf16.vlgmr.msrb.gmra.mxu1 %v23463_v38 }
 0x4ee   : > { %v6392_v45 = vpop.f32.mrf.mxu2 }
 0x4ef   : > { %v6393_v10 = vadd.f32 %v6392_v45, %v6364_v33 }
 0x4f0   : > { %v21025_v58 = vpop.f32.mrf.mxu1  ;;  %v21027_v42 = vpop.f32.mrf.mxu3 }
 0x4f1   : > { %v21023_v50 = vadd.f32 %v6421_v8, %v6393_v10  ;;  %v21046_v23 = vpop.f32.mrf.mxu0 }
 0x4f5   : > { %6657 = vmatmul.bf16.gmra.mxu3 %v23464_v26 }
 0x4f6   : > { %v21029_v40 = vpop.f32.mrf.mxu2 }
 0x4f8   : > { %v6368_v21 = vpop.f32.mrf.mxu1  ;;  %v6426_v48 = vpop.f32.mrf.mxu3 }
 0x4f9   : > { %v6369_v62 = vadd.f32 %v6368_v21, %v6340_v2  ;;  %v6450_v15 = vpop.f32.mrf.mxu0 }
 0x4fb   : > { %6628 = vmatmul.bf16.gmra.mxu2 %v23465_v57  ;;  %6599 = vmatmul.bf16.gmra.mxu1 %v23466_v39 }
 0x4fe   : > { %v6397_v36 = vpop.f32.mrf.mxu2 }
 0x4ff   : > { %v6398_v59 = vadd.f32 %v6397_v36, %v6369_v62 }
 0x500   : > { %v21037_v7 = vpop.f32.mrf.mxu1  ;;  %v21039_v1 = vpop.f32.mrf.mxu3 }
 0x501   : > { %v6427_v41 = vadd.f32 %v6426_v48, %v6398_v59  ;;  %v6452_v38 = vpop.f32.mrf.mxu0 }
 0x505   : > { %6662 = vmatmul.bf16.gmra.mxu3 %v23467_v0 }
 0x506   : > { %v21041_v55 = vpop.f32.mrf.mxu2 }
 0x508   : > { %v6373_v24 = vpop.f32.mrf.mxu1  ;;  %v6431_v44 = vpop.f32.mrf.mxu3 }
 0x509   : > { %v6374_v12 = vadd.f32 %v6373_v24, %v6345_v54  ;;  %v6455_v28 = vpop.f32.mrf.mxu0 }
 0x50b   : > { %6633 = vmatmul.bf16.gmra.mxu2 %v23468_v11  ;;  %6604 = vmatmul.bf16.gmra.mxu1 %v19546_v46 }
 0x50e   : > { %v6402_v51 = vpop.f32.mrf.mxu2 }
 0x50f   : > { %v6403_v29 = vadd.f32 %v6402_v51, %v6374_v12 }
 0x510   : > { %v21048_v25 = vpop.f32.mrf.mxu1  ;;  %v21050_v35 = vpop.f32.mrf.mxu3 }
 0x511   : > { %v6432_v30 = vadd.f32 %v6431_v44, %v6403_v29  ;;  %v21065_v62 = vpop.f32.mrf.mxu0 }
 0x515   : > { %6667 = vmatmul.bf16.gmra.mxu3 %v23469_v20 }
 0x516   : > { %v21052_v43 = vpop.f32.mrf.mxu2 }
 0x518   : > { %v6378_v47 = vpop.f32.mrf.mxu1  ;;  %v6436_v46 = vpop.f32.mrf.mxu3 }
 0x519   : > { %v6379_v49 = vadd.f32 %v6378_v47, %v6350_v56  ;;  %v6460_v0 = vpop.f32.mrf.mxu0 }
 0x51a   : > { %v6461_v11 = vadd.f32 %v6460_v0, %v6432_v30  ;;  %v6673_v0 = vmin.f32 %v19905_v18, 20.0 }
 0x51b   : > { %6638 = vmatmul.bf16.gmra.mxu2 %v19590_v5  ;;  %6609 = vmatmul.bf16.gmra.mxu1 %v19622_v3  ;;  %v6456_v3 = vadd.f32 %v6455_v28, %v6427_v41 }
 0x51e   : > { %v6407_v63 = vpop.f32.mrf.mxu2 }
 0x51f   : > { %v6408_v34 = vadd.f32 %v6407_v63, %v6379_v49 }
 0x520   : > { %v21057_v61 = vpop.f32.mrf.mxu1  ;;  %v21059_v8 = vpop.f32.mrf.mxu3 }
 0x521   : > { %v6437_v33 = vadd.f32 %v6436_v46, %v6408_v34  ;;  %v21075_v20 = vpop.f32.mrf.mxu0 }
 0x526   : > { %v21061_v45 = vpop.f32.mrf.mxu2 }
 0x528   : > { %v6479_v10 = vpop.f32.mrf.mxu1  ;;  %v6537_v16 = vpop.f32.mrf.mxu3 }
 0x529   : > { %v6465_v63 = vpop.f32.mrf.mxu0 }
 0x52a   : > { %v6466_v28 = vadd.f32 %v6465_v63, %v6437_v33  ;;  %v6337_v33 = vadd.f32 %v21004_v37, %v20940_v22 }
 0x52e   : > { %v6508_v26 = vpop.f32.mrf.mxu2 }
 0x530   : > { %v6481_v2 = vpop.f32.mrf.mxu1  ;;  %v21063_v21 = vpop.f32.mrf.mxu3 }
 0x536   : > { %v6510_v5 = vpop.f32.mrf.mxu2 }
 0x538   : > { %v6484_v57 = vpop.f32.mrf.mxu1  ;;  %v6542_v39 = vpop.f32.mrf.mxu3 }
 0x539   : > { %v6485_v48 = vadd.f32 %v6484_v57, %v6456_v3 }
 0x53e   : > { %v6513_v36 = vpop.f32.mrf.mxu2 }
 0x53f   : > { %v6514_v59 = vadd.f32 %v6513_v36, %v6485_v48 }
 0x540   : > { %v21069_v54 = vpop.f32.mrf.mxu1  ;;  %v21071_v24 = vpop.f32.mrf.mxu3 }
 0x541   : > { %v21067_v53 = vadd.f32 %v6542_v39, %v6514_v59  ;;  %v6451_v39 = vadd.f32 %v6450_v15, %v21023_v50  ;;  %v21086_v59 = vpop.f32.mrf.mxu0 }
 0x546   : > { %v21073_v12 = vpop.f32.mrf.mxu2 }
 0x548   : > { %v6489_v44 = vpop.f32.mrf.mxu1  ;;  %v6547_v29 = vpop.f32.mrf.mxu3 }
 0x549   : > { %v6490_v51 = vadd.f32 %v6489_v44, %v6461_v11  ;;  %v6480_v11 = vadd.f32 %v6479_v10, %v6451_v39  ;;  %v6566_v10 = vpop.f32.mrf.mxu0 }
 0x54e   : > { %v6518_v41 = vpop.f32.mrf.mxu2 }
 0x54f   : > { %v6519_v56 = vadd.f32 %v6518_v41, %v6490_v51  ;;  %v6689_v41 = vmul.f32 1.442695, %v6673_v0 }
 0x550   : > { %v21079_v49 = vpop.f32.mrf.mxu1  ;;  %v21081_v46 = vpop.f32.mrf.mxu3 }
 0x551   : > { %v21077_v47 = vadd.f32 %v6547_v29, %v6519_v56  ;;  %v6509_v29 = vadd.f32 %v6508_v26, %v6480_v11  ;;  %v6366_v56 = vadd.f32 %v21025_v58, %v6337_v33  ;;  %16142 = vpow2.f32 %v6689_v41 }
 0x552   : > { %v6675_v33 = vmin.f32 %v19929_v31, 20.0 }
 0x553   : > { %v6538_v15 = vadd.f32 %v6537_v16, %v6509_v29 }
 0x556   : > { %v21083_v34 = vpop.f32.mrf.mxu2 }
 0x557   : > { %v16143_v39 = vpop.eup %16142 }
 0x558   : > { %v6494_v3 = vpop.f32.mrf.mxu1  ;;  %v6552_v30 = vpop.f32.mrf.mxu3  ;;  %v6721_v0 = vadd.f32 2.0, %v16143_v39 }
 0x559   : > { %v6495_v57 = vadd.f32 %v6494_v3, %v6466_v28  ;;  %v6395_v28 = vadd.f32 %v21029_v40, %v6366_v56  ;;  %v6693_v56 = vmul.f32 1.442695, %v6675_v33 }
 0x55a   : > { %v6737_v41 = vmul.f32 %v16143_v39, %v6721_v0 }
 0x55e   : > { %v6523_v48 = vpop.f32.mrf.mxu2 }
 0x55f   : > { %v6524_v36 = vadd.f32 %v6523_v48, %v6495_v57  ;;  %v6567_v57 = vadd.f32 %v6566_v10, %v6538_v15 }
 0x560   : > { %v21091_v51 = vpop.f32.mrf.mxu1  ;;  %v21096_v63 = vpop.f32.mrf.mxu3 }
 0x561   : > { %v21089_v44 = vadd.f32 %v6552_v30, %v6524_v36  ;;  %23471 = vst [vmem:[#allocation50_spill] sm:$0xff] %v21096_v63  ;;  %v6424_v30 = vadd.f32 %v21027_v42, %v6395_v28  ;;  %v6753_v42 = vadd.f32 2.0, %v6737_v41  ;;  %v6568_v28 = vpop.f32.mrf.mxu0 }
 0x563   : > { %23470 = vst [vmem:[#allocation26_spill] sm:$0xff] %v21089_v44  ;;  %v6453_v37 = vadd.f32 %v6452_v38, %v6424_v30  ;;  %v15874_v38 = vld [vmem:[%s22993_s5 + $0x38] sm:$0xff] }
 0x564   : > { %9151 = vmatpush.bf16.msrb.mxu0 %v15874_v38 }
 0x565   : > { %v6482_v11 = vadd.f32 %v6481_v2, %v6453_v37 }
 0x566   : > { %v21098_v50 = vpop.f32.mrf.mxu2 }
 0x567   : > { %23472 = vst [vmem:[#allocation23_spill] sm:$0xff] %v21098_v50  ;;  %v6511_v29 = vadd.f32 %v6510_v5, %v6482_v11 }
 0x568   : > { %v6595_v3 = vpop.f32.mrf.mxu1  ;;  %v6653_v36 = vpop.f32.mrf.mxu3 }
 0x569   : > { %v6596_v26 = vadd.f32 %v6595_v3, %v6567_v57  ;;  %v6540_v15 = vadd.f32 %v21063_v21, %v6511_v29 }
 0x56b   : > { %v6569_v10 = vadd.f32 %v6568_v28, %v6540_v15 }
 0x56e   : > { %v6624_v48 = vpop.f32.mrf.mxu2 }
 0x56f   : > { %v6625_v22 = vadd.f32 %v6624_v48, %v6596_v26 }
 0x570   : > { %v6597_v3 = vpop.f32.mrf.mxu1 }
 0x571   : > { %v6654_v58 = vadd.f32 %v6653_v36, %v6625_v22  ;;  %v6598_v5 = vadd.f32 %v6597_v3, %v6569_v10  ;;  %v6655_v22 = vpop.f32.mrf.mxu3 }
 0x573   : > { %v6674_v16 = vmin.f32 %v6654_v58, 20.0  ;;  %vm6802_vm15 = vcmp.gt.f32.partialorder %v6654_v58, 20.0 }
 0x575   : > { %v6691_v40 = vmul.f32 1.442695, %v6674_v16 }
 0x576   : > { %v6626_v57 = vpop.f32.mrf.mxu2 }
 0x577   : > { %16144 = vpow2.f32 %v6691_v40  ;;  %v6627_v48 = vadd.f32 %v6626_v57, %v6598_v5  ;;  %v6677_v40 = vmin.f32 %v19957_v19, 20.0 }
 0x578   : > { %16146 = vpow2.f32 %v6693_v56 }
 0x579   : > { %16148 = vrcp.f32 %v6753_v42  ;;  %v21107_v37 = vadd.f32 %v6655_v22, %v6627_v48  ;;  %v6697_v10 = vmul.f32 1.442695, %v6677_v40  ;;  %v6342_v48 = vadd.f32 %v21015_v9, %v20987_v60 }
 0x57b   : > { %v6676_v11 = vmin.f32 %v21107_v37, 20.0  ;;  %v6371_v22 = vadd.f32 %v21037_v7, %v6342_v48 }
 0x57d   : > { %v16145_v2 = vpop.eup %16144  ;;  %v6695_v33 = vmul.f32 1.442695, %v6676_v11 }
 0x57e   : > { %v6722_v30 = vadd.f32 2.0, %v16145_v2  ;;  %v16147_v39 = vpop.eup %16146 }
 0x57f   : > { %v16149_v36 = vpop.eup %16148  ;;  %v6723_v0 = vadd.f32 2.0, %v16147_v39 }
 0x580   : > { %v6738_v26 = vmul.f32 %v16145_v2, %v6722_v30  ;;  %v6785_v16 = vmul.f32 %v16149_v36, %v6737_v41 }
 0x581   : > { %v6739_v29 = vmul.f32 %v16147_v39, %v6723_v0 }
 0x582   : > { %v6754_v21 = vadd.f32 2.0, %v6738_v26  ;;  %v6817_v15 = vmul.f32 %v6785_v16, %v19905_v18 }
 0x583   : > { %v6755_v28 = vadd.f32 2.0, %v6739_v29 }
 0x584   : > { %16150 = vrcp.f32 %v6754_v21  ;;  %v6833_v2 = vsel %vm6801_vm4, %v19905_v18, %v6817_v15  ;;  %v6400_v18 = vadd.f32 %v21041_v55, %v6371_v22  ;;  %v6571_v15 = vpop.f32.mrf.mxu0  ;;  %vm6804_vm4 = vcmp.gt.f32.partialorder %v21107_v37, 20.0 }
 0x585   : > { %16152 = vpow2.f32 %v6695_v33  ;;  %v6572_v55 = vadd.f32 %v6571_v15, %v21067_v53 }
 0x586   : > { %16154 = vrcp.f32 %v6755_v28  ;;  %v6429_v48 = vadd.f32 %v21039_v1, %v6400_v18 }
 0x587   : > { %16156 = vpow2.f32 %v6697_v10  ;;  %v15882_v10 = vld [vmem:[%s22993_s5 + $0x78] sm:$0xff] }
 0x588   : > { %9180 = vmatpush.bf16.msra.mxu1 %v15882_v10 }
 0x58a   : > { %v16151_v56 = vpop.eup %16150 }
 0x58b   : > { %v6786_v42 = vmul.f32 %v16151_v56, %v6738_v26  ;;  %v16153_v38 = vpop.eup %16152 }
 0x58c   : > { %v6724_v30 = vadd.f32 2.0, %v16153_v38  ;;  %v16155_v11 = vpop.eup %16154 }
 0x58d   : > { %v6818_v3 = vmul.f32 %v6786_v42, %v6654_v58  ;;  %v16157_v16 = vpop.eup %16156  ;;  %v6787_v42 = vmul.f32 %v16155_v11, %v6739_v29  ;;  %v6458_v11 = vadd.f32 %v21065_v62, %v6429_v48 }
 0x58e   : > { %v6740_v5 = vmul.f32 %v16153_v38, %v6724_v30  ;;  %v15873_v38 = vld [vmem:[%s22993_s5 + $0x30] sm:$0xff]  ;;  %v6629_v30 = vpop.f32.mrf.mxu2 }
 0x58f   : > { %v6834_v57 = vsel %vm6802_vm15, %v6654_v58, %v6818_v3  ;;  %v6600_v3 = vpop.f32.mrf.mxu1  ;;  %9152 = vmatpush.bf16.msrb.mxu0 %v15873_v38  ;;  %vm6805_vm15 = vcmp.gt.f32.partialorder %v19957_v19, 20.0 }
 0x590   : > { %v6849_v41 = vpack.c.bf16 %v6834_v57, %v6833_v2  ;;  %v6756_v0 = vadd.f32 2.0, %v6740_v5  ;;  %v6725_v2 = vadd.f32 2.0, %v16157_v16  ;;  %v6679_v57 = vmin.f32 %v19989_v6, 20.0 }
 0x591   : > { %v6601_v29 = vadd.f32 %v6600_v3, %v6572_v55 }
 0x592   : > { %v7025_v39 = vunpack.c.l.b16 %v6849_v41  ;;  %v7026_v26 = vunpack.c.h.b16 %v6849_v41  ;;  %7306 = vst [vmem:[#allocation2 + $0x20] sm:$0xff] %v6849_v41  ;;  %16158 = vrcp.f32 %v6756_v0  ;;  %v6658_v0 = vpop.f32.mrf.mxu3  ;;  %v6857_v18 = vsel %vm16490_vm2, 0, %v6849_v41 }
 0x593   : > { %v6630_v22 = vadd.f32 %v6629_v30, %v6601_v29 }
 0x594   : > { %v7039_v21 = vpack.c.b16 %v7025_v39, %v7025_v39  ;;  %v7040_v36 = vpack.c.b16 %v7026_v26, %v7026_v26  ;;  %v6819_v26 = vmul.f32 %v6787_v42, %v19929_v31 }
 0x596   : > { %v7042_v58 = vsel %vm23473_vm14, 0, %v7039_v21  ;;  %v7044_v33 = vsel %vm23474_vm11, 0, %v7040_v36  ;;  %v21130_v21 = vmul.f32 %v16157_v16, %v6725_v2  ;;  %v6701_v36 = vmul.f32 1.442695, %v6679_v57 }
 0x597   : > { %v7047_v40 = vunpack.c.l.b16 %v7042_v58  ;;  %v7048_v56 = vunpack.c.l.b16 %v7044_v33  ;;  %v7049_v60 = vunpack.c.h.b16 %v7042_v58  ;;  %v7050_v9 = vunpack.c.h.b16 %v7044_v33  ;;  %v6602_v50 = vpop.f32.mrf.mxu1 }
 0x598   : > { %v16159_v39 = vpop.eup %16158  ;;  %v21134_v33 = vadd.f32 %v6658_v0, %v6630_v22  ;;  %v6835_v16 = vsel %vm6803_vm13, %v19929_v31, %v6819_v26  ;;  %16160 = vpow2.f32 %v6701_v36  ;;  %vm6807_vm11 = vcmp.gt.f32.partialorder %v19989_v6, 20.0 }
 0x599   : > { %v7051_v28 = vpack.c.b16 %v7048_v56, %v7047_v40  ;;  %v7052_v7 = vpack.c.b16 %v7050_v9, %v7049_v60  ;;  %v6788_v53 = vmul.f32 %v16159_v39, %v6740_v5  ;;  %v6865_v56 = vsel %vm16494_vm3, 0, %v6849_v41 }
 0x59a   : > { %v6487_v5 = vadd.f32 %v21069_v54, %v6458_v11  ;;  %v6678_v60 = vmin.f32 %v21134_v33, 20.0  ;;  %v6757_v9 = vadd.f32 2.0, %v21130_v21  ;;  %v7083_v10 = vunpack.c.l.b16 %v6865_v56 }
 0x59b   : > { %7067 = vst [vmem:[#allocation2 + $0x8] sm:$0xff] %v7051_v28  ;;  %v6820_v58 = vmul.f32 %v6788_v53, %v21107_v37  ;;  %v6880_v28 = vunpack.c.l.b16 %v6857_v18  ;;  %v7084_v41 = vunpack.c.h.b16 %v6865_v56  ;;  %vm6806_vm14 = vcmp.gt.f32.partialorder %v21134_v33, 20.0 }
 0x59c   : > { %7068 = vst [vmem:[#allocation2 + $0x74] sm:$0xff] %v7052_v7  ;;  %v6516_v42 = vadd.f32 %v21073_v12, %v6487_v5  ;;  %v6881_v7 = vunpack.c.h.b16 %v6857_v18  ;;  %16162 = vrcp.f32 %v6757_v9 }
 0x59d   : > { %v6836_v62 = vsel %vm6804_vm4, %v21107_v37, %v6820_v58  ;;  %v6699_v37 = vmul.f32 1.442695, %v6678_v60 }
 0x59e   : > { %v6850_v15 = vpack.c.bf16 %v6836_v62, %v6835_v16  ;;  %v21162_v26 = vpop.eup %16160  ;;  %v21165_v53 = vadd.f32 %v21071_v24, %v6516_v42 }
 0x59f   : > { %16164 = vpow2.f32 %v6699_v37 }
 0x5a0   : > { %v6858_v3 = vsel %vm16560_vm7, 0, %v6850_v15  ;;  %v21152_v31 = vsel %vm16573_vm8, 0, %v6850_v15  ;;  %7069 = vst [vmem:[#allocation2 + $0xe0] sm:$0xff] %v6850_v15 }
 0x5a1   : > { %v6882_v38 = vunpack.c.l.b16 %v6858_v3  ;;  %v6883_v2 = vunpack.c.h.b16 %v6858_v3  ;;  %v23160_v57 = vunpack.c.l.b16 %v21152_v31  ;;  %v23159_v30 = vunpack.c.h.b16 %v21152_v31  ;;  %7307 = vst [vmem:[#allocation2 + $0x8c] sm:$0xff] %v6850_v15 }
 0x5a2   : > { %7439 = vst [vmem:[#allocation2 + $0x38] sm:$0xff] %v6850_v15  ;;  %v21169_v15 = vpop.eup %16162 }
 0x5a3   : > { %v6894_v12 = vpack.c.b16 %v6882_v38, %v6880_v28  ;;  %v6895_v48 = vpack.c.b16 %v6883_v2, %v6881_v7  ;;  %v7099_v29 = vpack.c.b16 %v23160_v57, %v7083_v10  ;;  %v21160_v39 = vpack.c.b16 %v23159_v30, %v7084_v41 }
 0x5a5   : > { %v6903_v22 = vshrl.u32 %v6894_v12, 16  ;;  %v6906_v36 = vshll.u32 %v6894_v12, 16  ;;  %v6911_v0 = vshrl.u32 %v6895_v48, 16  ;;  %v6914_v11 = vshll.u32 %v6895_v48, 16  ;;  %v16165_v38 = vpop.eup %16164 }
 0x5a6   : > { %v7108_v58 = vshrl.u32 %v7099_v29, 16  ;;  %v7111_v18 = vshll.u32 %v7099_v29, 16  ;;  %v7116_v56 = vshrl.u32 %v21160_v39, 16  ;;  %v7119_v5 = vshll.u32 %v21160_v39, 16 }
 0x5a7   : > { %v6905_v16 = vrot.slane %v6903_v22, 3  ;;  %v6908_v62 = vrot.slane %v6906_v36, 4  ;;  %v6913_v60 = vrot.slane %v6911_v0, 3  ;;  %v6916_v9 = vrot.slane %v6914_v11, 4 }
 0x5a8   : > { %v7110_v28 = vrot.slane %v7108_v58, 4  ;;  %v7113_v24 = vrot.slane %v7111_v18, 5  ;;  %v7118_v42 = vrot.slane %v7116_v56, 4  ;;  %v7121_v7 = vrot.slane %v7119_v5, 5 }
 0x5a9   : > { %v21171_v10 = vor.u32 %v6908_v62, %v6905_v16  ;;  %v21173_v41 = vor.u32 %v6916_v9, %v6913_v60  ;;  %v21175_v3 = vrot.slane %v6903_v22, 7  ;;  %v21177_v37 = vrot.slane %v6911_v0, 7 }
 0x5aa   : > { %v21179_v2 = vor.u32 %v7113_v24, %v7110_v28  ;;  %v21181_v12 = vor.u32 %v7121_v7, %v7118_v42  ;;  %v7314_v48 = vrot.slane %v7111_v18, 1  ;;  %v7318_v29 = vrot.slane %v7119_v5, 1 }
 0x5ab   : > { %v6974_v30 = vsel %vm16656_vm12, 0, %v21171_v10  ;;  %v6975_v16 = vsel %vm16656_vm12, 0, %v21173_v41  ;;  %v7229_v22 = vor.u32 %v21175_v3, %v6906_v36  ;;  %v7231_v0 = vor.u32 %v21177_v37, %v6914_v11 }
 0x5ac   : > { %v6978_v62 = vunpack.c.l.b16 %v6974_v30  ;;  %v6979_v60 = vunpack.c.l.b16 %v6975_v16  ;;  %v6980_v9 = vunpack.c.h.b16 %v6974_v30  ;;  %v6981_v28 = vunpack.c.h.b16 %v6975_v16  ;;  %v15881_v30 = vld [vmem:[%s22993_s5 + $0x70] sm:$0xff]  ;;  %v15872_v16 = vld [vmem:[%s22993_s5 + $0x28] sm:$0xff] }
 0x5ad   : > { %v7179_v18 = vsel %vm16698_vm0, 0, %v21179_v2  ;;  %v7180_v5 = vsel %vm16698_vm0, 0, %v21181_v12  ;;  %v7262_v7 = vsel %vm16736_vm5, 0, %v7229_v22  ;;  %v7263_v36 = vsel %vm16736_vm5, 0, %v7231_v0  ;;  %9181 = vmatpush.bf16.msra.mxu1 %v15881_v30  ;;  %9153 = vmatpush.bf16.msrb.mxu0 %v15872_v16 }
 0x5ae   : > { %v6994_v57 = vpack.c.b16 %v6979_v60, %v6978_v62  ;;  %v6995_v11 = vpack.c.b16 %v6981_v28, %v6980_v9  ;;  %v7183_v54 = vunpack.c.l.b16 %v7179_v18  ;;  %v7184_v55 = vunpack.c.l.b16 %v7180_v5  ;;  %v6573_v62 = vpop.f32.mrf.mxu0 }
 0x5af   : > { %v7185_v40 = vunpack.c.h.b16 %v7179_v18  ;;  %v7186_v1 = vunpack.c.h.b16 %v7180_v5  ;;  %v7266_v24 = vunpack.c.l.b16 %v7262_v7  ;;  %v7267_v39 = vunpack.c.l.b16 %v7263_v36 }
 0x5b0   : > { %v7199_v22 = vpack.c.b16 %v7184_v55, %v7183_v54  ;;  %v7268_v63 = vunpack.c.h.b16 %v7262_v7  ;;  %v7269_v42 = vunpack.c.h.b16 %v7263_v36  ;;  %v21207_v0 = vor.u32 %v7314_v48, %v7108_v58  ;;  %7010 = vst [vmem:[#allocation2] sm:$0xff] %v6994_v57  ;;  %v6631_v54 = vpop.f32.mrf.mxu2 }
 0x5b1   : > { %v7200_v60 = vpack.c.b16 %v7186_v1, %v7185_v40  ;;  %v7282_v9 = vpack.c.b16 %v7267_v39, %v7266_v24  ;;  %v21209_v28 = vor.u32 %v7318_v29, %v7116_v56  ;;  %7011 = vst [vmem:[#allocation2 + $0x6c] sm:$0xff] %v6995_v11  ;;  %v6726_v44 = vadd.f32 2.0, %v16165_v38  ;;  %v6660_v1 = vpop.f32.mrf.mxu3 }
 0x5b2   : > { %v7283_v18 = vpack.c.b16 %v7269_v42, %v7268_v63  ;;  %7215 = vst [vmem:[#allocation2 + $0x10] sm:$0xff] %v7199_v22  ;;  %v6574_v5 = vadd.f32 %v6573_v62, %v21165_v53  ;;  %v6727_v56 = vadd.f32 2.0, %v21162_v26  ;;  %v6789_v63 = vmul.f32 %v21169_v15, %v21130_v21 }
 0x5b3   : > { %7216 = vst [vmem:[#allocation2 + $0x7c] sm:$0xff] %v7200_v60  ;;  %v6742_v55 = vmul.f32 %v16165_v38, %v6726_v44  ;;  %v6681_v38 = vmin.f32 %v20029_v14, 20.0 }
 0x5b4   : > { %7298 = vst [vmem:[#allocation2 + $0x18] sm:$0xff] %v7282_v9  ;;  %v6603_v58 = vadd.f32 %v6602_v50, %v6574_v5  ;;  %v6743_v44 = vmul.f32 %v21162_v26, %v6727_v56  ;;  %v6821_v50 = vmul.f32 %v6789_v63, %v19957_v19  ;;  %v23484_v5 = vunpack.c.h.b16 %v21152_v31 }
 0x5b5   : > { %7299 = vst [vmem:[#allocation2 + $0x84] sm:$0xff] %v7283_v18  ;;  %v6758_v57 = vadd.f32 2.0, %v6742_v55  ;;  %v6705_v21 = vmul.f32 1.442695, %v6681_v38  ;;  %v6683_v56 = vmin.f32 %v20067_v52, 20.0  ;;  %v6605_v38 = vpop.f32.mrf.mxu1 }
 0x5b6   : > { %v6632_v48 = vadd.f32 %v6631_v54, %v6603_v58  ;;  %v6759_v7 = vadd.f32 2.0, %v6743_v44  ;;  %v6837_v15 = vsel %vm6805_vm15, %v19957_v19, %v6821_v50  ;;  %v6347_v19 = vadd.f32 %v21034_v4, %v21007_v27  ;;  %v6576_v63 = vpop.f32.mrf.mxu0 }
 0x5b7   : > { %16166 = vrcp.f32 %v6758_v57 }
 0x5b8   : > { %v21212_v40 = vadd.f32 %v6660_v1, %v6632_v48  ;;  %v6376_v58 = vadd.f32 %v21048_v25, %v6347_v19  ;;  %v15880_v25 = vld [vmem:[%s22993_s5 + $0x68] sm:$0xff] }
 0x5b9   : > { %9182 = vmatpush.bf16.msra.mxu1 %v15880_v25 }
 0x5ba   : > { %v6680_v29 = vmin.f32 %v21212_v40, 20.0  ;;  %v6405_v27 = vadd.f32 %v21052_v43, %v6376_v58  ;;  %v15890_v43 = vld [vmem:[%s22993_s5 + $0xb8] sm:$0xff]  ;;  %vm6808_vm13 = vcmp.gt.f32.partialorder %v21212_v40, 20.0 }
 0x5bb   : > { %9209 = vmatpush.bf16.msra.mxu2 %v15890_v43 }
 0x5bc   : > { %v6703_v53 = vmul.f32 1.442695, %v6680_v29  ;;  %v6434_v29 = vadd.f32 %v21050_v35, %v6405_v27 }
 0x5bd   : > { %v16167_v39 = vpop.eup %16166 }
 0x5be   : > { %v6790_v24 = vmul.f32 %v16167_v39, %v6742_v55  ;;  %16168 = vpow2.f32 %v6703_v53  ;;  %v6577_v53 = vadd.f32 %v6576_v63, %v21077_v47  ;;  %v15871_v47 = vld [vmem:[%s22993_s5 + $0x20] sm:$0xff] }
 0x5bf   : > { %16170 = vrcp.f32 %v6759_v7  ;;  %v6709_v7 = vmul.f32 1.442695, %v6683_v56  ;;  %9154 = vmatpush.bf16.msrb.mxu0 %v15871_v47  ;;  %v23488_v56 = vld [vmem:[#allocation13_spill] sm:$0xff] }
 0x5c0   : > { %v6822_v42 = vmul.f32 %v6790_v24, %v21134_v33  ;;  %16172 = vpow2.f32 %v6705_v21  ;;  %v6606_v24 = vadd.f32 %v6605_v38, %v6577_v53  ;;  %v6463_v21 = vadd.f32 %v21075_v20, %v6434_v29  ;;  %v15897_v20 = vld [vmem:[%s22993_s5 + $0xf0] sm:$0xff] }
 0x5c1   : > { %vm23489_vm15 = vnez %v23488_v56 }
 0x5c2   : > { %v6838_v36 = vsel %vm6806_vm14, %v21134_v33, %v6822_v42  ;;  %v23483_v33 = vunpack.c.l.b16 %v21152_v31  ;;  %v6634_v42 = vpop.f32.mrf.mxu2  ;;  %v6492_v19 = vadd.f32 %v21079_v49, %v6463_v21  ;;  %v23486_v49 = vld [vmem:[#allocation12_spill] sm:$0xff]  ;;  %vm23490_vm14 = vsmask.f32 4352 }
 0x5c3   : > { %v6851_v11 = vpack.c.bf16 %v6838_v36, %v6837_v15  ;;  %v15889_v36 = vld [vmem:[%s22993_s5 + $0xb0] sm:$0xff]  ;;  %vm23487_vm4 = vnez %v23486_v49  ;;  %v16064_v49 = vld [vmem:[%s22995_s7 + $0x88] sm:$0xff] }
 0x5c4   : > { %v16169_v26 = vpop.eup %16168  ;;  %v6521_v27 = vadd.f32 %v21083_v34, %v6492_v19  ;;  %9210 = vmatpush.bf16.msra.mxu2 %v15889_v36 }
 0x5c5   : > { %v21228_v16 = vsel %vm16765_vm6, 0, %v6851_v11  ;;  %7070 = vst [vmem:[#allocation2 + $0x14c] sm:$0xff] %v6851_v11  ;;  %v6728_v22 = vadd.f32 2.0, %v16169_v26  ;;  %v16171_v57 = vpop.eup %16170 }
 0x5c6   : > { %v7087_v62 = vunpack.c.l.b16 %v21228_v16  ;;  %v7088_v60 = vunpack.c.h.b16 %v21228_v16  ;;  %7308 = vst [vmem:[#allocation2 + $0xf8] sm:$0xff] %v6851_v11  ;;  %v16173_v48 = vpop.eup %16172  ;;  %v6791_v4 = vmul.f32 %v16171_v57, %v6743_v44  ;;  %v15898_v44 = vld [vmem:[%s22993_s5 + $0xf8] sm:$0xff]  ;;  %v21314_v38 = vadd.f32 %v21081_v46, %v6521_v27 }
 0x5c7   : > { %7440 = vst [vmem:[#allocation2 + $0xa4] sm:$0xff] %v6851_v11  ;;  %v6744_v9 = vmul.f32 %v16169_v26, %v6728_v22  ;;  %v6729_v1 = vadd.f32 2.0, %v16173_v48  ;;  %v6859_v22 = vsel %vm16789_vm10, 0, %v6851_v11  ;;  %9238 = vmatpush.bf16.msra.mxu3 %v15898_v44  ;;  %v6685_v44 = vmin.f32 %v20105_v17, 20.0 }
 0x5c8   : > { %v21238_v18 = vpack.c.b16 %v7087_v62, %v23483_v33  ;;  %v21244_v55 = vpack.c.b16 %v7088_v60, %v23484_v5  ;;  %v6823_v39 = vmul.f32 %v6791_v4, %v19989_v6  ;;  %v6884_v4 = vunpack.c.l.b16 %v6859_v22 }
 0x5c9   : > { %v6760_v54 = vadd.f32 2.0, %v6744_v9  ;;  %v21261_v35 = vmul.f32 %v16173_v48, %v6729_v1  ;;  %v6352_v48 = vadd.f32 %v21046_v23, %v21018_v13  ;;  %v6885_v1 = vunpack.c.h.b16 %v6859_v22 }
 0x5ca   : > { %v6839_v33 = vsel %vm6807_vm11, %v19989_v6, %v6823_v39  ;;  %vm23491_vm11 = vmmov %vm23490_vm14 }
 0x5cb   : > { %16174 = vrcp.f32 %v6760_v54  ;;  %v6663_v54 = vpop.f32.mrf.mxu3  ;;  %v6761_v58 = vadd.f32 2.0, %v21261_v35  ;;  %9239 = vmatpush.bf16.msra.mxu3 %v15897_v20  ;;  %v6381_v34 = vadd.f32 %v21057_v61, %v6352_v48 }
 0x5cc   : > { %16176 = vpow2.f32 %v6709_v7 }
 0x5cd   : > { %16178 = vrcp.f32 %v6761_v58  ;;  %v21311_v61 = vadd.f32 %v21061_v45, %v6381_v34 }
 0x5d1   : > { %v16175_v31 = vpop.eup %16174 }
 0x5d2   : > { %v6792_v50 = vmul.f32 %v16175_v31, %v6744_v9  ;;  %v6635_v9 = vadd.f32 %v6634_v42, %v6606_v24  ;;  %v21316_v24 = vpop.eup %16176 }
 0x5d3   : > { %v21322_v20 = vpop.eup %16178 }
 0x5d4   : > { %v6824_v15 = vmul.f32 %v6792_v50, %v21212_v40  ;;  %v21282_v11 = vadd.f32 %v6663_v54, %v6635_v9 }
 0x5d6   : > { %v6840_v5 = vsel %vm6808_vm13, %v21212_v40, %v6824_v15  ;;  %v6682_v63 = vmin.f32 %v21282_v11, 20.0  ;;  %vm23492_vm13 = vsmask.f32 3328 }
 0x5d7   : > { %v6852_v57 = vpack.c.bf16 %v6840_v5, %v6839_v33 }
 0x5d8   : > { %v6707_v53 = vmul.f32 1.442695, %v6682_v63 }
 0x5d9   : > { %v6860_v6 = vsel %vm23487_vm4, 0, %v6852_v57  ;;  %v21291_v40 = vsel %vm23489_vm15, 0, %v6852_v57  ;;  %7071 = vst [vmem:[#allocation2 + $0x1b8] sm:$0xff] %v6852_v57  ;;  %vm23493_vm15 = vmmov %vm23492_vm13 }
 0x5da   : > { %v6886_v29 = vunpack.c.l.b16 %v6860_v6  ;;  %v6887_v31 = vunpack.c.h.b16 %v6860_v6  ;;  %v7089_v13 = vunpack.c.l.b16 %v21291_v40  ;;  %v7090_v23 = vunpack.c.h.b16 %v21291_v40  ;;  %7309 = vst [vmem:[#allocation2 + $0x164] sm:$0xff] %v6852_v57 }
 0x5db   : > { %7441 = vst [vmem:[#allocation2 + $0x110] sm:$0xff] %v6852_v57  ;;  %16180 = vpow2.f32 %v6707_v53  ;;  %v7468_v40 = vshrl.u32 %v21244_v55, 16 }
 0x5dc   : > { %v6896_v39 = vpack.c.b16 %v6886_v29, %v6884_v4  ;;  %v6897_v50 = vpack.c.b16 %v6887_v31, %v6885_v1  ;;  %v21301_v25 = vpack.c.b16 %v7089_v13, %v7087_v62  ;;  %v21307_v43 = vpack.c.b16 %v7090_v23, %v7088_v60 }
 0x5de   : > { %v6919_v47 = vshrl.u32 %v6896_v39, 16  ;;  %v6922_v62 = vshll.u32 %v6896_v39, 16  ;;  %v6928_v42 = vshrl.u32 %v6897_v50, 16  ;;  %v6931_v7 = vshll.u32 %v6897_v50, 16 }
 0x5df   : > { %v7124_v16 = vshrl.u32 %v21301_v25, 16  ;;  %v7127_v60 = vshll.u32 %v21301_v25, 16  ;;  %v7133_v21 = vshrl.u32 %v21307_v43, 16  ;;  %v7136_v15 = vshll.u32 %v21307_v43, 16 }
 0x5e0   : > { %v6921_v45 = vrot.slane %v6919_v47, 3  ;;  %v6924_v36 = vrot.slane %v6922_v62, 4  ;;  %v6930_v22 = vrot.slane %v6928_v42, 3  ;;  %v6933_v46 = vrot.slane %v6931_v7, 4 }
 0x5e1   : > { %v7126_v9 = vrot.slane %v7124_v16, 4  ;;  %v7129_v19 = vrot.slane %v7127_v60, 5  ;;  %v7135_v33 = vrot.slane %v7133_v21, 4  ;;  %v7138_v5 = vrot.slane %v7136_v15, 5  ;;  %v16181_v27 = vpop.eup %16180 }
 0x5e2   : > { %v21324_v54 = vor.u32 %v6924_v36, %v6921_v45  ;;  %v21326_v58 = vor.u32 %v6933_v46, %v6930_v22  ;;  %v21328_v57 = vrot.slane %v6919_v47, 7  ;;  %v21330_v48 = vrot.slane %v6928_v42, 7 }
 0x5e3   : > { %v21332_v4 = vor.u32 %v7129_v19, %v7126_v9  ;;  %v21334_v1 = vor.u32 %v7138_v5, %v7135_v33  ;;  %v7316_v6 = vrot.slane %v7127_v60, 1  ;;  %v7320_v63 = vrot.slane %v7136_v15, 1 }
 0x5e4   : > { %v6926_v29 = vsel %vm23490_vm14, %v21171_v10, %v21324_v54  ;;  %v6935_v31 = vsel %vm23491_vm11, %v21173_v41, %v21326_v58  ;;  %v7233_v34 = vor.u32 %v21328_v57, %v6922_v62  ;;  %v7236_v53 = vor.u32 %v21330_v48, %v6931_v7 }
 0x5e5   : > { %v6982_v39 = vunpack.c.l.b16 %v6926_v29  ;;  %v6983_v50 = vunpack.c.l.b16 %v6935_v31  ;;  %v6984_v25 = vunpack.c.h.b16 %v6926_v29  ;;  %v6985_v43 = vunpack.c.h.b16 %v6935_v31 }
 0x5e6   : > { %v7131_v47 = vsel %vm23492_vm13, %v21179_v2, %v21332_v4  ;;  %v7140_v10 = vsel %vm23493_vm15, %v21181_v12, %v21334_v1  ;;  %vm23494_vm14 = vsmask.f32 256  ;;  %v15888_v2 = vld [vmem:[%s22993_s5 + $0xa8] sm:$0xff]  ;;  %vm23496_vm15 = vsmask.f32 7424 }
 0x5e7   : > { %v7234_v42 = vsel %vm23494_vm14, %v21175_v3, %v7233_v34  ;;  %vm23495_vm11 = vmmov %vm23494_vm14  ;;  %v6996_v62 = vpack.c.b16 %v6983_v50, %v6982_v39  ;;  %v6997_v7 = vpack.c.b16 %v6985_v43, %v6984_v25  ;;  %v7187_v60 = vunpack.c.l.b16 %v7131_v47  ;;  %v15896_v12 = vld [vmem:[%s22993_s5 + $0xe8] sm:$0xff]  ;;  %v6578_v3 = vpop.f32.mrf.mxu0  ;;  %9211 = vmatpush.bf16.msra.mxu2 %v15888_v2 }
 0x5e8   : > { %v7237_v41 = vsel %vm23495_vm11, %v21177_v37, %v7236_v53  ;;  %v7188_v15 = vunpack.c.l.b16 %v7140_v10  ;;  %v7189_v45 = vunpack.c.h.b16 %v7131_v47  ;;  %v7190_v36 = vunpack.c.h.b16 %v7140_v10  ;;  %vm23497_vm13 = vmmov %vm23496_vm15  ;;  %9240 = vmatpush.bf16.msra.mxu3 %v15896_v12 }
 0x5e9   : > { %v7270_v22 = vunpack.c.l.b16 %v7234_v42  ;;  %v7271_v46 = vunpack.c.l.b16 %v7237_v41  ;;  %v7272_v19 = vunpack.c.h.b16 %v7234_v42  ;;  %v7273_v37 = vunpack.c.h.b16 %v7237_v41  ;;  %7012 = vst [vmem:[#allocation2 + $0xd8] sm:$0xff] %v6996_v62  ;;  %v6607_v42 = vpop.f32.mrf.mxu1 }
 0x5ea   : > { %v7201_v9 = vpack.c.b16 %v7188_v15, %v7187_v60  ;;  %v7317_v33 = vsel %vm23496_vm15, %v21207_v0, %v7316_v6  ;;  %v7202_v5 = vpack.c.b16 %v7190_v36, %v7189_v45  ;;  %v7321_v31 = vsel %vm23497_vm13, %v21209_v28, %v7320_v63  ;;  %7013 = vst [vmem:[#allocation2 + $0x144] sm:$0xff] %v6997_v7  ;;  %v15887_v28 = vld [vmem:[%s22993_s5 + $0xa0] sm:$0xff]  ;;  %v15870_v45 = vld [vmem:[%s22993_s5 + $0x18] sm:$0xff]  ;;  %v6636_v36 = vpop.f32.mrf.mxu2 }
 0x5eb   : > { %v7284_v29 = vpack.c.b16 %v7271_v46, %v7270_v22  ;;  %v21364_v34 = vor.u32 %v7316_v6, %v7124_v16  ;;  %v7285_v53 = vpack.c.b16 %v7273_v37, %v7272_v19  ;;  %v21366_v39 = vor.u32 %v7320_v63, %v7133_v21  ;;  %v15895_v16 = vld [vmem:[%s22993_s5 + $0xe0] sm:$0xff]  ;;  %9212 = vmatpush.bf16.msra.mxu2 %v15887_v28  ;;  %v6665_v46 = vpop.f32.mrf.mxu3  ;;  %v23500_v28 = vld [vmem:[#allocation50_spill] sm:$0xff] }
 0x5ec   : > { %v7342_v50 = vunpack.c.l.b16 %v7317_v33  ;;  %v7343_v25 = vunpack.c.l.b16 %v7321_v31  ;;  %7217 = vst [vmem:[#allocation2 + $0xe8] sm:$0xff] %v7201_v9  ;;  %v7344_v43 = vunpack.c.h.b16 %v7317_v33  ;;  %v7345_v47 = vunpack.c.h.b16 %v7321_v31  ;;  %v15879_v15 = vld [vmem:[%s22993_s5 + $0x60] sm:$0xff]  ;;  %9241 = vmatpush.bf16.msra.mxu3 %v15895_v16  ;;  %9155 = vmatpush.bf16.msrb.mxu0 %v15870_v45  ;;  %v15885_v33 = vld [vmem:[%s22993_s5 + $0x90] sm:$0xff] }
 0x5ed   : > { %7218 = vst [vmem:[#allocation2 + $0x154] sm:$0xff] %v7202_v5  ;;  %v6730_v0 = vadd.f32 2.0, %v16181_v27  ;;  %v6579_v10 = vadd.f32 %v6578_v3, %v21314_v38  ;;  %v6439_v6 = vadd.f32 %v21059_v8, %v21311_v61  ;;  %v6713_v38 = vmul.f32 1.442695, %v6685_v44  ;;  %v15894_v44 = vld [vmem:[%s22993_s5 + $0xd8] sm:$0xff]  ;;  %9183 = vmatpush.bf16.msra.mxu1 %v15879_v15  ;;  %v15891_v15 = vld [vmem:[%s22993_s5 + $0xc0] sm:$0xff] }
 0x5ee   : > { %v7358_v21 = vpack.c.b16 %v7343_v25, %v7342_v50  ;;  %7300 = vst [vmem:[#allocation2 + $0xf0] sm:$0xff] %v7284_v29  ;;  %v7359_v63 = vpack.c.b16 %v7345_v47, %v7344_v43  ;;  %v6687_v22 = vmin.f32 %v20146_v32, 20.0  ;;  %v6731_v9 = vadd.f32 2.0, %v21316_v24  ;;  %v23498_v29 = vld [vmem:[#allocation23_spill] sm:$0xff]  ;;  %v23499_v50 = vld [vmem:[#allocation26_spill] sm:$0xff]  ;;  %v15884_v47 = vld [vmem:[%s22993_s5 + $0x88] sm:$0xff] }
 0x5ef   : > { %7301 = vst [vmem:[#allocation2 + $0x15c] sm:$0xff] %v7285_v53  ;;  %v6746_v41 = vmul.f32 %v16181_v27, %v6730_v0  ;;  %v6608_v60 = vadd.f32 %v6607_v42, %v6579_v10  ;;  %v15886_v27 = vld [vmem:[%s22993_s5 + $0x98] sm:$0xff]  ;;  %v6468_v2 = vadd.f32 %v21086_v59, %v6439_v6  ;;  %v6581_v3 = vpop.f32.mrf.mxu0  ;;  %v15893_v59 = vld [vmem:[%s22993_s5 + $0xd0] sm:$0xff]  ;;  %vm6809_vm14 = vcmp.gt.f32.partialorder %v20029_v14, 20.0 }
 0x5f0   : > { %7374 = vst [vmem:[#allocation2 + $0x28] sm:$0xff] %v7358_v21  ;;  %9213 = vmatpush.bf16.msra.mxu2 %v15886_v27  ;;  %9242 = vmatpush.bf16.msra.mxu3 %v15894_v44  ;;  %v6717_v5 = vmul.f32 1.442695, %v6687_v22  ;;  %v21409_v43 = vmul.f32 %v21316_v24, %v6731_v9  ;;  %vm6810_vm11 = vcmp.gt.f32.partialorder %v21282_v11, 20.0  ;;  %v15805_v9 = vld [vmem:[#allocation2 + $0x70] sm:$0xf0] }
 0x5f1   : > { %7375 = vst [vmem:[#allocation2 + $0x94] sm:$0xff] %v7359_v63  ;;  %v6762_v8 = vadd.f32 2.0, %v6746_v41  ;;  %v6637_v61 = vadd.f32 %v6636_v36, %v6608_v60  ;;  %v6497_v19 = vadd.f32 %v21091_v51, %v6468_v2  ;;  %v6582_v51 = vadd.f32 %v6581_v3, %v23499_v50  ;;  %v13918_v3 = vld [vmem:[#allocation2 + $0x8] sm:$0xf] }
 0x5f2   : > { %7412 = vst [vmem:[#allocation2 + $0x30] sm:$0xff] %v6996_v62  ;;  %v6610_v62 = vpop.f32.mrf.mxu1  ;;  %v6639_v21 = vpop.f32.mrf.mxu2  ;;  %v6763_v60 = vadd.f32 2.0, %v21409_v43  ;;  %v7458_v36 = vshll.u32 %v21238_v18, 16 }
 0x5f3   : > { %7413 = vst [vmem:[#allocation2 + $0x9c] sm:$0xff] %v6997_v7  ;;  %16182 = vrcp.f32 %v6762_v8  ;;  %v21393_v12 = vadd.f32 %v6665_v46, %v6637_v61  ;;  %v6793_v7 = vmul.f32 %v21322_v20, %v21261_v35  ;;  %v6526_v31 = vadd.f32 %v23498_v29, %v6497_v19  ;;  %v15892_v35 = vld [vmem:[%s22993_s5 + $0xc8] sm:$0xff]  ;;  %v6668_v6 = vpop.f32.mrf.mxu3  ;;  %v23501_v29 = vld [vmem:[#allocation14_spill] sm:$0xff] }
 0x5f4   : > { %16184 = vpow2.f32 %v6713_v38  ;;  %9214 = vmatpush.bf16.msra.mxu2 %v15885_v33  ;;  %9243 = vmatpush.bf16.msra.mxu3 %v15893_v59  ;;  %v6611_v42 = vadd.f32 %v6610_v62, %v6582_v51  ;;  %v15796_v19 = vld [vmem:[#allocation2 + $0xc] sm:$0xf]  ;;  %v7470_v62 = vshll.u32 %v21244_v55, 16  ;;  %v13919_v59 = vor.u32 %v15805_v9, %v13918_v3 }
 0x5f5   : > { %v6684_v37 = vmin.f32 %v21393_v12, 20.0  ;;  %v6825_v0 = vmul.f32 %v6793_v7, %v20029_v14  ;;  %v6555_v16 = vadd.f32 %v23500_v28, %v6526_v31  ;;  %v13920_v7 = vld [vmem:[#allocation2 + $0x74] sm:$0xf0]  ;;  %vm23502_vm15 = vnez %v23501_v29  ;;  %v15868_v55 = vld [vmem:[%s22993_s5 + $0x8] sm:$0xff] }
 0x5f6   : > { %v6640_v63 = vadd.f32 %v6639_v21, %v6611_v42  ;;  %v7472_v42 = vrot.slane %v7470_v62, 1  ;;  %v15869_v21 = vld [vmem:[%s22993_s5 + $0x10] sm:$0xff] }
 0x5f7   : > { %v6711_v53 = vmul.f32 1.442695, %v6684_v37  ;;  %v6583_v45 = vpop.f32.mrf.mxu0  ;;  %v6841_v8 = vsel %vm6809_vm14, %v20029_v14, %v6825_v0  ;;  %v15878_v14 = vld [vmem:[%s22993_s5 + $0x58] sm:$0xff]  ;;  %9156 = vmatpush.bf16.msrb.mxu0 %v15869_v21  ;;  %vm23503_vm14 = vmmov %vm23497_vm13 }
 0x5f8   : > { %9215 = vmatpush.bf16.msra.mxu2 %v15884_v47  ;;  %9244 = vmatpush.bf16.msra.mxu3 %v15892_v35  ;;  %v21432_v27 = vadd.f32 %v6668_v6, %v6640_v63  ;;  %v6584_v46 = vadd.f32 %v6583_v45, %v6555_v16  ;;  %v7460_v35 = vrot.slane %v7458_v36, 1 }
 0x5f9   : > { %v16183_v25 = vpop.eup %16182  ;;  %16186 = vpow2.f32 %v6711_v53  ;;  %v13923_v53 = vor.u32 %v15796_v19, %v13920_v7  ;;  %9184 = vmatpush.bf16.msra.mxu1 %v15878_v14 }
 0x5fa   : > { %v16185_v20 = vpop.eup %16184  ;;  %16188 = vpow2.f32 %v6717_v5  ;;  %v6794_v10 = vmul.f32 %v16183_v25, %v6746_v41  ;;  %v15883_v41 = vld [vmem:[%s22993_s5 + $0x80] sm:$0xff]  ;;  %v6612_v2 = vpop.f32.mrf.mxu1 }
 0x5fb   : > { %v6733_v38 = vadd.f32 2.0, %v16185_v20  ;;  %16190 = vrcp.f32 %v6763_v60  ;;  %v6613_v25 = vadd.f32 %v6612_v2, %v6584_v46  ;;  %9157 = vmatpush.bf16.msrb.mxu0 %v15868_v55 }
 0x5fc   : > { %v6826_v24 = vmul.f32 %v6794_v10, %v21282_v11  ;;  %9216 = vmatpush.bf16.msra.mxu2 %v15883_v41  ;;  %9245 = vmatpush.bf16.msra.mxu3 %v15891_v15  ;;  %v6641_v10 = vpop.f32.mrf.mxu2  ;;  %v6670_v41 = vpop.f32.mrf.mxu3 }
 0x5fd   : > { %v21441_v5 = vmul.f32 %v16185_v20, %v6733_v38  ;;  %v6642_v6 = vadd.f32 %v6641_v10, %v6613_v25  ;;  %v13990_v10 = vld [vmem:[#allocation2 + $0xe0] sm:$0xf] }
 0x5fe   : > { %v6842_v61 = vsel %vm6810_vm11, %v21282_v11, %v6826_v24  ;;  %v6686_v11 = vmin.f32 %v21432_v27, 20.0  ;;  %v15877_v24 = vld [vmem:[%s22993_s5 + $0x50] sm:$0xff]  ;;  %vm6811_vm11 = vcmp.gt.f32.partialorder %v20067_v52, 20.0 }
 0x5ff   : > { %v16187_v44 = vpop.eup %16186  ;;  %v21434_v22 = vpack.c.bf16 %v6842_v61, %v6841_v8  ;;  %9217 = vmatmul.bf16.vlgmr.msra.gmra.mxu2 %v13919_v59  ;;  %9246 = vmatmul.bf16.vlgmr.msra.gmra.mxu3 %v13923_v53  ;;  %v6765_v63 = vadd.f32 2.0, %v21441_v5  ;;  %v21478_v36 = vadd.f32 %v6670_v41, %v6642_v6  ;;  %v7473_v61 = vor.u32 %v7472_v42, %v7468_v40  ;;  %v15814_v42 = vld [vmem:[#allocation2 + $0xe4] sm:$0xf] }
 0x600   : > { %v16189_v37 = vpop.eup %16188  ;;  %v6732_v33 = vadd.f32 2.0, %v16187_v44  ;;  %v6715_v0 = vmul.f32 1.442695, %v6686_v11  ;;  %9185 = vmatpush.bf16.msra.mxu1 %v15877_v24 }
 0x601   : > { %v21446_v31 = vsel %vm23502_vm15, 0, %v21434_v22  ;;  %7072 = vst [vmem:[#allocation2 + $0x224] sm:$0xff] %v21434_v22  ;;  %v6735_v47 = vadd.f32 2.0, %v16189_v37  ;;  %v16191_v15 = vpop.eup %16190  ;;  %v6688_v46 = vmin.f32 %v21478_v36, 20.0 }
 0x602   : > { %v7091_v50 = vunpack.c.l.b16 %v21446_v31  ;;  %v7092_v51 = vunpack.c.h.b16 %v21446_v31  ;;  %7310 = vst [vmem:[#allocation2 + $0x1d0] sm:$0xff] %v21434_v22  ;;  %v6748_v20 = vmul.f32 %v16187_v44, %v6732_v33  ;;  %16192 = vpow2.f32 %v6715_v0 }
 0x603   : > { %7442 = vst [vmem:[#allocation2 + $0x17c] sm:$0xff] %v21434_v22  ;;  %v21476_v45 = vmul.f32 %v16189_v37, %v6735_v47  ;;  %v6795_v2 = vmul.f32 %v16191_v15, %v21409_v43  ;;  %v6719_v7 = vmul.f32 1.442695, %v6688_v46  ;;  %v15876_v15 = vld [vmem:[%s22993_s5 + $0x48] sm:$0xff] }
 0x604   : > { %v21457_v28 = vpack.c.b16 %v7091_v50, %v7089_v13  ;;  %v21463_v16 = vpack.c.b16 %v7092_v51, %v7090_v23  ;;  %v6764_v60 = vadd.f32 2.0, %v6748_v20  ;;  %v7456_v13 = vshrl.u32 %v21238_v18, 16  ;;  %9186 = vmatpush.bf16.msra.mxu1 %v15876_v15 }
 0x605   : > { %v6767_v11 = vadd.f32 2.0, %v21476_v45  ;;  %v6827_v47 = vmul.f32 %v6795_v2, %v20067_v52  ;;  %v23506_v2 = vld [vmem:[#allocation16_spill] sm:$0xff] }
 0x606   : > { %v7463_v23 = vshll.u32 %v21457_v28, 16  ;;  %v7475_v38 = vshll.u32 %v21463_v16, 16  ;;  %16194 = vrcp.f32 %v6764_v60  ;;  %v7461_v8 = vor.u32 %v7460_v35, %v7456_v13  ;;  %v13992_v60 = vld [vmem:[#allocation2 + $0x14c] sm:$0xf0]  ;;  %v23504_v13 = vld [vmem:[#allocation15_spill] sm:$0xff] }
 0x607   : > { %16196 = vrcp.f32 %v6765_v63  ;;  %v15823_v63 = vld [vmem:[#allocation2 + $0x148] sm:$0xf0] }
 0x608   : > { %v21480_v44 = vrot.slane %v7463_v23, 1  ;;  %v21482_v18 = vrot.slane %v7475_v38, 1  ;;  %v16193_v19 = vpop.eup %16192  ;;  %16198 = vpow2.f32 %v6719_v7  ;;  %v13995_v23 = vor.u32 %v15814_v42, %v13992_v60  ;;  %v15804_v42 = vld [vmem:[#allocation2 + $0x68] sm:$0xf0] }
 0x609   : > { %v6734_v59 = vadd.f32 2.0, %v16193_v19  ;;  %16200 = vrcp.f32 %v6767_v11  ;;  %v6843_v38 = vsel %vm6811_vm11, %v20067_v52, %v6827_v47  ;;  %v23508_v52 = vld [vmem:[#allocation17_spill] sm:$0xff]  ;;  %v15875_v11 = vld [vmem:[%s22993_s5 + $0x40] sm:$0xff] }
 0x60a   : > { %v7466_v3 = vsel %vm23497_vm13, %v7461_v8, %v21480_v44  ;;  %v7478_v9 = vsel %vm23503_vm14, %v7473_v61, %v21482_v18  ;;  %vm23505_vm13 = vnez %v23504_v13  ;;  %vm6812_vm14 = vcmp.gt.f32.partialorder %v21393_v12, 20.0  ;;  %9187 = vmatpush.bf16.msra.mxu1 %v15875_v11 }
 0x60b   : > { %v7523_v37 = vunpack.c.l.b16 %v7466_v3  ;;  %v7524_v62 = vunpack.c.l.b16 %v7478_v9  ;;  %v7525_v33 = vunpack.c.h.b16 %v7466_v3  ;;  %v7526_v14 = vunpack.c.h.b16 %v7478_v9 }
 0x60c   : > { %v16195_v53 = vpop.eup %16194  ;;  %v6750_v0 = vmul.f32 %v16193_v19, %v6734_v59  ;;  %v6861_v40 = vsel %vm23505_vm13, 0, %v21434_v22  ;;  %vm23507_vm13 = vnez %v23506_v2  ;;  %vm23509_vm11 = vnez %v23508_v52 }
 0x60d   : > { %v7539_v25 = vpack.c.b16 %v7524_v62, %v7523_v37  ;;  %v7540_v43 = vpack.c.b16 %v7526_v14, %v7525_v33  ;;  %v6796_v35 = vmul.f32 %v16195_v53, %v6748_v20  ;;  %v16197_v21 = vpop.eup %16196  ;;  %v13991_v20 = vor.u32 %v15823_v63, %v13990_v10  ;;  %v15867_v14 = vld [vmem:[%s22993_s5] sm:$0xff] }
 0x60e   : > { %v6766_v6 = vadd.f32 2.0, %v6750_v0  ;;  %v6797_v8 = vmul.f32 %v16197_v21, %v21441_v5  ;;  %v16199_v55 = vpop.eup %16198  ;;  %v6888_v22 = vunpack.c.l.b16 %v6861_v40  ;;  %v6889_v46 = vunpack.c.h.b16 %v6861_v40  ;;  %9158 = vmatpush.bf16.msrb.mxu0 %v15867_v14  ;;  %v13910_v10 = vld [vmem:[#allocation2] sm:$0xf] }
 0x60f   : > { %7555 = vst [vmem:[#allocation2 + $0x40] sm:$0xff] %v7539_v25  ;;  %v6828_v24 = vmul.f32 %v6796_v35, %v21393_v12  ;;  %9222 = vmatmul.bf16.gmra.mxu2 %v13991_v20  ;;  %9251 = vmatmul.bf16.gmra.mxu3 %v13995_v23  ;;  %v6736_v9 = vadd.f32 2.0, %v16199_v55  ;;  %v16201_v19 = vpop.eup %16200  ;;  %v13911_v63 = vor.u32 %v15804_v42, %v13910_v10 }
 0x610   : > { %7556 = vst [vmem:[#allocation2 + $0xac] sm:$0xff] %v7540_v43  ;;  %16202 = vrcp.f32 %v6766_v6  ;;  %v21522_v59 = vmul.f32 %v6797_v8, %v20105_v17  ;;  %v6799_v21 = vmul.f32 %v16201_v19, %v21476_v45 }
 0x611   : > { %v6844_v41 = vsel %vm6812_vm14, %v21393_v12, %v6828_v24  ;;  %v21524_v7 = vmul.f32 %v16199_v55, %v6736_v9  ;;  %9159 = vmatmul.bf16.vlgmr.msrb.gmra.mxu0 %v13911_v63 }
 0x612   : > { %v6854_v61 = vpack.c.bf16 %v6844_v41, %v6843_v38 }
 0x613   : > { %v21542_v6 = vadd.f32 2.0, %v21524_v7 }
 0x614   : > { %v6862_v3 = vsel %vm23507_vm13, 0, %v6854_v61  ;;  %v21511_v12 = vsel %vm23509_vm11, 0, %v6854_v61  ;;  %7073 = vst [vmem:[#allocation2 + $0x290] sm:$0xff] %v6854_v61  ;;  %vm23510_vm11 = vsmask.f32 4352 }
 0x615   : > { %v6890_v37 = vunpack.c.l.b16 %v6862_v3  ;;  %v6891_v62 = vunpack.c.h.b16 %v6862_v3  ;;  %v7093_v5 = vunpack.c.l.b16 %v21511_v12  ;;  %v7094_v33 = vunpack.c.h.b16 %v21511_v12  ;;  %7311 = vst [vmem:[#allocation2 + $0x23c] sm:$0xff] %v6854_v61  ;;  %vm23511_vm14 = vmmov %vm23510_vm11 }
 0x616   : > { %7443 = vst [vmem:[#allocation2 + $0x1e8] sm:$0xff] %v6854_v61  ;;  %v16203_v53 = vpop.eup %16202  ;;  %vm23512_vm13 = vsmask.f32 3328  ;;  %16204 = vrcp.f32 %v21542_v6  ;;  %v15922_v6 = vld [vmem:[%s22993_s5 + $0x1b8] sm:$0xff] }
 0x617   : > { %v6898_v25 = vpack.c.b16 %v6890_v37, %v6888_v22  ;;  %v6899_v43 = vpack.c.b16 %v6891_v62, %v6889_v46  ;;  %v21530_v47 = vpack.c.b16 %v7093_v5, %v7091_v50  ;;  %v21536_v35 = vpack.c.b16 %v7094_v33, %v7092_v51  ;;  %vm23513_vm15 = vmmov %vm23512_vm13  ;;  %9325 = vmatpush.bf16.msrb.mxu2 %v15922_v6 }
 0x618   : > { %v21539_v24 = vmul.f32 %v16203_v53, %v6750_v0 }
 0x619   : > { %v6937_v50 = vshrl.u32 %v6898_v25, 16  ;;  %v6940_v60 = vshll.u32 %v6898_v25, 16  ;;  %v6946_v40 = vshrl.u32 %v6899_v43, 16  ;;  %v6949_v31 = vshll.u32 %v6899_v43, 16 }
 0x61a   : > { %v7142_v20 = vshrl.u32 %v21530_v47, 16  ;;  %v7145_v51 = vshll.u32 %v21530_v47, 16  ;;  %v7151_v23 = vshrl.u32 %v21536_v35, 16  ;;  %v7154_v38 = vshll.u32 %v21536_v35, 16  ;;  %v15928_v47 = vld [vmem:[%s22993_s5 + $0x1e8] sm:$0xff] }
 0x61b   : > { %v6939_v45 = vrot.slane %v6937_v50, 3  ;;  %v6942_v0 = vrot.slane %v6940_v60, 4  ;;  %v6948_v41 = vrot.slane %v6946_v40, 3  ;;  %v6951_v15 = vrot.slane %v6949_v31, 4 }
 0x61c   : > { %v7144_v8 = vrot.slane %v7142_v20, 4  ;;  %v7147_v61 = vrot.slane %v7145_v51, 5  ;;  %v7153_v55 = vrot.slane %v7151_v23, 4  ;;  %v7156_v22 = vrot.slane %v7154_v38, 5 }
 0x61d   : > { %v21553_v46 = vor.u32 %v6942_v0, %v6939_v45  ;;  %v21555_v3 = vor.u32 %v6951_v15, %v6948_v41  ;;  %v21557_v9 = vrot.slane %v6937_v50, 7  ;;  %v21559_v19 = vrot.slane %v6946_v40, 7 }
 0x61e   : > { %v21561_v37 = vor.u32 %v7147_v61, %v7144_v8  ;;  %v21563_v62 = vor.u32 %v7156_v22, %v7153_v55  ;;  %v21565_v14 = vrot.slane %v7145_v51, 1  ;;  %v21567_v11 = vrot.slane %v7154_v38, 1 }
 0x61f   : > { %v6944_v53 = vsel %vm23510_vm11, %v21324_v54, %v21553_v46  ;;  %v6953_v25 = vsel %vm23511_vm14, %v21326_v58, %v21555_v3  ;;  %v7239_v43 = vor.u32 %v21557_v9, %v6940_v60  ;;  %v7242_v10 = vor.u32 %v21559_v19, %v6949_v31 }
 0x620   : > { %v6986_v42 = vunpack.c.l.b16 %v6944_v53  ;;  %v6987_v63 = vunpack.c.l.b16 %v6953_v25  ;;  %v6988_v50 = vunpack.c.h.b16 %v6944_v53  ;;  %v6989_v40 = vunpack.c.h.b16 %v6953_v25 }
 0x621   : > { %v7149_v51 = vsel %vm23512_vm13, %v21332_v4, %v21561_v37  ;;  %v7158_v54 = vsel %vm23513_vm15, %v21334_v1, %v21563_v62  ;;  %vm23514_vm11 = vsmask.f32 256  ;;  %vm23516_vm15 = vsmask.f32 7424 }
 0x622   : > { %v7240_v38 = vsel %vm23514_vm11, %v21328_v57, %v7239_v43  ;;  %vm23515_vm14 = vmmov %vm23514_vm11  ;;  %v6998_v60 = vpack.c.b16 %v6987_v63, %v6986_v42  ;;  %v6999_v31 = vpack.c.b16 %v6989_v40, %v6988_v50  ;;  %v7191_v45 = vunpack.c.l.b16 %v7149_v51  ;;  %v15795_v43 = vld [vmem:[#allocation2 + $0x4] sm:$0xf] }
 0x623   : > { %v7243_v58 = vsel %vm23515_vm14, %v21330_v48, %v7242_v10  ;;  %v7192_v0 = vunpack.c.l.b16 %v7158_v54  ;;  %v7193_v41 = vunpack.c.h.b16 %v7149_v51  ;;  %v7194_v15 = vunpack.c.h.b16 %v7158_v54  ;;  %vm23517_vm13 = vmmov %vm23516_vm15  ;;  %v13912_v10 = vld [vmem:[#allocation2 + $0x6c] sm:$0xf0]  ;;  %v15841_v40 = vld [vmem:[#allocation2 + $0x220] sm:$0xf0] }
 0x624   : > { %v7274_v8 = vunpack.c.l.b16 %v7240_v38  ;;  %v7275_v61 = vunpack.c.l.b16 %v7243_v58  ;;  %v7276_v4 = vunpack.c.h.b16 %v7240_v38  ;;  %v7277_v22 = vunpack.c.h.b16 %v7243_v58  ;;  %7014 = vst [vmem:[#allocation2 + $0x1b0] sm:$0xff] %v6998_v60  ;;  %v13982_v38 = vld [vmem:[#allocation2 + $0xd8] sm:$0xf]  ;;  %v15822_v58 = vld [vmem:[#allocation2 + $0x140] sm:$0xf0] }
 0x625   : > { %v7203_v55 = vpack.c.b16 %v7192_v0, %v7191_v45  ;;  %v7324_v1 = vsel %vm23516_vm15, %v21364_v34, %v21565_v14  ;;  %v6831_v57 = vmul.f32 %v6799_v21, %v20146_v32  ;;  %v7204_v53 = vpack.c.b16 %v7194_v15, %v7193_v41  ;;  %7015 = vst [vmem:[#allocation2 + $0x21c] sm:$0xff] %v6999_v31  ;;  %v14064_v21 = vld [vmem:[#allocation2 + $0x224] sm:$0xf0]  ;;  %v14062_v15 = vld [vmem:[#allocation2 + $0x1b8] sm:$0xf] }
 0x626   : > { %v7286_v48 = vpack.c.b16 %v7275_v61, %v7274_v8  ;;  %v7327_v25 = vsel %vm23517_vm13, %v21366_v39, %v21567_v11  ;;  %v7287_v42 = vpack.c.b16 %v7277_v22, %v7276_v4  ;;  %v7346_v63 = vunpack.c.l.b16 %v7324_v1  ;;  %v15930_v4 = vld [vmem:[%s22993_s5 + $0x1f8] sm:$0xff]  ;;  %7414 = vst [vmem:[#allocation2 + $0x108] sm:$0xff] %v6998_v60 }
 0x627   : > { %v7347_v50 = vunpack.c.l.b16 %v7327_v25  ;;  %7219 = vst [vmem:[#allocation2 + $0x1c0] sm:$0xff] %v7203_v55  ;;  %vm23518_vm11 = vcmp.gt.f32.partialorder %v20105_v17, 20.0  ;;  %v7348_v51 = vunpack.c.h.b16 %v7324_v1  ;;  %v7349_v54 = vunpack.c.h.b16 %v7327_v25  ;;  %v23521_v1 = vld [vmem:[#allocation19_spill] sm:$0xff]  ;;  %9354 = vmatpush.bf16.msrb.mxu3 %v15930_v4  ;;  %v16205_v25 = vpop.eup %16204 }
 0x628   : > { %v6845_v34 = vsel %vm23518_vm11, %v20105_v17, %v21522_v59  ;;  %7220 = vst [vmem:[#allocation2 + $0x22c] sm:$0xff] %v7204_v53  ;;  %v6830_v39 = vmul.f32 %v21539_v24, %v21432_v27  ;;  %vm6814_vm14 = vcmp.gt.f32.partialorder %v21432_v27, 20.0  ;;  %v13915_v0 = vor.u32 %v15795_v43, %v13912_v10  ;;  %v15832_v17 = vld [vmem:[#allocation2 + $0x1bc] sm:$0xf] }
 0x629   : > { %v7360_v45 = vpack.c.b16 %v7347_v50, %v7346_v63  ;;  %7302 = vst [vmem:[#allocation2 + $0x1c8] sm:$0xff] %v7286_v48  ;;  %v13983_v41 = vor.u32 %v15822_v58, %v13982_v38  ;;  %v7361_v59 = vpack.c.b16 %v7349_v54, %v7348_v51  ;;  %v14063_v61 = vor.u32 %v15841_v40, %v14062_v15 }
 0x62a   : > { %7303 = vst [vmem:[#allocation2 + $0x234] sm:$0xff] %v7287_v42  ;;  %v6846_v8 = vsel %vm6814_vm14, %v21432_v27, %v6830_v39  ;;  %v14067_v55 = vor.u32 %v15832_v17, %v14064_v21  ;;  %9188 = vmatmul.bf16.vlgmr.msra.gmra.mxu1 %v13915_v0  ;;  %vm6815_vm15 = vcmp.gt.f32.partialorder %v20146_v32, 20.0  ;;  %v23519_v27 = vld [vmem:[#allocation18_spill] sm:$0xff]  ;;  %vm23522_vm11 = vnez %v23521_v1  ;;  %v15920_v0 = vld [vmem:[%s22993_s5 + $0x1a8] sm:$0xff] }
 0x62b   : > { %7376 = vst [vmem:[#allocation2 + $0x100] sm:$0xff] %v7360_v45  ;;  %v6855_v24 = vpack.c.bf16 %v6846_v8, %v6845_v34  ;;  %9164 = vmatmul.bf16.gmra.mxu0 %v13983_v41  ;;  %9227 = vmatmul.bf16.gmra.mxu2 %v14063_v61  ;;  %vm23520_vm13 = vnez %v23519_v27  ;;  %v6847_v48 = vsel %vm6815_vm15, %v20146_v32, %v6831_v57  ;;  %v7479_v63 = vshrl.u32 %v21457_v28, 16  ;;  %v15921_v32 = vld [vmem:[%s22993_s5 + $0x1b0] sm:$0xff]  ;;  %v13984_v45 = vld [vmem:[#allocation2 + $0x144] sm:$0xf0] }
 0x62c   : > { %7377 = vst [vmem:[#allocation2 + $0x16c] sm:$0xff] %v7361_v59  ;;  %9256 = vmatmul.bf16.gmra.mxu3 %v14067_v55  ;;  %v7487_v50 = vshrl.u32 %v21463_v16, 16  ;;  %v6800_v34 = vmul.f32 %v16205_v25, %v21524_v7  ;;  %vm6816_vm14 = vcmp.gt.f32.partialorder %v21478_v36, 20.0  ;;  %9326 = vmatpush.bf16.msrb.mxu2 %v15921_v32  ;;  %v21653_v12 = vor.u32 %v21565_v14, %v7142_v20  ;;  %v15919_v25 = vld [vmem:[%s22993_s5 + $0x1a0] sm:$0xff] }
 0x62d   : > { %v6863_v22 = vsel %vm23520_vm13, 0, %v6855_v24  ;;  %v21614_v53 = vsel %vm23522_vm11, 0, %v6855_v24  ;;  %7415 = vst [vmem:[#allocation2 + $0x174] sm:$0xff] %v6999_v31  ;;  %v15929_v31 = vld [vmem:[%s22993_s5 + $0x1f0] sm:$0xff]  ;;  %v7481_v40 = vor.u32 %v7479_v63, %v21480_v44  ;;  %v21658_v44 = vor.u32 %v21567_v11, %v7151_v23 }
 0x62e   : > { %v21617_v43 = vunpack.c.l.b16 %v6863_v22  ;;  %v21619_v10 = vunpack.c.h.b16 %v6863_v22  ;;  %v7095_v42 = vunpack.c.l.b16 %v21614_v53  ;;  %v7096_v60 = vunpack.c.h.b16 %v21614_v53  ;;  %7074 = vst [vmem:[#allocation2 + $0x2fc] sm:$0xff] %v6855_v24  ;;  %9355 = vmatpush.bf16.msrb.mxu3 %v15929_v31 }
 0x62f   : > { %7312 = vst [vmem:[#allocation2 + $0x2a8] sm:$0xff] %v6855_v24  ;;  %v7489_v21 = vor.u32 %v7487_v50, %v21482_v18  ;;  %v6832_v51 = vmul.f32 %v6800_v34, %v21478_v36  ;;  %vm23523_vm15 = vsmask.f32 7424 }
 0x630   : > { %v6900_v57 = vpack.c.b16 %v21617_v43, %v21617_v43  ;;  %v6901_v28 = vpack.c.b16 %v21619_v10, %v21619_v10  ;;  %v7451_v16 = vpack.c.b16 %v7095_v42, %v7093_v5  ;;  %v21645_v7 = vpack.c.b16 %v7096_v60, %v7094_v33  ;;  %7444 = vst [vmem:[#allocation2 + $0x254] sm:$0xff] %v6855_v24  ;;  %v15813_v5 = vld [vmem:[#allocation2 + $0xdc] sm:$0xf]  ;;  %vm23524_vm11 = vmmov %vm23523_vm15 }
 0x631   : > { %v6848_v11 = vsel %vm6816_vm14, %v21478_v36, %v6832_v51  ;;  %9327 = vmatpush.bf16.msrb.mxu2 %v15920_v0  ;;  %v13987_v55 = vor.u32 %v15813_v5, %v13984_v45  ;;  %v15927_v36 = vld [vmem:[%s22993_s5 + $0x1e0] sm:$0xff]  ;;  %vm23525_vm14 = vsmask.f32 4352  ;;  %v15840_v5 = vld [vmem:[#allocation2 + $0x218] sm:$0xf0]  ;;  %v23528_v45 = vld [vmem:[#allocation21_spill] sm:$0xff] }
 0x632   : > { %v6955_v54 = vshrl.u32 %v6900_v57, 16  ;;  %v6958_v39 = vshll.u32 %v6900_v57, 16  ;;  %v6964_v38 = vshrl.u32 %v6901_v28, 16  ;;  %v6967_v58 = vshll.u32 %v6901_v28, 16  ;;  %9356 = vmatpush.bf16.msrb.mxu3 %v15928_v47 }
 0x633   : > { %v7483_v18 = vshll.u32 %v7451_v16, 16  ;;  %v7491_v33 = vshll.u32 %v21645_v7, 16  ;;  %v7495_v23 = vshrl.u32 %v7451_v16, 16  ;;  %v6856_v61 = vpack.c.bf16 %v6848_v11, %v6847_v48  ;;  %v14054_v16 = vld [vmem:[#allocation2 + $0x1b0] sm:$0xf] }
 0x634   : > { %v6957_v41 = vrot.slane %v6955_v54, 3  ;;  %v6960_v20 = vrot.slane %v6958_v39, 4  ;;  %v6966_v14 = vrot.slane %v6964_v38, 3  ;;  %v6969_v15 = vrot.slane %v6967_v58, 4  ;;  %v15906_v38 = vld [vmem:[%s22993_s5 + $0x138] sm:$0xff] }
 0x635   : > { %v7485_v35 = vrot.slane %v7483_v18, 1  ;;  %v21667_v17 = vrot.slane %v7491_v33, 1  ;;  %v7503_v22 = vshrl.u32 %v21645_v7, 16  ;;  %7313 = vst [vmem:[#allocation2 + $0x314] sm:$0xff] %v6856_v61  ;;  %9328 = vmatpush.bf16.msrb.mxu2 %v15919_v25  ;;  %v6864_v39 = vsel %vm17533_vm9, 0, %v6856_v61  ;;  %v15914_v58 = vld [vmem:[%s22993_s5 + $0x178] sm:$0xff]  ;;  %9267 = vmatpush.bf16.msra.mxu0 %v15906_v38 }
 0x636   : > { %v6961_v59 = vor.u32 %v6960_v20, %v6957_v41  ;;  %v6970_v8 = vor.u32 %v6969_v15, %v6966_v14  ;;  %9357 = vmatpush.bf16.msrb.mxu3 %v15927_v36  ;;  %v7224_v47 = vunpack.c.l.b16 %v6864_v39  ;;  %v7225_v15 = vunpack.c.h.b16 %v6864_v39  ;;  %9296 = vmatpush.bf16.msrb.mxu1 %v15914_v58 }
 0x637   : > { %v7486_v24 = vsel %vm23523_vm15, %v7481_v40, %v7485_v35  ;;  %v7494_v6 = vsel %vm23524_vm11, %v7489_v21, %v21667_v17  ;;  %v21675_v4 = vor.u32 %v7495_v23, %v7485_v35  ;;  %vm23526_vm15 = vmmov %vm23525_vm14  ;;  %vm23529_vm11 = vnez %v23528_v45 }
 0x638   : > { %v6962_v48 = vsel %vm23525_vm14, %v21553_v46, %v6961_v59  ;;  %v6971_v63 = vsel %vm23526_vm15, %v21555_v3, %v6970_v8  ;;  %v7527_v50 = vunpack.c.l.b16 %v7486_v24  ;;  %v7528_v34 = vunpack.c.l.b16 %v7494_v6 }
 0x639   : > { %v6990_v32 = vunpack.c.l.b16 %v6962_v48  ;;  %v6991_v31 = vunpack.c.l.b16 %v6971_v63  ;;  %v6992_v57 = vunpack.c.h.b16 %v6962_v48  ;;  %v6993_v28 = vunpack.c.h.b16 %v6971_v63 }
 0x63a   : > { %v7529_v40 = vunpack.c.h.b16 %v7486_v24  ;;  %v7530_v21 = vunpack.c.h.b16 %v7494_v6  ;;  %v7541_v51 = vpack.c.b16 %v7528_v34, %v7527_v50  ;;  %v6872_v0 = vsel %vm23529_vm11, 0, %v6856_v61  ;;  %9193 = vmatmul.bf16.gmra.mxu1 %v13987_v55  ;;  %v15918_v50 = vld [vmem:[%s22993_s5 + $0x198] sm:$0xff] }
 0x63b   : > { %v7000_v18 = vpack.c.b16 %v6991_v31, %v6990_v32  ;;  %v7001_v33 = vpack.c.b16 %v6993_v28, %v6992_v57  ;;  %v7097_v20 = vunpack.c.l.b16 %v6872_v0  ;;  %v21698_v14 = vunpack.c.h.b16 %v6872_v0  ;;  %v15926_v34 = vld [vmem:[%s22993_s5 + $0x1d8] sm:$0xff]  ;;  %9329 = vmatpush.bf16.msrb.mxu2 %v15918_v50  ;;  %v15917_v0 = vld [vmem:[%s22993_s5 + $0x190] sm:$0xff] }
 0x63c   : > { %v7542_v41 = vpack.c.b16 %v7530_v21, %v7529_v40  ;;  %7557 = vst [vmem:[#allocation2 + $0x118] sm:$0xff] %v7541_v51  ;;  %v7226_v35 = vpack.c.b16 %v7224_v47, %v21617_v43  ;;  %v7421_v23 = vunpack.c.l.b16 %v6856_v61  ;;  %v7422_v11 = vunpack.c.h.b16 %v6856_v61  ;;  %v15905_v43 = vld [vmem:[%s22993_s5 + $0x130] sm:$0xff]  ;;  %v15912_v40 = vld [vmem:[%s22993_s5 + $0x168] sm:$0xff]  ;;  %9358 = vmatpush.bf16.msrb.mxu3 %v15926_v34 }
 0x63d   : > { %7016 = vst [vmem:[#allocation2 + $0x288] sm:$0xff] %v7000_v18  ;;  %v14055_v59 = vor.u32 %v15840_v5, %v14054_v16  ;;  %v21703_v8 = vpack.c.b16 %v7097_v20, %v7095_v42  ;;  %v21708_v55 = vpack.c.b16 %v21698_v14, %v7096_v60  ;;  %v21711_v24 = vpack.c.b16 %v7225_v15, %v21619_v10  ;;  %v15913_v61 = vld [vmem:[%s22993_s5 + $0x170] sm:$0xff]  ;;  %v15904_v16 = vld [vmem:[%s22993_s5 + $0x128] sm:$0xff] }
 0x63e   : > { %7017 = vst [vmem:[#allocation2 + $0x2f4] sm:$0xff] %v7001_v33  ;;  %v21713_v6 = vpack.c.b16 %v7097_v20, %v7097_v20  ;;  %v7245_v42 = vshrl.u32 %v7226_v35, 16  ;;  %v7248_v25 = vshll.u32 %v7226_v35, 16  ;;  %v21721_v53 = vpack.c.b16 %v7421_v23, %v7421_v23  ;;  %9268 = vmatpush.bf16.msra.mxu0 %v15905_v43  ;;  %9297 = vmatpush.bf16.msrb.mxu1 %v15913_v61  ;;  %v15903_v35 = vld [vmem:[%s22993_s5 + $0x120] sm:$0xff] }
 0x63f   : > { %7558 = vst [vmem:[#allocation2 + $0x184] sm:$0xff] %v7542_v41  ;;  %v21723_v60 = vpack.c.b16 %v7422_v11, %v7422_v11  ;;  %9169 = vmatmul.bf16.gmra.mxu0 %v14055_v59  ;;  %v7160_v10 = vshrl.u32 %v21703_v8, 16  ;;  %v7163_v36 = vshll.u32 %v21703_v8, 16  ;;  %v7169_v48 = vshrl.u32 %v21708_v55, 16  ;;  %v15911_v23 = vld [vmem:[%s22993_s5 + $0x160] sm:$0xff]  ;;  %v15925_v11 = vld [vmem:[%s22993_s5 + $0x1d0] sm:$0xff]  ;;  %9330 = vmatpush.bf16.msrb.mxu2 %v15917_v0 }
 0x640   : > { %v7172_v63 = vshll.u32 %v21708_v55, 16  ;;  %v7247_v32 = vrot.slane %v7245_v42, 7  ;;  %v7253_v31 = vshrl.u32 %v21711_v24, 16  ;;  %v7256_v57 = vshll.u32 %v21711_v24, 16  ;;  %9359 = vmatpush.bf16.msrb.mxu3 %v15925_v11  ;;  %v16105_v24 = vld [vmem:[%s22995_s7 + $0x1d0] sm:$0xff] }
 0x641   : > { %v21737_v28 = vrot.slane %v7245_v42, 3  ;;  %v7162_v21 = vrot.slane %v7160_v10, 4  ;;  %v7165_v51 = vrot.slane %v7163_v36, 5  ;;  %v7171_v39 = vrot.slane %v7169_v48, 4 }
 0x642   : > { %v7174_v38 = vrot.slane %v7172_v63, 5  ;;  %v7250_v58 = vor.u32 %v7248_v25, %v7247_v32  ;;  %v7255_v5 = vrot.slane %v7253_v31, 7  ;;  %v7329_v18 = vrot.slane %v7163_v36, 1  ;;  %9269 = vmatpush.bf16.msra.mxu0 %v15904_v16  ;;  %9298 = vmatpush.bf16.msrb.mxu1 %v15912_v40  ;;  %v15902_v16 = vld [vmem:[%s22993_s5 + $0x118] sm:$0xff] }
 0x643   : > { %v7332_v33 = vrot.slane %v7172_v63, 1  ;;  %v7166_v47 = vor.u32 %v7165_v51, %v7162_v21  ;;  %v7383_v20 = vrot.slane %v7248_v25, 4  ;;  %v21748_v15 = vrot.slane %v7253_v31, 3  ;;  %v15910_v40 = vld [vmem:[%s22993_s5 + $0x158] sm:$0xff] }
 0x644   : > { %v7175_v41 = vor.u32 %v7174_v38, %v7171_v39  ;;  %vm23530_vm14 = vsmask.f32 256  ;;  %v7258_v8 = vor.u32 %v7256_v57, %v7255_v5  ;;  %vm23531_vm15 = vsmask.f32 7424 }
 0x645   : > { %v7251_v59 = vsel %vm23530_vm14, %v21557_v9, %v7250_v58  ;;  %v7330_v55 = vsel %vm23531_vm15, %v21653_v12, %v7329_v18  ;;  %vm23532_vm11 = vmmov %vm23531_vm15  ;;  %vm23533_vm9 = vsmask.f32 3328  ;;  %v15916_v9 = vld [vmem:[%s22993_s5 + $0x188] sm:$0xff]  ;;  %v7335_v32 = vor.u32 %v7332_v33, %v7169_v48 }
 0x646   : > { %v7333_v43 = vsel %vm23532_vm11, %v21658_v44, %v7332_v33  ;;  %v7167_v61 = vsel %vm23533_vm9, %v21561_v37, %v7166_v47  ;;  %vm23534_vm13 = vmmov %vm23533_vm9  ;;  %v7278_v25 = vunpack.c.l.b16 %v7251_v59  ;;  %v7280_v36 = vunpack.c.h.b16 %v7251_v59  ;;  %v15924_v12 = vld [vmem:[%s22993_s5 + $0x1c8] sm:$0xff]  ;;  %9270 = vmatpush.bf16.msra.mxu0 %v15903_v35  ;;  %9299 = vmatpush.bf16.msrb.mxu1 %v15911_v23  ;;  %v15923_v33 = vld [vmem:[%s22993_s5 + $0x1c0] sm:$0xff] }
 0x647   : > { %v7176_v42 = vsel %vm23534_vm13, %v21563_v62, %v7175_v41  ;;  %v7195_v63 = vunpack.c.l.b16 %v7167_v61  ;;  %v7197_v50 = vunpack.c.h.b16 %v7167_v61  ;;  %vm23535_vm9 = vmmov %vm23530_vm14  ;;  %v7334_v62 = vor.u32 %v7329_v18, %v7160_v10  ;;  %9331 = vmatpush.bf16.msrb.mxu2 %v15916_v9  ;;  %9360 = vmatpush.bf16.msrb.mxu3 %v15924_v12  ;;  %v15915_v18 = vld [vmem:[%s22993_s5 + $0x180] sm:$0xff]  ;;  %v15909_v61 = vld [vmem:[%s22993_s5 + $0x150] sm:$0xff] }
 0x648   : > { %v7196_v44 = vunpack.c.l.b16 %v7176_v42  ;;  %v7198_v34 = vunpack.c.h.b16 %v7176_v42  ;;  %v7259_v37 = vsel %vm23535_vm9, %v21559_v19, %v7258_v8  ;;  %v7350_v31 = vunpack.c.l.b16 %v7330_v55 }
 0x649   : > { %v7279_v39 = vunpack.c.l.b16 %v7259_v37  ;;  %v7281_v38 = vunpack.c.h.b16 %v7259_v37  ;;  %v7338_v19 = vsel %vm17640_vm1, %v7334_v62, 0  ;;  %v7339_v10 = vsel %vm17640_vm1, %v7335_v32, 0 }
 0x64a   : > { %v7205_v21 = vpack.c.b16 %v7196_v44, %v7195_v63  ;;  %v7206_v51 = vpack.c.b16 %v7198_v34, %v7197_v50  ;;  %v7351_v48 = vunpack.c.l.b16 %v7333_v43  ;;  %v7352_v5 = vunpack.c.h.b16 %v7330_v55  ;;  %9271 = vmatpush.bf16.msra.mxu0 %v15902_v16  ;;  %9300 = vmatpush.bf16.msrb.mxu1 %v15910_v40  ;;  %v15901_v55 = vld [vmem:[%s22993_s5 + $0x110] sm:$0xff]  ;;  %v15908_v16 = vld [vmem:[%s22993_s5 + $0x148] sm:$0xff] }
 0x64b   : > { %v7288_v0 = vpack.c.b16 %v7279_v39, %v7278_v25  ;;  %v7289_v47 = vpack.c.b16 %v7281_v38, %v7280_v36  ;;  %v7353_v41 = vunpack.c.h.b16 %v7333_v43  ;;  %v7354_v35 = vunpack.c.l.b16 %v7338_v19  ;;  %9332 = vmatpush.bf16.msrb.mxu2 %v15915_v18  ;;  %9361 = vmatpush.bf16.msrb.mxu3 %v15923_v33  ;;  %v15859_v38 = vld [vmem:[#allocation2 + $0x2f8] sm:$0xf0]  ;;  %v15831_v18 = vld [vmem:[#allocation2 + $0x1b4] sm:$0xf]  ;;  %v14056_v33 = vld [vmem:[#allocation2 + $0x21c] sm:$0xf0] }
 0x64c   : > { %7221 = vst [vmem:[#allocation2 + $0x298] sm:$0xff] %v7205_v21  ;;  %v7355_v23 = vunpack.c.l.b16 %v7339_v10  ;;  %v7356_v11 = vunpack.c.h.b16 %v7338_v19  ;;  %v7357_v59 = vunpack.c.h.b16 %v7339_v10  ;;  %v7362_v8 = vpack.c.b16 %v7351_v48, %v7350_v31  ;;  %v14136_v19 = vld [vmem:[#allocation2 + $0x2fc] sm:$0xf0] }
 0x64d   : > { %7222 = vst [vmem:[#allocation2 + $0x304] sm:$0xff] %v7206_v51  ;;  %v7363_v42 = vpack.c.b16 %v7353_v41, %v7352_v5  ;;  %v7384_v43 = vor.u32 %v7383_v20, %v21737_v28  ;;  %v7387_v25 = vrot.slane %v7256_v57, 4  ;;  %vm23537_vm13 = vcmask 1043456  }
 0x64e   : > { %v7426_v36 = vsel %vm23537_vm13, %v21721_v53, 0  ;;  %7304 = vst [vmem:[#allocation2 + $0x2a0] sm:$0xff] %v7288_v0  ;;  %v7364_v9 = vpack.c.b16 %v7355_v23, %v7354_v35  ;;  %v7365_v12 = vpack.c.b16 %v7357_v59, %v7356_v11  ;;  %vm23538_vm11 = vmmov %vm23537_vm13  ;;  %vm23539_vm14 = vsmask.f32 4352  ;;  %9272 = vmatpush.bf16.msra.mxu0 %v15901_v55  ;;  %9301 = vmatpush.bf16.msrb.mxu1 %v15909_v61  ;;  %v14134_v23 = vld [vmem:[#allocation2 + $0x290] sm:$0xf] }
 0x64f   : > { %v7428_v63 = vsel %vm23538_vm11, %v21723_v60, 0  ;;  %v7431_v44 = vunpack.c.l.b16 %v7426_v36  ;;  %7305 = vst [vmem:[#allocation2 + $0x30c] sm:$0xff] %v7289_v47  ;;  %v7385_v50 = vsel %vm23539_vm14, %v21553_v46, %v7384_v43  ;;  %v7388_v28 = vor.u32 %v7387_v25, %v21748_v15  ;;  %v15900_v60 = vld [vmem:[%s22993_s5 + $0x108] sm:$0xff]  ;;  %vm23541_vm15 = vmmov %vm23539_vm14  ;;  %v15858_v59 = vld [vmem:[#allocation2 + $0x2f0] sm:$0xf0] }
 0x650   : > { %v7392_v57 = vsel %vm16656_vm12, %v7384_v43, 0  ;;  %v7432_v20 = vunpack.c.l.b16 %v7428_v63  ;;  %7378 = vst [vmem:[#allocation2 + $0x1d8] sm:$0xff] %v7362_v8  ;;  %v7396_v53 = vunpack.c.l.b16 %v7385_v50  ;;  %v7398_v34 = vunpack.c.h.b16 %v7385_v50  ;;  %v14126_v11 = vld [vmem:[#allocation2 + $0x288] sm:$0xf]  ;;  %v15899_v25 = vld [vmem:[%s22993_s5 + $0x100] sm:$0xff] }
 0x651   : > { %v7400_v37 = vunpack.c.l.b16 %v7392_v57  ;;  %v7402_v62 = vunpack.c.h.b16 %v7392_v57  ;;  %7379 = vst [vmem:[#allocation2 + $0x244] sm:$0xff] %v7363_v42  ;;  %v7389_v46 = vsel %vm23541_vm15, %v21555_v3, %v7388_v28  ;;  %v7393_v15 = vsel %vm16656_vm12, %v7388_v28, 0  ;;  %v15938_v28 = vld [vmem:[%s22993_s5 + $0x238] sm:$0xff] }
 0x652   : > { %v7433_v32 = vunpack.c.h.b16 %v7426_v36  ;;  %v7434_v31 = vunpack.c.h.b16 %v7428_v63  ;;  %7380 = vst [vmem:[#allocation2 + $0x2b0] sm:$0xff] %v7364_v9  ;;  %v7397_v40 = vunpack.c.l.b16 %v7389_v46  ;;  %v7399_v21 = vunpack.c.h.b16 %v7389_v46  ;;  %9273 = vmatpush.bf16.msra.mxu0 %v15900_v60  ;;  %9302 = vmatpush.bf16.msrb.mxu1 %v15908_v16  ;;  %v15907_v36 = vld [vmem:[%s22993_s5 + $0x140] sm:$0xff] }
 0x653   : > { %v7401_v51 = vunpack.c.l.b16 %v7393_v15  ;;  %v7403_v39 = vunpack.c.h.b16 %v7393_v15  ;;  %7381 = vst [vmem:[#allocation2 + $0x31c] sm:$0xff] %v7365_v12  ;;  %v7505_v3 = vor.u32 %v7503_v22, %v21667_v17  ;;  %v7435_v10 = vpack.c.b16 %v7432_v20, %v7431_v44  ;;  %v15850_v22 = vld [vmem:[#allocation2 + $0x294] sm:$0xf] }
 0x654   : > { %v7454_v48 = vpack.c.b16 %v21698_v14, %v21698_v14  ;;  %v7499_v5 = vshll.u32 %v21713_v6, 16  ;;  %v7404_v0 = vpack.c.b16 %v7397_v40, %v7396_v53  ;;  %v7405_v47 = vpack.c.b16 %v7399_v21, %v7398_v34 }
 0x655   : > { %v7406_v41 = vpack.c.b16 %v7401_v51, %v7400_v37  ;;  %v7407_v35 = vpack.c.b16 %v7403_v39, %v7402_v62  ;;  %v7436_v8 = vpack.c.b16 %v7434_v31, %v7433_v32  ;;  %v7511_v17 = vshrl.u32 %v21713_v6, 16  ;;  %7445 = vst [vmem:[#allocation2 + $0x2c0] sm:$0xff] %v7435_v10  ;;  %v15937_v32 = vld [vmem:[%s22993_s5 + $0x230] sm:$0xff]  ;;  %v15849_v10 = vld [vmem:[#allocation2 + $0x28c] sm:$0xf] }
 0x656   : > { %v7501_v55 = vrot.slane %v7499_v5, 1  ;;  %v7507_v7 = vshll.u32 %v7454_v48, 16  ;;  %v7514_v14 = vshrl.u32 %v7454_v48, 16  ;;  %7416 = vst [vmem:[#allocation2 + $0x1e0] sm:$0xff] %v7404_v0  ;;  %v14059_v61 = vor.u32 %v15831_v18, %v14056_v33  ;;  %9274 = vmatpush.bf16.msra.mxu0 %v15899_v25  ;;  %9303 = vmatpush.bf16.msrb.mxu1 %v15907_v36  ;;  %v15945_v31 = vld [vmem:[%s22993_s5 + $0x270] sm:$0xff] }
 0x657   : > { %v14135_v42 = vor.u32 %v15859_v38, %v14134_v23  ;;  %v14139_v43 = vor.u32 %v15850_v22, %v14136_v19  ;;  %vm23542_vm9 = vsmask.f32 7424  ;;  %7417 = vst [vmem:[#allocation2 + $0x24c] sm:$0xff] %v7405_v47  ;;  %v14127_v63 = vor.u32 %v15858_v59, %v14126_v11  ;;  %v13934_v19 = vld [vmem:[#allocation2 + $0x18] sm:$0xf]  ;;  %v15936_v11 = vld [vmem:[%s22993_s5 + $0x228] sm:$0xff] }
 0x658   : > { %v7502_v9 = vsel %vm23542_vm9, %v21675_v4, %v7501_v55  ;;  %v7509_v6 = vrot.slane %v7507_v7, 1  ;;  %v7513_v12 = vor.u32 %v7511_v17, %v7501_v55  ;;  %7418 = vst [vmem:[#allocation2 + $0x2b8] sm:$0xff] %v7406_v41  ;;  %9198 = vmatmul.bf16.gmra.mxu1 %v14059_v61  ;;  %vm23543_vm13 = vmmov %vm23542_vm9  ;;  %v15946_v4 = vld [vmem:[%s22993_s5 + $0x278] sm:$0xff]  ;;  %v13936_v18 = vld [vmem:[#allocation2 + $0x84] sm:$0xf0]  ;;  %vm23545_vm14 = vcmask 1043456  }
 0x659   : > { %v7531_v44 = vunpack.c.l.b16 %v7502_v9  ;;  %v7533_v50 = vunpack.c.h.b16 %v7502_v9  ;;  %9232 = vmatmul.bf16.gmra.mxu2 %v14135_v42  ;;  %7419 = vst [vmem:[#allocation2 + $0x324] sm:$0xff] %v7407_v35  ;;  %9261 = vmatmul.bf16.gmra.mxu3 %v14139_v43  ;;  %v14128_v48 = vld [vmem:[#allocation2 + $0x2f4] sm:$0xf0]  ;;  %v15798_v5 = vld [vmem:[#allocation2 + $0x1c] sm:$0xf]  ;;  %v15944_v59 = vld [vmem:[%s22993_s5 + $0x268] sm:$0xff] }
 0x65a   : > { %v7510_v57 = vsel %vm23543_vm13, %v7505_v3, %v7509_v6  ;;  %v7516_v20 = vor.u32 %v7514_v14, %v7509_v6  ;;  %v7519_v34 = vsel %vm16698_vm0, %v7513_v12, 0  ;;  %9174 = vmatmul.bf16.gmra.mxu0 %v14127_v63  ;;  %7446 = vst [vmem:[#allocation2 + $0x32c] sm:$0xff] %v7436_v8  ;;  %9412 = vmatpush.bf16.msra.mxu1 %v15946_v4  ;;  %v15807_v3 = vld [vmem:[#allocation2 + $0x80] sm:$0xf0]  ;;  %v13926_v33 = vld [vmem:[#allocation2 + $0x10] sm:$0xf] }
 0x65b   : > { %v7532_v37 = vunpack.c.l.b16 %v7510_v57  ;;  %v7534_v62 = vunpack.c.h.b16 %v7510_v57  ;;  %v7535_v60 = vunpack.c.l.b16 %v7519_v34  ;;  %v7537_v46 = vunpack.c.h.b16 %v7519_v34  ;;  %9383 = vmatpush.bf16.msrb.mxu0 %v15938_v28  ;;  %v15806_v0 = vld [vmem:[#allocation2 + $0x78] sm:$0xf0]  ;;  %v15935_v7 = vld [vmem:[%s22993_s5 + $0x220] sm:$0xff]  ;;  %v15953_v17 = vld [vmem:[%s22993_s5 + $0x2b0] sm:$0xff] }
 0x65c   : > { %v7520_v15 = vsel %vm16698_vm0, %v7516_v20, 0  ;;  %v14131_v47 = vor.u32 %v15849_v10, %v14128_v48  ;;  %v13935_v41 = vor.u32 %v15807_v3, %v13934_v19  ;;  %v13939_v35 = vor.u32 %v15798_v5, %v13936_v18  ;;  %v15954_v8 = vld [vmem:[%s22993_s5 + $0x2b8] sm:$0xff]  ;;  %v15943_v22 = vld [vmem:[%s22993_s5 + $0x260] sm:$0xff]  ;;  %v15961_v14 = vld [vmem:[%s22993_s5 + $0x2f0] sm:$0xff] }
 0x65d   : > { %v7536_v16 = vunpack.c.l.b16 %v7520_v15  ;;  %v7538_v40 = vunpack.c.h.b16 %v7520_v15  ;;  %v7543_v21 = vpack.c.b16 %v7532_v37, %v7531_v44  ;;  %v7544_v51 = vpack.c.b16 %v7534_v62, %v7533_v50  ;;  %v15962_v55 = vld [vmem:[%s22993_s5 + $0x2f8] sm:$0xff]  ;;  %9441 = vmatpush.bf16.msra.mxu2 %v15954_v8  ;;  %v15952_v61 = vld [vmem:[%s22993_s5 + $0x2a8] sm:$0xff]  ;;  %v15797_v43 = vld [vmem:[#allocation2 + $0x14] sm:$0xf] }
 0x65e   : > { %9413 = vmatpush.bf16.msra.mxu1 %v15945_v31  ;;  %v13927_v23 = vor.u32 %v15806_v0, %v13926_v33  ;;  %9470 = vmatpush.bf16.msra.mxu3 %v15962_v55  ;;  %v15960_v42 = vld [vmem:[%s22993_s5 + $0x2e8] sm:$0xff]  ;;  %v13928_v25 = vld [vmem:[#allocation2 + $0x7c] sm:$0xf0]  ;;  %v14006_v36 = vld [vmem:[#allocation2 + $0xf0] sm:$0xf] }
 0x65f   : > { %v7545_v39 = vpack.c.b16 %v7536_v16, %v7535_v60  ;;  %v7546_v38 = vpack.c.b16 %v7538_v40, %v7537_v46  ;;  %7559 = vst [vmem:[#allocation2 + $0x1f0] sm:$0xff] %v7543_v21  ;;  %9384 = vmatpush.bf16.msrb.mxu0 %v15937_v32  ;;  %v15825_v9 = vld [vmem:[#allocation2 + $0x158] sm:$0xf0]  ;;  %v15816_v6 = vld [vmem:[#allocation2 + $0xf4] sm:$0xf]  ;;  %v15951_v12 = vld [vmem:[%s22993_s5 + $0x2a0] sm:$0xff]  ;;  %v13931_v28 = vor.u32 %v15797_v43, %v13928_v25 }
 0x660   : > { %7560 = vst [vmem:[#allocation2 + $0x25c] sm:$0xff] %v7544_v51  ;;  %v14008_v63 = vld [vmem:[#allocation2 + $0x15c] sm:$0xf0]  ;;  %v13998_v44 = vld [vmem:[#allocation2 + $0xe8] sm:$0xf]  ;;  %v14007_v57 = vor.u32 %v15825_v9, %v14006_v36  ;;  %v15934_v37 = vld [vmem:[%s22993_s5 + $0x218] sm:$0xff] }
 0x661   : > { %7561 = vst [vmem:[#allocation2 + $0x2c8] sm:$0xff] %v7545_v39  ;;  %9442 = vmatpush.bf16.msra.mxu2 %v15953_v17  ;;  %v15824_v50 = vld [vmem:[#allocation2 + $0x150] sm:$0xf0]  ;;  %v15959_v20 = vld [vmem:[%s22993_s5 + $0x2e0] sm:$0xff]  ;;  %v14011_v34 = vor.u32 %v15816_v6, %v14008_v63  ;;  %v15942_v62 = vld [vmem:[%s22993_s5 + $0x258] sm:$0xff] }
 0x662   : > { %7562 = vst [vmem:[#allocation2 + $0x334] sm:$0xff] %v7546_v38  ;;  %9414 = vmatpush.bf16.msra.mxu1 %v15944_v59  ;;  %9471 = vmatpush.bf16.msra.mxu3 %v15961_v14  ;;  %v13999_v4 = vor.u32 %v15824_v50, %v13998_v44  ;;  %v15950_v60 = vld [vmem:[%s22993_s5 + $0x298] sm:$0xff]  ;;  %v15933_v15 = vld [vmem:[%s22993_s5 + $0x210] sm:$0xff]  ;;  %v15948_v40 = vld [vmem:[%s22993_s5 + $0x288] sm:$0xff] }
 0x663   : > { %9385 = vmatpush.bf16.msrb.mxu0 %v15936_v11  ;;  %v15958_v46 = vld [vmem:[%s22993_s5 + $0x2d8] sm:$0xff]  ;;  %v15949_v32 = vld [vmem:[%s22993_s5 + $0x290] sm:$0xff]  ;;  %v15815_v21 = vld [vmem:[#allocation2 + $0xec] sm:$0xf] }
 0x664   : > { %v15941_v31 = vld [vmem:[%s22993_s5 + $0x250] sm:$0xff]  ;;  %v14000_v51 = vld [vmem:[#allocation2 + $0x154] sm:$0xf0]  ;;  %v14078_v39 = vld [vmem:[#allocation2 + $0x1c8] sm:$0xf] }
 0x665   : > { %9443 = vmatpush.bf16.msra.mxu2 %v15952_v61  ;;  %v15957_v16 = vld [vmem:[%s22993_s5 + $0x2d0] sm:$0xff]  ;;  %v15956_v38 = vld [vmem:[%s22993_s5 + $0x2c8] sm:$0xff]  ;;  %v15947_v10 = vld [vmem:[%s22993_s5 + $0x280] sm:$0xff]  ;;  %v14003_v33 = vor.u32 %v15815_v21, %v14000_v51 }
 0x666   : > { %9415 = vmatpush.bf16.msra.mxu1 %v15943_v22  ;;  %9472 = vmatpush.bf16.msra.mxu3 %v15960_v42  ;;  %v15843_v19 = vld [vmem:[#allocation2 + $0x230] sm:$0xf0]  ;;  %v15834_v3 = vld [vmem:[#allocation2 + $0x1cc] sm:$0xf]  ;;  %v14080_v48 = vld [vmem:[#allocation2 + $0x234] sm:$0xf0] }
 0x667   : > { %9386 = vmatpush.bf16.msrb.mxu0 %v15935_v7  ;;  %v14070_v5 = vld [vmem:[#allocation2 + $0x1c0] sm:$0xf]  ;;  %v15842_v18 = vld [vmem:[#allocation2 + $0x228] sm:$0xf0]  ;;  %v14079_v0 = vor.u32 %v15843_v19, %v14078_v39  ;;  %v15833_v55 = vld [vmem:[#allocation2 + $0x1c4] sm:$0xf] }
 0x668   : > { %9203 = vmatmul.bf16.gmra.mxu1 %v14131_v47  ;;  %v15955_v47 = vld [vmem:[%s22993_s5 + $0x2c0] sm:$0xff]  ;;  %v15940_v11 = vld [vmem:[%s22993_s5 + $0x248] sm:$0xff]  ;;  %v14072_v7 = vld [vmem:[#allocation2 + $0x22c] sm:$0xf0] }
 0x669   : > { %9333 = vmatmul.bf16.vlgmr.msrb.gmra.mxu2 %v13935_v41  ;;  %9362 = vmatmul.bf16.vlgmr.msrb.gmra.mxu3 %v13939_v35  ;;  %v14083_v41 = vor.u32 %v15834_v3, %v14080_v48  ;;  %v14071_v35 = vor.u32 %v15842_v18, %v14070_v5  ;;  %v15931_v59 = vld [vmem:[%s22993_s5 + $0x200] sm:$0xff]  ;;  %v15861_v22 = vld [vmem:[#allocation2 + $0x308] sm:$0xf0]  ;;  %v14142_v14 = vld [vmem:[#allocation2 + $0x298] sm:$0xf]  ;;  %v14075_v25 = vor.u32 %v15833_v55, %v14072_v7 }
 0x66a   : > { %9275 = vmatmul.bf16.vlgmr.msra.gmra.mxu0 %v13927_v23  ;;  %9444 = vmatpush.bf16.msra.mxu2 %v15951_v12  ;;  %v15932_v23 = vld [vmem:[%s22993_s5 + $0x208] sm:$0xff]  ;;  %v15939_v8 = vld [vmem:[%s22993_s5 + $0x240] sm:$0xff]  ;;  %v14152_v42 = vld [vmem:[#allocation2 + $0x30c] sm:$0xf0] }
 0x66b   : > { %9473 = vmatpush.bf16.msra.mxu3 %v15959_v20  ;;  %9387 = vmatpush.bf16.msrb.mxu0 %v15934_v37  ;;  %v14150_v17 = vld [vmem:[#allocation2 + $0x2a0] sm:$0xf]  ;;  %v15852_v61 = vld [vmem:[#allocation2 + $0x2a4] sm:$0xf]  ;;  %v15970_v12 = vld [vmem:[%s22993_s5 + $0x338] sm:$0xff] }
 0x66c   : > { %9416 = vmatpush.bf16.msra.mxu1 %v15942_v62  ;;  %v15860_v43 = vld [vmem:[#allocation2 + $0x300] sm:$0xf0]  ;;  %v14151_v36 = vor.u32 %v15861_v22, %v14150_v17  ;;  %v14155_v9 = vor.u32 %v15852_v61, %v14152_v42  ;;  %v15978_v63 = vld [vmem:[%s22993_s5 + $0x378] sm:$0xff]  ;;  %v15969_v50 = vld [vmem:[%s22993_s5 + $0x330] sm:$0xff] }
 0x66d   : > { %v14143_v6 = vor.u32 %v15860_v43, %v14142_v14  ;;  %v21954_v20 = vld [vmem:[%s22994_s6] ss:$0 sm:$0xff]  ;;  %v15851_v37 = vld [vmem:[#allocation2 + $0x29c] sm:$0xf]  ;;  %v14144_v62 = vld [vmem:[#allocation2 + $0x304] sm:$0xf0] }
 0x66e   : > { %9445 = vmatpush.bf16.msra.mxu2 %v15950_v60  ;;  %v15809_v60 = vld [vmem:[#allocation2 + $0x90] sm:$0xf0]  ;;  %v13942_v51 = vld [vmem:[#allocation2 + $0x20] sm:$0xf]  ;;  %v15968_v3 = vld [vmem:[%s22993_s5 + $0x328] sm:$0xff] }
 0x66f   : > { %9474 = vmatpush.bf16.msra.mxu3 %v15958_v46  ;;  %9388 = vmatpush.bf16.msrb.mxu0 %v15933_v15  ;;  %v15800_v46 = vld [vmem:[#allocation2 + $0x2c] sm:$0xf]  ;;  %v13952_v15 = vld [vmem:[#allocation2 + $0x94] sm:$0xf0]  ;;  %v13944_v17 = vld [vmem:[#allocation2 + $0x8c] sm:$0xf0] }
 0x670   : > { %9417 = vmatpush.bf16.msra.mxu1 %v15941_v31  ;;  %v13955_v39 = vor.u32 %v15800_v46, %v13952_v15  ;;  %v15976_v5 = vld [vmem:[%s22993_s5 + $0x368] sm:$0xff]  ;;  %v15986_v18 = vld [vmem:[%s22993_s5 + $0x3b8] sm:$0xff]  ;;  %v14022_v22 = vld [vmem:[#allocation2 + $0x100] sm:$0xf] }
 0x671   : > { %v15992_v7 = vld [vmem:[%s22993_s5 + $0x3e8] sm:$0xff]  ;;  %v15818_v42 = vld [vmem:[#allocation2 + $0x104] sm:$0xf]  ;;  %v14024_v43 = vld [vmem:[#allocation2 + $0x16c] sm:$0xf0] }
 0x672   : > { %9446 = vmatpush.bf16.msra.mxu2 %v15949_v32  ;;  %v15808_v32 = vld [vmem:[#allocation2 + $0x88] sm:$0xf0]  ;;  %v15974_v15 = vld [vmem:[%s22993_s5 + $0x358] sm:$0xff] }
 0x673   : > { %9475 = vmatpush.bf16.msra.mxu3 %v15957_v16  ;;  %9389 = vmatpush.bf16.msrb.mxu0 %v15932_v23  ;;  %v15827_v14 = vld [vmem:[#allocation2 + $0x168] sm:$0xf0] }
 0x674   : > { %9418 = vmatpush.bf16.msra.mxu1 %v15940_v11  ;;  %v15993_v11 = vld [vmem:[%s22993_s5 + $0x3f0] sm:$0xff] }
 0x676   : > { %9447 = vmatpush.bf16.msra.mxu2 %v15948_v40  ;;  %v14147_v40 = vor.u32 %v15851_v37, %v14144_v62  ;;  %v15983_v37 = vld [vmem:[%s22993_s5 + $0x3a0] sm:$0xff] }
 0x677   : > { %9476 = vmatpush.bf16.msra.mxu3 %v15956_v38  ;;  %9390 = vmatpush.bf16.msrb.mxu0 %v15931_v59  ;;  %v13943_v38 = vor.u32 %v15808_v32, %v13942_v51  ;;  %v15991_v62 = vld [vmem:[%s22993_s5 + $0x3e0] sm:$0xff]  ;;  %v15982_v32 = vld [vmem:[%s22993_s5 + $0x398] sm:$0xff] }
 0x678   : > { %9304 = vmatmul.bf16.vlgmr.msrb.gmra.mxu1 %v13931_v28  ;;  %v15977_v28 = vld [vmem:[%s22993_s5 + $0x370] sm:$0xff] }
 0x679   : > { %9338 = vmatmul.bf16.gmra.mxu2 %v14007_v57  ;;  %9367 = vmatmul.bf16.gmra.mxu3 %v14011_v34  ;;  %v13950_v34 = vld [vmem:[#allocation2 + $0x28] sm:$0xf] }
 0x67a   : > { %9280 = vmatmul.bf16.gmra.mxu0 %v13999_v4  ;;  %9448 = vmatpush.bf16.msra.mxu2 %v15947_v10  ;;  %v13951_v21 = vor.u32 %v15809_v60, %v13950_v34  ;;  %v15966_v60 = vld [vmem:[%s22993_s5 + $0x318] sm:$0xff] }
 0x67b   : > { %9477 = vmatpush.bf16.msra.mxu3 %v15955_v47  ;;  %9419 = vmatpush.bf16.msra.mxu1 %v15939_v8  ;;  %v15984_v8 = vld [vmem:[%s22993_s5 + $0x3a8] sm:$0xff] }
 0x67c   : > { %9499 = vmatpush.bf16.msra.mxu0 %v15970_v12  ;;  %v14023_v12 = vor.u32 %v15827_v14, %v14022_v22  ;;  %v14086_v22 = vld [vmem:[#allocation2 + $0x1d0] sm:$0xf] }
 0x67e   : > { %9557 = vmatpush.bf16.msrb.mxu2 %v15986_v18  ;;  %v15988_v18 = vld [vmem:[%s22993_s5 + $0x3c8] sm:$0xff] }
 0x67f   : > { %9528 = vmatpush.bf16.msrb.mxu1 %v15978_v63 }
 0x680   : > { %9500 = vmatpush.bf16.msra.mxu0 %v15969_v50  ;;  %v14027_v50 = vor.u32 %v15818_v42, %v14024_v43  ;;  %v15979_v43 = vld [vmem:[%s22993_s5 + $0x380] sm:$0xff] }
 0x682   : > { %v9218_v57 = vpop.f32.mrf.mxu2  ;;  %v21956_v4 = vpop.f32.mrf.mxu3 }
 0x683   : > { %9529 = vmatpush.bf16.msrb.mxu1 %v15977_v28 }
 0x684   : > { %9501 = vmatpush.bf16.msra.mxu0 %v15968_v3  ;;  %v15973_v3 = vld [vmem:[%s22993_s5 + $0x350] sm:$0xff] }
 0x687   : > { %9530 = vmatpush.bf16.msrb.mxu1 %v15976_v5  ;;  %v15980_v5 = vld [vmem:[%s22993_s5 + $0x388] sm:$0xff] }
 0x688   : > { %9309 = vmatmul.bf16.gmra.mxu1 %v14003_v33  ;;  %v15994_v33 = vld [vmem:[%s22993_s5 + $0x3f8] sm:$0xff] }
 0x689   : > { %9343 = vmatmul.bf16.gmra.mxu2 %v14079_v0  ;;  %9372 = vmatmul.bf16.gmra.mxu3 %v14083_v41  ;;  %v15967_v0 = vld [vmem:[%s22993_s5 + $0x320] sm:$0xff]  ;;  %v15985_v41 = vld [vmem:[%s22993_s5 + $0x3b0] sm:$0xff] }
 0x68a   : > { %9285 = vmatmul.bf16.gmra.mxu0 %v14071_v35  ;;  %v21964_v10 = vpop.f32.mrf.mxu2  ;;  %v15975_v35 = vld [vmem:[%s22993_s5 + $0x360] sm:$0xff]  ;;  %v21986_v23 = vpop.f32.mrf.mxu3  ;;  %9586 = vmatpush.bf16.msrb.mxu3 %v15994_v33  ;;  %v14016_v33 = vld [vmem:[#allocation2 + $0x164] sm:$0xf0] }
 0x68b   : > { %9502 = vmatpush.bf16.msra.mxu0 %v15967_v0  ;;  %9558 = vmatpush.bf16.msrb.mxu2 %v15985_v41  ;;  %v14094_v0 = vld [vmem:[#allocation2 + $0x1d8] sm:$0xf]  ;;  %v15845_v41 = vld [vmem:[#allocation2 + $0x240] sm:$0xf0] }
 0x68c   : > { %9531 = vmatpush.bf16.msrb.mxu1 %v15975_v35  ;;  %v15836_v35 = vld [vmem:[#allocation2 + $0x1dc] sm:$0xf] }
 0x68e   : > { %v9160_v44 = vpop.f32.mrf.mxu0  ;;  %9587 = vmatpush.bf16.msrb.mxu3 %v15993_v11  ;;  %v14096_v11 = vld [vmem:[#allocation2 + $0x244] sm:$0xf0] }
 0x68f   : > { %v9161_v16 = vadd.f32 %v21954_v20, %v9160_v44  ;;  %9559 = vmatpush.bf16.msrb.mxu2 %v15984_v8  ;;  %v14014_v44 = vld [vmem:[#allocation2 + $0xf8] sm:$0xf]  ;;  %9503 = vmatpush.bf16.msra.mxu0 %v15966_v60  ;;  %v15817_v8 = vld [vmem:[#allocation2 + $0xfc] sm:$0xf]  ;;  %v14099_v14 = vor.u32 %v15836_v35, %v14096_v11  ;;  %v14088_v60 = vld [vmem:[#allocation2 + $0x23c] sm:$0xf0] }
 0x690   : > { %9532 = vmatpush.bf16.msrb.mxu1 %v15974_v15  ;;  %v15863_v15 = vld [vmem:[#allocation2 + $0x318] sm:$0xf0] }
 0x691   : > { %v16002_v35 = vld [vmem:[%s22993_s5 + $0x438] sm:$0xff] }
 0x692   : > { %v9223_v61 = vpop.f32.mrf.mxu2  ;;  %9588 = vmatpush.bf16.msrb.mxu3 %v15992_v7  ;;  %v22000_v63 = vpop.f32.mrf.mxu3  ;;  %v14019_v7 = vor.u32 %v15817_v8, %v14016_v33  ;;  %v14158_v33 = vld [vmem:[#allocation2 + $0x2a8] sm:$0xf]  ;;  %v16010_v11 = vld [vmem:[%s22993_s5 + $0x478] sm:$0xff] }
 0x693   : > { %9560 = vmatpush.bf16.msrb.mxu2 %v15983_v37 }
 0x694   : > { %9533 = vmatpush.bf16.msrb.mxu1 %v15973_v3 }
 0x696   : > { %v21958_v31 = vpop.f32.mrf.mxu0  ;;  %9589 = vmatpush.bf16.msrb.mxu3 %v15991_v62 }
 0x697   : > { %9561 = vmatpush.bf16.msrb.mxu2 %v15982_v32 }
 0x698   : > { %9314 = vmatmul.bf16.gmra.mxu1 %v14075_v25  ;;  %v15826_v25 = vld [vmem:[#allocation2 + $0x160] sm:$0xf0] }
 0x699   : > { %9348 = vmatmul.bf16.gmra.mxu2 %v14151_v36  ;;  %9377 = vmatmul.bf16.gmra.mxu3 %v14155_v9  ;;  %v15799_v36 = vld [vmem:[#allocation2 + $0x24] sm:$0xf]  ;;  %v14015_v28 = vor.u32 %v15826_v25, %v14014_v44 }
 0x69a   : > { %9290 = vmatmul.bf16.gmra.mxu0 %v14143_v6  ;;  %v13947_v6 = vor.u32 %v15799_v36, %v13944_v17  ;;  %v22026_v51 = vpop.f32.mrf.mxu3  ;;  %v14095_v17 = vor.u32 %v15845_v41, %v14094_v0  ;;  %v15987_v25 = vld [vmem:[%s22993_s5 + $0x3c0] sm:$0xff]  ;;  %v15964_v36 = vld [vmem:[%s22993_s5 + $0x308] sm:$0xff] }
 0x6a7   : > { %v9189_v19 = vpop.f32.mrf.mxu1 }
 0x6a8   : > { %9319 = vmatmul.bf16.gmra.mxu1 %v14147_v40  ;;  %v9190_v48 = vadd.f32 %v9189_v19, %v9161_v16  ;;  %v9165_v59 = vpop.f32.mrf.mxu0  ;;  %v15990_v16 = vld [vmem:[%s22993_s5 + $0x3d8] sm:$0xff]  ;;  %v15965_v19 = vld [vmem:[%s22993_s5 + $0x310] sm:$0xff] }
 0x6a9   : > { %9449 = vmatmul.bf16.vlgmr.msra.gmra.mxu2 %v13951_v21  ;;  %9478 = vmatmul.bf16.vlgmr.msra.gmra.mxu3 %v13955_v39  ;;  %v9166_v9 = vadd.f32 %v21954_v20, %v9165_v59  ;;  %v22024_v21 = vpop.f32.mrf.mxu2  ;;  %v15981_v39 = vld [vmem:[%s22993_s5 + $0x390] sm:$0xff]  ;;  %v15844_v59 = vld [vmem:[#allocation2 + $0x238] sm:$0xf0] }
 0x6aa   : > { %9391 = vmatmul.bf16.vlgmr.msrb.gmra.mxu0 %v13943_v38  ;;  %v21978_v47 = vadd.f32 %v9218_v57, %v9190_v48  ;;  %9590 = vmatpush.bf16.msrb.mxu3 %v15990_v16  ;;  %v15989_v38 = vld [vmem:[%s22993_s5 + $0x3d0] sm:$0xff]  ;;  %v14087_v42 = vor.u32 %v15844_v59, %v14086_v22 }
 0x6ab   : > { %9562 = vmatpush.bf16.msrb.mxu2 %v15981_v39  ;;  %9504 = vmatpush.bf16.msra.mxu0 %v15965_v19  ;;  %v15854_v16 = vld [vmem:[#allocation2 + $0x2b4] sm:$0xf] }
 0x6ae   : > { %9591 = vmatpush.bf16.msrb.mxu3 %v15989_v38  ;;  %v15835_v38 = vld [vmem:[#allocation2 + $0x1d4] sm:$0xf] }
 0x6af   : > { %v21994_v55 = vpop.f32.mrf.mxu1  ;;  %9563 = vmatpush.bf16.msrb.mxu2 %v15980_v5  ;;  %9505 = vmatpush.bf16.msra.mxu0 %v15964_v36  ;;  %v14091_v3 = vor.u32 %v15835_v38, %v14088_v60  ;;  %v13966_v60 = vld [vmem:[#allocation2 + $0x38] sm:$0xf] }
 0x6b0   : > { %v22002_v34 = vpop.f32.mrf.mxu0 }
 0x6b2   : > { %9592 = vmatpush.bf16.msrb.mxu3 %v15988_v18 }
 0x6b3   : > { %9564 = vmatpush.bf16.msrb.mxu2 %v15979_v43  ;;  %v16001_v43 = vld [vmem:[%s22993_s5 + $0x430] sm:$0xff] }
 0x6b6   : > { %9593 = vmatpush.bf16.msrb.mxu3 %v15987_v25  ;;  %v16009_v25 = vld [vmem:[%s22993_s5 + $0x470] sm:$0xff] }
 0x6b7   : > { %v9194_v57 = vpop.f32.mrf.mxu1 }
 0x6b8   : > { %9420 = vmatmul.bf16.vlgmr.msra.gmra.mxu1 %v13947_v6  ;;  %v9195_v46 = vadd.f32 %v9194_v57, %v9166_v9  ;;  %v15972_v9 = vld [vmem:[%s22993_s5 + $0x348] sm:$0xff]  ;;  %v22058_v6 = vpop.f32.mrf.mxu3  ;;  %v15971_v57 = vld [vmem:[%s22993_s5 + $0x340] sm:$0xff] }
 0x6b9   : > { %9454 = vmatmul.bf16.gmra.mxu2 %v14023_v12  ;;  %9483 = vmatmul.bf16.gmra.mxu3 %v14027_v50  ;;  %v9248_v50 = vadd.f32 %v21956_v4, %v21978_v47  ;;  %v14168_v4 = vld [vmem:[#allocation2 + $0x31c] sm:$0xf0]  ;;  %v15862_v47 = vld [vmem:[#allocation2 + $0x310] sm:$0xf0] }
 0x6ba   : > { %9396 = vmatmul.bf16.gmra.mxu0 %v14015_v28  ;;  %v22022_v40 = vadd.f32 %v9223_v61, %v9195_v46  ;;  %v9228_v61 = vpop.f32.mrf.mxu2  ;;  %9534 = vmatpush.bf16.msrb.mxu1 %v15972_v9  ;;  %v15963_v28 = vld [vmem:[%s22993_s5 + $0x300] sm:$0xff]  ;;  %v14166_v46 = vld [vmem:[#allocation2 + $0x2b0] sm:$0xf]  ;;  %v14171_v0 = vor.u32 %v15854_v16, %v14168_v4  ;;  %v14159_v41 = vor.u32 %v15862_v47, %v14158_v33  ;;  %v15802_v4 = vld [vmem:[#allocation2 + $0x3c] sm:$0xf] }
 0x6bb   : > { %9506 = vmatpush.bf16.msra.mxu0 %v15963_v28  ;;  %v14167_v5 = vor.u32 %v15863_v15, %v14166_v46  ;;  %v15811_v28 = vld [vmem:[#allocation2 + $0xa0] sm:$0xf0]  ;;  %v16008_v33 = vld [vmem:[%s22993_s5 + $0x468] sm:$0xff] }
 0x6bc   : > { %v9170_v48 = vpop.f32.mrf.mxu0  ;;  %v13967_v16 = vor.u32 %v15811_v28, %v13966_v60  ;;  %v15828_v28 = vld [vmem:[#allocation2 + $0x170] sm:$0xf0] }
 0x6bd   : > { %v9171_v62 = vadd.f32 %v21954_v20, %v9170_v48  ;;  %v15820_v60 = vld [vmem:[#allocation2 + $0x114] sm:$0xf] }
 0x6be   : > { %9535 = vmatpush.bf16.msrb.mxu1 %v15971_v57  ;;  %v13968_v57 = vld [vmem:[#allocation2 + $0xa4] sm:$0xf0] }
 0x6bf   : > { %v22060_v12 = vpop.f32.mrf.mxu1  ;;  %9615 = vmatpush.bf16.msrb.mxu0 %v16002_v35 }
 0x6c0   : > { %v22071_v32 = vpop.f32.mrf.mxu3 }
 0x6c2   : > { %v9230_v37 = vpop.f32.mrf.mxu2  ;;  %9644 = vmatpush.bf16.msra.mxu1 %v16010_v11 }
 0x6c3   : > { %9616 = vmatpush.bf16.msrb.mxu0 %v16001_v43  ;;  %v16007_v43 = vld [vmem:[%s22993_s5 + $0x460] sm:$0xff] }
 0x6c4   : > { %v9172_v44 = vpop.f32.mrf.mxu0 }
 0x6c5   : > { %v9173_v59 = vadd.f32 %v21954_v20, %v9172_v44  ;;  %v14160_v44 = vld [vmem:[#allocation2 + $0x314] sm:$0xf0] }
 0x6c6   : > { %9645 = vmatpush.bf16.msra.mxu1 %v16009_v25 }
 0x6c8   : > { %9425 = vmatmul.bf16.gmra.mxu1 %v14019_v7 }
 0x6c9   : > { %9459 = vmatmul.bf16.gmra.mxu2 %v14095_v17  ;;  %9488 = vmatmul.bf16.gmra.mxu3 %v14099_v14 }
 0x6ca   : > { %9401 = vmatmul.bf16.gmra.mxu0 %v14087_v42  ;;  %9646 = vmatpush.bf16.msra.mxu1 %v16008_v33 }
 0x6ce   : > { %9647 = vmatpush.bf16.msra.mxu1 %v16007_v43 }
 0x6d5   : > { %v9199_v39 = vpop.f32.mrf.mxu1 }
 0x6d6   : > { %v9200_v19 = vadd.f32 %v9199_v39, %v9171_v62  ;;  %v15853_v62 = vld [vmem:[#allocation2 + $0x2ac] sm:$0xf]  ;;  %v13971_v39 = vor.u32 %v15802_v4, %v13968_v57 }
 0x6d7   : > { %v9175_v18 = vpop.f32.mrf.mxu0  ;;  %v14163_v15 = vor.u32 %v15853_v62, %v14160_v44  ;;  %v14030_v44 = vld [vmem:[#allocation2 + $0x108] sm:$0xf] }
 0x6d8   : > { %v9229_v48 = vadd.f32 %v9228_v61, %v9200_v19  ;;  %9430 = vmatmul.bf16.gmra.mxu1 %v14091_v3  ;;  %v22084_v61 = vadd.f32 %v22000_v63, %v22022_v40  ;;  %v9176_v36 = vadd.f32 %v21954_v20, %v9175_v18  ;;  %v13958_v63 = vld [vmem:[#allocation2 + $0x30] sm:$0xf]  ;;  %v15810_v40 = vld [vmem:[#allocation2 + $0x98] sm:$0xf0]  ;;  %v16000_v18 = vld [vmem:[%s22993_s5 + $0x428] sm:$0xff]  ;;  %v14031_v4 = vor.u32 %v15828_v28, %v14030_v44 }
 0x6d9   : > { %9464 = vmatmul.bf16.gmra.mxu2 %v14167_v5  ;;  %9493 = vmatmul.bf16.gmra.mxu3 %v14171_v0  ;;  %v13959_v19 = vor.u32 %v15810_v40, %v13958_v63  ;;  %v14038_v63 = vld [vmem:[#allocation2 + $0x110] sm:$0xf]  ;;  %v15838_v44 = vld [vmem:[#allocation2 + $0x1ec] sm:$0xf] }
 0x6da   : > { %9406 = vmatmul.bf16.gmra.mxu0 %v14159_v41  ;;  %v9163_v41 = vadd.f32 %v21954_v20, %v21958_v31 }
 0x6db   : > { %9617 = vmatpush.bf16.msrb.mxu0 %v16000_v18 }
 0x6dc   : > { %v9233_v8 = vpop.f32.mrf.mxu2  ;;  %v22080_v17 = vpop.f32.mrf.mxu3 }
 0x6dd   : > { %v9201_v7 = vpop.f32.mrf.mxu1 }
 0x6de   : > { %v9202_v22 = vadd.f32 %v9201_v7, %v9173_v59  ;;  %v9192_v7 = vadd.f32 %v21994_v55, %v9163_v41 }
 0x6df   : > { %v9177_v14 = vpop.f32.mrf.mxu0 }
 0x6e0   : > { %v22086_v42 = vadd.f32 %v9230_v37, %v9202_v22  ;;  %v9178_v0 = vadd.f32 %v21954_v20, %v9177_v14  ;;  %v15999_v14 = vld [vmem:[%s22993_s5 + $0x420] sm:$0xff]  ;;  %v9221_v55 = vadd.f32 %v21964_v10, %v9192_v7  ;;  %v15847_v7 = vld [vmem:[#allocation2 + $0x250] sm:$0xf0] }
 0x6e1   : > { %9618 = vmatpush.bf16.msrb.mxu0 %v15999_v14  ;;  %v14102_v14 = vld [vmem:[#allocation2 + $0x1e0] sm:$0xf] }
 0x6e2   : > { %v9250_v10 = vadd.f32 %v21986_v23, %v9221_v55 }
 0x6e4   : > { %v9235_v9 = vpop.f32.mrf.mxu2  ;;  %v22095_v3 = vpop.f32.mrf.mxu3 }
 0x6e5   : > { %v9204_v37 = vpop.f32.mrf.mxu1 }
 0x6e6   : > { %v9205_v46 = vadd.f32 %v9204_v37, %v9176_v36  ;;  %v15829_v36 = vld [vmem:[#allocation2 + $0x178] sm:$0xf0] }
 0x6e7   : > { %v9276_v47 = vpop.f32.mrf.mxu0  ;;  %v14039_v62 = vor.u32 %v15829_v36, %v14038_v63 }
 0x6e8   : > { %v9277_v38 = vadd.f32 %v9276_v47, %v9248_v50  ;;  %v9234_v5 = vadd.f32 %v9233_v8, %v9205_v46  ;;  %9435 = vmatmul.bf16.gmra.mxu1 %v14163_v15  ;;  %v22107_v8 = vadd.f32 %v22058_v6, %v9229_v48  ;;  %v15801_v6 = vld [vmem:[#allocation2 + $0x34] sm:$0xf]  ;;  %v13960_v48 = vld [vmem:[#allocation2 + $0x9c] sm:$0xf0]  ;;  %v9260_v47 = vadd.f32 %v22071_v32, %v22086_v42 }
 0x6e9   : > { %9565 = vmatmul.bf16.vlgmr.msrb.gmra.mxu2 %v13967_v16  ;;  %9594 = vmatmul.bf16.vlgmr.msrb.gmra.mxu3 %v13971_v39  ;;  %v13963_v37 = vor.u32 %v15801_v6, %v13960_v48  ;;  %v9168_v32 = vadd.f32 %v21954_v20, %v22002_v34  ;;  %v15819_v34 = vld [vmem:[#allocation2 + $0x10c] sm:$0xf]  ;;  %v14110_v6 = vld [vmem:[#allocation2 + $0x1e8] sm:$0xf] }
 0x6ea   : > { %9507 = vmatmul.bf16.vlgmr.msra.gmra.mxu0 %v13959_v19  ;;  %v16006_v19 = vld [vmem:[%s22993_s5 + $0x458] sm:$0xff] }
 0x6eb   : > { %9648 = vmatpush.bf16.msra.mxu1 %v16006_v19  ;;  %v9197_v41 = vadd.f32 %v22060_v12, %v9168_v32  ;;  %v15846_v12 = vld [vmem:[#allocation2 + $0x248] sm:$0xf0]  ;;  %v16003_v19 = vld [vmem:[%s22993_s5 + $0x440] sm:$0xff] }
 0x6ec   : > { %v9334_v50 = vpop.f32.mrf.mxu2  ;;  %v22118_v25 = vpop.f32.mrf.mxu3 }
 0x6ed   : > { %v9206_v35 = vpop.f32.mrf.mxu1 }
 0x6ee   : > { %v9207_v11 = vadd.f32 %v9206_v35, %v9178_v0  ;;  %v15997_v35 = vld [vmem:[%s22993_s5 + $0x410] sm:$0xff] }
 0x6ef   : > { %v9278_v59 = vpop.f32.mrf.mxu0 }
 0x6f0   : > { %v22110_v22 = vadd.f32 %v9235_v9, %v9207_v11  ;;  %v14040_v9 = vld [vmem:[#allocation2 + $0x17c] sm:$0xf0]  ;;  %v16005_v11 = vld [vmem:[%s22993_s5 + $0x450] sm:$0xff] }
 0x6f1   : > { %v14043_v15 = vor.u32 %v15820_v60, %v14040_v9  ;;  %9649 = vmatpush.bf16.msra.mxu1 %v16005_v11  ;;  %v14111_v9 = vor.u32 %v15847_v7, %v14110_v6  ;;  %v15996_v60 = vld [vmem:[%s22993_s5 + $0x408] sm:$0xff] }
 0x6f4   : > { %v22120_v31 = vpop.f32.mrf.mxu2  ;;  %v22135_v42 = vpop.f32.mrf.mxu3 }
 0x6f5   : > { %v9305_v57 = vpop.f32.mrf.mxu1 }
 0x6f6   : > { %v9306_v40 = vadd.f32 %v9305_v57, %v9277_v38  ;;  %v15998_v38 = vld [vmem:[%s22993_s5 + $0x418] sm:$0xff] }
 0x6f7   : > { %v9281_v46 = vpop.f32.mrf.mxu0  ;;  %9619 = vmatpush.bf16.msrb.mxu0 %v15998_v38  ;;  %v15995_v38 = vld [vmem:[%s22993_s5 + $0x400] sm:$0xff] }
 0x6f8   : > { %v9282_v16 = vadd.f32 %v9281_v46, %v22084_v61  ;;  %v9335_v39 = vadd.f32 %v9334_v50, %v9306_v40  ;;  %9536 = vmatmul.bf16.vlgmr.msrb.gmra.mxu1 %v13963_v37  ;;  %v9279_v61 = vadd.f32 %v9278_v59, %v9250_v10  ;;  %v22140_v50 = vadd.f32 %v22080_v17, %v9234_v5  ;;  %v14032_v59 = vld [vmem:[#allocation2 + $0x174] sm:$0xf0]  ;;  %v16004_v46 = vld [vmem:[%s22993_s5 + $0x448] sm:$0xff] }
 0x6f9   : > { %9570 = vmatmul.bf16.gmra.mxu2 %v14039_v62  ;;  %9599 = vmatmul.bf16.gmra.mxu3 %v14043_v15  ;;  %v9226_v17 = vadd.f32 %v22024_v21, %v9197_v41  ;;  %v14112_v5 = vld [vmem:[#allocation2 + $0x254] sm:$0xf0]  ;;  %v14035_v55 = vor.u32 %v15819_v34, %v14032_v59  ;;  %v14103_v40 = vor.u32 %v15846_v12, %v14102_v14  ;;  %v15864_v41 = vld [vmem:[#allocation2 + $0x320] sm:$0xf0] }
 0x6fa   : > { %9512 = vmatmul.bf16.gmra.mxu0 %v14031_v4  ;;  %v14115_v57 = vor.u32 %v15838_v44, %v14112_v5  ;;  %v9265_v37 = vadd.f32 %v22095_v3, %v22110_v22  ;;  %9650 = vmatpush.bf16.msra.mxu1 %v16004_v46 }
 0x6fb   : > { %9620 = vmatpush.bf16.msrb.mxu0 %v15997_v35  ;;  %v9255_v21 = vadd.f32 %v22026_v51, %v9226_v17  ;;  %v9364_v51 = vadd.f32 %v22118_v25, %v9335_v39  ;;  %v14184_v25 = vld [vmem:[#allocation2 + $0x32c] sm:$0xf0]  ;;  %v14174_v39 = vld [vmem:[#allocation2 + $0x2b8] sm:$0xf] }
 0x6fc   : > { %v9339_v18 = vpop.f32.mrf.mxu2  ;;  %v9368_v48 = vpop.f32.mrf.mxu3  ;;  %v14175_v14 = vor.u32 %v15864_v41, %v14174_v39 }
 0x6fd   : > { %v9307_v23 = vpop.f32.mrf.mxu1 }
 0x6fe   : > { %v22137_v33 = vadd.f32 %v9307_v23, %v9279_v61  ;;  %v14182_v61 = vld [vmem:[#allocation2 + $0x2c0] sm:$0xf]  ;;  %9651 = vmatpush.bf16.msra.mxu1 %v16003_v19  ;;  %v15837_v23 = vld [vmem:[#allocation2 + $0x1e4] sm:$0xf] }
 0x6ff   : > { %v9283_v0 = vpop.f32.mrf.mxu0  ;;  %9621 = vmatpush.bf16.msrb.mxu0 %v15996_v60  ;;  %v15812_v60 = vld [vmem:[#allocation2 + $0xa8] sm:$0xf0] }
 0x703   : > { %9622 = vmatpush.bf16.msrb.mxu0 %v15995_v38 }
 0x704   : > { %v22149_v20 = vpop.f32.mrf.mxu2  ;;  %v22165_v10 = vpop.f32.mrf.mxu3 }
 0x705   : > { %v9310_v43 = vpop.f32.mrf.mxu1 }
 0x706   : > { %v9311_v36 = vadd.f32 %v9310_v43, %v9282_v16 }
 0x707   : > { %v9286_v28 = vpop.f32.mrf.mxu0 }
 0x708   : > { %v9287_v63 = vadd.f32 %v9286_v28, %v22107_v8  ;;  %v9340_v62 = vadd.f32 %v9339_v18, %v9311_v36  ;;  %9541 = vmatmul.bf16.gmra.mxu1 %v14035_v55  ;;  %v9284_v8 = vadd.f32 %v9283_v0, %v9255_v21  ;;  %v15865_v18 = vld [vmem:[#allocation2 + $0x328] sm:$0xf0]  ;;  %v15856_v0 = vld [vmem:[#allocation2 + $0x2c4] sm:$0xf] }
 0x709   : > { %9575 = vmatmul.bf16.gmra.mxu2 %v14111_v9  ;;  %9604 = vmatmul.bf16.gmra.mxu3 %v14115_v57  ;;  %v14183_v59 = vor.u32 %v15865_v18, %v14182_v61  ;;  %v14187_v17 = vor.u32 %v15856_v0, %v14184_v25  ;;  %v14046_v0 = vld [vmem:[#allocation2 + $0x118] sm:$0xf]  ;;  %v15830_v25 = vld [vmem:[#allocation2 + $0x180] sm:$0xf0] }
 0x70a   : > { %9517 = vmatmul.bf16.gmra.mxu0 %v14103_v40  ;;  %v9369_v28 = vadd.f32 %v9368_v48, %v9340_v62  ;;  %v14176_v40 = vld [vmem:[#allocation2 + $0x324] sm:$0xf0] }
 0x70c   : > { %v9344_v15 = vpop.f32.mrf.mxu2  ;;  %v9373_v43 = vpop.f32.mrf.mxu3 }
 0x70d   : > { %v9312_v3 = vpop.f32.mrf.mxu1 }
 0x70e   : > { %v22162_v22 = vadd.f32 %v9312_v3, %v9284_v8 }
 0x70f   : > { %v9288_v16 = vpop.f32.mrf.mxu0 }
 0x710   : > { %v9289_v4 = vadd.f32 %v9288_v16, %v9260_v47  ;;  %v14104_v47 = vld [vmem:[#allocation2 + $0x24c] sm:$0xf0] }
 0x711   : > { %v14107_v34 = vor.u32 %v15837_v23, %v14104_v47  ;;  %v15803_v23 = vld [vmem:[#allocation2 + $0x44] sm:$0xf]  ;;  %v13976_v47 = vld [vmem:[#allocation2 + $0xac] sm:$0xf0] }
 0x714   : > { %v22173_v32 = vpop.f32.mrf.mxu2  ;;  %v22180_v21 = vpop.f32.mrf.mxu3 }
 0x715   : > { %v9315_v35 = vpop.f32.mrf.mxu1 }
 0x716   : > { %v9316_v11 = vadd.f32 %v9315_v35, %v9287_v63  ;;  %v15855_v63 = vld [vmem:[#allocation2 + $0x2bc] sm:$0xf]  ;;  %v13979_v35 = vor.u32 %v15803_v23, %v13976_v47  ;;  %v14190_v23 = vld [vmem:[#allocation2 + $0x2c8] sm:$0xf]  ;;  %v15866_v47 = vld [vmem:[#allocation2 + $0x330] sm:$0xf0] }
 0x717   : > { %v9291_v7 = vpop.f32.mrf.mxu0 }
 0x718   : > { %v9292_v5 = vadd.f32 %v9291_v7, %v22140_v50  ;;  %v9345_v12 = vadd.f32 %v9344_v15, %v9316_v11  ;;  %9546 = vmatmul.bf16.gmra.mxu1 %v14107_v34  ;;  %v13974_v50 = vld [vmem:[#allocation2 + $0x40] sm:$0xf]  ;;  %v14179_v15 = vor.u32 %v15855_v63, %v14176_v40 }
 0x719   : > { %9580 = vmatmul.bf16.gmra.mxu2 %v14183_v59  ;;  %9609 = vmatmul.bf16.gmra.mxu3 %v14187_v17  ;;  %v13975_v38 = vor.u32 %v15812_v60, %v13974_v50  ;;  %v14047_v59 = vor.u32 %v15830_v25, %v14046_v0 }
 0x71a   : > { %9522 = vmatmul.bf16.gmra.mxu0 %v14175_v14  ;;  %v9374_v18 = vadd.f32 %v9373_v43, %v9345_v12 }
 0x71c   : > { %v9349_v6 = vpop.f32.mrf.mxu2 }
 0x71d   : > { %v9317_v36 = vpop.f32.mrf.mxu1 }
 0x71e   : > { %v22176_v55 = vadd.f32 %v9317_v36, %v9289_v4  ;;  %v14048_v36 = vld [vmem:[#allocation2 + $0x184] sm:$0xf0] }
 0x71f   : > { %v9293_v9 = vpop.f32.mrf.mxu0 }
 0x720   : > { %v9294_v44 = vadd.f32 %v9293_v9, %v9265_v37  ;;  %v9378_v37 = vpop.f32.mrf.mxu3  ;;  %v14118_v9 = vld [vmem:[#allocation2 + $0x1f0] sm:$0xf] }
 0x724   : > { %v22178_v57 = vpop.f32.mrf.mxu2 }
 0x725   : > { %v9320_v46 = vpop.f32.mrf.mxu1 }
 0x726   : > { %v9321_v8 = vadd.f32 %v9320_v46, %v9292_v5 }
 0x727   : > { %v9392_v3 = vpop.f32.mrf.mxu0 }
 0x728   : > { %v9393_v16 = vadd.f32 %v9392_v3, %v9364_v51  ;;  %v9350_v19 = vadd.f32 %v9349_v6, %v9321_v8  ;;  %9551 = vmatmul.bf16.gmra.mxu1 %v14179_v15  ;;  %v22192_v7 = vpop.f32.mrf.mxu3  ;;  %v15821_v6 = vld [vmem:[#allocation2 + $0x11c] sm:$0xf] }
 0x72a   : > { %9623 = vmatmul.bf16.vlgmr.msrb.gmra.mxu0 %v13975_v38  ;;  %v9379_v12 = vadd.f32 %v9378_v37, %v9350_v19  ;;  %v14120_v37 = vld [vmem:[#allocation2 + $0x25c] sm:$0xf0] }
 0x72c   : > { %v22182_v4 = vpop.f32.mrf.mxu2 }
 0x72d   : > { %v9322_v48 = vpop.f32.mrf.mxu1 }
 0x72e   : > { %v22184_v62 = vadd.f32 %v9322_v48, %v9294_v44  ;;  %v15848_v44 = vld [vmem:[#allocation2 + $0x258] sm:$0xf0]  ;;  %v15839_v48 = vld [vmem:[#allocation2 + $0x1f4] sm:$0xf] }
 0x72f   : > { %v22186_v61 = vpop.f32.mrf.mxu0  ;;  %v14119_v46 = vor.u32 %v15848_v44, %v14118_v9 }
 0x730   : > { %v22198_v43 = vpop.f32.mrf.mxu3 }
 0x734   : > { %v22188_v39 = vpop.f32.mrf.mxu2 }
 0x735   : > { %v9421_v51 = vpop.f32.mrf.mxu1 }
 0x736   : > { %v22190_v41 = vadd.f32 %v9421_v51, %v9393_v16  ;;  %v14123_v51 = vor.u32 %v15839_v48, %v14120_v37 }
 0x737   : > { %v9397_v11 = vpop.f32.mrf.mxu0 }
 0x738   : > { %v9398_v34 = vadd.f32 %v9397_v11, %v9369_v28  ;;  %9652 = vmatmul.bf16.vlgmr.msra.gmra.mxu1 %v13979_v35  ;;  %v14051_v28 = vor.u32 %v15821_v6, %v14048_v36  ;;  %v22202_v3 = vpop.f32.mrf.mxu3 }
 0x73a   : > { %9628 = vmatmul.bf16.gmra.mxu0 %v14047_v59 }
 0x73c   : > { %v9455_v14 = vpop.f32.mrf.mxu2 }
 0x73d   : > { %v22194_v17 = vpop.f32.mrf.mxu1 }
 0x73f   : > { %v22196_v5 = vpop.f32.mrf.mxu0 }
 0x740   : > { %v9484_v25 = vpop.f32.mrf.mxu3 }
 0x744   : > { %v22200_v15 = vpop.f32.mrf.mxu2 }
 0x745   : > { %v9426_v63 = vpop.f32.mrf.mxu1 }
 0x746   : > { %v9427_v40 = vadd.f32 %v9426_v63, %v9398_v34  ;;  %v14191_v34 = vor.u32 %v15866_v47, %v14190_v23  ;;  %v15857_v63 = vld [vmem:[#allocation2 + $0x2cc] sm:$0xf] }
 0x747   : > { %v9402_v50 = vpop.f32.mrf.mxu0 }
 0x748   : > { %v9403_v60 = vadd.f32 %v9402_v50, %v9374_v18  ;;  %v9456_v8 = vadd.f32 %v9455_v14, %v9427_v40  ;;  %9657 = vmatmul.bf16.gmra.mxu1 %v14051_v28  ;;  %v22214_v44 = vpop.f32.mrf.mxu3  ;;  %v14192_v40 = vld [vmem:[#allocation2 + $0x334] sm:$0xf0] }
 0x74a   : > { %9633 = vmatmul.bf16.gmra.mxu0 %v14119_v46  ;;  %v9485_v9 = vadd.f32 %v9484_v25, %v9456_v8 }
 0x74c   : > { %v9460_v19 = vpop.f32.mrf.mxu2 }
 0x74d   : > { %v22204_v16 = vpop.f32.mrf.mxu1 }
 0x74f   : > { %v22206_v38 = vpop.f32.mrf.mxu0 }
 0x754   : > { %v22208_v14 = vpop.f32.mrf.mxu2 }
 0x755   : > { %v9431_v0 = vpop.f32.mrf.mxu1 }
 0x756   : > { %v9432_v18 = vadd.f32 %v9431_v0, %v9403_v60  ;;  %v14195_v60 = vor.u32 %v15857_v63, %v14192_v40 }
 0x757   : > { %v9407_v35 = vpop.f32.mrf.mxu0 }
 0x758   : > { %v9408_v11 = vadd.f32 %v9407_v35, %v9379_v12  ;;  %v9461_v59 = vadd.f32 %v9460_v19, %v9432_v18  ;;  %9662 = vmatmul.bf16.gmra.mxu1 %v14123_v51  ;;  %v9489_v19 = vpop.f32.mrf.mxu3 }
 0x75a   : > { %9638 = vmatmul.bf16.gmra.mxu0 %v14191_v34  ;;  %v9490_v47 = vadd.f32 %v9489_v19, %v9461_v59 }
 0x75c   : > { %v9465_v12 = vpop.f32.mrf.mxu2 }
 0x75d   : > { %v22210_v6 = vpop.f32.mrf.mxu1 }
 0x75f   : > { %v22212_v36 = vpop.f32.mrf.mxu0 }
 0x760   : > { %v22218_v0 = vpop.f32.mrf.mxu3 }
 0x765   : > { %v9436_v28 = vpop.f32.mrf.mxu1 }
 0x766   : > { %v9437_v50 = vadd.f32 %v9436_v28, %v9408_v11 }
 0x767   : > { %v9508_v46 = vpop.f32.mrf.mxu0 }
 0x768   : > { %v9466_v48 = vadd.f32 %v9465_v12, %v9437_v50  ;;  %9667 = vmatmul.bf16.gmra.mxu1 %v14195_v60  ;;  %v9494_v35 = vpop.f32.mrf.mxu3 }
 0x76a   : > { %v9495_v11 = vadd.f32 %v9494_v35, %v9466_v48  ;;  %v9337_v48 = vadd.f32 %v22120_v31, %v22137_v33 }
 0x76c   : > { %v9366_v35 = vadd.f32 %v22135_v42, %v9337_v48 }
 0x76d   : > { %v22216_v37 = vpop.f32.mrf.mxu1 }
 0x76f   : > { %v9510_v23 = vpop.f32.mrf.mxu0 }
 0x775   : > { %v9537_v18 = vpop.f32.mrf.mxu1 }
 0x777   : > { %v9513_v8 = vpop.f32.mrf.mxu0 }
 0x778   : > { %v9514_v25 = vadd.f32 %v9513_v8, %v9485_v9  ;;  %v9451_v8 = vadd.f32 %v22182_v4, %v22190_v41 }
 0x77d   : > { %v9539_v51 = vpop.f32.mrf.mxu1 }
 0x77f   : > { %v22220_v34 = vpop.f32.mrf.mxu0 }
 0x785   : > { %v9542_v63 = vpop.f32.mrf.mxu1 }
 0x786   : > { %v22222_v40 = vadd.f32 %v9542_v63, %v9514_v25  ;;  %v22236_v25 = vpop.f32.mrf.mxu2  ;;  %v22240_v63 = vpop.f32.mrf.mxu3 }
 0x787   : > { %v9518_v28 = vpop.f32.mrf.mxu0 }
 0x788   : > { %v9519_v50 = vadd.f32 %v9518_v28, %v9490_v47  ;;  %v9480_v47 = vadd.f32 %v22198_v43, %v9451_v8 }
 0x78a   : > { %v9509_v28 = vadd.f32 %v9508_v46, %v9480_v47 }
 0x78c   : > { %v9538_v4 = vadd.f32 %v9537_v18, %v9509_v28 }
 0x78d   : > { %v22224_v60 = vpop.f32.mrf.mxu1 }
 0x78e   : > { %v9566_v31 = vpop.f32.mrf.mxu2  ;;  %v9595_v42 = vpop.f32.mrf.mxu3 }
 0x78f   : > { %v22226_v12 = vpop.f32.mrf.mxu0  ;;  %v9567_v33 = vadd.f32 %v9566_v31, %v9538_v4  ;;  %v16054_v4 = vld [vmem:[%s22995_s7 + $0x38] sm:$0xff] }
 0x790   : > { %11036 = vmatpush.bf16.msra.mxu2 %v16054_v4 }
 0x791   : > { %v9596_v48 = vadd.f32 %v9595_v42, %v9567_v33 }
 0x795   : > { %v9547_v59 = vpop.f32.mrf.mxu1 }
 0x796   : > { %v22228_v19 = vadd.f32 %v9547_v59, %v9519_v50  ;;  %v9568_v28 = vpop.f32.mrf.mxu2 }
 0x797   : > { %v9523_v58 = vpop.f32.mrf.mxu0 }
 0x798   : > { %v9524_v45 = vadd.f32 %v9523_v58, %v9495_v11  ;;  %v9395_v58 = vadd.f32 %v22186_v61, %v9366_v35 }
 0x79a   : > { %v9424_v41 = vadd.f32 %v22194_v17, %v9395_v58  ;;  %v9597_v58 = vpop.f32.mrf.mxu3 }
 0x79c   : > { %v9453_v43 = vadd.f32 %v22188_v39, %v9424_v41 }
 0x79d   : > { %v22230_v9 = vpop.f32.mrf.mxu1 }
 0x79e   : > { %v9482_v46 = vadd.f32 %v22202_v3, %v9453_v43 }
 0x79f   : > { %v22242_v59 = vpop.f32.mrf.mxu0 }
 0x7a0   : > { %v9511_v1 = vadd.f32 %v9510_v23, %v9482_v46 }
 0x7a2   : > { %v9600_v46 = vpop.f32.mrf.mxu3 }
 0x7a5   : > { %v9552_v50 = vpop.f32.mrf.mxu1 }
 0x7a6   : > { %v22245_v11 = vadd.f32 %v9552_v50, %v9524_v45  ;;  %v9540_v45 = vadd.f32 %v9539_v51, %v9511_v1  ;;  %v9342_v50 = vadd.f32 %v22149_v20, %v22162_v22  ;;  %v9571_v20 = vpop.f32.mrf.mxu2 }
 0x7a7   : > { %v9624_v8 = vpop.f32.mrf.mxu0 }
 0x7a8   : > { %v9625_v47 = vadd.f32 %v9624_v8, %v9596_v48  ;;  %v9569_v17 = vadd.f32 %v9568_v28, %v9540_v45 }
 0x7aa   : > { %v9598_v39 = vadd.f32 %v9597_v58, %v9569_v17 }
 0x7ad   : > { %v22248_v54 = vpop.f32.mrf.mxu1 }
 0x7af   : > { %v9626_v3 = vpop.f32.mrf.mxu0 }
 0x7b0   : > { %v9627_v23 = vadd.f32 %v9626_v3, %v9598_v39 }
 0x7b5   : > { %v9653_v27 = vpop.f32.mrf.mxu1 }
 0x7b6   : > { %v9654_v61 = vadd.f32 %v9653_v27, %v9625_v47  ;;  %v9371_v27 = vadd.f32 %v22165_v10, %v9342_v50  ;;  %v9347_v47 = vadd.f32 %v22173_v32, %v22176_v55  ;;  %v9602_v32 = vpop.f32.mrf.mxu3 }
 0x7b8   : > { %v9673_v35 = vmin.f32 %v9654_v61, 20.0  ;;  %v9400_v33 = vadd.f32 %v22196_v5, %v9371_v27  ;;  %v9376_v50 = vadd.f32 %v22180_v21, %v9347_v47  ;;  %vm9737_vm11 = vcmp.gt.f32.partialorder %v9654_v61, 20.0  ;;  %v16062_v47 = vld [vmem:[%s22995_s7 + $0x78] sm:$0xff] }
 0x7b9   : > { %11065 = vmatpush.bf16.msra.mxu3 %v16062_v47 }
 0x7ba   : > { %v9681_v18 = vmul.f32 1.442695, %v9673_v35  ;;  %v9429_v48 = vadd.f32 %v22204_v16, %v9400_v33  ;;  %v9572_v16 = vadd.f32 %v9571_v20, %v22222_v40 }
 0x7bc   : > { %16206 = vpow2.f32 %v9681_v18  ;;  %v9458_v10 = vadd.f32 %v22200_v15, %v9429_v48  ;;  %v9573_v18 = vpop.f32.mrf.mxu2  ;;  %v9405_v15 = vadd.f32 %v22206_v38, %v9376_v50  ;;  %v9601_v21 = vadd.f32 %v9600_v46, %v9572_v16 }
 0x7bd   : > { %v9655_v51 = vpop.f32.mrf.mxu1 }
 0x7be   : > { %v22258_v31 = vadd.f32 %v9655_v51, %v9627_v23  ;;  %v9487_v28 = vadd.f32 %v22214_v44, %v9458_v10  ;;  %v9352_v23 = vadd.f32 %v22178_v57, %v22184_v62  ;;  %v9434_v40 = vadd.f32 %v22210_v6, %v9405_v15 }
 0x7c0   : > { %v9674_v22 = vmin.f32 %v22258_v31, 20.0  ;;  %v9516_v39 = vadd.f32 %v22220_v34, %v9487_v28  ;;  %v9629_v34 = vpop.f32.mrf.mxu0  ;;  %v9381_v38 = vadd.f32 %v22192_v7, %v9352_v23  ;;  %v9463_v20 = vadd.f32 %v22208_v14, %v9434_v40 }
 0x7c1   : > { %v9630_v33 = vadd.f32 %v9629_v34, %v9601_v21  ;;  %vm9738_vm15 = vcmp.gt.f32.partialorder %v22258_v31, 20.0 }
 0x7c2   : > { %v16207_v41 = vpop.eup %16206  ;;  %v9683_v8 = vmul.f32 1.442695, %v9674_v22  ;;  %v9545_v44 = vadd.f32 %v22224_v60, %v9516_v39  ;;  %v9410_v6 = vadd.f32 %v22212_v36, %v9381_v38  ;;  %v9492_v36 = vadd.f32 %v22218_v0, %v9463_v20 }
 0x7c3   : > { %v9697_v1 = vadd.f32 2.0, %v16207_v41 }
 0x7c4   : > { %v9574_v57 = vadd.f32 %v9573_v18, %v9545_v44  ;;  %v9439_v14 = vadd.f32 %v22216_v37, %v9410_v6  ;;  %v9521_v16 = vadd.f32 %v22226_v12, %v9492_v36  ;;  %v16061_v37 = vld [vmem:[%s22995_s7 + $0x70] sm:$0xff]  ;;  %v16059_v36 = vld [vmem:[%s22995_s7 + $0x60] sm:$0xff] }
 0x7c5   : > { %v9705_v43 = vmul.f32 %v16207_v41, %v9697_v1  ;;  %v9658_v1 = vpop.f32.mrf.mxu1  ;;  %11066 = vmatpush.bf16.msra.mxu3 %v16061_v37  ;;  %v16078_v37 = vld [vmem:[%s22995_s7 + $0xf8] sm:$0xff] }
 0x7c6   : > { %v22280_v60 = vadd.f32 %v9658_v1, %v9630_v33  ;;  %v9603_v18 = vadd.f32 %v9602_v32, %v9574_v57  ;;  %v9468_v23 = vadd.f32 %v22236_v25, %v9439_v14  ;;  %v16052_v25 = vld [vmem:[%s22995_s7 + $0x28] sm:$0xff]  ;;  %11123 = vmatpush.bf16.msrb.mxu1 %v16078_v37 }
 0x7c7   : > { %v9713_v42 = vadd.f32 2.0, %v9705_v43  ;;  %v16060_v33 = vld [vmem:[%s22995_s7 + $0x68] sm:$0xff] }
 0x7c8   : > { %v9675_v7 = vmin.f32 %v22280_v60, 20.0  ;;  %v9631_v28 = vpop.f32.mrf.mxu0 }
 0x7c9   : > { %16208 = vrcp.f32 %v9713_v42  ;;  %v9632_v50 = vadd.f32 %v9631_v28, %v9603_v18  ;;  %11067 = vmatpush.bf16.msra.mxu3 %v16060_v33  ;;  %v16069_v33 = vld [vmem:[%s22995_s7 + $0xb0] sm:$0xff] }
 0x7ca   : > { %16210 = vpow2.f32 %v9683_v8 }
 0x7cd   : > { %11068 = vmatpush.bf16.msra.mxu3 %v16059_v36 }
 0x7cf   : > { %v16209_v45 = vpop.eup %16208 }
 0x7d0   : > { %v16211_v35 = vpop.eup %16210  ;;  %v9729_v5 = vmul.f32 %v16209_v45, %v9705_v43  ;;  %v16053_v43 = vld [vmem:[%s22995_s7 + $0x30] sm:$0xff]  ;;  %v9605_v45 = vpop.f32.mrf.mxu3 }
 0x7d1   : > { %v9698_v17 = vadd.f32 2.0, %v16211_v35  ;;  %11037 = vmatpush.bf16.msra.mxu2 %v16053_v43 }
 0x7d2   : > { %v9745_v58 = vmul.f32 %v9729_v5, %v9654_v61 }
 0x7d3   : > { %v9706_v4 = vmul.f32 %v16211_v35, %v9698_v17  ;;  %v9685_v35 = vmul.f32 1.442695, %v9675_v7  ;;  %v9660_v17 = vpop.f32.mrf.mxu1 }
 0x7d4   : > { %v9753_v3 = vsel %vm9737_vm11, %v9654_v61, %v9745_v58  ;;  %v9576_v61 = vpop.f32.mrf.mxu2  ;;  %vm23557_vm11 = vnez %v23504_v13 }
 0x7d5   : > { %v9761_v55 = vpack.c.bf16 %v9753_v3, %v9753_v3  ;;  %v9714_v41 = vadd.f32 2.0, %v9706_v4  ;;  %v9577_v58 = vadd.f32 %v9576_v61, %v22228_v19  ;;  %v9550_v61 = vadd.f32 %v22230_v9, %v9521_v16  ;;  %11038 = vmatpush.bf16.msra.mxu2 %v16052_v25 }
 0x7d7   : > { %v9880_v27 = vunpack.c.l.b16 %v9761_v55  ;;  %10061 = vst [vmem:[#allocation2 + $0x10] sm:$0xf] %v9761_v55  ;;  %16212 = vrcp.f32 %v9714_v41  ;;  %v9777_v3 = vsel %vm16494_vm3, 0, %v9761_v55  ;;  %v22302_v41 = vadd.f32 %v9660_v17, %v9632_v50 }
 0x7d8   : > { %16214 = vpow2.f32 %v9685_v35  ;;  %v9925_v1 = vunpack.c.l.b16 %v9777_v3  ;;  %v9497_v35 = vadd.f32 %v22240_v63, %v9468_v23 }
 0x7d9   : > { %v9887_v51 = vpack.c.b16 %v9880_v27, %v9880_v27  ;;  %v9676_v40 = vmin.f32 %v22302_v41, 20.0  ;;  %vm9740_vm3 = vcmp.gt.f32.partialorder %v22302_v41, 20.0 }
 0x7db   : > { %v9889_v62 = vsel %vm23545_vm14, 0, %v9887_v51  ;;  %v9687_v57 = vmul.f32 1.442695, %v9676_v40  ;;  %vm23558_vm14 = vnez %v23506_v2 }
 0x7dc   : > { %v9891_v22 = vunpack.c.l.b16 %v9889_v62  ;;  %v9892_v42 = vunpack.c.h.b16 %v9889_v62  ;;  %v9578_v19 = vpop.f32.mrf.mxu2  ;;  %v9606_v62 = vadd.f32 %v9605_v45, %v9577_v58 }
 0x7dd   : > { %v16213_v8 = vpop.eup %16212  ;;  %16216 = vpow2.f32 %v9687_v57  ;;  %v9579_v45 = vadd.f32 %v9578_v19, %v9550_v61 }
 0x7de   : > { %v9893_v48 = vpack.c.b16 %v9891_v22, %v9891_v22  ;;  %v9894_v46 = vpack.c.b16 %v9892_v42, %v9892_v42  ;;  %v9730_v10 = vmul.f32 %v16213_v8, %v9706_v4  ;;  %v9769_v4 = vsel %vm16490_vm2, 0, %v9761_v55  ;;  %v16215_v38 = vpop.eup %16214  ;;  %v9634_v42 = vpop.f32.mrf.mxu0 }
 0x7df   : > { %v9792_v34 = vunpack.c.l.b16 %v9769_v4  ;;  %v9699_v22 = vadd.f32 2.0, %v16215_v38  ;;  %v9663_v8 = vpop.f32.mrf.mxu1  ;;  %v9635_v7 = vadd.f32 %v9634_v42, %v9606_v62  ;;  %v9526_v4 = vadd.f32 %v22242_v59, %v9497_v35 }
 0x7e0   : > { %9909 = vst [vmem:[#allocation2 + $0x4] sm:$0xf] %v9893_v48  ;;  %v9746_v5 = vmul.f32 %v9730_v10, %v22258_v31  ;;  %v9607_v48 = vpop.f32.mrf.mxu3  ;;  %vm9739_vm2 = vcmp.gt.f32.partialorder %v22280_v60, 20.0 }
 0x7e1   : > { %9910 = vst [vmem:[#allocation2 + $0x70] sm:$0xf] %v9894_v46  ;;  %v22325_v18 = vmul.f32 %v16215_v38, %v9699_v22  ;;  %v22327_v14 = vadd.f32 %v9663_v8, %v9635_v7  ;;  %v16077_v38 = vld [vmem:[%s22995_s7 + $0xf0] sm:$0xff] }
 0x7e2   : > { %v9754_v39 = vsel %vm9738_vm15, %v22258_v31, %v9746_v5  ;;  %11124 = vmatpush.bf16.msrb.mxu1 %v16077_v38  ;;  %vm23559_vm15 = vnez %v23508_v52 }
 0x7e3   : > { %v9762_v32 = vpack.c.bf16 %v9754_v39, %v9754_v39  ;;  %v9715_v63 = vadd.f32 2.0, %v22325_v18  ;;  %v9677_v16 = vmin.f32 %v22327_v14, 20.0  ;;  %v16070_v39 = vld [vmem:[%s22995_s7 + $0xb8] sm:$0xff]  ;;  %v16217_v23 = vpop.eup %16216 }
 0x7e4   : > { %v9581_v0 = vpop.f32.mrf.mxu2  ;;  %11094 = vmatpush.bf16.msra.mxu0 %v16070_v39 }
 0x7e5   : > { %v9770_v31 = vsel %vm16560_vm7, 0, %v9762_v32  ;;  %v9778_v27 = vsel %vm16573_vm8, 0, %v9762_v32  ;;  %v9881_v21 = vunpack.c.l.b16 %v9762_v32  ;;  %10062 = vst [vmem:[#allocation2 + $0x7c] sm:$0xf] %v9762_v32  ;;  %v16058_v32 = vld [vmem:[%s22995_s7 + $0x58] sm:$0xff]  ;;  %v9582_v19 = vadd.f32 %v9581_v0, %v22245_v11 }
 0x7e6   : > { %v9793_v55 = vunpack.c.l.b16 %v9770_v31  ;;  %v22310_v51 = vunpack.c.l.b16 %v9778_v27  ;;  %16218 = vrcp.f32 %v9715_v63  ;;  %v9689_v31 = vmul.f32 1.442695, %v9677_v16  ;;  %v9636_v40 = vpop.f32.mrf.mxu0  ;;  %11069 = vmatpush.bf16.msra.mxu3 %v16058_v32 }
 0x7e7   : > { %v9895_v43 = vpack.c.b16 %v9881_v21, %v9881_v21  ;;  %v9700_v27 = vadd.f32 2.0, %v16217_v23  ;;  %v9608_v21 = vadd.f32 %v9607_v48, %v9579_v45  ;;  %vm23551_vm7 = vnez %v23488_v56  ;;  %v16072_v56 = vld [vmem:[%s22995_s7 + $0xc8] sm:$0xff] }
 0x7e8   : > { %v9799_v20 = vpack.c.b16 %v9793_v55, %v9792_v34  ;;  %v22320_v6 = vpack.c.b16 %v22310_v51, %v9925_v1  ;;  %v9665_v34 = vpop.f32.mrf.mxu1  ;;  %16220 = vpow2.f32 %v9689_v31  ;;  %11095 = vmatpush.bf16.msra.mxu0 %v16069_v33  ;;  %v9610_v48 = vpop.f32.mrf.mxu3  ;;  %v14776_v33 = vld [vmem:[#allocation2 + $0x6c] sm:$0xf0]  ;;  %vm9741_vm8 = vcmp.gt.f32.partialorder %v22327_v14, 20.0 }
 0x7e9   : > { %9911 = vst [vmem:[#allocation2 + $0xdc] sm:$0xf] %v9895_v43  ;;  %v22370_v57 = vmul.f32 %v16217_v23, %v9700_v27  ;;  %v9637_v62 = vadd.f32 %v9636_v40, %v9608_v21  ;;  %v9611_v37 = vadd.f32 %v9610_v48, %v9582_v19  ;;  %v16067_v21 = vld [vmem:[%s22995_s7 + $0xa0] sm:$0xff] }
 0x7ea   : > { %v9804_v46 = vshrl.u32 %v9799_v20, 16  ;;  %v9807_v10 = vshll.u32 %v9799_v20, 16  ;;  %v9938_v9 = vshrl.u32 %v22320_v6, 16  ;;  %v9941_v47 = vshll.u32 %v22320_v6, 16  ;;  %10154 = vst [vmem:[#allocation2 + $0x1c] sm:$0xf] %v9895_v43 }
 0x7eb   : > { %v16057_v20 = vld [vmem:[%s22995_s7 + $0x50] sm:$0xff]  ;;  %v9716_v45 = vadd.f32 2.0, %v22370_v57  ;;  %v22376_v35 = vadd.f32 %v9665_v34, %v9637_v62  ;;  %v16075_v40 = vld [vmem:[%s22995_s7 + $0xe0] sm:$0xff]  ;;  %v16050_v62 = vld [vmem:[%s22995_s7 + $0x18] sm:$0xff] }
 0x7ec   : > { %v9806_v5 = vrot.slane %v9804_v46, 3  ;;  %v9809_v28 = vrot.slane %v9807_v10, 4  ;;  %v9940_v17 = vrot.slane %v9938_v9, 4  ;;  %v9943_v50 = vrot.slane %v9941_v47, 5  ;;  %v16219_v36 = vpop.eup %16218  ;;  %11070 = vmatpush.bf16.msra.mxu3 %v16057_v20  ;;  %v16055_v34 = vld [vmem:[%s22995_s7 + $0x40] sm:$0xff]  ;;  %v16066_v20 = vld [vmem:[%s22995_s7 + $0x98] sm:$0xff] }
 0x7ed   : > { %v22336_v58 = vrot.slane %v9804_v46, 7  ;;  %v9731_v16 = vmul.f32 %v16219_v36, %v22325_v18  ;;  %16222 = vrcp.f32 %v9716_v45  ;;  %v9678_v39 = vmin.f32 %v22376_v35, 20.0  ;;  %v9583_v18 = vpop.f32.mrf.mxu2 }
 0x7ee   : > { %v22347_v15 = vor.u32 %v9809_v28, %v9806_v5  ;;  %v22349_v3 = vor.u32 %v9943_v50, %v9940_v17  ;;  %v9555_v5 = vadd.f32 %v22248_v54, %v9526_v4  ;;  %v16068_v28 = vld [vmem:[%s22995_s7 + $0xa8] sm:$0xff]  ;;  %v16221_v0 = vpop.eup %16220  ;;  %v9639_v32 = vpop.f32.mrf.mxu0  ;;  %vm9742_vm13 = vcmp.gt.f32.partialorder %v22376_v35, 20.0 }
 0x7ef   : > { %v10011_v12 = vor.u32 %v22336_v58, %v9807_v10  ;;  %v16076_v17 = vld [vmem:[%s22995_s7 + $0xe8] sm:$0xff]  ;;  %11096 = vmatpush.bf16.msra.mxu0 %v16068_v28  ;;  %v9747_v4 = vmul.f32 %v9731_v16, %v22280_v60  ;;  %v9701_v31 = vadd.f32 2.0, %v16221_v0  ;;  %v16065_v16 = vld [vmem:[%s22995_s7 + $0x90] sm:$0xff] }
 0x7f0   : > { %v9839_v59 = vsel %vm16656_vm12, 0, %v22347_v15  ;;  %v9973_v44 = vsel %vm16698_vm0, 0, %v22349_v3  ;;  %v16056_v54 = vld [vmem:[%s22995_s7 + $0x48] sm:$0xff]  ;;  %11125 = vmatpush.bf16.msrb.mxu1 %v16076_v17  ;;  %v9668_v23 = vpop.f32.mrf.mxu1  ;;  %v9584_v19 = vadd.f32 %v9583_v18, %v9555_v5 }
 0x7f1   : > { %v9841_v1 = vunpack.c.l.b16 %v9839_v59  ;;  %v9842_v11 = vunpack.c.h.b16 %v9839_v59  ;;  %v9975_v55 = vunpack.c.l.b16 %v9973_v44  ;;  %v9976_v25 = vunpack.c.h.b16 %v9973_v44  ;;  %11071 = vmatpush.bf16.msra.mxu3 %v16056_v54  ;;  %v16073_v54 = vld [vmem:[%s22995_s7 + $0xd0] sm:$0xff] }
 0x7f2   : > { %v10027_v43 = vsel %vm16736_vm5, 0, %v10011_v12  ;;  %v16051_v12 = vld [vmem:[%s22995_s7 + $0x20] sm:$0xff]  ;;  %v9691_v59 = vmul.f32 1.442695, %v9678_v39  ;;  %v9640_v44 = vadd.f32 %v9639_v32, %v9611_v37  ;;  %v9755_v27 = vsel %vm9739_vm2, %v22280_v60, %v9747_v4  ;;  %vm23552_vm5 = vmmov %vm23542_vm9 }
 0x7f3   : > { %v9849_v22 = vpack.c.b16 %v9841_v1, %v9841_v1  ;;  %v9850_v42 = vpack.c.b16 %v9842_v11, %v9842_v11  ;;  %v9983_v8 = vpack.c.b16 %v9975_v55, %v9975_v55  ;;  %v9984_v7 = vpack.c.b16 %v9976_v25, %v9976_v25  ;;  %11039 = vmatpush.bf16.msra.mxu2 %v16051_v12  ;;  %v16223_v60 = vpop.eup %16222  ;;  %v16011_v25 = vld [vmem:[#allocation2 + $0x4] sm:$0xf]  ;;  %vm23560_vm2 = vmmov %vm23552_vm5 }
 0x7f4   : > { %v10029_v46 = vunpack.c.l.b16 %v10027_v43  ;;  %v10030_v10 = vunpack.c.h.b16 %v10027_v43  ;;  %v9763_v1 = vpack.c.bf16 %v9755_v27, %v9755_v27  ;;  %v22405_v11 = vmul.f32 %v16221_v0, %v9701_v31  ;;  %11097 = vmatpush.bf16.msra.mxu0 %v16067_v21  ;;  %11126 = vmatpush.bf16.msrb.mxu1 %v16075_v40 }
 0x7f5   : > { %9865 = vst [vmem:[#allocation2] sm:$0xf] %v9849_v22  ;;  %16224 = vpow2.f32 %v9691_v59  ;;  %v22407_v55 = vadd.f32 %v9668_v23, %v9640_v44  ;;  %v9732_v43 = vmul.f32 %v16223_v60, %v22370_v57  ;;  %11072 = vmatpush.bf16.msra.mxu3 %v16055_v34  ;;  %v9612_v22 = vpop.f32.mrf.mxu3  ;;  %v16048_v59 = vld [vmem:[%s22995_s7 + $0x8] sm:$0xff]  ;;  %v10069_v27 = vrot.slane %v9941_v47, 1 }
 0x7f6   : > { %9866 = vst [vmem:[#allocation2 + $0x6c] sm:$0xf] %v9850_v42  ;;  %v10037_v50 = vpack.c.b16 %v10029_v46, %v10029_v46  ;;  %v10038_v63 = vpack.c.b16 %v10030_v10, %v10030_v10  ;;  %v9779_v38 = vsel %vm16765_vm6, 0, %v9763_v1  ;;  %v9882_v61 = vunpack.c.l.b16 %v9763_v1  ;;  %v9641_v5 = vpop.f32.mrf.mxu0 }
 0x7f7   : > { %9999 = vst [vmem:[#allocation2 + $0x8] sm:$0xf] %v9983_v8  ;;  %v9927_v42 = vunpack.c.l.b16 %v9779_v38  ;;  %v9717_v8 = vadd.f32 2.0, %v22405_v11  ;;  %v9679_v30 = vmin.f32 %v22407_v55, 20.0  ;;  %v9748_v48 = vmul.f32 %v9732_v43, %v22302_v41  ;;  %11040 = vmatpush.bf16.msra.mxu2 %v16050_v62 }
 0x7f8   : > { %10000 = vst [vmem:[#allocation2 + $0x74] sm:$0xf] %v9984_v7  ;;  %v16074_v7 = vld [vmem:[%s22995_s7 + $0xd8] sm:$0xff]  ;;  %v9896_v57 = vpack.c.b16 %v9882_v61, %v9882_v61  ;;  %v14779_v46 = vor.u32 %v16011_v25, %v14776_v33  ;;  %v9613_v10 = vadd.f32 %v9612_v22, %v9584_v19  ;;  %11098 = vmatpush.bf16.msra.mxu0 %v16066_v20  ;;  %v9771_v17 = vsel %vm16789_vm10, 0, %v9763_v1  ;;  %v9670_v37 = vpop.f32.mrf.mxu1  ;;  %v16047_v22 = vld [vmem:[%s22995_s7] sm:$0xff] }
 0x7f9   : > { %10053 = vst [vmem:[#allocation2 + $0xc] sm:$0xf] %v10037_v50  ;;  %v22425_v45 = vpack.c.b16 %v9927_v42, %v22310_v51  ;;  %16226 = vrcp.f32 %v9717_v8  ;;  %v9693_v36 = vmul.f32 1.442695, %v9679_v30  ;;  %11127 = vmatpush.bf16.msrb.mxu1 %v16074_v7  ;;  %v9756_v50 = vsel %vm9740_vm3, %v22302_v41, %v9748_v48  ;;  %v16071_v8 = vld [vmem:[%s22995_s7 + $0xc0] sm:$0xff] }
 0x7fa   : > { %10054 = vst [vmem:[#allocation2 + $0x78] sm:$0xf] %v10038_v63  ;;  %v16049_v63 = vld [vmem:[%s22995_s7 + $0x10] sm:$0xff]  ;;  %11073 = vmatmul.bf16.vlgmr.msra.gmra.mxu3 %v14779_v46  ;;  %v9642_v51 = vadd.f32 %v9641_v5, %v9613_v10  ;;  %v9764_v26 = vpack.c.bf16 %v9756_v50, %v9756_v50  ;;  %v9794_v0 = vunpack.c.l.b16 %v9771_v17  ;;  %v16020_v50 = vld [vmem:[#allocation2 + $0xdc] sm:$0xf]  ;;  %vm23556_vm9 = vnez %v23501_v29 }
 0x7fb   : > { %10063 = vst [vmem:[#allocation2 + $0xe8] sm:$0xf] %v9763_v1  ;;  %v16225_v28 = vpop.eup %16224  ;;  %11041 = vmatpush.bf16.msra.mxu2 %v16049_v63  ;;  %16228 = vpow2.f32 %v9693_v36  ;;  %vm23553_vm6 = vsmask.f32 4352  ;;  %vm23554_vm10 = vsmask.f32 3328 }
 0x7fc   : > { %9912 = vst [vmem:[#allocation2 + $0x148] sm:$0xf] %v9896_v57  ;;  %v9702_v39 = vadd.f32 2.0, %v16225_v28  ;;  %v22440_v41 = vadd.f32 %v9670_v37, %v9642_v51  ;;  %v9772_v4 = vsel %vm23487_vm4, 0, %v9764_v26  ;;  %v9780_v32 = vsel %vm23551_vm7, 0, %v9764_v26  ;;  %11099 = vmatpush.bf16.msra.mxu0 %v16065_v16 }
 0x7fd   : > { %10155 = vst [vmem:[#allocation2 + $0x88] sm:$0xf] %v9896_v57  ;;  %v9883_v23 = vunpack.c.l.b16 %v9764_v26  ;;  %11128 = vmatpush.bf16.msrb.mxu1 %v16073_v54  ;;  %v9795_v18 = vunpack.c.l.b16 %v9772_v4  ;;  %v22446_v12 = vunpack.c.l.b16 %v9780_v32  ;;  %vm23555_vm4 = vsmask.f32 256 }
 0x7fe   : > { %10064 = vst [vmem:[#allocation2 + $0x154] sm:$0xf] %v9764_v26  ;;  %v22448_v31 = vmul.f32 %v16225_v28, %v9702_v39  ;;  %v9680_v44 = vmin.f32 %v22440_v41, 20.0  ;;  %vm9743_vm3 = vcmp.gt.f32.partialorder %v22407_v55, 20.0 }
 0x7ff   : > { %v16227_v19 = vpop.eup %16226  ;;  %v9897_v21 = vpack.c.b16 %v9883_v23, %v9883_v23  ;;  %v9800_v40 = vpack.c.b16 %v9795_v18, %v9794_v0  ;;  %v22463_v34 = vpack.c.b16 %v22446_v12, %v9927_v42  ;;  %11042 = vmatpush.bf16.msra.mxu2 %v16048_v59  ;;  %v16063_v42 = vld [vmem:[%s22995_s7 + $0x80] sm:$0xff]  ;;  %v10169_v59 = vshll.u32 %v22425_v45, 16 }
 0x800   : > { %v9733_v1 = vmul.f32 %v16227_v19, %v22405_v11  ;;  %v9718_v60 = vadd.f32 2.0, %v22448_v31  ;;  %v9695_v25 = vmul.f32 1.442695, %v9680_v44  ;;  %11100 = vmatpush.bf16.msra.mxu0 %v16064_v49  ;;  %v10070_v11 = vor.u32 %v10069_v27, %v9938_v9  ;;  %v16015_v27 = vld [vmem:[#allocation2 + $0x68] sm:$0xf0] }
 0x801   : > { %9913 = vst [vmem:[#allocation2 + $0x1b4] sm:$0xf] %v9897_v21  ;;  %11129 = vmatpush.bf16.msrb.mxu1 %v16072_v56  ;;  %v16229_v33 = vpop.eup %16228  ;;  %v9812_v38 = vshrl.u32 %v9800_v40, 16  ;;  %v9815_v61 = vshll.u32 %v9800_v40, 16  ;;  %v9946_v47 = vshrl.u32 %v22463_v34, 16  ;;  %v9949_v43 = vshll.u32 %v22463_v34, 16 }
 0x802   : > { %10156 = vst [vmem:[#allocation2 + $0xf4] sm:$0xf] %v9897_v21  ;;  %v9749_v62 = vmul.f32 %v9733_v1, %v22327_v14  ;;  %16230 = vrcp.f32 %v9718_v60  ;;  %v9703_v20 = vadd.f32 2.0, %v16229_v33  ;;  %v14782_v21 = vld [vmem:[#allocation2 + $0x8] sm:$0xf]  ;;  %v23561_v34 = vld [vmem:[#allocation18_spill] sm:$0xff] }
 0x803   : > { %v9814_v30 = vrot.slane %v9812_v38, 3  ;;  %v9817_v7 = vrot.slane %v9815_v61, 4  ;;  %v9948_v6 = vrot.slane %v9946_v47, 4  ;;  %v9951_v9 = vrot.slane %v9949_v43, 5  ;;  %v14812_v57 = vld [vmem:[#allocation2 + $0x144] sm:$0xf0]  ;;  %11043 = vmatpush.bf16.msra.mxu2 %v16047_v22 }
 0x804   : > { %v22484_v48 = vrot.slane %v9812_v38, 7  ;;  %v22486_v46 = vrot.slane %v9949_v43, 1  ;;  %v9757_v10 = vsel %vm9741_vm8, %v22327_v14, %v9749_v62  ;;  %v22491_v36 = vmul.f32 %v16229_v33, %v9703_v20  ;;  %11101 = vmatpush.bf16.msra.mxu0 %v16063_v42  ;;  %v16016_v38 = vld [vmem:[#allocation2 + $0x70] sm:$0xf0]  ;;  %v14784_v62 = vld [vmem:[#allocation2 + $0x74] sm:$0xf0] }
 0x805   : > { %v22493_v5 = vor.u32 %v9817_v7, %v9814_v30  ;;  %v22495_v28 = vor.u32 %v9951_v9, %v9948_v6  ;;  %v22497_v17 = vpack.c.bf16 %v9757_v10, %v9757_v10  ;;  %16232 = vpow2.f32 %v9695_v25  ;;  %11130 = vmatpush.bf16.msrb.mxu1 %v16071_v8 }
 0x806   : > { %v10013_v63 = vor.u32 %v22484_v48, %v9815_v61  ;;  %v10072_v51 = vsel %vm23552_vm5, %v10070_v11, %v22486_v46  ;;  %v9719_v14 = vadd.f32 2.0, %v22491_v36  ;;  %v14815_v16 = vor.u32 %v16020_v50, %v14812_v57  ;;  %v16012_v11 = vld [vmem:[#allocation2 + $0xc] sm:$0xf]  ;;  %vm23565_vm5 = vmmov %vm23560_vm2 }
 0x807   : > { %v9819_v54 = vsel %vm23553_vm6, %v22347_v15, %v22493_v5  ;;  %v9953_v26 = vsel %vm23554_vm10, %v22349_v3, %v22495_v28  ;;  %v10083_v39 = vunpack.c.l.b16 %v10072_v51  ;;  %v10084_v37 = vunpack.c.h.b16 %v10072_v51  ;;  %10065 = vst [vmem:[#allocation2 + $0x1c0] sm:$0xf] %v22497_v17  ;;  %v14774_v3 = vld [vmem:[#allocation2] sm:$0xf] }
 0x808   : > { %v16231_v0 = vpop.eup %16230  ;;  %v9843_v4 = vunpack.c.l.b16 %v9819_v54  ;;  %v9844_v32 = vunpack.c.h.b16 %v9819_v54  ;;  %v9977_v23 = vunpack.c.l.b16 %v9953_v26  ;;  %v9978_v18 = vunpack.c.h.b16 %v9953_v26 }
 0x809   : > { %v10014_v44 = vsel %vm23555_vm4, %v22336_v58, %v10013_v63  ;;  %v10091_v49 = vpack.c.b16 %v10083_v39, %v10083_v39  ;;  %v10092_v25 = vpack.c.b16 %v10084_v37, %v10084_v37  ;;  %v9781_v33 = vsel %vm23556_vm9, 0, %v22497_v17 }
 0x80a   : > { %11078 = vmatmul.bf16.gmra.mxu3 %v14815_v16  ;;  %v9851_v15 = vpack.c.b16 %v9843_v4, %v9843_v4  ;;  %v9852_v56 = vpack.c.b16 %v9844_v32, %v9844_v32  ;;  %v9985_v19 = vpack.c.b16 %v9977_v23, %v9977_v23  ;;  %v9986_v1 = vpack.c.b16 %v9978_v18, %v9978_v18 }
 0x80b   : > { %v16233_v40 = vpop.eup %16232  ;;  %v10031_v60 = vunpack.c.l.b16 %v10014_v44  ;;  %10107 = vst [vmem:[#allocation2 + $0x14] sm:$0xf] %v10091_v49  ;;  %v10032_v58 = vunpack.c.h.b16 %v10014_v44  ;;  %v9929_v61 = vunpack.c.l.b16 %v9781_v33  ;;  %v9734_v43 = vmul.f32 %v16231_v0, %v22448_v31 }
 0x80c   : > { %9867 = vst [vmem:[#allocation2 + $0xd8] sm:$0xf] %v9851_v15  ;;  %16234 = vrcp.f32 %v9719_v14  ;;  %v9884_v20 = vunpack.c.l.b16 %v22497_v17  ;;  %v9704_v22 = vadd.f32 2.0, %v16233_v40  ;;  %v14775_v42 = vor.u32 %v16015_v27, %v14774_v3 }
 0x80d   : > { %9868 = vst [vmem:[#allocation2 + $0x144] sm:$0xf] %v9852_v56  ;;  %v10171_v8 = vrot.slane %v10169_v59, 1  ;;  %v22520_v29 = vpack.c.b16 %v9929_v61, %v22446_v12  ;;  %v9750_v30 = vmul.f32 %v9734_v43, %v22376_v35  ;;  %v14783_v7 = vor.u32 %v16016_v38, %v14782_v21 }
 0x80e   : > { %10001 = vst [vmem:[#allocation2 + $0xe0] sm:$0xf] %v9985_v19  ;;  %v10167_v31 = vshrl.u32 %v22425_v45, 16  ;;  %v10039_v6 = vpack.c.b16 %v10031_v60, %v10031_v60  ;;  %v9773_v9 = vsel %vm23557_vm11, 0, %v22497_v17  ;;  %11044 = vmatmul.bf16.vlgmr.msra.gmra.mxu2 %v14775_v42  ;;  %v14787_v57 = vor.u32 %v16012_v11, %v14784_v62  ;;  %vm23567_vm11 = vmmov %vm23560_vm2 }
 0x80f   : > { %10002 = vst [vmem:[#allocation2 + $0x14c] sm:$0xf] %v9986_v1  ;;  %v10040_v10 = vpack.c.b16 %v10032_v58, %v10032_v58  ;;  %v10174_v50 = vshll.u32 %v22520_v29, 16  ;;  %v9758_v12 = vsel %vm9742_vm13, %v22376_v35, %v9750_v30  ;;  %v22531_v63 = vmul.f32 %v16233_v40, %v9704_v22  ;;  %11102 = vmatmul.bf16.vlgmr.msra.gmra.mxu0 %v14783_v7  ;;  %vm23566_vm13 = vmmov %vm23553_vm6 }
 0x810   : > { %10108 = vst [vmem:[#allocation2 + $0x80] sm:$0xf] %v10092_v25  ;;  %v9898_v45 = vpack.c.b16 %v9884_v20, %v9884_v20  ;;  %v9766_v51 = vpack.c.bf16 %v9758_v12, %v9758_v12  ;;  %11131 = vmatmul.bf16.vlgmr.msrb.gmra.mxu1 %v14787_v57  ;;  %v10172_v13 = vor.u32 %v10171_v8, %v10167_v31  ;;  %v9796_v17 = vunpack.c.l.b16 %v9773_v9  ;;  %v16093_v9 = vld [vmem:[%s22995_s7 + $0x170] sm:$0xff] }
 0x811   : > { %10134 = vst [vmem:[#allocation2 + $0x18] sm:$0xf] %v9851_v15  ;;  %v22533_v16 = vrot.slane %v10174_v50, 1  ;;  %v9720_v32 = vadd.f32 2.0, %v22531_v63  ;;  %v16094_v15 = vld [vmem:[%s22995_s7 + $0x178] sm:$0xff]  ;;  %v10073_v60 = vor.u32 %v22486_v46, %v9946_v47  ;;  %vm23562_vm7 = vnez %v23561_v34  ;;  %v23563_v46 = vld [vmem:[#allocation19_spill] sm:$0xff] }
 0x812   : > { %v16235_v14 = vpop.eup %16234  ;;  %10135 = vst [vmem:[#allocation2 + $0x84] sm:$0xf] %v9852_v56  ;;  %v9774_v54 = vsel %vm23558_vm14, 0, %v9766_v51  ;;  %v9782_v35 = vsel %vm23559_vm15, 0, %v9766_v51  ;;  %v9885_v26 = vunpack.c.l.b16 %v9766_v51  ;;  %11181 = vmatpush.bf16.msrb.mxu3 %v16094_v15  ;;  %vm23564_vm8 = vnez %v23563_v46 }
 0x813   : > { %10055 = vst [vmem:[#allocation2 + $0xe4] sm:$0xf] %v10039_v6  ;;  %v9735_v39 = vmul.f32 %v16235_v14, %v22491_v36  ;;  %v10177_v37 = vsel %vm23560_vm2, %v10172_v13, %v22533_v16  ;;  %v9797_v0 = vunpack.c.l.b16 %v9774_v54  ;;  %v22542_v4 = vunpack.c.l.b16 %v9782_v35  ;;  %v14810_v52 = vld [vmem:[#allocation2 + $0xd8] sm:$0xf] }
 0x814   : > { %10056 = vst [vmem:[#allocation2 + $0x150] sm:$0xf] %v10040_v10  ;;  %v10200_v23 = vunpack.c.l.b16 %v10177_v37  ;;  %v10201_v18 = vunpack.c.h.b16 %v10177_v37  ;;  %v9899_v2 = vpack.c.b16 %v9885_v26, %v9885_v26  ;;  %v16024_v49 = vld [vmem:[#allocation2 + $0x140] sm:$0xf0]  ;;  %16236 = vrcp.f32 %v9720_v32 }
 0x815   : > { %9914 = vst [vmem:[#allocation2 + $0x220] sm:$0xf] %v9898_v45  ;;  %v9751_v59 = vmul.f32 %v9735_v39, %v22407_v55  ;;  %v9801_v44 = vpack.c.b16 %v9797_v0, %v9796_v17  ;;  %v22547_v36 = vpack.c.b16 %v22542_v4, %v9929_v61  ;;  %v14811_v33 = vor.u32 %v16024_v49, %v14810_v52  ;;  %v14818_v38 = vld [vmem:[#allocation2 + $0xe0] sm:$0xf]  ;;  %v16092_v39 = vld [vmem:[%s22995_s7 + $0x168] sm:$0xff] }
 0x816   : > { %10157 = vst [vmem:[#allocation2 + $0x160] sm:$0xf] %v9898_v45  ;;  %v10208_v56 = vpack.c.b16 %v10200_v23, %v10200_v23  ;;  %v10209_v19 = vpack.c.b16 %v10201_v18, %v10201_v18  ;;  %v16025_v58 = vld [vmem:[#allocation2 + $0x148] sm:$0xf0]  ;;  %11182 = vmatpush.bf16.msrb.mxu3 %v16093_v9  ;;  %vm9744_vm9 = vcmp.gt.f32.partialorder %v22440_v41, 20.0  ;;  %vm23572_vm2 = vcmask 1043456  }
 0x817   : > { %9915 = vst [vmem:[#allocation2 + $0x28c] sm:$0xf] %v9899_v2  ;;  %v9759_v3 = vsel %vm9743_vm3, %v22407_v55, %v9751_v59  ;;  %v9821_v27 = vshrl.u32 %v9801_v44, 16  ;;  %v9824_v21 = vshll.u32 %v9801_v44, 16  ;;  %v9955_v40 = vshrl.u32 %v22547_v36, 16  ;;  %vm23573_vm3 = vmmov %vm23565_vm5 }
 0x818   : > { %v9958_v1 = vshll.u32 %v22547_v36, 16  ;;  %10066 = vst [vmem:[#allocation2 + $0x22c] sm:$0xf] %v9766_v51  ;;  %v22559_v25 = vpack.c.bf16 %v9759_v3, %v9759_v3  ;;  %v14819_v7 = vor.u32 %v16025_v58, %v14818_v38  ;;  %v10178_v3 = vshrl.u32 %v22520_v29, 16  ;;  %v16086_v29 = vld [vmem:[%s22995_s7 + $0x138] sm:$0xff] }
 0x819   : > { %10224 = vst [vmem:[#allocation2 + $0x20] sm:$0xf] %v10208_v56  ;;  %v9823_v55 = vrot.slane %v9821_v27, 3  ;;  %v9826_v61 = vrot.slane %v9824_v21, 4  ;;  %v9957_v43 = vrot.slane %v9955_v40, 4  ;;  %v22563_v62 = vrot.slane %v9821_v27, 7  ;;  %11152 = vmatpush.bf16.msrb.mxu2 %v16086_v29 }
 0x81a   : > { %10225 = vst [vmem:[#allocation2 + $0x8c] sm:$0xf] %v10209_v19  ;;  %v9960_v11 = vrot.slane %v9958_v1, 5  ;;  %v22565_v20 = vrot.slane %v9958_v1, 1  ;;  %v9775_v47 = vsel %vm23562_vm7, 0, %v22559_v25  ;;  %v9783_v22 = vsel %vm23564_vm8, 0, %v22559_v25  ;;  %v16237_v45 = vpop.eup %16236  ;;  %11183 = vmatpush.bf16.msrb.mxu3 %v16092_v39  ;;  %vm23574_vm7 = vmmov %vm23554_vm10 }
 0x81b   : > { %10158 = vst [vmem:[#allocation2 + $0x1cc] sm:$0xf] %v9899_v2  ;;  %v22573_v42 = vor.u32 %v9826_v61, %v9823_v55  ;;  %v22577_v30 = vunpack.c.l.b16 %v9775_v47  ;;  %v10016_v31 = vor.u32 %v22563_v62, %v9824_v21  ;;  %v22592_v12 = vunpack.c.l.b16 %v9783_v22  ;;  %v16021_v26 = vld [vmem:[#allocation2 + $0xe4] sm:$0xf]  ;;  %v16029_v19 = vld [vmem:[#allocation2 + $0x1b4] sm:$0xf]  ;;  %vm23575_vm8 = vmmov %vm23555_vm4 }
 0x81c   : > { %v22575_v8 = vor.u32 %v9960_v11, %v9957_v43  ;;  %10067 = vst [vmem:[#allocation2 + $0x298] sm:$0xf] %v22559_v25  ;;  %v10075_v6 = vsel %vm23565_vm5, %v10073_v60, %v22565_v20  ;;  %v14848_v52 = vld [vmem:[#allocation2 + $0x21c] sm:$0xf0]  ;;  %v9736_v15 = vmul.f32 %v16237_v45, %v22531_v63  ;;  %v9886_v1 = vunpack.c.l.b16 %v22559_v25  ;;  %v16102_v25 = vld [vmem:[%s22995_s7 + $0x1b8] sm:$0xff]  ;;  %v16084_v39 = vld [vmem:[%s22995_s7 + $0x128] sm:$0xff] }
 0x81d   : > { %v9828_v57 = vsel %vm23553_vm6, %v22493_v5, %v22573_v42  ;;  %v10085_v50 = vunpack.c.l.b16 %v10075_v6  ;;  %v10017_v54 = vsel %vm23555_vm4, %v22484_v48, %v10016_v31  ;;  %v9802_v5 = vpack.c.b16 %v22577_v30, %v22577_v30  ;;  %v16091_v60 = vld [vmem:[%s22995_s7 + $0x160] sm:$0xff]  ;;  %v16110_v43 = vld [vmem:[%s22995_s7 + $0x1f8] sm:$0xff]  ;;  %11210 = vmatpush.bf16.msrb.mxu0 %v16102_v25 }
 0x81e   : > { %v9962_v10 = vsel %vm23554_vm10, %v22495_v28, %v22575_v8  ;;  %v9845_v51 = vunpack.c.l.b16 %v9828_v57  ;;  %v9846_v14 = vunpack.c.h.b16 %v9828_v57  ;;  %11049 = vmatmul.bf16.gmra.mxu2 %v14811_v33  ;;  %v14820_v28 = vld [vmem:[#allocation2 + $0x14c] sm:$0xf0]  ;;  %v10033_v18 = vunpack.c.l.b16 %v10017_v54  ;;  %11184 = vmatpush.bf16.msrb.mxu3 %v16091_v60  ;;  %v16090_v31 = vld [vmem:[%s22995_s7 + $0x158] sm:$0xff]  ;;  %v16099_v29 = vld [vmem:[%s22995_s7 + $0x1a0] sm:$0xff] }
 0x81f   : > { %v9979_v13 = vunpack.c.l.b16 %v9962_v10  ;;  %v9980_v17 = vunpack.c.h.b16 %v9962_v10  ;;  %v10093_v35 = vpack.c.b16 %v10085_v50, %v10085_v50  ;;  %11107 = vmatmul.bf16.gmra.mxu0 %v14819_v7  ;;  %v10034_v2 = vunpack.c.h.b16 %v10017_v54  ;;  %v16085_v7 = vld [vmem:[%s22995_s7 + $0x130] sm:$0xff]  ;;  %11239 = vmatpush.bf16.msra.mxu1 %v16110_v43  ;;  %v16107_v43 = vld [vmem:[%s22995_s7 + $0x1e0] sm:$0xff] }
 0x820   : > { %v9853_v37 = vpack.c.b16 %v9845_v51, %v9845_v51  ;;  %v9854_v0 = vpack.c.b16 %v9846_v14, %v9846_v14  ;;  %v9830_v59 = vshrl.u32 %v9802_v5, 16  ;;  %v9833_v48 = vshll.u32 %v9802_v5, 16  ;;  %v16101_v57 = vld [vmem:[%s22995_s7 + $0x1b0] sm:$0xff]  ;;  %v23568_v51 = vld [vmem:[#allocation20_spill] sm:$0xff]  ;;  %11153 = vmatpush.bf16.msrb.mxu2 %v16085_v7 }
 0x821   : > { %v9987_v32 = vpack.c.b16 %v9979_v13, %v9979_v13  ;;  %v9988_v23 = vpack.c.b16 %v9980_v17, %v9980_v17  ;;  %10109 = vst [vmem:[#allocation2 + $0xec] sm:$0xf] %v10093_v35  ;;  %v10086_v44 = vunpack.c.h.b16 %v10075_v6  ;;  %v22603_v49 = vpack.c.b16 %v22592_v12, %v22542_v4  ;;  %v16109_v10 = vld [vmem:[%s22995_s7 + $0x1f0] sm:$0xff]  ;;  %11211 = vmatpush.bf16.msrb.mxu0 %v16101_v57  ;;  %v16095_v57 = vld [vmem:[%s22995_s7 + $0x180] sm:$0xff] }
 0x822   : > { %9869 = vst [vmem:[#allocation2 + $0x1b0] sm:$0xf] %v9853_v37  ;;  %v14823_v56 = vor.u32 %v16021_v26, %v14820_v28  ;;  %v9832_v27 = vrot.slane %v9830_v59, 3  ;;  %v9835_v21 = vrot.slane %v9833_v48, 4  ;;  %v10041_v33 = vpack.c.b16 %v10033_v18, %v10033_v18  ;;  %v23570_v13 = vld [vmem:[#allocation21_spill] sm:$0xff]  ;;  %11185 = vmatpush.bf16.msrb.mxu3 %v16090_v31 }
 0x823   : > { %9870 = vst [vmem:[#allocation2 + $0x21c] sm:$0xf] %v9854_v0  ;;  %v10182_v4 = vshll.u32 %v22603_v49, 16  ;;  %v9752_v63 = vmul.f32 %v9736_v15, %v22440_v41  ;;  %v14851_v38 = vor.u32 %v16029_v19, %v14848_v52  ;;  %v10180_v58 = vor.u32 %v10178_v3, %v22533_v16  ;;  %11240 = vmatpush.bf16.msra.mxu1 %v16109_v10  ;;  %v16100_v15 = vld [vmem:[%s22995_s7 + $0x1a8] sm:$0xff]  ;;  %v16083_v19 = vld [vmem:[%s22995_s7 + $0x120] sm:$0xff] }
 0x824   : > { %10003 = vst [vmem:[#allocation2 + $0x1b8] sm:$0xf] %v9987_v32  ;;  %11136 = vmatmul.bf16.gmra.mxu1 %v14823_v56  ;;  %v10042_v55 = vpack.c.b16 %v10034_v2, %v10034_v2  ;;  %v9836_v61 = vor.u32 %v9835_v21, %v9832_v27  ;;  %v10094_v11 = vpack.c.b16 %v10086_v44, %v10086_v44  ;;  %v16089_v44 = vld [vmem:[%s22995_s7 + $0x150] sm:$0xff] }
 0x825   : > { %10004 = vst [vmem:[#allocation2 + $0x224] sm:$0xf] %v9988_v23  ;;  %v22624_v34 = vrot.slane %v10182_v4, 1  ;;  %v9760_v47 = vsel %vm9744_vm9, %v22440_v41, %v9752_v63  ;;  %11083 = vmatmul.bf16.gmra.mxu3 %v14851_v38  ;;  %v9900_v46 = vpack.c.b16 %v9886_v1, %v9886_v1  ;;  %vm23569_vm14 = vnez %v23568_v51  ;;  %11154 = vmatpush.bf16.msrb.mxu2 %v16084_v39  ;;  %v16088_v63 = vld [vmem:[%s22995_s7 + $0x148] sm:$0xff] }
 0x826   : > { %10136 = vst [vmem:[#allocation2 + $0xf0] sm:$0xf] %v9853_v37  ;;  %v9837_v16 = vsel %vm23566_vm13, %v22573_v42, %v9836_v61  ;;  %v22629_v22 = vpack.c.bf16 %v9760_v47, %v9760_v47  ;;  %vm23571_vm15 = vnez %v23570_v13  ;;  %v10076_v60 = vor.u32 %v22565_v20, %v9955_v40  ;;  %11186 = vmatpush.bf16.msrb.mxu3 %v16089_v44 }
 0x827   : > { %10137 = vst [vmem:[#allocation2 + $0x15c] sm:$0xf] %v9854_v0  ;;  %v9847_v41 = vunpack.c.l.b16 %v9837_v16  ;;  %v9848_v6 = vunpack.c.h.b16 %v9837_v16  ;;  %v10185_v9 = vsel %vm23567_vm11, %v10180_v58, %v22624_v34  ;;  %11212 = vmatpush.bf16.msrb.mxu0 %v16100_v15  ;;  %v10186_v51 = vshrl.u32 %v22603_v49, 16 }
 0x828   : > { %10057 = vst [vmem:[#allocation2 + $0x1bc] sm:$0xf] %v10041_v33  ;;  %v10202_v50 = vunpack.c.l.b16 %v10185_v9  ;;  %v10203_v45 = vunpack.c.h.b16 %v10185_v9  ;;  %v9776_v14 = vsel %vm23569_vm14, 0, %v22629_v22  ;;  %v9784_v17 = vsel %vm23571_vm15, 0, %v22629_v22 }
 0x829   : > { %10058 = vst [vmem:[#allocation2 + $0x228] sm:$0xf] %v10042_v55  ;;  %v14846_v54 = vld [vmem:[#allocation2 + $0x1b0] sm:$0xf]  ;;  %v9855_v35 = vpack.c.b16 %v9847_v41, %v9847_v41  ;;  %v9856_v5 = vpack.c.b16 %v9848_v6, %v9848_v6  ;;  %v9932_v26 = vunpack.c.l.b16 %v9784_v17  ;;  %v10008_v28 = vunpack.c.l.b16 %v9776_v14  ;;  %11155 = vmatpush.bf16.msrb.mxu2 %v16083_v19  ;;  %v16106_v17 = vld [vmem:[%s22995_s7 + $0x1d8] sm:$0xff] }
 0x82a   : > { %10110 = vst [vmem:[#allocation2 + $0x158] sm:$0xf] %v10094_v11  ;;  %v16033_v37 = vld [vmem:[#allocation2 + $0x218] sm:$0xf0]  ;;  %v10210_v0 = vpack.c.b16 %v10202_v50, %v10202_v50  ;;  %v10143_v32 = vunpack.c.l.b16 %v22629_v22  ;;  %v10211_v2 = vpack.c.b16 %v10203_v45, %v10203_v45  ;;  %11187 = vmatpush.bf16.msrb.mxu3 %v16088_v63  ;;  %v16087_v45 = vld [vmem:[%s22995_s7 + $0x140] sm:$0xff]  ;;  %vm11596_vm14 = vcmask 15368  }
 0x82b   : > { %9916 = vst [vmem:[#allocation2 + $0x2f8] sm:$0xf] %v9900_v46  ;;  %v14847_v23 = vor.u32 %v16033_v37, %v14846_v54  ;;  %v14854_v18 = vld [vmem:[#allocation2 + $0x1b8] sm:$0xf]  ;;  %v9936_v59 = vpack.c.b16 %v9932_v26, %v22592_v12  ;;  %v10009_v48 = vpack.c.b16 %v10008_v28, %v22577_v30  ;;  %v16108_v30 = vld [vmem:[%s22995_s7 + $0x1e8] sm:$0xff]  ;;  %v22673_v4 = vpack.c.b16 %v9932_v26, %v9932_v26  ;;  %v16081_v26 = vld [vmem:[%s22995_s7 + $0x110] sm:$0xff] }
 0x82c   : > { %9871 = vst [vmem:[#allocation2 + $0x288] sm:$0xf] %v9855_v35  ;;  %v16034_v52 = vld [vmem:[#allocation2 + $0x220] sm:$0xf0]  ;;  %v10144_v56 = vpack.c.b16 %v10143_v32, %v10143_v32  ;;  %11241 = vmatpush.bf16.msra.mxu1 %v16108_v30  ;;  %11213 = vmatpush.bf16.msrb.mxu0 %v16099_v29  ;;  %vm11574_vm15 = vcmask 7168  }
 0x82d   : > { %9872 = vst [vmem:[#allocation2 + $0x2f4] sm:$0xf] %v9856_v5  ;;  %v14855_v12 = vor.u32 %v16034_v52, %v14854_v18  ;;  %v9964_v3 = vshrl.u32 %v9936_v59, 16  ;;  %v9967_v27 = vshll.u32 %v9936_v59, 16  ;;  %v10019_v21 = vshrl.u32 %v10009_v48, 16 }
 0x82e   : > { %10159 = vst [vmem:[#allocation2 + $0x238] sm:$0xf] %v9900_v46  ;;  %v10022_v1 = vshll.u32 %v10009_v48, 16  ;;  %v10146_v33 = vsel %vm23572_vm2, %v10144_v56, 0  ;;  %11054 = vmatmul.bf16.gmra.mxu2 %v14847_v23  ;;  %v10194_v49 = vshrl.u32 %v22673_v4, 16  ;;  %11188 = vmatpush.bf16.msrb.mxu3 %v16087_v45 }
 0x82f   : > { %10226 = vst [vmem:[#allocation2 + $0xf8] sm:$0xf] %v10210_v0  ;;  %11112 = vmatmul.bf16.gmra.mxu0 %v14855_v12  ;;  %v9966_v38 = vrot.slane %v9964_v3, 4  ;;  %v9969_v36 = vrot.slane %v9967_v27, 5  ;;  %v10021_v25 = vrot.slane %v10019_v21, 7  ;;  %v10077_v40 = vrot.slane %v9967_v27, 1 }
 0x830   : > { %10227 = vst [vmem:[#allocation2 + $0x164] sm:$0xf] %v10211_v2  ;;  %v10115_v20 = vrot.slane %v10019_v21, 3  ;;  %v10116_v58 = vrot.slane %v10022_v1, 4  ;;  %v10148_v55 = vunpack.c.l.b16 %v10146_v33  ;;  %v10149_v61 = vunpack.c.h.b16 %v10146_v33  ;;  %11242 = vmatpush.bf16.msra.mxu1 %v16107_v43  ;;  %v16030_v37 = vld [vmem:[#allocation2 + $0x1bc] sm:$0xf] }
 0x831   : > { %10068 = vst [vmem:[#allocation2 + $0x304] sm:$0xf] %v22629_v22  ;;  %v9970_v11 = vor.u32 %v9969_v36, %v9966_v38  ;;  %v10024_v47 = vor.u32 %v10022_v1, %v10021_v25  ;;  %v22686_v16 = vsel %vm23573_vm3, %v10076_v60, %v10077_v40  ;;  %v10079_v46 = vor.u32 %v10077_v40, %v9964_v3  ;;  %v16082_v22 = vld [vmem:[%s22995_s7 + $0x118] sm:$0xff]  ;;  %v14856_v0 = vld [vmem:[#allocation2 + $0x224] sm:$0xf0]  ;;  %v16097_v12 = vld [vmem:[%s22995_s7 + $0x190] sm:$0xff] }
 0x832   : > { %v10087_v7 = vunpack.c.l.b16 %v22686_v16  ;;  %v10117_v31 = vor.u32 %v10116_v58, %v10115_v20  ;;  %v10150_v41 = vpack.c.b16 %v10148_v55, %v10148_v55  ;;  %v10151_v50 = vpack.c.b16 %v10149_v61, %v10149_v61  ;;  %11156 = vmatpush.bf16.msrb.mxu2 %v16082_v22  ;;  %v14884_v32 = vld [vmem:[#allocation2 + $0x2f4] sm:$0xf0]  ;;  %v16038_v48 = vld [vmem:[#allocation2 + $0x28c] sm:$0xf] }
 0x833   : > { %v9971_v6 = vsel %vm23574_vm7, %v22575_v8, %v9970_v11  ;;  %v22696_v9 = vsel %vm23575_vm8, %v22563_v62, %v10024_v47  ;;  %v10081_v10 = vsel %vm17640_vm1, %v10079_v46, 0  ;;  %v10190_v8 = vshll.u32 %v22673_v4, 16  ;;  %v16098_v62 = vld [vmem:[%s22995_s7 + $0x198] sm:$0xff]  ;;  %vm23577_vm1 = vmmov %vm23553_vm6  ;;  %v14882_v19 = vld [vmem:[#allocation2 + $0x288] sm:$0xf] }
 0x834   : > { %v9981_v14 = vunpack.c.l.b16 %v9971_v6  ;;  %v9982_v13 = vunpack.c.h.b16 %v9971_v6  ;;  %10160 = vst [vmem:[#allocation2 + $0x2a4] sm:$0xf] %v10150_v41  ;;  %v10089_v54 = vunpack.c.l.b16 %v10081_v10  ;;  %v10090_v35 = vunpack.c.h.b16 %v10081_v10  ;;  %11214 = vmatpush.bf16.msrb.mxu0 %v16098_v62  ;;  %11243 = vmatpush.bf16.msra.mxu1 %v16106_v17  ;;  %v16042_v21 = vld [vmem:[#allocation2 + $0x2f0] sm:$0xf0]  ;;  %v16080_v1 = vld [vmem:[%s22995_s7 + $0x108] sm:$0xff]  ;;  %v16079_v11 = vld [vmem:[%s22995_s7 + $0x100] sm:$0xff] }
 0x835   : > { %v10095_v5 = vpack.c.b16 %v10087_v7, %v10087_v7  ;;  %10161 = vst [vmem:[#allocation2 + $0x310] sm:$0xf] %v10151_v50  ;;  %v10118_v2 = vsel %vm23577_vm1, %v22573_v42, %v10117_v31  ;;  %v10120_v59 = vsel %vm16656_vm12, %v10117_v31, 0  ;;  %v10188_v42 = vor.u32 %v10186_v51, %v22624_v34  ;;  %vm23578_vm12 = vmmov %vm23573_vm3  ;;  %v16096_v20 = vld [vmem:[%s22995_s7 + $0x188] sm:$0xff]  ;;  %v16103_v10 = vld [vmem:[%s22995_s7 + $0x1c0] sm:$0xff] }
 0x836   : > { %v9989_v28 = vpack.c.b16 %v9981_v14, %v9981_v14  ;;  %v9990_v39 = vpack.c.b16 %v9982_v13, %v9982_v13  ;;  %v10097_v23 = vpack.c.b16 %v10089_v54, %v10089_v54  ;;  %v10098_v18 = vpack.c.b16 %v10090_v35, %v10090_v35  ;;  %11157 = vmatpush.bf16.msrb.mxu2 %v16081_v26  ;;  %v16104_v58 = vld [vmem:[%s22995_s7 + $0x1c8] sm:$0xff]  ;;  %v16117_v14 = vld [vmem:[%s22995_s7 + $0x230] sm:$0xff]  ;;  %v16017_v17 = vld [vmem:[#allocation2 + $0x78] sm:$0xf0] }
 0x837   : > { %10111 = vst [vmem:[#allocation2 + $0x1c4] sm:$0xf] %v10095_v5  ;;  %v10122_v52 = vunpack.c.l.b16 %v10118_v2  ;;  %v10123_v44 = vunpack.c.h.b16 %v10118_v2  ;;  %v10124_v15 = vunpack.c.l.b16 %v10120_v59  ;;  %v10125_v56 = vunpack.c.h.b16 %v10120_v59  ;;  %v16013_v13 = vld [vmem:[#allocation2 + $0x14] sm:$0xf]  ;;  %v14790_v35 = vld [vmem:[#allocation2 + $0x10] sm:$0xf] }
 0x838   : > { %10005 = vst [vmem:[#allocation2 + $0x290] sm:$0xf] %v9989_v28  ;;  %v10192_v30 = vrot.slane %v10190_v8, 1  ;;  %v14859_v3 = vor.u32 %v16030_v37, %v14856_v0  ;;  %v14887_v27 = vor.u32 %v16038_v48, %v14884_v32  ;;  %v10035_v34 = vunpack.c.l.b16 %v22696_v9  ;;  %11215 = vmatpush.bf16.msrb.mxu0 %v16097_v12  ;;  %11244 = vmatpush.bf16.msra.mxu1 %v16105_v24  ;;  %v14792_v8 = vld [vmem:[#allocation2 + $0x7c] sm:$0xf0]  ;;  %v16116_v37 = vld [vmem:[%s22995_s7 + $0x228] sm:$0xff] }
 0x839   : > { %10006 = vst [vmem:[#allocation2 + $0x2fc] sm:$0xf] %v9990_v39  ;;  %v10126_v60 = vpack.c.b16 %v10122_v52, %v10122_v52  ;;  %v10127_v33 = vpack.c.b16 %v10123_v44, %v10123_v44  ;;  %v10128_v4 = vpack.c.b16 %v10124_v15, %v10124_v15  ;;  %v10129_v63 = vpack.c.b16 %v10125_v56, %v10125_v56  ;;  %v14798_v28 = vld [vmem:[#allocation2 + $0x18] sm:$0xf]  ;;  %v16018_v39 = vld [vmem:[#allocation2 + $0x80] sm:$0xf0] }
 0x83a   : > { %10113 = vst [vmem:[#allocation2 + $0x29c] sm:$0xf] %v10097_v23  ;;  %v10193_v29 = vsel %vm23578_vm12, %v10188_v42, %v10192_v30  ;;  %v10196_v38 = vor.u32 %v10194_v49, %v10192_v30  ;;  %11141 = vmatmul.bf16.gmra.mxu1 %v14859_v3  ;;  %11088 = vmatmul.bf16.gmra.mxu3 %v14887_v27  ;;  %v10036_v55 = vunpack.c.h.b16 %v22696_v9  ;;  %v10088_v61 = vunpack.c.h.b16 %v22686_v16  ;;  %v16118_v16 = vld [vmem:[%s22995_s7 + $0x238] sm:$0xff]  ;;  %v16115_v32 = vld [vmem:[%s22995_s7 + $0x220] sm:$0xff]  ;;  %v16022_v23 = vld [vmem:[#allocation2 + $0xec] sm:$0xf] }
 0x83b   : > { %10114 = vst [vmem:[#allocation2 + $0x308] sm:$0xf] %v10098_v18  ;;  %v10204_v36 = vunpack.c.l.b16 %v10193_v29  ;;  %v10205_v25 = vunpack.c.h.b16 %v10193_v29  ;;  %v14883_v40 = vor.u32 %v16042_v21, %v14882_v19  ;;  %11158 = vmatpush.bf16.msrb.mxu2 %v16080_v1  ;;  %v10043_v41 = vpack.c.b16 %v10035_v34, %v10035_v34  ;;  %v14828_v18 = vld [vmem:[#allocation2 + $0x154] sm:$0xf0]  ;;  %v16026_v59 = vld [vmem:[#allocation2 + $0x150] sm:$0xf0] }
 0x83c   : > { %10138 = vst [vmem:[#allocation2 + $0x1c8] sm:$0xf] %v10126_v60  ;;  %v10198_v43 = vsel %vm16698_vm0, %v10196_v38, 0  ;;  %11216 = vmatpush.bf16.msrb.mxu0 %v16096_v20  ;;  %11245 = vmatpush.bf16.msra.mxu1 %v16104_v58  ;;  %v10044_v50 = vpack.c.b16 %v10036_v55, %v10036_v55  ;;  %v10096_v51 = vpack.c.b16 %v10088_v61, %v10088_v61  ;;  %v14800_v48 = vld [vmem:[#allocation2 + $0x84] sm:$0xf0]  ;;  %v16114_v24 = vld [vmem:[%s22995_s7 + $0x218] sm:$0xff] }
 0x83d   : > { %10139 = vst [vmem:[#allocation2 + $0x234] sm:$0xf] %v10127_v33  ;;  %v10206_v47 = vunpack.c.l.b16 %v10198_v43  ;;  %v10207_v46 = vunpack.c.h.b16 %v10198_v43  ;;  %v10212_v22 = vpack.c.b16 %v10204_v36, %v10204_v36  ;;  %v10213_v7 = vpack.c.b16 %v10205_v25, %v10205_v25  ;;  %v14826_v52 = vld [vmem:[#allocation2 + $0xe8] sm:$0xf]  ;;  %v16014_v44 = vld [vmem:[#allocation2 + $0x1c] sm:$0xf] }
 0x83e   : > { %10140 = vst [vmem:[#allocation2 + $0x2a0] sm:$0xf] %v10128_v4  ;;  %11059 = vmatmul.bf16.gmra.mxu2 %v14883_v40  ;;  %v14795_v62 = vor.u32 %v16013_v13, %v14792_v8  ;;  %v14791_v49 = vor.u32 %v16017_v17, %v14790_v35  ;;  %v14799_v0 = vor.u32 %v16018_v39, %v14798_v28  ;;  %v14834_v19 = vld [vmem:[#allocation2 + $0xf0] sm:$0xf]  ;;  %v16027_v12 = vld [vmem:[#allocation2 + $0x158] sm:$0xf0] }
 0x83f   : > { %10141 = vst [vmem:[#allocation2 + $0x30c] sm:$0xf] %v10129_v63  ;;  %v14890_v31 = vld [vmem:[#allocation2 + $0x290] sm:$0xf]  ;;  %v10214_v53 = vpack.c.b16 %v10206_v47, %v10206_v47  ;;  %v10215_v6 = vpack.c.b16 %v10207_v46, %v10207_v46  ;;  %11159 = vmatpush.bf16.msrb.mxu2 %v16079_v11  ;;  %v14831_v2 = vor.u32 %v16022_v23, %v14828_v18  ;;  %v16031_v3 = vld [vmem:[#allocation2 + $0x1c4] sm:$0xf] }
 0x840   : > { %10228 = vst [vmem:[#allocation2 + $0x1d0] sm:$0xf] %v10212_v22  ;;  %v16043_v9 = vld [vmem:[#allocation2 + $0x2f8] sm:$0xf0]  ;;  %11217 = vmatpush.bf16.msrb.mxu0 %v16095_v57  ;;  %11246 = vmatpush.bf16.msra.mxu1 %v16103_v10  ;;  %v14827_v15 = vor.u32 %v16026_v59, %v14826_v52  ;;  %v14803_v56 = vor.u32 %v16014_v44, %v14800_v48  ;;  %v16113_v30 = vld [vmem:[%s22995_s7 + $0x210] sm:$0xff]  ;;  %v16112_v36 = vld [vmem:[%s22995_s7 + $0x208] sm:$0xff] }
 0x841   : > { %10229 = vst [vmem:[#allocation2 + $0x23c] sm:$0xf] %v10213_v7  ;;  %v14891_v45 = vor.u32 %v16043_v9, %v14890_v31  ;;  %v14835_v42 = vor.u32 %v16027_v12, %v14834_v19  ;;  %v16035_v1 = vld [vmem:[#allocation2 + $0x228] sm:$0xf0]  ;;  %v14836_v60 = vld [vmem:[#allocation2 + $0x15c] sm:$0xf0] }
 0x842   : > { %10230 = vst [vmem:[#allocation2 + $0x2a8] sm:$0xf] %v10214_v53  ;;  %v14862_v33 = vld [vmem:[#allocation2 + $0x1c0] sm:$0xf]  ;;  %v16023_v4 = vld [vmem:[#allocation2 + $0xf4] sm:$0xf] }
 0x843   : > { %11268 = vmatpush.bf16.msra.mxu2 %v16118_v16  ;;  %10231 = vst [vmem:[#allocation2 + $0x314] sm:$0xf] %v10215_v6  ;;  %11117 = vmatmul.bf16.gmra.mxu0 %v14891_v45  ;;  %v14863_v63 = vor.u32 %v16035_v1, %v14862_v33  ;;  %v14839_v29 = vor.u32 %v16023_v4, %v14836_v60  ;;  %v14870_v38 = vld [vmem:[#allocation2 + $0x1c8] sm:$0xf]  ;;  %v16111_v40 = vld [vmem:[%s22995_s7 + $0x200] sm:$0xff] }
 0x844   : > { %10059 = vst [vmem:[#allocation2 + $0x294] sm:$0xf] %v10043_v41  ;;  %v16036_v34 = vld [vmem:[#allocation2 + $0x230] sm:$0xf0]  ;;  %v16040_v20 = vld [vmem:[#allocation2 + $0x29c] sm:$0xf] }
 0x845   : > { %10060 = vst [vmem:[#allocation2 + $0x300] sm:$0xf] %v10044_v50  ;;  %v14871_v25 = vor.u32 %v16036_v34, %v14870_v38  ;;  %v14900_v58 = vld [vmem:[#allocation2 + $0x304] sm:$0xf0]  ;;  %v16044_v61 = vld [vmem:[#allocation2 + $0x300] sm:$0xf0] }
 0x846   : > { %10112 = vst [vmem:[#allocation2 + $0x230] sm:$0xf] %v10096_v51  ;;  %v14903_v55 = vor.u32 %v16040_v20, %v14900_v58  ;;  %v14872_v43 = vld [vmem:[#allocation2 + $0x234] sm:$0xf0]  ;;  %v16032_v47 = vld [vmem:[#allocation2 + $0x1cc] sm:$0xf] }
 0x847   : > { %11269 = vmatpush.bf16.msra.mxu2 %v16117_v14  ;;  %v14898_v11 = vld [vmem:[#allocation2 + $0x298] sm:$0xf]  ;;  %v14875_v22 = vor.u32 %v16032_v47, %v14872_v43  ;;  %v14906_v7 = vld [vmem:[#allocation2 + $0x2a0] sm:$0xf]  ;;  %v16045_v31 = vld [vmem:[#allocation2 + $0x308] sm:$0xf0] }
 0x848   : > { %v14899_v46 = vor.u32 %v16044_v61, %v14898_v11  ;;  %v14907_v16 = vor.u32 %v16045_v31, %v14906_v7  ;;  %v14806_v53 = vld [vmem:[#allocation2 + $0x20] sm:$0xf]  ;;  %v16019_v6 = vld [vmem:[#allocation2 + $0x88] sm:$0xf0]  ;;  %v16041_v9 = vld [vmem:[#allocation2 + $0x2a4] sm:$0xf] }
 0x849   : > { %v14908_v57 = vld [vmem:[#allocation2 + $0x30c] sm:$0xf0]  ;;  %v14807_v50 = vor.u32 %v16019_v6, %v14806_v53  ;;  %v22777_v51 = vld [vmem:[%s22996_s8] ss:$0 sm:$0xff]  ;;  %v16028_v28 = vld [vmem:[#allocation2 + $0x160] sm:$0xf0] }
 0x84a   : > { %11189 = vmatmul.bf16.vlgmr.msrb.gmra.mxu3 %v14795_v62  ;;  %v14911_v45 = vor.u32 %v16041_v9, %v14908_v57  ;;  %v14878_v19 = vld [vmem:[#allocation2 + $0x1d0] sm:$0xf]  ;;  %v16037_v12 = vld [vmem:[#allocation2 + $0x238] sm:$0xf0]  ;;  %v16046_v38 = vld [vmem:[#allocation2 + $0x310] sm:$0xf0] }
 0x84b   : > { %v16039_v54 = vld [vmem:[#allocation2 + $0x294] sm:$0xf]  ;;  %11270 = vmatpush.bf16.msra.mxu2 %v16116_v37  ;;  %v16126_v9 = vld [vmem:[%s22997_s9 + $0x38] sm:$0xff] }
 0x84c   : > { %v14892_v5 = vld [vmem:[#allocation2 + $0x2fc] sm:$0xf0]  ;;  %11457 = vmatpush.bf16.msra.mxu3 %v16126_v9 }
 0x84d   : > { %v14895_v26 = vor.u32 %v16039_v54, %v14892_v5  ;;  %v14864_v27 = vld [vmem:[#allocation2 + $0x22c] sm:$0xf0] }
 0x84e   : > { %11160 = vmatmul.bf16.vlgmr.msrb.gmra.mxu2 %v14791_v49  ;;  %v14867_v21 = vor.u32 %v16031_v3, %v14864_v27 }
 0x84f   : > { %11146 = vmatmul.bf16.gmra.mxu1 %v14895_v26  ;;  %11271 = vmatpush.bf16.msra.mxu2 %v16115_v32  ;;  %v14842_v26 = vld [vmem:[#allocation2 + $0xf8] sm:$0xf] }
 0x853   : > { %11218 = vmatmul.bf16.vlgmr.msrb.gmra.mxu0 %v14799_v0  ;;  %11272 = vmatpush.bf16.msra.mxu2 %v16114_v24  ;;  %v14843_v0 = vor.u32 %v16028_v28, %v14842_v26  ;;  %v14879_v24 = vor.u32 %v16037_v12, %v14878_v19 }
 0x857   : > { %11273 = vmatpush.bf16.msra.mxu2 %v16113_v30 }
 0x85a   : > { %11194 = vmatmul.bf16.gmra.mxu3 %v14831_v2 }
 0x85b   : > { %11274 = vmatpush.bf16.msra.mxu2 %v16112_v36 }
 0x85e   : > { %11165 = vmatmul.bf16.gmra.mxu2 %v14827_v15 }
 0x85f   : > { %11247 = vmatmul.bf16.vlgmr.msra.gmra.mxu1 %v14803_v56  ;;  %11275 = vmatpush.bf16.msra.mxu2 %v16111_v40 }
 0x863   : > { %11223 = vmatmul.bf16.gmra.mxu0 %v14835_v42 }
 0x86a   : > { %11199 = vmatmul.bf16.gmra.mxu3 %v14867_v21 }
 0x86e   : > { %11170 = vmatmul.bf16.gmra.mxu2 %v14863_v63 }
 0x86f   : > { %11252 = vmatmul.bf16.gmra.mxu1 %v14839_v29  ;;  %v14914_v29 = vld [vmem:[#allocation2 + $0x2a8] sm:$0xf] }
 0x873   : > { %11228 = vmatmul.bf16.gmra.mxu0 %v14871_v25  ;;  %v14915_v25 = vor.u32 %v16046_v38, %v14914_v29 }
 0x87a   : > { %11204 = vmatmul.bf16.gmra.mxu3 %v14903_v55 }
 0x87d   : > { %v11074_v41 = vpop.f32.mrf.mxu3 }
 0x87e   : > { %11175 = vmatmul.bf16.gmra.mxu2 %v14899_v46 }
 0x87f   : > { %11257 = vmatmul.bf16.gmra.mxu1 %v14875_v22 }
 0x883   : > { %11233 = vmatmul.bf16.gmra.mxu0 %v14907_v16 }
 0x885   : > { %v22779_v8 = vpop.f32.mrf.mxu3 }
 0x88c   : > { %v11103_v10 = vpop.f32.mrf.mxu0 }
 0x88d   : > { %v11132_v14 = vpop.f32.mrf.mxu1  ;;  %v11079_v37 = vpop.f32.mrf.mxu3 }
 0x88e   : > { %11276 = vmatmul.bf16.vlgmr.msra.gmra.mxu2 %v14807_v50 }
 0x88f   : > { %11262 = vmatmul.bf16.gmra.mxu1 %v14911_v45 }
 0x891   : > { %v11045_v13 = vpop.f32.mrf.mxu2 }
 0x892   : > { %v11046_v62 = vadd.f32 %v22777_v51, %v11045_v13  ;;  %v16124_v13 = vld [vmem:[%s22997_s9 + $0x28] sm:$0xff] }
 0x894   : > { %v11075_v17 = vadd.f32 %v11074_v41, %v11046_v62  ;;  %v22782_v54 = vpop.f32.mrf.mxu0 }
 0x895   : > { %v22786_v39 = vpop.f32.mrf.mxu1  ;;  %v22789_v48 = vpop.f32.mrf.mxu3 }
 0x896   : > { %v11104_v35 = vadd.f32 %v11103_v10, %v11075_v17 }
 0x898   : > { %v11133_v5 = vadd.f32 %v11132_v14, %v11104_v35  ;;  %v16125_v14 = vld [vmem:[%s22997_s9 + $0x30] sm:$0xff] }
 0x899   : > { %v22784_v49 = vpop.f32.mrf.mxu2  ;;  %11458 = vmatpush.bf16.msra.mxu3 %v16125_v14 }
 0x89a   : > { %v11048_v26 = vadd.f32 %v22777_v51, %v22784_v49 }
 0x89c   : > { %v11108_v32 = vpop.f32.mrf.mxu0 }
 0x89d   : > { %11459 = vmatpush.bf16.msra.mxu3 %v16124_v13 }
 0x89e   : > { %11281 = vmatmul.bf16.gmra.mxu2 %v14843_v0  ;;  %v11077_v0 = vadd.f32 %v22779_v8, %v11048_v26 }
 0x8a1   : > { %v11050_v23 = vpop.f32.mrf.mxu2  ;;  %v11137_v59 = vpop.f32.mrf.mxu1 }
 0x8a2   : > { %v11051_v18 = vadd.f32 %v22777_v51, %v11050_v23 }
 0x8a4   : > { %v11080_v2 = vadd.f32 %v11079_v37, %v11051_v18  ;;  %v22791_v44 = vpop.f32.mrf.mxu0  ;;  %v11106_v18 = vadd.f32 %v22782_v54, %v11077_v0 }
 0x8a6   : > { %v11109_v52 = vadd.f32 %v11108_v32, %v11080_v2 }
 0x8a8   : > { %v11138_v15 = vadd.f32 %v11137_v59, %v11109_v52  ;;  %v11084_v30 = vpop.f32.mrf.mxu3 }
 0x8a9   : > { %v22793_v56 = vpop.f32.mrf.mxu2  ;;  %v22795_v42 = vpop.f32.mrf.mxu1 }
 0x8aa   : > { %v11053_v49 = vadd.f32 %v22777_v51, %v22793_v56 }
 0x8ac   : > { %v11113_v3 = vpop.f32.mrf.mxu0 }
 0x8ae   : > { %11286 = vmatmul.bf16.gmra.mxu2 %v14879_v24 }
 0x8b0   : > { %v22798_v4 = vpop.f32.mrf.mxu3 }
 0x8b1   : > { %v11055_v27 = vpop.f32.mrf.mxu2 }
 0x8b2   : > { %v11056_v21 = vadd.f32 %v22777_v51, %v11055_v27  ;;  %v16123_v27 = vld [vmem:[%s22997_s9 + $0x20] sm:$0xff] }
 0x8b3   : > { %11460 = vmatpush.bf16.msra.mxu3 %v16123_v27 }
 0x8b4   : > { %v11085_v1 = vadd.f32 %v11084_v30, %v11056_v21  ;;  %v22802_v36 = vpop.f32.mrf.mxu0 }
 0x8b6   : > { %v11114_v60 = vadd.f32 %v11113_v3, %v11085_v1  ;;  %v11082_v1 = vadd.f32 %v22789_v48, %v11053_v49 }
 0x8b7   : > { %v11142_v33 = vpop.f32.mrf.mxu1 }
 0x8b8   : > { %v11143_v34 = vadd.f32 %v11142_v33, %v11114_v60  ;;  %v11111_v38 = vadd.f32 %v22791_v44, %v11082_v1 }
 0x8b9   : > { %v22800_v63 = vpop.f32.mrf.mxu2 }
 0x8ba   : > { %v11140_v48 = vadd.f32 %v22795_v42, %v11111_v38 }
 0x8bd   : > { %v11089_v55 = vpop.f32.mrf.mxu3 }
 0x8be   : > { %11291 = vmatmul.bf16.gmra.mxu2 %v14915_v25 }
 0x8bf   : > { %v22804_v20 = vpop.f32.mrf.mxu1 }
 0x8c0   : > { %v11118_v43 = vpop.f32.mrf.mxu0 }
 0x8c1   : > { %v11060_v40 = vpop.f32.mrf.mxu2 }
 0x8c2   : > { %v11061_v58 = vadd.f32 %v22777_v51, %v11060_v40 }
 0x8c4   : > { %v11090_v61 = vadd.f32 %v11089_v55, %v11061_v58  ;;  %v16122_v55 = vld [vmem:[%s22997_s9 + $0x18] sm:$0xff] }
 0x8c5   : > { %v22812_v57 = vpop.f32.mrf.mxu3  ;;  %11461 = vmatpush.bf16.msra.mxu3 %v16122_v55 }
 0x8c6   : > { %v11119_v11 = vadd.f32 %v11118_v43, %v11090_v61 }
 0x8c8   : > { %v22816_v45 = vpop.f32.mrf.mxu0 }
 0x8c9   : > { %v22807_v47 = vpop.f32.mrf.mxu2 }
 0x8ca   : > { %v11063_v1 = vadd.f32 %v22777_v51, %v22807_v47 }
 0x8cc   : > { %v11147_v46 = vpop.f32.mrf.mxu1 }
 0x8cd   : > { %v11148_v22 = vadd.f32 %v11147_v46, %v11119_v11  ;;  %v11190_v17 = vpop.f32.mrf.mxu3 }
 0x8d1   : > { %v11161_v7 = vpop.f32.mrf.mxu2 }
 0x8d2   : > { %v11162_v31 = vadd.f32 %v11161_v7, %v11133_v5  ;;  %v11219_v5 = vpop.f32.mrf.mxu0  ;;  %v11058_v7 = vadd.f32 %v22777_v51, %v22800_v63 }
 0x8d4   : > { %v22824_v62 = vpop.f32.mrf.mxu1  ;;  %v11191_v59 = vadd.f32 %v11190_v17, %v11162_v31  ;;  %v11087_v13 = vadd.f32 %v22798_v4, %v11058_v7 }
 0x8d5   : > { %v11192_v23 = vpop.f32.mrf.mxu3 }
 0x8d6   : > { %v11220_v24 = vadd.f32 %v11219_v5, %v11191_v59  ;;  %v11116_v0 = vadd.f32 %v22802_v36, %v11087_v13 }
 0x8d9   : > { %v11163_v16 = vpop.f32.mrf.mxu2 }
 0x8da   : > { %v11221_v2 = vpop.f32.mrf.mxu0 }
 0x8dc   : > { %v11248_v28 = vpop.f32.mrf.mxu1 }
 0x8dd   : > { %v11195_v30 = vpop.f32.mrf.mxu3  ;;  %v11249_v8 = vadd.f32 %v11248_v28, %v11220_v24  ;;  %v11145_v24 = vadd.f32 %v22804_v20, %v11116_v0 }
 0x8e1   : > { %v11166_v41 = vpop.f32.mrf.mxu2 }
 0x8e2   : > { %v11167_v53 = vadd.f32 %v11166_v41, %v11138_v15  ;;  %v11135_v15 = vadd.f32 %v22786_v39, %v11106_v18  ;;  %v11224_v54 = vpop.f32.mrf.mxu0  ;;  %v16120_v18 = vld [vmem:[%s22997_s9 + $0x8] sm:$0xff] }
 0x8e4   : > { %v11250_v19 = vpop.f32.mrf.mxu1  ;;  %v11164_v12 = vadd.f32 %v11163_v16, %v11135_v15  ;;  %v11196_v25 = vadd.f32 %v11195_v30, %v11167_v53  ;;  %v16121_v16 = vld [vmem:[%s22997_s9 + $0x10] sm:$0xff] }
 0x8e5   : > { %11462 = vmatpush.bf16.msra.mxu3 %v16121_v16 }
 0x8e6   : > { %v11193_v3 = vadd.f32 %v11192_v23, %v11164_v12  ;;  %v11225_v44 = vadd.f32 %v11224_v54, %v11196_v25  ;;  %v11092_v25 = vadd.f32 %v22812_v57, %v11063_v1 }
 0x8e8   : > { %v11222_v33 = vadd.f32 %v11221_v2, %v11193_v3  ;;  %v11121_v7 = vadd.f32 %v22816_v45, %v11092_v25 }
 0x8e9   : > { %v11168_v6 = vpop.f32.mrf.mxu2  ;;  %11463 = vmatpush.bf16.msra.mxu3 %v16120_v18 }
 0x8ea   : > { %v11251_v40 = vadd.f32 %v11250_v19, %v11222_v33  ;;  %v11226_v43 = vpop.f32.mrf.mxu0  ;;  %v11169_v11 = vadd.f32 %v11168_v6, %v11140_v48  ;;  %v11150_v45 = vadd.f32 %v22824_v62, %v11121_v7 }
 0x8ec   : > { %v11253_v29 = vpop.f32.mrf.mxu1 }
 0x8ed   : > { %v11254_v9 = vadd.f32 %v11253_v29, %v11225_v44 }
 0x8f1   : > { %v11171_v10 = vpop.f32.mrf.mxu2 }
 0x8f2   : > { %v22814_v50 = vadd.f32 %v11171_v10, %v11143_v34  ;;  %v11197_v34 = vpop.f32.mrf.mxu3  ;;  %v11229_v28 = vpop.f32.mrf.mxu0 }
 0x8f3   : > { %v11198_v42 = vadd.f32 %v11197_v34, %v11169_v11 }
 0x8f4   : > { %v11255_v41 = vpop.f32.mrf.mxu1 }
 0x8f5   : > { %v11227_v26 = vadd.f32 %v11226_v43, %v11198_v42 }
 0x8f7   : > { %v11256_v4 = vadd.f32 %v11255_v41, %v11227_v26 }
 0x8f9   : > { %v22826_v35 = vpop.f32.mrf.mxu2 }
 0x8fa   : > { %v11200_v10 = vpop.f32.mrf.mxu3  ;;  %v11174_v3 = vadd.f32 %v22826_v35, %v11145_v24 }
 0x8fb   : > { %v11201_v59 = vadd.f32 %v11200_v10, %v22814_v50  ;;  %v16119_v50 = vld [vmem:[%s22997_s9] sm:$0xff] }
 0x8fc   : > { %v11258_v15 = vpop.f32.mrf.mxu1  ;;  %11464 = vmatpush.bf16.msra.mxu3 %v16119_v50 }
 0x8fd   : > { %v11230_v27 = vadd.f32 %v11229_v28, %v11201_v59 }
 0x8ff   : > { %v11259_v35 = vadd.f32 %v11258_v15, %v11230_v27 }
 0x901   : > { %v11176_v37 = vpop.f32.mrf.mxu2 }
 0x902   : > { %v22831_v32 = vadd.f32 %v11176_v37, %v11148_v22  ;;  %v11202_v36 = vpop.f32.mrf.mxu3 }
 0x903   : > { %v11203_v29 = vadd.f32 %v11202_v36, %v11174_v3 }
 0x904   : > { %v11260_v55 = vpop.f32.mrf.mxu1 }
 0x909   : > { %v22834_v52 = vpop.f32.mrf.mxu2 }
 0x90c   : > { %v11263_v28 = vpop.f32.mrf.mxu1 }
 0x911   : > { %v11277_v21 = vpop.f32.mrf.mxu2 }
 0x912   : > { %v22843_v60 = vadd.f32 %v11277_v21, %v11249_v8 }
 0x914   : > { %v11297_v39 = vmin.f32 %v22843_v60, 20.0  ;;  %vm11361_vm0 = vcmp.gt.f32.partialorder %v22843_v60, 20.0 }
 0x916   : > { %v11305_v56 = vmul.f32 1.442695, %v11297_v39  ;;  %v11231_v39 = vpop.f32.mrf.mxu0 }
 0x917   : > { %v11232_v11 = vadd.f32 %v11231_v39, %v11203_v29 }
 0x918   : > { %16238 = vpow2.f32 %v11305_v56 }
 0x919   : > { %v11279_v58 = vpop.f32.mrf.mxu2  ;;  %v11261_v42 = vadd.f32 %v11260_v55, %v11232_v11 }
 0x91a   : > { %v22851_v61 = vadd.f32 %v11279_v58, %v11251_v40 }
 0x91c   : > { %v11298_v46 = vmin.f32 %v22851_v61, 20.0  ;;  %vm11362_vm5 = vcmp.gt.f32.partialorder %v22851_v61, 20.0 }
 0x91e   : > { %v16239_v22 = vpop.eup %16238  ;;  %v11307_v31 = vmul.f32 1.442695, %v11298_v46  ;;  %v11205_v46 = vpop.f32.mrf.mxu3 }
 0x91f   : > { %v11321_v53 = vadd.f32 2.0, %v16239_v22 }
 0x920   : > { %16240 = vpow2.f32 %v11307_v31 }
 0x921   : > { %v11329_v6 = vmul.f32 %v16239_v22, %v11321_v53  ;;  %v11282_v14 = vpop.f32.mrf.mxu2  ;;  %v11206_v22 = vadd.f32 %v11205_v46, %v22831_v32 }
 0x922   : > { %v22860_v17 = vadd.f32 %v11282_v14, %v11254_v9  ;;  %v11234_v9 = vpop.f32.mrf.mxu0 }
 0x923   : > { %v11337_v5 = vadd.f32 2.0, %v11329_v6  ;;  %v11235_v26 = vadd.f32 %v11234_v9, %v11206_v22 }
 0x924   : > { %v11299_v63 = vmin.f32 %v22860_v17, 20.0  ;;  %vm11363_vm6 = vcmp.gt.f32.partialorder %v22860_v17, 20.0 }
 0x925   : > { %16242 = vrcp.f32 %v11337_v5  ;;  %v11179_v5 = vadd.f32 %v22834_v52, %v11150_v45  ;;  %v11264_v62 = vadd.f32 %v11263_v28, %v11235_v26 }
 0x926   : > { %v16241_v37 = vpop.eup %16240  ;;  %v11309_v23 = vmul.f32 1.442695, %v11299_v63  ;;  %v11207_v0 = vpop.f32.mrf.mxu3 }
 0x927   : > { %v11322_v2 = vadd.f32 2.0, %v16241_v37  ;;  %v11208_v18 = vadd.f32 %v11207_v0, %v11179_v5 }
 0x928   : > { %16244 = vpow2.f32 %v11309_v23 }
 0x929   : > { %v11330_v19 = vmul.f32 %v16241_v37, %v11322_v2  ;;  %v11284_v12 = vpop.f32.mrf.mxu2 }
 0x92a   : > { %v22869_v30 = vadd.f32 %v11284_v12, %v11256_v4  ;;  %v11236_v12 = vpop.f32.mrf.mxu0 }
 0x92b   : > { %v11338_v49 = vadd.f32 2.0, %v11330_v19  ;;  %v16243_v54 = vpop.eup %16242  ;;  %v11237_v3 = vadd.f32 %v11236_v12, %v11208_v18 }
 0x92c   : > { %v11300_v8 = vmin.f32 %v22869_v30, 20.0  ;;  %v11353_v38 = vmul.f32 %v16243_v54, %v11329_v6  ;;  %v11265_v54 = vpop.f32.mrf.mxu1  ;;  %vm11364_vm10 = vcmp.gt.f32.partialorder %v22869_v30, 20.0 }
 0x92d   : > { %16246 = vrcp.f32 %v11338_v49  ;;  %v11266_v1 = vadd.f32 %v11265_v54, %v11237_v3 }
 0x92e   : > { %v16245_v21 = vpop.eup %16244  ;;  %v11311_v20 = vmul.f32 1.442695, %v11300_v8  ;;  %v11369_v43 = vmul.f32 %v11353_v38, %v22843_v60 }
 0x92f   : > { %v11323_v33 = vadd.f32 2.0, %v16245_v21 }
 0x930   : > { %16248 = vpow2.f32 %v11311_v20  ;;  %v11377_v41 = vsel %vm11361_vm0, %v22843_v60, %v11369_v43 }
 0x931   : > { %v11331_v56 = vmul.f32 %v16245_v21, %v11323_v33  ;;  %v11287_v34 = vpop.f32.mrf.mxu2 }
 0x932   : > { %v22879_v40 = vadd.f32 %v11287_v34, %v11259_v35 }
 0x933   : > { %v16247_v58 = vpop.eup %16246  ;;  %v11339_v48 = vadd.f32 2.0, %v11331_v56 }
 0x934   : > { %v11354_v51 = vmul.f32 %v16247_v58, %v11330_v19  ;;  %v11301_v47 = vmin.f32 %v22879_v40, 20.0  ;;  %vm11365_vm4 = vcmp.gt.f32.partialorder %v22879_v40, 20.0 }
 0x935   : > { %16250 = vrcp.f32 %v11339_v48 }
 0x936   : > { %v16249_v44 = vpop.eup %16248  ;;  %v11370_v31 = vmul.f32 %v11354_v51, %v22851_v61  ;;  %v11313_v57 = vmul.f32 1.442695, %v11301_v47 }
 0x937   : > { %v11324_v16 = vadd.f32 2.0, %v16249_v44 }
 0x938   : > { %v11378_v53 = vsel %vm11362_vm5, %v22851_v61, %v11370_v31  ;;  %16252 = vpow2.f32 %v11313_v57 }
 0x939   : > { %v11385_v10 = vpack.c.bf16 %v11378_v53, %v11377_v41  ;;  %v11332_v32 = vmul.f32 %v16249_v44, %v11324_v16  ;;  %v11289_v6 = vpop.f32.mrf.mxu2 }
 0x93a   : > { %v22891_v14 = vadd.f32 %v11289_v6, %v11261_v42 }
 0x93b   : > { %v11340_v13 = vadd.f32 2.0, %v11332_v32  ;;  %11465 = vmatmul.bf16.vlgmr.msra.gmra.mxu3 %v11385_v10  ;;  %v16251_v60 = vpop.eup %16250 }
 0x93c   : > { %v11302_v63 = vmin.f32 %v22891_v14, 20.0  ;;  %v11355_v2 = vmul.f32 %v16251_v60, %v11331_v56  ;;  %vm11366_vm9 = vcmp.gt.f32.partialorder %v22891_v14, 20.0 }
 0x93d   : > { %16254 = vrcp.f32 %v11340_v13 }
 0x93e   : > { %v16253_v61 = vpop.eup %16252  ;;  %v11315_v37 = vmul.f32 1.442695, %v11302_v63  ;;  %v11371_v24 = vmul.f32 %v11355_v2, %v22860_v17 }
 0x93f   : > { %v11325_v23 = vadd.f32 2.0, %v16253_v61 }
 0x940   : > { %16256 = vpow2.f32 %v11315_v37  ;;  %v11379_v20 = vsel %vm11363_vm6, %v22860_v17, %v11371_v24 }
 0x941   : > { %v11333_v59 = vmul.f32 %v16253_v61, %v11325_v23  ;;  %v11292_v4 = vpop.f32.mrf.mxu2 }
 0x942   : > { %v11293_v15 = vadd.f32 %v11292_v4, %v11264_v62 }
 0x943   : > { %v16255_v19 = vpop.eup %16254  ;;  %v11341_v52 = vadd.f32 2.0, %v11333_v59 }
 0x944   : > { %v11356_v36 = vmul.f32 %v16255_v19, %v11332_v32  ;;  %v11303_v49 = vmin.f32 %v11293_v15, 20.0  ;;  %vm11367_vm13 = vcmp.gt.f32.partialorder %v11293_v15, 20.0 }
 0x945   : > { %16258 = vrcp.f32 %v11341_v52 }
 0x946   : > { %v16257_v8 = vpop.eup %16256  ;;  %v11372_v27 = vmul.f32 %v11356_v36, %v22869_v30  ;;  %v11317_v50 = vmul.f32 1.442695, %v11303_v49 }
 0x947   : > { %v11326_v21 = vadd.f32 2.0, %v16257_v8 }
 0x948   : > { %16260 = vpow2.f32 %v11317_v50  ;;  %v11380_v39 = vsel %vm11364_vm10, %v22869_v30, %v11372_v27 }
 0x949   : > { %v11334_v33 = vmul.f32 %v16257_v8, %v11326_v21  ;;  %v11294_v29 = vpop.f32.mrf.mxu2  ;;  %v11386_v38 = vpack.c.bf16 %v11380_v39, %v11379_v20 }
 0x94a   : > { %v11295_v35 = vadd.f32 %v11294_v29, %v11266_v1 }
 0x94b   : > { %v11342_v56 = vadd.f32 2.0, %v11334_v33  ;;  %11470 = vmatmul.bf16.gmra.mxu3 %v11386_v38  ;;  %v16259_v25 = vpop.eup %16258 }
 0x94c   : > { %v11304_v34 = vmin.f32 %v11295_v35, 20.0  ;;  %v11357_v43 = vmul.f32 %v16259_v25, %v11333_v59  ;;  %vm11368_vm11 = vcmp.gt.f32.partialorder %v11295_v35, 20.0 }
 0x94d   : > { %16262 = vrcp.f32 %v11342_v56 }
 0x94e   : > { %v16261_v58 = vpop.eup %16260  ;;  %v11319_v55 = vmul.f32 1.442695, %v11304_v34  ;;  %v11373_v17 = vmul.f32 %v11357_v43, %v22879_v40 }
 0x94f   : > { %v11327_v48 = vadd.f32 2.0, %v16261_v58 }
 0x950   : > { %16264 = vpow2.f32 %v11319_v55  ;;  %v11381_v7 = vsel %vm11365_vm4, %v22879_v40, %v11373_v17  ;;  %v22910_v40 = vld [vmem:[%s22998_s10] ss:$0 sm:$0xff] }
 0x951   : > { %v11335_v51 = vmul.f32 %v16261_v58, %v11327_v48 }
 0x953   : > { %v16263_v47 = vpop.eup %16262  ;;  %v11343_v11 = vadd.f32 2.0, %v11335_v51 }
 0x954   : > { %v11358_v30 = vmul.f32 %v16263_v47, %v11334_v33 }
 0x955   : > { %16266 = vrcp.f32 %v11343_v11 }
 0x956   : > { %v16265_v46 = vpop.eup %16264  ;;  %v11374_v44 = vmul.f32 %v11358_v30, %v22891_v14 }
 0x957   : > { %v11328_v22 = vadd.f32 2.0, %v16265_v46 }
 0x958   : > { %v11382_v31 = vsel %vm11366_vm9, %v22891_v14, %v11374_v44 }
 0x959   : > { %v11336_v57 = vmul.f32 %v16265_v46, %v11328_v22  ;;  %v11387_v16 = vpack.c.bf16 %v11382_v31, %v11381_v7 }
 0x95b   : > { %v11344_v41 = vadd.f32 2.0, %v11336_v57  ;;  %11475 = vmatmul.bf16.gmra.mxu3 %v11387_v16  ;;  %v16267_v53 = vpop.eup %16266 }
 0x95c   : > { %v11359_v42 = vmul.f32 %v16267_v53, %v11335_v51 }
 0x95d   : > { %16268 = vrcp.f32 %v11344_v41 }
 0x95e   : > { %v11375_v10 = vmul.f32 %v11359_v42, %v11293_v15 }
 0x960   : > { %v11383_v45 = vsel %vm11367_vm13, %v11293_v15, %v11375_v10 }
 0x963   : > { %v16269_v9 = vpop.eup %16268 }
 0x964   : > { %v11360_v32 = vmul.f32 %v16269_v9, %v11336_v57 }
 0x966   : > { %v11376_v6 = vmul.f32 %v11360_v32, %v11295_v35 }
 0x968   : > { %v11384_v13 = vsel %vm11368_vm11, %v11295_v35, %v11376_v6 }
 0x969   : > { %v11388_v5 = vpack.c.bf16 %v11384_v13, %v11383_v45 }
 0x96b   : > { %11480 = vmatmul.bf16.gmra.mxu3 %v11388_v5 }
 0x9be   : > { %v11466_v14 = vpop.f32.mrf.mxu3 }
 0x9bf   : > { %v22913_v63 = vadd.f32 %v22910_v40, %v11466_v14 }
 0x9c1   : > { %v11486_v26 = vmax.f32 %v22913_v63, -60.0 }
 0x9c3   : > { %v11494_v60 = vsub.f32 0.0, %v11486_v26 }
 0x9c5   : > { %v11502_v28 = vmul.f32 1.442695, %v11494_v60 }
 0x9c6   : > { %v11468_v61 = vpop.f32.mrf.mxu3 }
 0x9c7   : > { %16270 = vpow2.f32 %v11502_v28  ;;  %v22917_v37 = vadd.f32 %v22910_v40, %v11468_v61 }
 0x9c9   : > { %v11487_v0 = vmax.f32 %v22917_v37, -60.0 }
 0x9cb   : > { %v11495_v23 = vsub.f32 0.0, %v11487_v0 }
 0x9cd   : > { %v16271_v18 = vpop.eup %16270  ;;  %v11504_v2 = vmul.f32 1.442695, %v11495_v23 }
 0x9ce   : > { %v11518_v62 = vadd.f32 1.0, %v16271_v18  ;;  %v11471_v59 = vpop.f32.mrf.mxu3 }
 0x9cf   : > { %16272 = vpow2.f32 %v11504_v2  ;;  %v22921_v4 = vadd.f32 %v22910_v40, %v11471_v59 }
 0x9d0   : > { %16274 = vrcp.f32 %v11518_v62 }
 0x9d1   : > { %v11488_v15 = vmax.f32 %v22921_v4, -60.0 }
 0x9d3   : > { %v11496_v19 = vsub.f32 0.0, %v11488_v15 }
 0x9d5   : > { %v16273_v12 = vpop.eup %16272  ;;  %v11506_v52 = vmul.f32 1.442695, %v11496_v19 }
 0x9d6   : > { %v22924_v24 = vpop.eup %16274  ;;  %v11519_v36 = vadd.f32 1.0, %v16273_v12  ;;  %v11473_v49 = vpop.f32.mrf.mxu3 }
 0x9d7   : > { %16276 = vpow2.f32 %v11506_v52  ;;  %v22927_v3 = vadd.f32 %v22910_v40, %v11473_v49  ;;  %11542 = vrot.lane.b32.xlu0 %v22924_v24, %s16314_s19  ;;  %v11597_v13 = vsel %vm11596_vm14, %v22924_v24, 0.0 }
 0x9d8   : > { %16278 = vrcp.f32 %v11519_v36 }
 0x9d9   : > { %v11489_v8 = vmax.f32 %v22927_v3, -60.0 }
 0x9db   : > { %v11497_v27 = vsub.f32 0.0, %v11489_v8 }
 0x9dd   : > { %v16277_v50 = vpop.eup %16276  ;;  %v11508_v54 = vmul.f32 1.442695, %v11497_v27 }
 0x9de   : > { %v16279_v21 = vpop.eup %16278  ;;  %v11520_v1 = vadd.f32 1.0, %v16277_v50  ;;  %v11476_v20 = vpop.f32.mrf.mxu3 }
 0x9df   : > { %16280 = vpow2.f32 %v11508_v54  ;;  %v22933_v39 = vadd.f32 %v22910_v40, %v11476_v20  ;;  %11544 = vrot.lane.b32.xlu0 %v16279_v21, %s16314_s19  ;;  %v11598_v45 = vsel %vm11596_vm14, %v16279_v21, 0.0 }
 0x9e0   : > { %16282 = vrcp.f32 %v11520_v1 }
 0x9e1   : > { %v11490_v33 = vmax.f32 %v22933_v39, -60.0 }
 0x9e3   : > { %v11498_v29 = vsub.f32 0.0, %v11490_v33 }
 0x9e5   : > { %v16281_v38 = vpop.eup %16280  ;;  %v11510_v35 = vmul.f32 1.442695, %v11498_v29  ;;  %v16315_v29 = vmov 0  }
 0x9e6   : > { %v16283_v56 = vpop.eup %16282  ;;  %v11521_v34 = vadd.f32 1.0, %v16281_v38  ;;  %v11478_v25 = vpop.f32.mrf.mxu3  ;;  %16137 = vset.pattern.permute.xlu0 %v16315_v29 }
 0x9e7   : > { %16284 = vpow2.f32 %v11510_v35  ;;  %v22938_v58 = vadd.f32 %v22910_v40, %v11478_v25  ;;  %11546 = vrot.lane.b32.xlu1 %v16283_v56, %s16314_s19  ;;  %v11600_v5 = vsel %vm11596_vm14, %v16283_v56, 0.0 }
 0x9e8   : > { %16286 = vrcp.f32 %v11521_v34 }
 0x9e9   : > { %v11491_v55 = vmax.f32 %v22938_v58, -60.0 }
 0x9eb   : > { %v11499_v48 = vsub.f32 0.0, %v11491_v55 }
 0x9ed   : > { %v16285_v43 = vpop.eup %16284  ;;  %v11512_v51 = vmul.f32 1.442695, %v11499_v48 }
 0x9ee   : > { %v16287_v47 = vpop.eup %16286  ;;  %v11522_v11 = vadd.f32 1.0, %v16285_v43  ;;  %v11481_v17 = vpop.f32.mrf.mxu3 }
 0x9ef   : > { %16288 = vpow2.f32 %v11512_v51  ;;  %v22943_v30 = vadd.f32 %v22910_v40, %v11481_v17  ;;  %11548 = vrot.lane.b32.xlu1 %v16287_v47, %s16314_s19  ;;  %v11602_v26 = vsel %vm11596_vm14, %v16287_v47, 0.0 }
 0x9f0   : > { %16290 = vrcp.f32 %v11522_v11 }
 0x9f1   : > { %v11492_v46 = vmax.f32 %v22943_v30, -60.0 }
 0x9f3   : > { %v11500_v44 = vsub.f32 0.0, %v11492_v46 }
 0x9f5   : > { %v16289_v22 = vpop.eup %16288  ;;  %v11514_v7 = vmul.f32 1.442695, %v11500_v44 }
 0x9f6   : > { %v16291_v31 = vpop.eup %16290  ;;  %v11523_v57 = vadd.f32 1.0, %v16289_v22  ;;  %v11483_v16 = vpop.f32.mrf.mxu3 }
 0x9f7   : > { %16292 = vpow2.f32 %v11514_v7  ;;  %v22948_v41 = vadd.f32 %v22910_v40, %v11483_v16  ;;  %11550 = vrot.lane.b32.xlu2 %v16291_v31, %s16314_s19  ;;  %v11599_v40 = vadd.f32 %v11598_v45, %v11597_v13  ;;  %v11604_v0 = vsel %vm11596_vm14, %v16291_v31, 0.0 }
 0x9f8   : > { %16294 = vrcp.f32 %v11523_v57 }
 0x9f9   : > { %v11493_v53 = vmax.f32 %v22948_v41, -60.0  ;;  %v11601_v28 = vadd.f32 %v11600_v5, %v11599_v40 }
 0x9fb   : > { %v11501_v42 = vsub.f32 0.0, %v11493_v53  ;;  %v11603_v23 = vadd.f32 %v11602_v26, %v11601_v28 }
 0x9fd   : > { %v16293_v9 = vpop.eup %16292  ;;  %v11516_v10 = vmul.f32 1.442695, %v11501_v42  ;;  %v11605_v2 = vadd.f32 %v11604_v0, %v11603_v23 }
 0x9fe   : > { %v16295_v32 = vpop.eup %16294  ;;  %v11524_v6 = vadd.f32 1.0, %v16293_v9 }
 0x9ff   : > { %16296 = vpow2.f32 %v11516_v10  ;;  %11552 = vrot.lane.b32.xlu2 %v16295_v32, %s16314_s19  ;;  %v11606_v18 = vsel %vm11596_vm14, %v16295_v32, 0.0 }
 0xa00   : > { %16298 = vrcp.f32 %v11524_v6  ;;  %v11607_v59 = vadd.f32 %v11606_v18, %v11605_v2 }
 0xa05   : > { %v16297_v14 = vpop.eup %16296 }
 0xa06   : > { %v16299_v60 = vpop.eup %16298  ;;  %v11525_v61 = vadd.f32 1.0, %v16297_v14 }
 0xa07   : > { %11554 = vrot.lane.b32.xlu0 %v16299_v60, %s16314_s19  ;;  %v11608_v62 = vsel %vm11596_vm14, %v16299_v60, 0.0 }
 0xa08   : > { %16300 = vrcp.f32 %v11525_v61  ;;  %v11609_v19 = vadd.f32 %v11608_v62, %v11607_v59 }
 0xa0e   : > { %v16301_v15 = vpop.eup %16300 }
 0xa0f   : > { %v11610_v12 = vsel %vm11596_vm14, %v16301_v15, 0.0  ;;  %11556 = vrot.lane.b32.xlu1 %v16301_v15, %s16314_s19 }
 0xa10   : > { %v11611_v52 = vadd.f32 %v11610_v12, %v11609_v19 }
 0xa12   : > { %v11612_v24 = vrot.slane %v11611_v52, 4 }
 0xa14   : > { %v11613_v36 = vadd.f32 %v11612_v24, %v11611_v52 }
 0xa16   : > { %v11614_v49 = vrot.slane %v11613_v36, 2 }
 0xa18   : > { %v11615_v8 = vadd.f32 %v11614_v49, %v11613_v36 }
 0xa1a   : > { %v11616_v27 = vrot.slane %v11615_v8, 1 }
 0xa1c   : > { %v11617_v50 = vadd.f32 %v11616_v27, %v11615_v8 }
 0xa1e   : > { %16302 = vrcp.f32 %v11617_v50 }
 0xa24   : > { %v16303_v54 = vpop.eup %16302 }
 0xa25   : > { %11620 = vrot.lane.b32.xlu2 %v16303_v54, %s16314_s19 }
 0xa49   : > { %v11543_v21 = vpop.permute.xlu0 %11542 }
 0xa4a   : > { %v11566_v56 = vmul.f32 %v11543_v21, %v22913_v63 }
 0xa4c   : > { %v11575_v48 = vsel %vm11574_vm15, %v11566_v56, 0.0 }
 0xa51   : > { %v11545_v20 = vpop.permute.xlu0 %11544  ;;  %v11551_v38 = vpop.permute.xlu2 %11550 }
 0xa52   : > { %v11567_v33 = vmul.f32 %v11545_v20, %v22917_v37  ;;  %v11570_v11 = vmul.f32 %v11551_v38, %v22933_v39 }
 0xa54   : > { %v11576_v25 = vsel %vm11574_vm15, %v11567_v33, 0.0 }
 0xa55   : > { %v11577_v51 = vadd.f32 %v11576_v25, %v11575_v48 }
 0xa59   : > { %v11547_v1 = vpop.permute.xlu1 %11546  ;;  %v11553_v17 = vpop.permute.xlu2 %11552 }
 0xa5a   : > { %v11568_v34 = vmul.f32 %v11547_v1, %v22921_v4  ;;  %v11582_v4 = vsel %vm11574_vm15, %v11570_v11, 0.0  ;;  %v11571_v44 = vmul.f32 %v11553_v17, %v22938_v58 }
 0xa5c   : > { %v11578_v43 = vsel %vm11574_vm15, %v11568_v34, 0.0  ;;  %v11584_v7 = vsel %vm11574_vm15, %v11571_v44, 0.0 }
 0xa5d   : > { %v11579_v47 = vadd.f32 %v11578_v43, %v11577_v51 }
 0xa61   : > { %v11549_v35 = vpop.permute.xlu1 %11548 }
 0xa62   : > { %v11569_v55 = vmul.f32 %v11549_v35, %v22927_v3 }
 0xa64   : > { %v11580_v37 = vsel %vm11574_vm15, %v11569_v55, 0.0 }
 0xa65   : > { %v11581_v46 = vadd.f32 %v11580_v37, %v11579_v47 }
 0xa67   : > { %v11583_v3 = vadd.f32 %v11582_v4, %v11581_v46 }
 0xa69   : > { %v11585_v57 = vadd.f32 %v11584_v7, %v11583_v3 }
 0xa79   : > { %v11555_v63 = vpop.permute.xlu0 %11554 }
 0xa7a   : > { %v11572_v22 = vmul.f32 %v11555_v63, %v22943_v30 }
 0xa7c   : > { %v11586_v31 = vsel %vm11574_vm15, %v11572_v22, 0.0 }
 0xa7d   : > { %v11587_v39 = vadd.f32 %v11586_v31, %v11585_v57 }
 0xa7f   : > { %v11621_v13 = vpop.permute.xlu2 %11620 }
 0xa81   : > { %v11557_v16 = vpop.permute.xlu1 %11556 }
 0xa82   : > { %v11573_v53 = vmul.f32 %v11557_v16, %v22948_v41 }
 0xa84   : > { %v11588_v42 = vsel %vm11574_vm15, %v11573_v53, 0.0 }
 0xa85   : > { %v11589_v9 = vadd.f32 %v11588_v42, %v11587_v39 }
 0xa87   : > { %v11590_v10 = vrot.slane %v11589_v9, 4 }
 0xa89   : > { %v11591_v32 = vadd.f32 %v11590_v10, %v11589_v9 }
 0xa8b   : > { %v11592_v6 = vrot.slane %v11591_v32, 2 }
 0xa8d   : > { %v11593_v58 = vadd.f32 %v11592_v6, %v11591_v32 }
 0xa8f   : > { %v11594_v45 = vrot.slane %v11593_v58, 1 }
 0xa91   : > { %v11595_v30 = vadd.f32 %v11594_v45, %v11593_v58 }
 0xa93   : > { %v11623_v5 = vmul.f32 %v11621_v13, %v11595_v30 }
 0xa95   : > { %11626 = vperm.xlu0 %16137, %v11623_v5  }
 0xb07   : > { %v11627_v40 = vpop.permute.xlu0 %11626 }
 0xb08   : > { %11629 = vst [vmem:[%s382_s22] sm:$0x1] %v11627_v40 }
 0xb09 PF: > { %s21_s17 = sadd.s32 1, %s16312_s17  }
 0xb0a   : > { %p18_p4 = scmp.ge.s32.totalorder %s21_s17, 4  }
 0xb0c   :  { %20 = sbr.rel (!%p18_p4) target bundleno = 1 (0x1), region = 94 }

</bundles_post_ra>
